<compile_context>
chip_gen: v6e
topology: v6e:2x2x1
jax: 0.10.0
libtpu: 0.0.40
codegen_flags: <defaults>
</compile_context>

<pallas_src>
import jax
import jax.numpy as jnp
from jax import lax
from jax.experimental import pallas as pl
from jax.experimental.pallas import tpu as pltpu

# ---- hyperparameters (small, consistent with the module's forward) ----
VOCAB = 50
IN_DIM = 64            # embedding / LSTM input dim
MEM_DIM = 100          # LSTM hidden per direction (module hardcodes .view(2, 100))
HP = 128               # padded hidden (lane aligned)
D = 2 * MEM_DIM        # sentence encoding dim = 200
DP = 2 * HP            # padded sentence encoding dim = 256
HIDDEN = 50            # Similarity hidden_dim
HIDDENP = 128          # padded Similarity hidden
MAX_WORD = 8           # max_num_word  (= T)
MAX_SENT = 8           # max_num_sent  (= S)
MAX_PARA = 2
NUM_FILTER = 10
WINDOW_SIZES = (1, 2, 3, 4, 5, 6, 7)
MAXW = max(WINDOW_SIZES)
NF_TOT = len(WINDOW_SIZES) * NUM_FILTER        # 70
LMAX = MAX_SENT + MAXW - 1                     # 14 (longest conv output)
BP = 8                 # sentence batch padded to a sublane multiple (head + <=7 body)
NEG = -1e30

BF = jnp.bfloat16
F32 = jnp.float32


# --------------------------------------------------------------------------
# Fused kernel: whole forward pass, everything resident in VMEM.
# --------------------------------------------------------------------------
def build_fused_kernel(n_body):
    T, S = MAX_WORD, MAX_SENT

    def kernel(x_ref, wihf_ref, whhf_ref, bf_ref, wihb_ref, whhb_ref, bb_ref,
               wq_ref, bq_ref, wk_ref, bk_ref, wv_ref, bv_ref, wc_ref, bc_ref,
               wm_ref, bm_ref, filt_ref, cmask_ref,
               sh_head_ref, sh_body_ref, sh_diff_ref, sh_ang_ref, sh_conv_ref,
               bh_ref, wp_ref, bp_ref, out_ref):
        # ---------------- BiLSTM over BP padded sentences --------------------
        # Hoisted input projections: one well-shaped matmul per direction.
        x = x_ref[...].astype(BF)                                        # (T*BP, E)
        gx_f = jnp.dot(x, wihf_ref[...], preferred_element_type=F32) + bf_ref[...]
        gx_b = jnp.dot(x, wihb_ref[...], preferred_element_type=F32) + bb_ref[...]
        whhf = whhf_ref[...]
        whhb = whhb_ref[...]

        def gates(g, c_prev):
            # 128-lane aligned gate slices (PyTorch order i, f, g, o)
            i = jax.nn.sigmoid(g[:, 0 * HP:1 * HP])
            f = jax.nn.sigmoid(g[:, 1 * HP:2 * HP])
            gg = jnp.tanh(g[:, 2 * HP:3 * HP])
            o = jax.nn.sigmoid(g[:, 3 * HP:4 * HP])
            c = f * c_prev + i * gg
            return o * jnp.tanh(c), c

        h_f = jnp.zeros((BP, HP), F32); c_f = h_f
        h_b = jnp.zeros((BP, HP), F32); c_b = h_b
        for t in range(T):  # static unroll (T=8): both directions visible per step
            g_f = gx_f[t * BP:(t + 1) * BP, :] + jnp.dot(
                h_f.astype(BF), whhf, preferred_element_type=F32)
            g_b = gx_b[(T - 1 - t) * BP:(T - t) * BP, :] + jnp.dot(
                h_b.astype(BF), whhb, preferred_element_type=F32)
            h_f, c_f = gates(g_f, c_f)
            h_b, c_b = gates(g_b, c_b)

        sent_h = jnp.concatenate([h_f, h_b], axis=1)                     # (BP, DP)
        bi_head = sent_h[0:1, :]                                         # Bi_Head_h (1, DP)
        if n_body < S:
            sent_enc = jnp.concatenate(
                [sent_h[1:1 + n_body, :], jnp.zeros((S - n_body, DP), F32)], axis=0)
        else:
            sent_enc = sent_h[1:1 + S, :]
        se = sent_enc.astype(BF)                                         # (S, DP)

        # ------------- single-head self attention (indicator == 1) -----------
        # 1/sqrt(200) scale is folded into wq/bq on the host.
        q = jnp.dot(se, wq_ref[...], preferred_element_type=F32) + bq_ref[...]
        k = jnp.dot(se, wk_ref[...], preferred_element_type=F32) + bk_ref[...]
        v = jnp.dot(se, wv_ref[...], preferred_element_type=F32) + bv_ref[...]
        sim = lax.dot_general(q.astype(BF), k.astype(BF),
                              (((1,), (1,)), ((), ())),
                              preferred_element_type=F32)                # Q @ K^T (S, S)
        # torch.softmax(..., dim=0): normalize over rows (each column sums to 1)
        m = jnp.max(sim, axis=0, keepdims=True)
        e = jnp.exp(sim - m)
        attw = e * pl.reciprocal(jnp.sum(e, axis=0, keepdims=True), approx=True)
        att_out = jnp.dot(attw.astype(BF), v.astype(BF),
                          preferred_element_type=F32)                    # (S, DP)

        # concnate_head_output (att_head == 1) + flatten + multihead_to_feature_map
        hc = jnp.dot(att_out.astype(BF), wc_ref[...],
                     preferred_element_type=F32) + bc_ref[...]           # (S, DP)
        # lane-aligned flatten: (S, DP) -> (1, S*DP), then ONE K=2048 matmul
        flat = jnp.concatenate([hc[s:s + 1, :] for s in range(S)], axis=1)
        body_feat = jnp.dot(flat.astype(BF), wm_ref[...],
                            preferred_element_type=F32) + bm_ref[...]    # (1, DP)

        # -------- 7 window convolutions (tap-repacked) + global max pool -----
        zpad = jnp.zeros((MAXW - 1, DP), BF)
        xp = jnp.concatenate([zpad, se, zpad], axis=0)                   # (S+2*(MAXW-1), DP)
        acc = cmask_ref[...]   # per-window bias where position valid, -1e30 elsewhere
        for j in range(MAXW):  # 7 matmuls, 70 output lanes each
            acc = acc + jnp.dot(xp[j:j + LMAX, :], filt_ref[j],
                                preferred_element_type=F32)              # (LMAX, 70)
        pooled = jnp.max(acc, axis=0, keepdims=True)                     # (1, 70)

        # ------------------ Similarity head (wh split in blocks) -------------
        head_v = bi_head                                                 # head = Bi_Head_h
        body_v = body_feat                                               # body = high_sent_feature
        diff = jnp.abs(body_v - head_v)
        ang = body_v * head_v
        hsum = (jnp.dot(head_v, sh_head_ref[...], preferred_element_type=F32)
                + jnp.dot(body_v, sh_body_ref[...], preferred_element_type=F32)
                + jnp.dot(diff, sh_diff_ref[...], preferred_element_type=F32)
                + jnp.dot(ang, sh_ang_ref[...], preferred_element_type=F32)
                + jnp.dot(pooled, sh_conv_ref[...], preferred_element_type=F32)
                + bh_ref[...])
        h = jax.nn.sigmoid(hsum)                                         # (1, HIDDENP)
        out_ref[...] = jnp.dot(h, wp_ref[...], preferred_element_type=F32) + bp_ref[...]

    return kernel


def run_fused(n_body, *arrays):
    kernel = build_fused_kernel(n_body)
    return pl.pallas_call(
        kernel,
        out_shape=jax.ShapeDtypeStruct((1, 2), jnp.float32),
        in_specs=[pl.BlockSpec(memory_space=pltpu.MemorySpace.VMEM)] * len(arrays),
        out_specs=pl.BlockSpec(memory_space=pltpu.MemorySpace.VMEM),
    )(*arrays)


# --------------------------------------------------------------------------
# Host-side packing helpers (padding is zero-filled -> math is exact).
# --------------------------------------------------------------------------
def pad_d_axis(a, axis):
    """Pad a 200-wide (2*MEM_DIM) axis to 256: [0:100]->[0:100], [100:200]->[128:228]."""
    i0 = [slice(None)] * a.ndim; i0[axis] = slice(0, MEM_DIM)
    i1 = [slice(None)] * a.ndim; i1[axis] = slice(MEM_DIM, 2 * MEM_DIM)
    zshape = list(a.shape); zshape[axis] = HP - MEM_DIM
    z = jnp.zeros(zshape, a.dtype)
    return jnp.concatenate([a[tuple(i0)], z, a[tuple(i1)], z], axis=axis)


def pad_gate_cols(a):
    """Pad (..., 4*MEM_DIM) gate axis to (..., 4*HP); each i/f/g/o block 128-aligned."""
    z = jnp.zeros(a.shape[:-1] + (HP - MEM_DIM,), a.dtype)
    parts = []
    for g in range(4):
        parts += [a[..., g * MEM_DIM:(g + 1) * MEM_DIM], z]
    return jnp.concatenate(parts, axis=-1)


def pad_last_to(a, n):
    return jnp.concatenate(
        [a, jnp.zeros(a.shape[:-1] + (n - a.shape[-1],), a.dtype)], axis=-1)


# TODO(synk): the ragged document-dict traversal + per-word embedding gather has no
# clean Pallas equivalent; it stays in plain JAX (host) as in the PyTorch module.
def embed_sentence(emb, word_pad, ids):
    L = ids.shape[0]
    rows = jnp.take(emb, ids, axis=0)                       # (L, IN_DIM)
    if L < MAX_WORD:
        rows = jnp.concatenate(
            [rows, jnp.tile(word_pad, (MAX_WORD - L, 1))], axis=0)
    return rows[:MAX_WORD]


if __name__ == "__main__":
    key = jax.random.PRNGKey(0)
    keys = jax.random.split(key, 64)
    _ki = iter(keys)

    def nrm(shape, scale=0.1):
        return (scale * jax.random.normal(next(_ki), shape)).astype(jnp.float32)

    # nn.Embedding(vocab, in_dim, padding_idx=PAD=0)
    emb = nrm((VOCAB, IN_DIM), 1.0).at[0].set(0.0)
    word_pad = nrm((1, IN_DIM), 1.0)                        # torch.randn(1, in_dim)

    # ---- bidirectional nn.LSTM(in_dim, mem_dim, 1)  (PyTorch layout, gates i,f,g,o) ----
    H4 = 4 * MEM_DIM
    w_ih_f = nrm((H4, IN_DIM)); w_hh_f = nrm((H4, MEM_DIM))
    b_ih_f = nrm((H4,));        b_hh_f = nrm((H4,))
    w_ih_b = nrm((H4, IN_DIM)); w_hh_b = nrm((H4, MEM_DIM))
    b_ih_b = nrm((H4,));        b_hh_b = nrm((H4,))

    def pack_lstm(w_ih, w_hh, b_ih, b_hh):
        wih = pad_gate_cols(w_ih.T).astype(BF)                                   # (E, 4HP)
        whh_rows = jnp.concatenate(
            [w_hh.T, jnp.zeros((HP - MEM_DIM, H4), F32)], axis=0)
        whh = pad_gate_cols(whh_rows).astype(BF)                                 # (HP, 4HP)
        b = pad_gate_cols((b_ih + b_hh)[None, :])                                # (1, 4HP)
        return wih, whh, b

    wihf_p, whhf_p, bf_p = pack_lstm(w_ih_f, w_hh_f, b_ih_f, b_hh_f)
    wihb_p, whhb_p, bb_p = pack_lstm(w_ih_b, w_hh_b, b_ih_b, b_hh_b)

    # ---- SingleHead_Self_Attention + concnate_head_output + multihead_to_feature_map ----
    wq = nrm((D, D)); bq = nrm((D,))
    wk = nrm((D, D)); bk = nrm((D,))
    wv = nrm((D, D)); bv = nrm((D,))
    wc = nrm((D, D)); bc = nrm((D,))
    wm = nrm((D, MAX_SENT * D)); bm = nrm((D,))

    scale = 1.0 / (float(D) ** 0.5)                         # folded into Wq / bq

    def pack_lin(w, b, s=1.0):
        wpk = pad_d_axis(pad_d_axis(w.T * s, 0), 1).astype(BF)       # (DP, DP)
        bpk = pad_d_axis(b[None, :] * s, 1)                           # (1, DP) f32
        return wpk, bpk

    wq_p, bq_p = pack_lin(wq, bq, scale)
    wk_p, bk_p = pack_lin(wk, bk)
    wv_p, bv_p = pack_lin(wv, bv)
    wc_p, bc_p = pack_lin(wc, bc)

    # multihead_to_feature_map: Linear(max_num_sent*2*mem_dim, 2*mem_dim)
    wm_3 = wm.T.reshape(MAX_SENT, D, D)                     # [s, d, j]
    wm_3 = pad_d_axis(pad_d_axis(wm_3, 1), 2)               # (S, DP, DP)
    wm_p = wm_3.reshape(MAX_SENT * DP, DP).astype(BF)       # flat(hc) @ wm_p
    bm_p = pad_d_axis(bm[None, :], 1)                       # (1, DP)

    # ---- conv stack: nn.Conv2d(1, 10, [w, 200], padding=(w-1, 0)), repacked by tap ----
    filt2 = jnp.zeros((MAXW, DP, NF_TOT), F32)
    cmaskb = jnp.full((LMAX, NF_TOT), NEG, F32)             # -1e30 on invalid positions
    for wi, w in enumerate(WINDOW_SIZES):
        cw = nrm((NUM_FILTER, 1, w, D))                     # torch conv weight layout
        cb = nrm((NUM_FILTER,))
        for kk in range(w):
            tap = pad_d_axis(cw[:, 0, kk, :].T, 0)          # (DP, NUM_FILTER)
            filt2 = filt2.at[MAXW - w + kk, :,
                             wi * NUM_FILTER:(wi + 1) * NUM_FILTER].set(tap)
        Lw = MAX_SENT + w - 1                               # conv output length for window w
        cmaskb = cmaskb.at[:Lw, wi * NUM_FILTER:(wi + 1) * NUM_FILTER].set(
            jnp.broadcast_to(cb, (Lw, NUM_FILTER)))         # bias folded into the mask
    filt2 = filt2.astype(BF)

    # ---- Similarity: wh = Linear(8*mem_dim + 70, hidden_dim), wp = Linear(hidden, 2) ----
    wh = nrm((HIDDEN, 8 * MEM_DIM + 70)); bh = nrm((HIDDEN,))
    wpw = nrm((2, HIDDEN));               bpb = nrm((2,))
    wh_x = wh.T                                             # (870, HIDDEN)
    sh_head_p = pad_last_to(pad_d_axis(wh_x[0:D], 0), HIDDENP)           # rows for head
    sh_body_p = pad_last_to(pad_d_axis(wh_x[D:2 * D], 0), HIDDENP)       # rows for body
    sh_diff_p = pad_last_to(pad_d_axis(wh_x[2 * D:3 * D], 0), HIDDENP)   # rows for |b-h|
    sh_ang_p = pad_last_to(pad_d_axis(wh_x[3 * D:4 * D], 0), HIDDENP)    # rows for b*h
    sh_conv_p = pad_last_to(wh_x[4 * D:4 * D + NF_TOT], HIDDENP)         # rows for conv
    bh_p = pad_last_to(bh[None, :], HIDDENP)
    wp_p = jnp.concatenate([wpw.T, jnp.zeros((HIDDENP - HIDDEN, 2), F32)], axis=0)
    bp_p = bpb[None, :]

    # ---- synthetic document: headline + 2 paragraphs x 2 sentences (<= max_num_para) ----
    head_len = 6
    body_lens = [5, 7, 8, 4]
    rsent = jax.random.randint(next(_ki), (head_len,), 1, VOCAB)
    body_sents = [jax.random.randint(next(_ki), (L,), 1, VOCAB) for L in body_lens]
    n_body = len(body_sents)

    all_sents = [rsent] + body_sents                        # head first, then body sentences
    seqs = jnp.stack([embed_sentence(emb, word_pad, s) for s in all_sents], axis=0)
    B = seqs.shape[0]
    seqs = jnp.concatenate(
        [seqs, jnp.zeros((BP - B, MAX_WORD, IN_DIM), F32)], axis=0)      # pad batch to BP
    x_flat = jnp.transpose(seqs, (1, 0, 2)).reshape(MAX_WORD * BP, IN_DIM)  # time-major

    out = run_fused(
        n_body, x_flat,
        wihf_p, whhf_p, bf_p, wihb_p, whhb_p, bb_p,
        wq_p, bq_p, wk_p, bk_p, wv_p, bv_p, wc_p, bc_p, wm_p, bm_p,
        filt2, cmaskb,
        sh_head_p, sh_body_p, sh_diff_p, sh_ang_p, sh_conv_p, bh_p, wp_p, bp_p)

    out = jax.block_until_ready(out)
    assert out.shape == (1, 2) and bool(jnp.all(jnp.isfinite(out)))
    print("KERNEL_OK")
</pallas_src>

<mosaic_0001>
module attributes {stable_mosaic.version = 11 : i64} {
  func.func @kernel(%arg0: memref<64x64xf32, #tpu.memory_space<vmem>>, %arg1: memref<64x512xbf16, #tpu.memory_space<vmem>>, %arg2: memref<128x512xbf16, #tpu.memory_space<vmem>>, %arg3: memref<1x512xf32, #tpu.memory_space<vmem>>, %arg4: memref<64x512xbf16, #tpu.memory_space<vmem>>, %arg5: memref<128x512xbf16, #tpu.memory_space<vmem>>, %arg6: memref<1x512xf32, #tpu.memory_space<vmem>>, %arg7: memref<256x256xbf16, #tpu.memory_space<vmem>>, %arg8: memref<1x256xf32, #tpu.memory_space<vmem>>, %arg9: memref<256x256xbf16, #tpu.memory_space<vmem>>, %arg10: memref<1x256xf32, #tpu.memory_space<vmem>>, %arg11: memref<256x256xbf16, #tpu.memory_space<vmem>>, %arg12: memref<1x256xf32, #tpu.memory_space<vmem>>, %arg13: memref<256x256xbf16, #tpu.memory_space<vmem>>, %arg14: memref<1x256xf32, #tpu.memory_space<vmem>>, %arg15: memref<2048x256xbf16, #tpu.memory_space<vmem>>, %arg16: memref<1x256xf32, #tpu.memory_space<vmem>>, %arg17: memref<7x256x70xbf16, #tpu.memory_space<vmem>>, %arg18: memref<14x70xf32, #tpu.memory_space<vmem>>, %arg19: memref<256x128xf32, #tpu.memory_space<vmem>>, %arg20: memref<256x128xf32, #tpu.memory_space<vmem>>, %arg21: memref<256x128xf32, #tpu.memory_space<vmem>>, %arg22: memref<256x128xf32, #tpu.memory_space<vmem>>, %arg23: memref<70x128xf32, #tpu.memory_space<vmem>>, %arg24: memref<1x128xf32, #tpu.memory_space<vmem>>, %arg25: memref<128x2xf32, #tpu.memory_space<vmem>>, %arg26: memref<1x2xf32, #tpu.memory_space<vmem>>, %arg27: memref<1x2xf32, #tpu.memory_space<vmem>>) attributes {dimension_semantics = [], scalar_prefetch = 0 : i64, scratch_operands = 0 : i64, tpu.core_type = #tpu.core_type<tc>} {
    %c0 = arith.constant 0 : index
    %c0_0 = arith.constant 0 : index
    %0 = vector.load %arg0[%c0, %c0_0] : memref<64x64xf32, #tpu.memory_space<vmem>>, vector<64x64xf32>
    %1 = arith.truncf %0 : vector<64x64xf32> to vector<64x64xbf16>
    %c0_1 = arith.constant 0 : index
    %c0_2 = arith.constant 0 : index
    %2 = vector.load %arg1[%c0_1, %c0_2] : memref<64x512xbf16, #tpu.memory_space<vmem>>, vector<64x512xbf16>
    %cst = arith.constant dense<0.000000e+00> : vector<64x512xf32>
    %3 = tpu.matmul %1, %2, %cst {dimension_numbers = #tpu.dot_dimension_numbers<[1], [0], [0], [1], [0, 0, 1, 1], [], []>} : vector<64x64xbf16>, vector<64x512xbf16>, vector<64x512xf32> -> vector<64x512xf32>
    %c0_3 = arith.constant 0 : index
    %c0_4 = arith.constant 0 : index
    %4 = vector.load %arg3[%c0_3, %c0_4] : memref<1x512xf32, #tpu.memory_space<vmem>>, vector<1x512xf32>
    %5 = vector.broadcast %4 : vector<1x512xf32> to vector<64x512xf32>
    %6 = arith.addf %3, %5 : vector<64x512xf32>
    %c0_5 = arith.constant 0 : index
    %c0_6 = arith.constant 0 : index
    %7 = vector.load %arg4[%c0_5, %c0_6] : memref<64x512xbf16, #tpu.memory_space<vmem>>, vector<64x512xbf16>
    %cst_7 = arith.constant dense<0.000000e+00> : vector<64x512xf32>
    %8 = tpu.matmul %1, %7, %cst_7 {dimension_numbers = #tpu.dot_dimension_numbers<[1], [0], [0], [1], [0, 0, 1, 1], [], []>} : vector<64x64xbf16>, vector<64x512xbf16>, vector<64x512xf32> -> vector<64x512xf32>
    %c0_8 = arith.constant 0 : index
    %c0_9 = arith.constant 0 : index
    %9 = vector.load %arg6[%c0_8, %c0_9] : memref<1x512xf32, #tpu.memory_space<vmem>>, vector<1x512xf32>
    %10 = vector.broadcast %9 : vector<1x512xf32> to vector<64x512xf32>
    %11 = arith.addf %8, %10 : vector<64x512xf32>
    %c0_10 = arith.constant 0 : index
    %c0_11 = arith.constant 0 : index
    %12 = vector.load %arg2[%c0_10, %c0_11] : memref<128x512xbf16, #tpu.memory_space<vmem>>, vector<128x512xbf16>
    %c0_12 = arith.constant 0 : index
    %c0_13 = arith.constant 0 : index
    %13 = vector.load %arg5[%c0_12, %c0_13] : memref<128x512xbf16, #tpu.memory_space<vmem>>, vector<128x512xbf16>
    %cst_14 = arith.constant 0.000000e+00 : f32
    %14 = vector.broadcast %cst_14 : f32 to vector<8x128xf32>
    %cst_15 = arith.constant 0.000000e+00 : f32
    %15 = vector.broadcast %cst_15 : f32 to vector<8x128xf32>
    %16 = vector.extract_strided_slice %6 {offsets = [0, 0], sizes = [8, 512], strides = [1, 1]} : vector<64x512xf32> to vector<8x512xf32>
    %17 = arith.truncf %14 : vector<8x128xf32> to vector<8x128xbf16>
    %cst_16 = arith.constant dense<0.000000e+00> : vector<8x512xf32>
    %18 = tpu.matmul %17, %12, %cst_16 {dimension_numbers = #tpu.dot_dimension_numbers<[1], [0], [0], [1], [0, 0, 1, 1], [], []>} : vector<8x128xbf16>, vector<128x512xbf16>, vector<8x512xf32> -> vector<8x512xf32>
    %19 = arith.addf %16, %18 : vector<8x512xf32>
    %20 = vector.extract_strided_slice %11 {offsets = [56, 0], sizes = [8, 512], strides = [1, 1]} : vector<64x512xf32> to vector<8x512xf32>
    %21 = arith.truncf %15 : vector<8x128xf32> to vector<8x128xbf16>
    %cst_17 = arith.constant dense<0.000000e+00> : vector<8x512xf32>
    %22 = tpu.matmul %21, %13, %cst_17 {dimension_numbers = #tpu.dot_dimension_numbers<[1], [0], [0], [1], [0, 0, 1, 1], [], []>} : vector<8x128xbf16>, vector<128x512xbf16>, vector<8x512xf32> -> vector<8x512xf32>
    %23 = arith.addf %20, %22 : vector<8x512xf32>
    %24 = vector.extract_strided_slice %19 {offsets = [0, 0], sizes = [8, 128], strides = [1, 1]} : vector<8x512xf32> to vector<8x128xf32>
    %25 = arith.negf %24 : vector<8x128xf32>
    %26 = math.exp %25 : vector<8x128xf32>
    %cst_18 = arith.constant 1.000000e+00 : f32
    %27 = vector.broadcast %cst_18 : f32 to vector<8x128xf32>
    %28 = arith.addf %27, %26 : vector<8x128xf32>
    %29 = arith.divf %27, %28 : vector<8x128xf32>
    %30 = vector.extract_strided_slice %19 {offsets = [0, 128], sizes = [8, 128], strides = [1, 1]} : vector<8x512xf32> to vector<8x128xf32>
    %31 = arith.negf %30 : vector<8x128xf32>
    %32 = math.exp %31 : vector<8x128xf32>
    %cst_19 = arith.constant 1.000000e+00 : f32
    %33 = vector.broadcast %cst_19 : f32 to vector<8x128xf32>
    %34 = arith.addf %33, %32 : vector<8x128xf32>
    %35 = arith.divf %33, %34 : vector<8x128xf32>
    %36 = vector.extract_strided_slice %19 {offsets = [0, 256], sizes = [8, 128], strides = [1, 1]} : vector<8x512xf32> to vector<8x128xf32>
    %37 = math.tanh %36 : vector<8x128xf32>
    %38 = vector.extract_strided_slice %19 {offsets = [0, 384], sizes = [8, 128], strides = [1, 1]} : vector<8x512xf32> to vector<8x128xf32>
    %39 = arith.negf %38 : vector<8x128xf32>
    %40 = math.exp %39 : vector<8x128xf32>
    %cst_20 = arith.constant 1.000000e+00 : f32
    %41 = vector.broadcast %cst_20 : f32 to vector<8x128xf32>
    %42 = arith.addf %41, %40 : vector<8x128xf32>
    %43 = arith.divf %41, %42 : vector<8x128xf32>
    %44 = arith.mulf %35, %14 : vector<8x128xf32>
    %45 = arith.mulf %29, %37 : vector<8x128xf32>
    %46 = arith.addf %44, %45 : vector<8x128xf32>
    %47 = math.tanh %46 : vector<8x128xf32>
    %48 = arith.mulf %43, %47 : vector<8x128xf32>
    %49 = vector.extract_strided_slice %23 {offsets = [0, 0], sizes = [8, 128], strides = [1, 1]} : vector<8x512xf32> to vector<8x128xf32>
    %50 = arith.negf %49 : vector<8x128xf32>
    %51 = math.exp %50 : vector<8x128xf32>
    %cst_21 = arith.constant 1.000000e+00 : f32
    %52 = vector.broadcast %cst_21 : f32 to vector<8x128xf32>
    %53 = arith.addf %52, %51 : vector<8x128xf32>
    %54 = arith.divf %52, %53 : vector<8x128xf32>
    %55 = vector.extract_strided_slice %23 {offsets = [0, 128], sizes = [8, 128], strides = [1, 1]} : vector<8x512xf32> to vector<8x128xf32>
    %56 = arith.negf %55 : vector<8x128xf32>
    %57 = math.exp %56 : vector<8x128xf32>
    %cst_22 = arith.constant 1.000000e+00 : f32
    %58 = vector.broadcast %cst_22 : f32 to vector<8x128xf32>
    %59 = arith.addf %58, %57 : vector<8x128xf32>
    %60 = arith.divf %58, %59 : vector<8x128xf32>
    %61 = vector.extract_strided_slice %23 {offsets = [0, 256], sizes = [8, 128], strides = [1, 1]} : vector<8x512xf32> to vector<8x128xf32>
    %62 = math.tanh %61 : vector<8x128xf32>
    %63 = vector.extract_strided_slice %23 {offsets = [0, 384], sizes = [8, 128], strides = [1, 1]} : vector<8x512xf32> to vector<8x128xf32>
    %64 = arith.negf %63 : vector<8x128xf32>
    %65 = math.exp %64 : vector<8x128xf32>
    %cst_23 = arith.constant 1.000000e+00 : f32
    %66 = vector.broadcast %cst_23 : f32 to vector<8x128xf32>
    %67 = arith.addf %66, %65 : vector<8x128xf32>
    %68 = arith.divf %66, %67 : vector<8x128xf32>
    %69 = arith.mulf %60, %15 : vector<8x128xf32>
    %70 = arith.mulf %54, %62 : vector<8x128xf32>
    %71 = arith.addf %69, %70 : vector<8x128xf32>
    %72 = math.tanh %71 : vector<8x128xf32>
    %73 = arith.mulf %68, %72 : vector<8x128xf32>
    %74 = vector.extract_strided_slice %6 {offsets = [8, 0], sizes = [8, 512], strides = [1, 1]} : vector<64x512xf32> to vector<8x512xf32>
    %75 = arith.truncf %48 : vector<8x128xf32> to vector<8x128xbf16>
    %cst_24 = arith.constant dense<0.000000e+00> : vector<8x512xf32>
    %76 = tpu.matmul %75, %12, %cst_24 {dimension_numbers = #tpu.dot_dimension_numbers<[1], [0], [0], [1], [0, 0, 1, 1], [], []>} : vector<8x128xbf16>, vector<128x512xbf16>, vector<8x512xf32> -> vector<8x512xf32>
    %77 = arith.addf %74, %76 : vector<8x512xf32>
    %78 = vector.extract_strided_slice %11 {offsets = [48, 0], sizes = [8, 512], strides = [1, 1]} : vector<64x512xf32> to vector<8x512xf32>
    %79 = arith.truncf %73 : vector<8x128xf32> to vector<8x128xbf16>
    %cst_25 = arith.constant dense<0.000000e+00> : vector<8x512xf32>
    %80 = tpu.matmul %79, %13, %cst_25 {dimension_numbers = #tpu.dot_dimension_numbers<[1], [0], [0], [1], [0, 0, 1, 1], [], []>} : vector<8x128xbf16>, vector<128x512xbf16>, vector<8x512xf32> -> vector<8x512xf32>
    %81 = arith.addf %78, %80 : vector<8x512xf32>
    %82 = vector.extract_strided_slice %77 {offsets = [0, 0], sizes = [8, 128], strides = [1, 1]} : vector<8x512xf32> to vector<8x128xf32>
    %83 = arith.negf %82 : vector<8x128xf32>
    %84 = math.exp %83 : vector<8x128xf32>
    %cst_26 = arith.constant 1.000000e+00 : f32
    %85 = vector.broadcast %cst_26 : f32 to vector<8x128xf32>
    %86 = arith.addf %85, %84 : vector<8x128xf32>
    %87 = arith.divf %85, %86 : vector<8x128xf32>
    %88 = vector.extract_strided_slice %77 {offsets = [0, 128], sizes = [8, 128], strides = [1, 1]} : vector<8x512xf32> to vector<8x128xf32>
    %89 = arith.negf %88 : vector<8x128xf32>
    %90 = math.exp %89 : vector<8x128xf32>
    %cst_27 = arith.constant 1.000000e+00 : f32
    %91 = vector.broadcast %cst_27 : f32 to vector<8x128xf32>
    %92 = arith.addf %91, %90 : vector<8x128xf32>
    %93 = arith.divf %91, %92 : vector<8x128xf32>
    %94 = vector.extract_strided_slice %77 {offsets = [0, 256], sizes = [8, 128], strides = [1, 1]} : vector<8x512xf32> to vector<8x128xf32>
    %95 = math.tanh %94 : vector<8x128xf32>
    %96 = vector.extract_strided_slice %77 {offsets = [0, 384], sizes = [8, 128], strides = [1, 1]} : vector<8x512xf32> to vector<8x128xf32>
    %97 = arith.negf %96 : vector<8x128xf32>
    %98 = math.exp %97 : vector<8x128xf32>
    %cst_28 = arith.constant 1.000000e+00 : f32
    %99 = vector.broadcast %cst_28 : f32 to vector<8x128xf32>
    %100 = arith.addf %99, %98 : vector<8x128xf32>
    %101 = arith.divf %99, %100 : vector<8x128xf32>
    %102 = arith.mulf %93, %46 : vector<8x128xf32>
    %103 = arith.mulf %87, %95 : vector<8x128xf32>
    %104 = arith.addf %102, %103 : vector<8x128xf32>
    %105 = math.tanh %104 : vector<8x128xf32>
    %106 = arith.mulf %101, %105 : vector<8x128xf32>
    %107 = vector.extract_strided_slice %81 {offsets = [0, 0], sizes = [8, 128], strides = [1, 1]} : vector<8x512xf32> to vector<8x128xf32>
    %108 = arith.negf %107 : vector<8x128xf32>
    %109 = math.exp %108 : vector<8x128xf32>
    %cst_29 = arith.constant 1.000000e+00 : f32
    %110 = vector.broadcast %cst_29 : f32 to vector<8x128xf32>
    %111 = arith.addf %110, %109 : vector<8x128xf32>
    %112 = arith.divf %110, %111 : vector<8x128xf32>
    %113 = vector.extract_strided_slice %81 {offsets = [0, 128], sizes = [8, 128], strides = [1, 1]} : vector<8x512xf32> to vector<8x128xf32>
    %114 = arith.negf %113 : vector<8x128xf32>
    %115 = math.exp %114 : vector<8x128xf32>
    %cst_30 = arith.constant 1.000000e+00 : f32
    %116 = vector.broadcast %cst_30 : f32 to vector<8x128xf32>
    %117 = arith.addf %116, %115 : vector<8x128xf32>
    %118 = arith.divf %116, %117 : vector<8x128xf32>
    %119 = vector.extract_strided_slice %81 {offsets = [0, 256], sizes = [8, 128], strides = [1, 1]} : vector<8x512xf32> to vector<8x128xf32>
    %120 = math.tanh %119 : vector<8x128xf32>
    %121 = vector.extract_strided_slice %81 {offsets = [0, 384], sizes = [8, 128], strides = [1, 1]} : vector<8x512xf32> to vector<8x128xf32>
    %122 = arith.negf %121 : vector<8x128xf32>
    %123 = math.exp %122 : vector<8x128xf32>
    %cst_31 = arith.constant 1.000000e+00 : f32
    %124 = vector.broadcast %cst_31 : f32 to vector<8x128xf32>
    %125 = arith.addf %124, %123 : vector<8x128xf32>
    %126 = arith.divf %124, %125 : vector<8x128xf32>
    %127 = arith.mulf %118, %71 : vector<8x128xf32>
    %128 = arith.mulf %112, %120 : vector<8x128xf32>
    %129 = arith.addf %127, %128 : vector<8x128xf32>
    %130 = math.tanh %129 : vector<8x128xf32>
    %131 = arith.mulf %126, %130 : vector<8x128xf32>
    %132 = vector.extract_strided_slice %6 {offsets = [16, 0], sizes = [8, 512], strides = [1, 1]} : vector<64x512xf32> to vector<8x512xf32>
    %133 = arith.truncf %106 : vector<8x128xf32> to vector<8x128xbf16>
    %cst_32 = arith.constant dense<0.000000e+00> : vector<8x512xf32>
    %134 = tpu.matmul %133, %12, %cst_32 {dimension_numbers = #tpu.dot_dimension_numbers<[1], [0], [0], [1], [0, 0, 1, 1], [], []>} : vector<8x128xbf16>, vector<128x512xbf16>, vector<8x512xf32> -> vector<8x512xf32>
    %135 = arith.addf %132, %134 : vector<8x512xf32>
    %136 = vector.extract_strided_slice %11 {offsets = [40, 0], sizes = [8, 512], strides = [1, 1]} : vector<64x512xf32> to vector<8x512xf32>
    %137 = arith.truncf %131 : vector<8x128xf32> to vector<8x128xbf16>
    %cst_33 = arith.constant dense<0.000000e+00> : vector<8x512xf32>
    %138 = tpu.matmul %137, %13, %cst_33 {dimension_numbers = #tpu.dot_dimension_numbers<[1], [0], [0], [1], [0, 0, 1, 1], [], []>} : vector<8x128xbf16>, vector<128x512xbf16>, vector<8x512xf32> -> vector<8x512xf32>
    %139 = arith.addf %136, %138 : vector<8x512xf32>
    %140 = vector.extract_strided_slice %135 {offsets = [0, 0], sizes = [8, 128], strides = [1, 1]} : vector<8x512xf32> to vector<8x128xf32>
    %141 = arith.negf %140 : vector<8x128xf32>
    %142 = math.exp %141 : vector<8x128xf32>
    %cst_34 = arith.constant 1.000000e+00 : f32
    %143 = vector.broadcast %cst_34 : f32 to vector<8x128xf32>
    %144 = arith.addf %143, %142 : vector<8x128xf32>
    %145 = arith.divf %143, %144 : vector<8x128xf32>
    %146 = vector.extract_strided_slice %135 {offsets = [0, 128], sizes = [8, 128], strides = [1, 1]} : vector<8x512xf32> to vector<8x128xf32>
    %147 = arith.negf %146 : vector<8x128xf32>
    %148 = math.exp %147 : vector<8x128xf32>
    %cst_35 = arith.constant 1.000000e+00 : f32
    %149 = vector.broadcast %cst_35 : f32 to vector<8x128xf32>
    %150 = arith.addf %149, %148 : vector<8x128xf32>
    %151 = arith.divf %149, %150 : vector<8x128xf32>
    %152 = vector.extract_strided_slice %135 {offsets = [0, 256], sizes = [8, 128], strides = [1, 1]} : vector<8x512xf32> to vector<8x128xf32>
    %153 = math.tanh %152 : vector<8x128xf32>
    %154 = vector.extract_strided_slice %135 {offsets = [0, 384], sizes = [8, 128], strides = [1, 1]} : vector<8x512xf32> to vector<8x128xf32>
    %155 = arith.negf %154 : vector<8x128xf32>
    %156 = math.exp %155 : vector<8x128xf32>
    %cst_36 = arith.constant 1.000000e+00 : f32
    %157 = vector.broadcast %cst_36 : f32 to vector<8x128xf32>
    %158 = arith.addf %157, %156 : vector<8x128xf32>
    %159 = arith.divf %157, %158 : vector<8x128xf32>
    %160 = arith.mulf %151, %104 : vector<8x128xf32>
    %161 = arith.mulf %145, %153 : vector<8x128xf32>
    %162 = arith.addf %160, %161 : vector<8x128xf32>
    %163 = math.tanh %162 : vector<8x128xf32>
    %164 = arith.mulf %159, %163 : vector<8x128xf32>
    %165 = vector.extract_strided_slice %139 {offsets = [0, 0], sizes = [8, 128], strides = [1, 1]} : vector<8x512xf32> to vector<8x128xf32>
    %166 = arith.negf %165 : vector<8x128xf32>
    %167 = math.exp %166 : vector<8x128xf32>
    %cst_37 = arith.constant 1.000000e+00 : f32
    %168 = vector.broadcast %cst_37 : f32 to vector<8x128xf32>
    %169 = arith.addf %168, %167 : vector<8x128xf32>
    %170 = arith.divf %168, %169 : vector<8x128xf32>
    %171 = vector.extract_strided_slice %139 {offsets = [0, 128], sizes = [8, 128], strides = [1, 1]} : vector<8x512xf32> to vector<8x128xf32>
    %172 = arith.negf %171 : vector<8x128xf32>
    %173 = math.exp %172 : vector<8x128xf32>
    %cst_38 = arith.constant 1.000000e+00 : f32
    %174 = vector.broadcast %cst_38 : f32 to vector<8x128xf32>
    %175 = arith.addf %174, %173 : vector<8x128xf32>
    %176 = arith.divf %174, %175 : vector<8x128xf32>
    %177 = vector.extract_strided_slice %139 {offsets = [0, 256], sizes = [8, 128], strides = [1, 1]} : vector<8x512xf32> to vector<8x128xf32>
    %178 = math.tanh %177 : vector<8x128xf32>
    %179 = vector.extract_strided_slice %139 {offsets = [0, 384], sizes = [8, 128], strides = [1, 1]} : vector<8x512xf32> to vector<8x128xf32>
    %180 = arith.negf %179 : vector<8x128xf32>
    %181 = math.exp %180 : vector<8x128xf32>
    %cst_39 = arith.constant 1.000000e+00 : f32
    %182 = vector.broadcast %cst_39 : f32 to vector<8x128xf32>
    %183 = arith.addf %182, %181 : vector<8x128xf32>
    %184 = arith.divf %182, %183 : vector<8x128xf32>
    %185 = arith.mulf %176, %129 : vector<8x128xf32>
    %186 = arith.mulf %170, %178 : vector<8x128xf32>
    %187 = arith.addf %185, %186 : vector<8x128xf32>
    %188 = math.tanh %187 : vector<8x128xf32>
    %189 = arith.mulf %184, %188 : vector<8x128xf32>
    %190 = vector.extract_strided_slice %6 {offsets = [24, 0], sizes = [8, 512], strides = [1, 1]} : vector<64x512xf32> to vector<8x512xf32>
    %191 = arith.truncf %164 : vector<8x128xf32> to vector<8x128xbf16>
    %cst_40 = arith.constant dense<0.000000e+00> : vector<8x512xf32>
    %192 = tpu.matmul %191, %12, %cst_40 {dimension_numbers = #tpu.dot_dimension_numbers<[1], [0], [0], [1], [0, 0, 1, 1], [], []>} : vector<8x128xbf16>, vector<128x512xbf16>, vector<8x512xf32> -> vector<8x512xf32>
    %193 = arith.addf %190, %192 : vector<8x512xf32>
    %194 = vector.extract_strided_slice %11 {offsets = [32, 0], sizes = [8, 512], strides = [1, 1]} : vector<64x512xf32> to vector<8x512xf32>
    %195 = arith.truncf %189 : vector<8x128xf32> to vector<8x128xbf16>
    %cst_41 = arith.constant dense<0.000000e+00> : vector<8x512xf32>
    %196 = tpu.matmul %195, %13, %cst_41 {dimension_numbers = #tpu.dot_dimension_numbers<[1], [0], [0], [1], [0, 0, 1, 1], [], []>} : vector<8x128xbf16>, vector<128x512xbf16>, vector<8x512xf32> -> vector<8x512xf32>
    %197 = arith.addf %194, %196 : vector<8x512xf32>
    %198 = vector.extract_strided_slice %193 {offsets = [0, 0], sizes = [8, 128], strides = [1, 1]} : vector<8x512xf32> to vector<8x128xf32>
    %199 = arith.negf %198 : vector<8x128xf32>
    %200 = math.exp %199 : vector<8x128xf32>
    %cst_42 = arith.constant 1.000000e+00 : f32
    %201 = vector.broadcast %cst_42 : f32 to vector<8x128xf32>
    %202 = arith.addf %201, %200 : vector<8x128xf32>
    %203 = arith.divf %201, %202 : vector<8x128xf32>
    %204 = vector.extract_strided_slice %193 {offsets = [0, 128], sizes = [8, 128], strides = [1, 1]} : vector<8x512xf32> to vector<8x128xf32>
    %205 = arith.negf %204 : vector<8x128xf32>
    %206 = math.exp %205 : vector<8x128xf32>
    %cst_43 = arith.constant 1.000000e+00 : f32
    %207 = vector.broadcast %cst_43 : f32 to vector<8x128xf32>
    %208 = arith.addf %207, %206 : vector<8x128xf32>
    %209 = arith.divf %207, %208 : vector<8x128xf32>
    %210 = vector.extract_strided_slice %193 {offsets = [0, 256], sizes = [8, 128], strides = [1, 1]} : vector<8x512xf32> to vector<8x128xf32>
    %211 = math.tanh %210 : vector<8x128xf32>
    %212 = vector.extract_strided_slice %193 {offsets = [0, 384], sizes = [8, 128], strides = [1, 1]} : vector<8x512xf32> to vector<8x128xf32>
    %213 = arith.negf %212 : vector<8x128xf32>
    %214 = math.exp %213 : vector<8x128xf32>
    %cst_44 = arith.constant 1.000000e+00 : f32
    %215 = vector.broadcast %cst_44 : f32 to vector<8x128xf32>
    %216 = arith.addf %215, %214 : vector<8x128xf32>
    %217 = arith.divf %215, %216 : vector<8x128xf32>
    %218 = arith.mulf %209, %162 : vector<8x128xf32>
    %219 = arith.mulf %203, %211 : vector<8x128xf32>
    %220 = arith.addf %218, %219 : vector<8x128xf32>
    %221 = math.tanh %220 : vector<8x128xf32>
    %222 = arith.mulf %217, %221 : vector<8x128xf32>
    %223 = vector.extract_strided_slice %197 {offsets = [0, 0], sizes = [8, 128], strides = [1, 1]} : vector<8x512xf32> to vector<8x128xf32>
    %224 = arith.negf %223 : vector<8x128xf32>
    %225 = math.exp %224 : vector<8x128xf32>
    %cst_45 = arith.constant 1.000000e+00 : f32
    %226 = vector.broadcast %cst_45 : f32 to vector<8x128xf32>
    %227 = arith.addf %226, %225 : vector<8x128xf32>
    %228 = arith.divf %226, %227 : vector<8x128xf32>
    %229 = vector.extract_strided_slice %197 {offsets = [0, 128], sizes = [8, 128], strides = [1, 1]} : vector<8x512xf32> to vector<8x128xf32>
    %230 = arith.negf %229 : vector<8x128xf32>
    %231 = math.exp %230 : vector<8x128xf32>
    %cst_46 = arith.constant 1.000000e+00 : f32
    %232 = vector.broadcast %cst_46 : f32 to vector<8x128xf32>
    %233 = arith.addf %232, %231 : vector<8x128xf32>
    %234 = arith.divf %232, %233 : vector<8x128xf32>
    %235 = vector.extract_strided_slice %197 {offsets = [0, 256], sizes = [8, 128], strides = [1, 1]} : vector<8x512xf32> to vector<8x128xf32>
    %236 = math.tanh %235 : vector<8x128xf32>
    %237 = vector.extract_strided_slice %197 {offsets = [0, 384], sizes = [8, 128], strides = [1, 1]} : vector<8x512xf32> to vector<8x128xf32>
    %238 = arith.negf %237 : vector<8x128xf32>
    %239 = math.exp %238 : vector<8x128xf32>
    %cst_47 = arith.constant 1.000000e+00 : f32
    %240 = vector.broadcast %cst_47 : f32 to vector<8x128xf32>
    %241 = arith.addf %240, %239 : vector<8x128xf32>
    %242 = arith.divf %240, %241 : vector<8x128xf32>
    %243 = arith.mulf %234, %187 : vector<8x128xf32>
    %244 = arith.mulf %228, %236 : vector<8x128xf32>
    %245 = arith.addf %243, %244 : vector<8x128xf32>
    %246 = math.tanh %245 : vector<8x128xf32>
    %247 = arith.mulf %242, %246 : vector<8x128xf32>
    %248 = vector.extract_strided_slice %6 {offsets = [32, 0], sizes = [8, 512], strides = [1, 1]} : vector<64x512xf32> to vector<8x512xf32>
    %249 = arith.truncf %222 : vector<8x128xf32> to vector<8x128xbf16>
    %cst_48 = arith.constant dense<0.000000e+00> : vector<8x512xf32>
    %250 = tpu.matmul %249, %12, %cst_48 {dimension_numbers = #tpu.dot_dimension_numbers<[1], [0], [0], [1], [0, 0, 1, 1], [], []>} : vector<8x128xbf16>, vector<128x512xbf16>, vector<8x512xf32> -> vector<8x512xf32>
    %251 = arith.addf %248, %250 : vector<8x512xf32>
    %252 = vector.extract_strided_slice %11 {offsets = [24, 0], sizes = [8, 512], strides = [1, 1]} : vector<64x512xf32> to vector<8x512xf32>
    %253 = arith.truncf %247 : vector<8x128xf32> to vector<8x128xbf16>
    %cst_49 = arith.constant dense<0.000000e+00> : vector<8x512xf32>
    %254 = tpu.matmul %253, %13, %cst_49 {dimension_numbers = #tpu.dot_dimension_numbers<[1], [0], [0], [1], [0, 0, 1, 1], [], []>} : vector<8x128xbf16>, vector<128x512xbf16>, vector<8x512xf32> -> vector<8x512xf32>
    %255 = arith.addf %252, %254 : vector<8x512xf32>
    %256 = vector.extract_strided_slice %251 {offsets = [0, 0], sizes = [8, 128], strides = [1, 1]} : vector<8x512xf32> to vector<8x128xf32>
    %257 = arith.negf %256 : vector<8x128xf32>
    %258 = math.exp %257 : vector<8x128xf32>
    %cst_50 = arith.constant 1.000000e+00 : f32
    %259 = vector.broadcast %cst_50 : f32 to vector<8x128xf32>
    %260 = arith.addf %259, %258 : vector<8x128xf32>
    %261 = arith.divf %259, %260 : vector<8x128xf32>
    %262 = vector.extract_strided_slice %251 {offsets = [0, 128], sizes = [8, 128], strides = [1, 1]} : vector<8x512xf32> to vector<8x128xf32>
    %263 = arith.negf %262 : vector<8x128xf32>
    %264 = math.exp %263 : vector<8x128xf32>
    %cst_51 = arith.constant 1.000000e+00 : f32
    %265 = vector.broadcast %cst_51 : f32 to vector<8x128xf32>
    %266 = arith.addf %265, %264 : vector<8x128xf32>
    %267 = arith.divf %265, %266 : vector<8x128xf32>
    %268 = vector.extract_strided_slice %251 {offsets = [0, 256], sizes = [8, 128], strides = [1, 1]} : vector<8x512xf32> to vector<8x128xf32>
    %269 = math.tanh %268 : vector<8x128xf32>
    %270 = vector.extract_strided_slice %251 {offsets = [0, 384], sizes = [8, 128], strides = [1, 1]} : vector<8x512xf32> to vector<8x128xf32>
    %271 = arith.negf %270 : vector<8x128xf32>
    %272 = math.exp %271 : vector<8x128xf32>
    %cst_52 = arith.constant 1.000000e+00 : f32
    %273 = vector.broadcast %cst_52 : f32 to vector<8x128xf32>
    %274 = arith.addf %273, %272 : vector<8x128xf32>
    %275 = arith.divf %273, %274 : vector<8x128xf32>
    %276 = arith.mulf %267, %220 : vector<8x128xf32>
    %277 = arith.mulf %261, %269 : vector<8x128xf32>
    %278 = arith.addf %276, %277 : vector<8x128xf32>
    %279 = math.tanh %278 : vector<8x128xf32>
    %280 = arith.mulf %275, %279 : vector<8x128xf32>
    %281 = vector.extract_strided_slice %255 {offsets = [0, 0], sizes = [8, 128], strides = [1, 1]} : vector<8x512xf32> to vector<8x128xf32>
    %282 = arith.negf %281 : vector<8x128xf32>
    %283 = math.exp %282 : vector<8x128xf32>
    %cst_53 = arith.constant 1.000000e+00 : f32
    %284 = vector.broadcast %cst_53 : f32 to vector<8x128xf32>
    %285 = arith.addf %284, %283 : vector<8x128xf32>
    %286 = arith.divf %284, %285 : vector<8x128xf32>
    %287 = vector.extract_strided_slice %255 {offsets = [0, 128], sizes = [8, 128], strides = [1, 1]} : vector<8x512xf32> to vector<8x128xf32>
    %288 = arith.negf %287 : vector<8x128xf32>
    %289 = math.exp %288 : vector<8x128xf32>
    %cst_54 = arith.constant 1.000000e+00 : f32
    %290 = vector.broadcast %cst_54 : f32 to vector<8x128xf32>
    %291 = arith.addf %290, %289 : vector<8x128xf32>
    %292 = arith.divf %290, %291 : vector<8x128xf32>
    %293 = vector.extract_strided_slice %255 {offsets = [0, 256], sizes = [8, 128], strides = [1, 1]} : vector<8x512xf32> to vector<8x128xf32>
    %294 = math.tanh %293 : vector<8x128xf32>
    %295 = vector.extract_strided_slice %255 {offsets = [0, 384], sizes = [8, 128], strides = [1, 1]} : vector<8x512xf32> to vector<8x128xf32>
    %296 = arith.negf %295 : vector<8x128xf32>
    %297 = math.exp %296 : vector<8x128xf32>
    %cst_55 = arith.constant 1.000000e+00 : f32
    %298 = vector.broadcast %cst_55 : f32 to vector<8x128xf32>
    %299 = arith.addf %298, %297 : vector<8x128xf32>
    %300 = arith.divf %298, %299 : vector<8x128xf32>
    %301 = arith.mulf %292, %245 : vector<8x128xf32>
    %302 = arith.mulf %286, %294 : vector<8x128xf32>
    %303 = arith.addf %301, %302 : vector<8x128xf32>
    %304 = math.tanh %303 : vector<8x128xf32>
    %305 = arith.mulf %300, %304 : vector<8x128xf32>
    %306 = vector.extract_strided_slice %6 {offsets = [40, 0], sizes = [8, 512], strides = [1, 1]} : vector<64x512xf32> to vector<8x512xf32>
    %307 = arith.truncf %280 : vector<8x128xf32> to vector<8x128xbf16>
    %cst_56 = arith.constant dense<0.000000e+00> : vector<8x512xf32>
    %308 = tpu.matmul %307, %12, %cst_56 {dimension_numbers = #tpu.dot_dimension_numbers<[1], [0], [0], [1], [0, 0, 1, 1], [], []>} : vector<8x128xbf16>, vector<128x512xbf16>, vector<8x512xf32> -> vector<8x512xf32>
    %309 = arith.addf %306, %308 : vector<8x512xf32>
    %310 = vector.extract_strided_slice %11 {offsets = [16, 0], sizes = [8, 512], strides = [1, 1]} : vector<64x512xf32> to vector<8x512xf32>
    %311 = arith.truncf %305 : vector<8x128xf32> to vector<8x128xbf16>
    %cst_57 = arith.constant dense<0.000000e+00> : vector<8x512xf32>
    %312 = tpu.matmul %311, %13, %cst_57 {dimension_numbers = #tpu.dot_dimension_numbers<[1], [0], [0], [1], [0, 0, 1, 1], [], []>} : vector<8x128xbf16>, vector<128x512xbf16>, vector<8x512xf32> -> vector<8x512xf32>
    %313 = arith.addf %310, %312 : vector<8x512xf32>
    %314 = vector.extract_strided_slice %309 {offsets = [0, 0], sizes = [8, 128], strides = [1, 1]} : vector<8x512xf32> to vector<8x128xf32>
    %315 = arith.negf %314 : vector<8x128xf32>
    %316 = math.exp %315 : vector<8x128xf32>
    %cst_58 = arith.constant 1.000000e+00 : f32
    %317 = vector.broadcast %cst_58 : f32 to vector<8x128xf32>
    %318 = arith.addf %317, %316 : vector<8x128xf32>
    %319 = arith.divf %317, %318 : vector<8x128xf32>
    %320 = vector.extract_strided_slice %309 {offsets = [0, 128], sizes = [8, 128], strides = [1, 1]} : vector<8x512xf32> to vector<8x128xf32>
    %321 = arith.negf %320 : vector<8x128xf32>
    %322 = math.exp %321 : vector<8x128xf32>
    %cst_59 = arith.constant 1.000000e+00 : f32
    %323 = vector.broadcast %cst_59 : f32 to vector<8x128xf32>
    %324 = arith.addf %323, %322 : vector<8x128xf32>
    %325 = arith.divf %323, %324 : vector<8x128xf32>
    %326 = vector.extract_strided_slice %309 {offsets = [0, 256], sizes = [8, 128], strides = [1, 1]} : vector<8x512xf32> to vector<8x128xf32>
    %327 = math.tanh %326 : vector<8x128xf32>
    %328 = vector.extract_strided_slice %309 {offsets = [0, 384], sizes = [8, 128], strides = [1, 1]} : vector<8x512xf32> to vector<8x128xf32>
    %329 = arith.negf %328 : vector<8x128xf32>
    %330 = math.exp %329 : vector<8x128xf32>
    %cst_60 = arith.constant 1.000000e+00 : f32
    %331 = vector.broadcast %cst_60 : f32 to vector<8x128xf32>
    %332 = arith.addf %331, %330 : vector<8x128xf32>
    %333 = arith.divf %331, %332 : vector<8x128xf32>
    %334 = arith.mulf %325, %278 : vector<8x128xf32>
    %335 = arith.mulf %319, %327 : vector<8x128xf32>
    %336 = arith.addf %334, %335 : vector<8x128xf32>
    %337 = math.tanh %336 : vector<8x128xf32>
    %338 = arith.mulf %333, %337 : vector<8x128xf32>
    %339 = vector.extract_strided_slice %313 {offsets = [0, 0], sizes = [8, 128], strides = [1, 1]} : vector<8x512xf32> to vector<8x128xf32>
    %340 = arith.negf %339 : vector<8x128xf32>
    %341 = math.exp %340 : vector<8x128xf32>
    %cst_61 = arith.constant 1.000000e+00 : f32
    %342 = vector.broadcast %cst_61 : f32 to vector<8x128xf32>
    %343 = arith.addf %342, %341 : vector<8x128xf32>
    %344 = arith.divf %342, %343 : vector<8x128xf32>
    %345 = vector.extract_strided_slice %313 {offsets = [0, 128], sizes = [8, 128], strides = [1, 1]} : vector<8x512xf32> to vector<8x128xf32>
    %346 = arith.negf %345 : vector<8x128xf32>
    %347 = math.exp %346 : vector<8x128xf32>
    %cst_62 = arith.constant 1.000000e+00 : f32
    %348 = vector.broadcast %cst_62 : f32 to vector<8x128xf32>
    %349 = arith.addf %348, %347 : vector<8x128xf32>
    %350 = arith.divf %348, %349 : vector<8x128xf32>
    %351 = vector.extract_strided_slice %313 {offsets = [0, 256], sizes = [8, 128], strides = [1, 1]} : vector<8x512xf32> to vector<8x128xf32>
    %352 = math.tanh %351 : vector<8x128xf32>
    %353 = vector.extract_strided_slice %313 {offsets = [0, 384], sizes = [8, 128], strides = [1, 1]} : vector<8x512xf32> to vector<8x128xf32>
    %354 = arith.negf %353 : vector<8x128xf32>
    %355 = math.exp %354 : vector<8x128xf32>
    %cst_63 = arith.constant 1.000000e+00 : f32
    %356 = vector.broadcast %cst_63 : f32 to vector<8x128xf32>
    %357 = arith.addf %356, %355 : vector<8x128xf32>
    %358 = arith.divf %356, %357 : vector<8x128xf32>
    %359 = arith.mulf %350, %303 : vector<8x128xf32>
    %360 = arith.mulf %344, %352 : vector<8x128xf32>
    %361 = arith.addf %359, %360 : vector<8x128xf32>
    %362 = math.tanh %361 : vector<8x128xf32>
    %363 = arith.mulf %358, %362 : vector<8x128xf32>
    %364 = vector.extract_strided_slice %6 {offsets = [48, 0], sizes = [8, 512], strides = [1, 1]} : vector<64x512xf32> to vector<8x512xf32>
    %365 = arith.truncf %338 : vector<8x128xf32> to vector<8x128xbf16>
    %cst_64 = arith.constant dense<0.000000e+00> : vector<8x512xf32>
    %366 = tpu.matmul %365, %12, %cst_64 {dimension_numbers = #tpu.dot_dimension_numbers<[1], [0], [0], [1], [0, 0, 1, 1], [], []>} : vector<8x128xbf16>, vector<128x512xbf16>, vector<8x512xf32> -> vector<8x512xf32>
    %367 = arith.addf %364, %366 : vector<8x512xf32>
    %368 = vector.extract_strided_slice %11 {offsets = [8, 0], sizes = [8, 512], strides = [1, 1]} : vector<64x512xf32> to vector<8x512xf32>
    %369 = arith.truncf %363 : vector<8x128xf32> to vector<8x128xbf16>
    %cst_65 = arith.constant dense<0.000000e+00> : vector<8x512xf32>
    %370 = tpu.matmul %369, %13, %cst_65 {dimension_numbers = #tpu.dot_dimension_numbers<[1], [0], [0], [1], [0, 0, 1, 1], [], []>} : vector<8x128xbf16>, vector<128x512xbf16>, vector<8x512xf32> -> vector<8x512xf32>
    %371 = arith.addf %368, %370 : vector<8x512xf32>
    %372 = vector.extract_strided_slice %367 {offsets = [0, 0], sizes = [8, 128], strides = [1, 1]} : vector<8x512xf32> to vector<8x128xf32>
    %373 = arith.negf %372 : vector<8x128xf32>
    %374 = math.exp %373 : vector<8x128xf32>
    %cst_66 = arith.constant 1.000000e+00 : f32
    %375 = vector.broadcast %cst_66 : f32 to vector<8x128xf32>
    %376 = arith.addf %375, %374 : vector<8x128xf32>
    %377 = arith.divf %375, %376 : vector<8x128xf32>
    %378 = vector.extract_strided_slice %367 {offsets = [0, 128], sizes = [8, 128], strides = [1, 1]} : vector<8x512xf32> to vector<8x128xf32>
    %379 = arith.negf %378 : vector<8x128xf32>
    %380 = math.exp %379 : vector<8x128xf32>
    %cst_67 = arith.constant 1.000000e+00 : f32
    %381 = vector.broadcast %cst_67 : f32 to vector<8x128xf32>
    %382 = arith.addf %381, %380 : vector<8x128xf32>
    %383 = arith.divf %381, %382 : vector<8x128xf32>
    %384 = vector.extract_strided_slice %367 {offsets = [0, 256], sizes = [8, 128], strides = [1, 1]} : vector<8x512xf32> to vector<8x128xf32>
    %385 = math.tanh %384 : vector<8x128xf32>
    %386 = vector.extract_strided_slice %367 {offsets = [0, 384], sizes = [8, 128], strides = [1, 1]} : vector<8x512xf32> to vector<8x128xf32>
    %387 = arith.negf %386 : vector<8x128xf32>
    %388 = math.exp %387 : vector<8x128xf32>
    %cst_68 = arith.constant 1.000000e+00 : f32
    %389 = vector.broadcast %cst_68 : f32 to vector<8x128xf32>
    %390 = arith.addf %389, %388 : vector<8x128xf32>
    %391 = arith.divf %389, %390 : vector<8x128xf32>
    %392 = arith.mulf %383, %336 : vector<8x128xf32>
    %393 = arith.mulf %377, %385 : vector<8x128xf32>
    %394 = arith.addf %392, %393 : vector<8x128xf32>
    %395 = math.tanh %394 : vector<8x128xf32>
    %396 = arith.mulf %391, %395 : vector<8x128xf32>
    %397 = vector.extract_strided_slice %371 {offsets = [0, 0], sizes = [8, 128], strides = [1, 1]} : vector<8x512xf32> to vector<8x128xf32>
    %398 = arith.negf %397 : vector<8x128xf32>
    %399 = math.exp %398 : vector<8x128xf32>
    %cst_69 = arith.constant 1.000000e+00 : f32
    %400 = vector.broadcast %cst_69 : f32 to vector<8x128xf32>
    %401 = arith.addf %400, %399 : vector<8x128xf32>
    %402 = arith.divf %400, %401 : vector<8x128xf32>
    %403 = vector.extract_strided_slice %371 {offsets = [0, 128], sizes = [8, 128], strides = [1, 1]} : vector<8x512xf32> to vector<8x128xf32>
    %404 = arith.negf %403 : vector<8x128xf32>
    %405 = math.exp %404 : vector<8x128xf32>
    %cst_70 = arith.constant 1.000000e+00 : f32
    %406 = vector.broadcast %cst_70 : f32 to vector<8x128xf32>
    %407 = arith.addf %406, %405 : vector<8x128xf32>
    %408 = arith.divf %406, %407 : vector<8x128xf32>
    %409 = vector.extract_strided_slice %371 {offsets = [0, 256], sizes = [8, 128], strides = [1, 1]} : vector<8x512xf32> to vector<8x128xf32>
    %410 = math.tanh %409 : vector<8x128xf32>
    %411 = vector.extract_strided_slice %371 {offsets = [0, 384], sizes = [8, 128], strides = [1, 1]} : vector<8x512xf32> to vector<8x128xf32>
    %412 = arith.negf %411 : vector<8x128xf32>
    %413 = math.exp %412 : vector<8x128xf32>
    %cst_71 = arith.constant 1.000000e+00 : f32
    %414 = vector.broadcast %cst_71 : f32 to vector<8x128xf32>
    %415 = arith.addf %414, %413 : vector<8x128xf32>
    %416 = arith.divf %414, %415 : vector<8x128xf32>
    %417 = arith.mulf %408, %361 : vector<8x128xf32>
    %418 = arith.mulf %402, %410 : vector<8x128xf32>
    %419 = arith.addf %417, %418 : vector<8x128xf32>
    %420 = math.tanh %419 : vector<8x128xf32>
    %421 = arith.mulf %416, %420 : vector<8x128xf32>
    %422 = vector.extract_strided_slice %6 {offsets = [56, 0], sizes = [8, 512], strides = [1, 1]} : vector<64x512xf32> to vector<8x512xf32>
    %423 = arith.truncf %396 : vector<8x128xf32> to vector<8x128xbf16>
    %cst_72 = arith.constant dense<0.000000e+00> : vector<8x512xf32>
    %424 = tpu.matmul %423, %12, %cst_72 {dimension_numbers = #tpu.dot_dimension_numbers<[1], [0], [0], [1], [0, 0, 1, 1], [], []>} : vector<8x128xbf16>, vector<128x512xbf16>, vector<8x512xf32> -> vector<8x512xf32>
    %425 = arith.addf %422, %424 : vector<8x512xf32>
    %426 = vector.extract_strided_slice %11 {offsets = [0, 0], sizes = [8, 512], strides = [1, 1]} : vector<64x512xf32> to vector<8x512xf32>
    %427 = arith.truncf %421 : vector<8x128xf32> to vector<8x128xbf16>
    %cst_73 = arith.constant dense<0.000000e+00> : vector<8x512xf32>
    %428 = tpu.matmul %427, %13, %cst_73 {dimension_numbers = #tpu.dot_dimension_numbers<[1], [0], [0], [1], [0, 0, 1, 1], [], []>} : vector<8x128xbf16>, vector<128x512xbf16>, vector<8x512xf32> -> vector<8x512xf32>
    %429 = arith.addf %426, %428 : vector<8x512xf32>
    %430 = vector.extract_strided_slice %425 {offsets = [0, 0], sizes = [8, 128], strides = [1, 1]} : vector<8x512xf32> to vector<8x128xf32>
    %431 = arith.negf %430 : vector<8x128xf32>
    %432 = math.exp %431 : vector<8x128xf32>
    %cst_74 = arith.constant 1.000000e+00 : f32
    %433 = vector.broadcast %cst_74 : f32 to vector<8x128xf32>
    %434 = arith.addf %433, %432 : vector<8x128xf32>
    %435 = arith.divf %433, %434 : vector<8x128xf32>
    %436 = vector.extract_strided_slice %425 {offsets = [0, 128], sizes = [8, 128], strides = [1, 1]} : vector<8x512xf32> to vector<8x128xf32>
    %437 = arith.negf %436 : vector<8x128xf32>
    %438 = math.exp %437 : vector<8x128xf32>
    %cst_75 = arith.constant 1.000000e+00 : f32
    %439 = vector.broadcast %cst_75 : f32 to vector<8x128xf32>
    %440 = arith.addf %439, %438 : vector<8x128xf32>
    %441 = arith.divf %439, %440 : vector<8x128xf32>
    %442 = vector.extract_strided_slice %425 {offsets = [0, 256], sizes = [8, 128], strides = [1, 1]} : vector<8x512xf32> to vector<8x128xf32>
    %443 = math.tanh %442 : vector<8x128xf32>
    %444 = vector.extract_strided_slice %425 {offsets = [0, 384], sizes = [8, 128], strides = [1, 1]} : vector<8x512xf32> to vector<8x128xf32>
    %445 = arith.negf %444 : vector<8x128xf32>
    %446 = math.exp %445 : vector<8x128xf32>
    %cst_76 = arith.constant 1.000000e+00 : f32
    %447 = vector.broadcast %cst_76 : f32 to vector<8x128xf32>
    %448 = arith.addf %447, %446 : vector<8x128xf32>
    %449 = arith.divf %447, %448 : vector<8x128xf32>
    %450 = arith.mulf %441, %394 : vector<8x128xf32>
    %451 = arith.mulf %435, %443 : vector<8x128xf32>
    %452 = arith.addf %450, %451 : vector<8x128xf32>
    %453 = math.tanh %452 : vector<8x128xf32>
    %454 = arith.mulf %449, %453 : vector<8x128xf32>
    %455 = vector.extract_strided_slice %429 {offsets = [0, 0], sizes = [8, 128], strides = [1, 1]} : vector<8x512xf32> to vector<8x128xf32>
    %456 = arith.negf %455 : vector<8x128xf32>
    %457 = math.exp %456 : vector<8x128xf32>
    %cst_77 = arith.constant 1.000000e+00 : f32
    %458 = vector.broadcast %cst_77 : f32 to vector<8x128xf32>
    %459 = arith.addf %458, %457 : vector<8x128xf32>
    %460 = arith.divf %458, %459 : vector<8x128xf32>
    %461 = vector.extract_strided_slice %429 {offsets = [0, 128], sizes = [8, 128], strides = [1, 1]} : vector<8x512xf32> to vector<8x128xf32>
    %462 = arith.negf %461 : vector<8x128xf32>
    %463 = math.exp %462 : vector<8x128xf32>
    %cst_78 = arith.constant 1.000000e+00 : f32
    %464 = vector.broadcast %cst_78 : f32 to vector<8x128xf32>
    %465 = arith.addf %464, %463 : vector<8x128xf32>
    %466 = arith.divf %464, %465 : vector<8x128xf32>
    %467 = vector.extract_strided_slice %429 {offsets = [0, 256], sizes = [8, 128], strides = [1, 1]} : vector<8x512xf32> to vector<8x128xf32>
    %468 = math.tanh %467 : vector<8x128xf32>
    %469 = vector.extract_strided_slice %429 {offsets = [0, 384], sizes = [8, 128], strides = [1, 1]} : vector<8x512xf32> to vector<8x128xf32>
    %470 = arith.negf %469 : vector<8x128xf32>
    %471 = math.exp %470 : vector<8x128xf32>
    %cst_79 = arith.constant 1.000000e+00 : f32
    %472 = vector.broadcast %cst_79 : f32 to vector<8x128xf32>
    %473 = arith.addf %472, %471 : vector<8x128xf32>
    %474 = arith.divf %472, %473 : vector<8x128xf32>
    %475 = arith.mulf %466, %419 : vector<8x128xf32>
    %476 = arith.mulf %460, %468 : vector<8x128xf32>
    %477 = arith.addf %475, %476 : vector<8x128xf32>
    %478 = math.tanh %477 : vector<8x128xf32>
    %479 = arith.mulf %474, %478 : vector<8x128xf32>
    %480 = tpu.concatenate %454, %479 in 1 : vector<8x128xf32>, vector<8x128xf32> -> vector<8x256xf32>
    %481 = vector.extract_strided_slice %480 {offsets = [0, 0], sizes = [1, 256], strides = [1, 1]} : vector<8x256xf32> to vector<1x256xf32>
    %482 = vector.extract_strided_slice %480 {offsets = [1, 0], sizes = [4, 256], strides = [1, 1]} : vector<8x256xf32> to vector<4x256xf32>
    %cst_80 = arith.constant 0.000000e+00 : f32
    %483 = vector.broadcast %cst_80 : f32 to vector<4x256xf32>
    %484 = tpu.concatenate %482, %483 in 0 : vector<4x256xf32>, vector<4x256xf32> -> vector<8x256xf32>
    %485 = arith.truncf %484 : vector<8x256xf32> to vector<8x256xbf16>
    %c0_81 = arith.constant 0 : index
    %c0_82 = arith.constant 0 : index
    %486 = vector.load %arg7[%c0_81, %c0_82] : memref<256x256xbf16, #tpu.memory_space<vmem>>, vector<256x256xbf16>
    %cst_83 = arith.constant dense<0.000000e+00> : vector<8x256xf32>
    %487 = tpu.matmul %485, %486, %cst_83 {dimension_numbers = #tpu.dot_dimension_numbers<[1], [0], [0], [1], [0, 0, 1, 1], [], []>} : vector<8x256xbf16>, vector<256x256xbf16>, vector<8x256xf32> -> vector<8x256xf32>
    %c0_84 = arith.constant 0 : index
    %c0_85 = arith.constant 0 : index
    %488 = vector.load %arg8[%c0_84, %c0_85] : memref<1x256xf32, #tpu.memory_space<vmem>>, vector<1x256xf32>
    %489 = vector.broadcast %488 : vector<1x256xf32> to vector<8x256xf32>
    %490 = arith.addf %487, %489 : vector<8x256xf32>
    %c0_86 = arith.constant 0 : index
    %c0_87 = arith.constant 0 : index
    %491 = vector.load %arg9[%c0_86, %c0_87] : memref<256x256xbf16, #tpu.memory_space<vmem>>, vector<256x256xbf16>
    %cst_88 = arith.constant dense<0.000000e+00> : vector<8x256xf32>
    %492 = tpu.matmul %485, %491, %cst_88 {dimension_numbers = #tpu.dot_dimension_numbers<[1], [0], [0], [1], [0, 0, 1, 1], [], []>} : vector<8x256xbf16>, vector<256x256xbf16>, vector<8x256xf32> -> vector<8x256xf32>
    %c0_89 = arith.constant 0 : index
    %c0_90 = arith.constant 0 : index
    %493 = vector.load %arg10[%c0_89, %c0_90] : memref<1x256xf32, #tpu.memory_space<vmem>>, vector<1x256xf32>
    %494 = vector.broadcast %493 : vector<1x256xf32> to vector<8x256xf32>
    %495 = arith.addf %492, %494 : vector<8x256xf32>
    %c0_91 = arith.constant 0 : index
    %c0_92 = arith.constant 0 : index
    %496 = vector.load %arg11[%c0_91, %c0_92] : memref<256x256xbf16, #tpu.memory_space<vmem>>, vector<256x256xbf16>
    %cst_93 = arith.constant dense<0.000000e+00> : vector<8x256xf32>
    %497 = tpu.matmul %485, %496, %cst_93 {dimension_numbers = #tpu.dot_dimension_numbers<[1], [0], [0], [1], [0, 0, 1, 1], [], []>} : vector<8x256xbf16>, vector<256x256xbf16>, vector<8x256xf32> -> vector<8x256xf32>
    %c0_94 = arith.constant 0 : index
    %c0_95 = arith.constant 0 : index
    %498 = vector.load %arg12[%c0_94, %c0_95] : memref<1x256xf32, #tpu.memory_space<vmem>>, vector<1x256xf32>
    %499 = vector.broadcast %498 : vector<1x256xf32> to vector<8x256xf32>
    %500 = arith.addf %497, %499 : vector<8x256xf32>
    %501 = arith.truncf %490 : vector<8x256xf32> to vector<8x256xbf16>
    %502 = arith.truncf %495 : vector<8x256xf32> to vector<8x256xbf16>
    %cst_96 = arith.constant dense<0.000000e+00> : vector<8x8xf32>
    %503 = tpu.matmul %501, %502, %cst_96 {dimension_numbers = #tpu.dot_dimension_numbers<[1], [1], [0], [0], [0, 0, 1, 0], [], []>} : vector<8x256xbf16>, vector<8x256xbf16>, vector<8x8xf32> -> vector<8x8xf32>
    %cst_97 = arith.constant dense<0xFF800000> : vector<8xf32>
    %504 = vector.multi_reduction <maximumf>, %503, %cst_97 [0] : vector<8x8xf32> to vector<8xf32>
    %505 = vector.shape_cast %504 : vector<8xf32> to vector<1x8xf32>
    %506 = vector.broadcast %505 : vector<1x8xf32> to vector<8x8xf32>
    %507 = arith.subf %503, %506 : vector<8x8xf32>
    %508 = math.exp %507 : vector<8x8xf32>
    %cst_98 = arith.constant dense<0.000000e+00> : vector<8xf32>
    %509 = vector.multi_reduction <add>, %508, %cst_98 [0] : vector<8x8xf32> to vector<8xf32>
    %510 = vector.shape_cast %509 : vector<8xf32> to vector<1x8xf32>
    %511 = tpu.reciprocal %510 {approx = true} : vector<1x8xf32> -> vector<1x8xf32>
    %512 = vector.broadcast %511 : vector<1x8xf32> to vector<8x8xf32>
    %513 = arith.mulf %508, %512 : vector<8x8xf32>
    %514 = arith.truncf %513 : vector<8x8xf32> to vector<8x8xbf16>
    %515 = arith.truncf %500 : vector<8x256xf32> to vector<8x256xbf16>
    %cst_99 = arith.constant dense<0.000000e+00> : vector<8x256xf32>
    %516 = tpu.matmul %514, %515, %cst_99 {dimension_numbers = #tpu.dot_dimension_numbers<[1], [0], [0], [1], [0, 0, 1, 1], [], []>} : vector<8x8xbf16>, vector<8x256xbf16>, vector<8x256xf32> -> vector<8x256xf32>
    %517 = arith.truncf %516 : vector<8x256xf32> to vector<8x256xbf16>
    %c0_100 = arith.constant 0 : index
    %c0_101 = arith.constant 0 : index
    %518 = vector.load %arg13[%c0_100, %c0_101] : memref<256x256xbf16, #tpu.memory_space<vmem>>, vector<256x256xbf16>
    %cst_102 = arith.constant dense<0.000000e+00> : vector<8x256xf32>
    %519 = tpu.matmul %517, %518, %cst_102 {dimension_numbers = #tpu.dot_dimension_numbers<[1], [0], [0], [1], [0, 0, 1, 1], [], []>} : vector<8x256xbf16>, vector<256x256xbf16>, vector<8x256xf32> -> vector<8x256xf32>
    %c0_103 = arith.constant 0 : index
    %c0_104 = arith.constant 0 : index
    %520 = vector.load %arg14[%c0_103, %c0_104] : memref<1x256xf32, #tpu.memory_space<vmem>>, vector<1x256xf32>
    %521 = vector.broadcast %520 : vector<1x256xf32> to vector<8x256xf32>
    %522 = arith.addf %519, %521 : vector<8x256xf32>
    %523 = vector.extract_strided_slice %522 {offsets = [0, 0], sizes = [1, 256], strides = [1, 1]} : vector<8x256xf32> to vector<1x256xf32>
    %524 = vector.extract_strided_slice %522 {offsets = [1, 0], sizes = [1, 256], strides = [1, 1]} : vector<8x256xf32> to vector<1x256xf32>
    %525 = vector.extract_strided_slice %522 {offsets = [2, 0], sizes = [1, 256], strides = [1, 1]} : vector<8x256xf32> to vector<1x256xf32>
    %526 = vector.extract_strided_slice %522 {offsets = [3, 0], sizes = [1, 256], strides = [1, 1]} : vector<8x256xf32> to vector<1x256xf32>
    %527 = vector.extract_strided_slice %522 {offsets = [4, 0], sizes = [1, 256], strides = [1, 1]} : vector<8x256xf32> to vector<1x256xf32>
    %528 = vector.extract_strided_slice %522 {offsets = [5, 0], sizes = [1, 256], strides = [1, 1]} : vector<8x256xf32> to vector<1x256xf32>
    %529 = vector.extract_strided_slice %522 {offsets = [6, 0], sizes = [1, 256], strides = [1, 1]} : vector<8x256xf32> to vector<1x256xf32>
    %530 = vector.extract_strided_slice %522 {offsets = [7, 0], sizes = [1, 256], strides = [1, 1]} : vector<8x256xf32> to vector<1x256xf32>
    %531 = tpu.concatenate %523, %524, %525, %526, %527, %528, %529, %530 in 1 : vector<1x256xf32>, vector<1x256xf32>, vector<1x256xf32>, vector<1x256xf32>, vector<1x256xf32>, vector<1x256xf32>, vector<1x256xf32>, vector<1x256xf32> -> vector<1x2048xf32>
    %532 = arith.truncf %531 : vector<1x2048xf32> to vector<1x2048xbf16>
    %c0_105 = arith.constant 0 : index
    %c0_106 = arith.constant 0 : index
    %533 = vector.load %arg15[%c0_105, %c0_106] : memref<2048x256xbf16, #tpu.memory_space<vmem>>, vector<2048x256xbf16>
    %cst_107 = arith.constant dense<0.000000e+00> : vector<1x256xf32>
    %534 = tpu.matmul %532, %533, %cst_107 {dimension_numbers = #tpu.dot_dimension_numbers<[1], [0], [0], [1], [0, 0, 1, 1], [], []>} : vector<1x2048xbf16>, vector<2048x256xbf16>, vector<1x256xf32> -> vector<1x256xf32>
    %c0_108 = arith.constant 0 : index
    %c0_109 = arith.constant 0 : index
    %535 = vector.load %arg16[%c0_108, %c0_109] : memref<1x256xf32, #tpu.memory_space<vmem>>, vector<1x256xf32>
    %536 = arith.addf %534, %535 : vector<1x256xf32>
    %cst_110 = arith.constant 0.000000e+00 : bf16
    %537 = vector.broadcast %cst_110 : bf16 to vector<6x256xbf16>
    %538 = tpu.concatenate %537, %485, %537 in 0 : vector<6x256xbf16>, vector<8x256xbf16>, vector<6x256xbf16> -> vector<20x256xbf16>
    %c0_111 = arith.constant 0 : index
    %c0_112 = arith.constant 0 : index
    %539 = vector.load %arg18[%c0_111, %c0_112] : memref<14x70xf32, #tpu.memory_space<vmem>>, vector<14x70xf32>
    %540 = vector.extract_strided_slice %538 {offsets = [0, 0], sizes = [14, 256], strides = [1, 1]} : vector<20x256xbf16> to vector<14x256xbf16>
    %c0_113 = arith.constant 0 : index
    %c0_114 = arith.constant 0 : index
    %c0_115 = arith.constant 0 : index
    %541 = vector.load %arg17[%c0_113, %c0_114, %c0_115] : memref<7x256x70xbf16, #tpu.memory_space<vmem>>, vector<1x256x70xbf16>
    %542 = vector.shape_cast %541 : vector<1x256x70xbf16> to vector<256x70xbf16>
    %cst_116 = arith.constant dense<0.000000e+00> : vector<14x70xf32>
    %543 = tpu.matmul %540, %542, %cst_116 {dimension_numbers = #tpu.dot_dimension_numbers<[1], [0], [0], [1], [0, 0, 1, 1], [], []>} : vector<14x256xbf16>, vector<256x70xbf16>, vector<14x70xf32> -> vector<14x70xf32>
    %544 = arith.addf %539, %543 : vector<14x70xf32>
    %545 = vector.extract_strided_slice %538 {offsets = [1, 0], sizes = [14, 256], strides = [1, 1]} : vector<20x256xbf16> to vector<14x256xbf16>
    %c1 = arith.constant 1 : index
    %c0_117 = arith.constant 0 : index
    %c0_118 = arith.constant 0 : index
    %546 = vector.load %arg17[%c1, %c0_117, %c0_118] : memref<7x256x70xbf16, #tpu.memory_space<vmem>>, vector<1x256x70xbf16>
    %547 = vector.shape_cast %546 : vector<1x256x70xbf16> to vector<256x70xbf16>
    %cst_119 = arith.constant dense<0.000000e+00> : vector<14x70xf32>
    %548 = tpu.matmul %545, %547, %cst_119 {dimension_numbers = #tpu.dot_dimension_numbers<[1], [0], [0], [1], [0, 0, 1, 1], [], []>} : vector<14x256xbf16>, vector<256x70xbf16>, vector<14x70xf32> -> vector<14x70xf32>
    %549 = arith.addf %544, %548 : vector<14x70xf32>
    %550 = vector.extract_strided_slice %538 {offsets = [2, 0], sizes = [14, 256], strides = [1, 1]} : vector<20x256xbf16> to vector<14x256xbf16>
    %c2 = arith.constant 2 : index
    %c0_120 = arith.constant 0 : index
    %c0_121 = arith.constant 0 : index
    %551 = vector.load %arg17[%c2, %c0_120, %c0_121] : memref<7x256x70xbf16, #tpu.memory_space<vmem>>, vector<1x256x70xbf16>
    %552 = vector.shape_cast %551 : vector<1x256x70xbf16> to vector<256x70xbf16>
    %cst_122 = arith.constant dense<0.000000e+00> : vector<14x70xf32>
    %553 = tpu.matmul %550, %552, %cst_122 {dimension_numbers = #tpu.dot_dimension_numbers<[1], [0], [0], [1], [0, 0, 1, 1], [], []>} : vector<14x256xbf16>, vector<256x70xbf16>, vector<14x70xf32> -> vector<14x70xf32>
    %554 = arith.addf %549, %553 : vector<14x70xf32>
    %555 = vector.extract_strided_slice %538 {offsets = [3, 0], sizes = [14, 256], strides = [1, 1]} : vector<20x256xbf16> to vector<14x256xbf16>
    %c3 = arith.constant 3 : index
    %c0_123 = arith.constant 0 : index
    %c0_124 = arith.constant 0 : index
    %556 = vector.load %arg17[%c3, %c0_123, %c0_124] : memref<7x256x70xbf16, #tpu.memory_space<vmem>>, vector<1x256x70xbf16>
    %557 = vector.shape_cast %556 : vector<1x256x70xbf16> to vector<256x70xbf16>
    %cst_125 = arith.constant dense<0.000000e+00> : vector<14x70xf32>
    %558 = tpu.matmul %555, %557, %cst_125 {dimension_numbers = #tpu.dot_dimension_numbers<[1], [0], [0], [1], [0, 0, 1, 1], [], []>} : vector<14x256xbf16>, vector<256x70xbf16>, vector<14x70xf32> -> vector<14x70xf32>
    %559 = arith.addf %554, %558 : vector<14x70xf32>
    %560 = vector.extract_strided_slice %538 {offsets = [4, 0], sizes = [14, 256], strides = [1, 1]} : vector<20x256xbf16> to vector<14x256xbf16>
    %c4 = arith.constant 4 : index
    %c0_126 = arith.constant 0 : index
    %c0_127 = arith.constant 0 : index
    %561 = vector.load %arg17[%c4, %c0_126, %c0_127] : memref<7x256x70xbf16, #tpu.memory_space<vmem>>, vector<1x256x70xbf16>
    %562 = vector.shape_cast %561 : vector<1x256x70xbf16> to vector<256x70xbf16>
    %cst_128 = arith.constant dense<0.000000e+00> : vector<14x70xf32>
    %563 = tpu.matmul %560, %562, %cst_128 {dimension_numbers = #tpu.dot_dimension_numbers<[1], [0], [0], [1], [0, 0, 1, 1], [], []>} : vector<14x256xbf16>, vector<256x70xbf16>, vector<14x70xf32> -> vector<14x70xf32>
    %564 = arith.addf %559, %563 : vector<14x70xf32>
    %565 = vector.extract_strided_slice %538 {offsets = [5, 0], sizes = [14, 256], strides = [1, 1]} : vector<20x256xbf16> to vector<14x256xbf16>
    %c5 = arith.constant 5 : index
    %c0_129 = arith.constant 0 : index
    %c0_130 = arith.constant 0 : index
    %566 = vector.load %arg17[%c5, %c0_129, %c0_130] : memref<7x256x70xbf16, #tpu.memory_space<vmem>>, vector<1x256x70xbf16>
    %567 = vector.shape_cast %566 : vector<1x256x70xbf16> to vector<256x70xbf16>
    %cst_131 = arith.constant dense<0.000000e+00> : vector<14x70xf32>
    %568 = tpu.matmul %565, %567, %cst_131 {dimension_numbers = #tpu.dot_dimension_numbers<[1], [0], [0], [1], [0, 0, 1, 1], [], []>} : vector<14x256xbf16>, vector<256x70xbf16>, vector<14x70xf32> -> vector<14x70xf32>
    %569 = arith.addf %564, %568 : vector<14x70xf32>
    %570 = vector.extract_strided_slice %538 {offsets = [6, 0], sizes = [14, 256], strides = [1, 1]} : vector<20x256xbf16> to vector<14x256xbf16>
    %c6 = arith.constant 6 : index
    %c0_132 = arith.constant 0 : index
    %c0_133 = arith.constant 0 : index
    %571 = vector.load %arg17[%c6, %c0_132, %c0_133] : memref<7x256x70xbf16, #tpu.memory_space<vmem>>, vector<1x256x70xbf16>
    %572 = vector.shape_cast %571 : vector<1x256x70xbf16> to vector<256x70xbf16>
    %cst_134 = arith.constant dense<0.000000e+00> : vector<14x70xf32>
    %573 = tpu.matmul %570, %572, %cst_134 {dimension_numbers = #tpu.dot_dimension_numbers<[1], [0], [0], [1], [0, 0, 1, 1], [], []>} : vector<14x256xbf16>, vector<256x70xbf16>, vector<14x70xf32> -> vector<14x70xf32>
    %574 = arith.addf %569, %573 : vector<14x70xf32>
    %cst_135 = arith.constant dense<0xFF800000> : vector<70xf32>
    %575 = vector.multi_reduction <maximumf>, %574, %cst_135 [0] : vector<14x70xf32> to vector<70xf32>
    %576 = vector.shape_cast %575 : vector<70xf32> to vector<1x70xf32>
    %577 = arith.subf %536, %481 : vector<1x256xf32>
    %578 = math.absf %577 : vector<1x256xf32>
    %579 = arith.mulf %536, %481 : vector<1x256xf32>
    %c0_136 = arith.constant 0 : index
    %c0_137 = arith.constant 0 : index
    %580 = vector.load %arg19[%c0_136, %c0_137] : memref<256x128xf32, #tpu.memory_space<vmem>>, vector<256x128xf32>
    %cst_138 = arith.constant dense<0.000000e+00> : vector<1x128xf32>
    %581 = tpu.matmul %481, %580, %cst_138 {dimension_numbers = #tpu.dot_dimension_numbers<[1], [0], [0], [1], [0, 0, 1, 1], [], []>} : vector<1x256xf32>, vector<256x128xf32>, vector<1x128xf32> -> vector<1x128xf32>
    %c0_139 = arith.constant 0 : index
    %c0_140 = arith.constant 0 : index
    %582 = vector.load %arg20[%c0_139, %c0_140] : memref<256x128xf32, #tpu.memory_space<vmem>>, vector<256x128xf32>
    %cst_141 = arith.constant dense<0.000000e+00> : vector<1x128xf32>
    %583 = tpu.matmul %536, %582, %cst_141 {dimension_numbers = #tpu.dot_dimension_numbers<[1], [0], [0], [1], [0, 0, 1, 1], [], []>} : vector<1x256xf32>, vector<256x128xf32>, vector<1x128xf32> -> vector<1x128xf32>
    %584 = arith.addf %581, %583 : vector<1x128xf32>
    %c0_142 = arith.constant 0 : index
    %c0_143 = arith.constant 0 : index
    %585 = vector.load %arg21[%c0_142, %c0_143] : memref<256x128xf32, #tpu.memory_space<vmem>>, vector<256x128xf32>
    %cst_144 = arith.constant dense<0.000000e+00> : vector<1x128xf32>
    %586 = tpu.matmul %578, %585, %cst_144 {dimension_numbers = #tpu.dot_dimension_numbers<[1], [0], [0], [1], [0, 0, 1, 1], [], []>} : vector<1x256xf32>, vector<256x128xf32>, vector<1x128xf32> -> vector<1x128xf32>
    %587 = arith.addf %584, %586 : vector<1x128xf32>
    %c0_145 = arith.constant 0 : index
    %c0_146 = arith.constant 0 : index
    %588 = vector.load %arg22[%c0_145, %c0_146] : memref<256x128xf32, #tpu.memory_space<vmem>>, vector<256x128xf32>
    %cst_147 = arith.constant dense<0.000000e+00> : vector<1x128xf32>
    %589 = tpu.matmul %579, %588, %cst_147 {dimension_numbers = #tpu.dot_dimension_numbers<[1], [0], [0], [1], [0, 0, 1, 1], [], []>} : vector<1x256xf32>, vector<256x128xf32>, vector<1x128xf32> -> vector<1x128xf32>
    %590 = arith.addf %587, %589 : vector<1x128xf32>
    %c0_148 = arith.constant 0 : index
    %c0_149 = arith.constant 0 : index
    %591 = vector.load %arg23[%c0_148, %c0_149] : memref<70x128xf32, #tpu.memory_space<vmem>>, vector<70x128xf32>
    %cst_150 = arith.constant dense<0.000000e+00> : vector<1x128xf32>
    %592 = tpu.matmul %576, %591, %cst_150 {dimension_numbers = #tpu.dot_dimension_numbers<[1], [0], [0], [1], [0, 0, 1, 1], [], []>} : vector<1x70xf32>, vector<70x128xf32>, vector<1x128xf32> -> vector<1x128xf32>
    %593 = arith.addf %590, %592 : vector<1x128xf32>
    %c0_151 = arith.constant 0 : index
    %c0_152 = arith.constant 0 : index
    %594 = vector.load %arg24[%c0_151, %c0_152] : memref<1x128xf32, #tpu.memory_space<vmem>>, vector<1x128xf32>
    %595 = arith.addf %593, %594 : vector<1x128xf32>
    %596 = arith.negf %595 : vector<1x128xf32>
    %597 = math.exp %596 : vector<1x128xf32>
    %cst_153 = arith.constant 1.000000e+00 : f32
    %598 = vector.broadcast %cst_153 : f32 to vector<1x128xf32>
    %599 = arith.addf %598, %597 : vector<1x128xf32>
    %600 = arith.divf %598, %599 : vector<1x128xf32>
    %c0_154 = arith.constant 0 : index
    %c0_155 = arith.constant 0 : index
    %601 = vector.load %arg25[%c0_154, %c0_155] : memref<128x2xf32, #tpu.memory_space<vmem>>, vector<128x2xf32>
    %cst_156 = arith.constant dense<0.000000e+00> : vector<1x2xf32>
    %602 = tpu.matmul %600, %601, %cst_156 {dimension_numbers = #tpu.dot_dimension_numbers<[1], [0], [0], [1], [0, 0, 1, 1], [], []>} : vector<1x128xf32>, vector<128x2xf32>, vector<1x2xf32> -> vector<1x2xf32>
    %c0_157 = arith.constant 0 : index
    %c0_158 = arith.constant 0 : index
    %603 = vector.load %arg26[%c0_157, %c0_158] : memref<1x2xf32, #tpu.memory_space<vmem>>, vector<1x2xf32>
    %604 = arith.addf %602, %603 : vector<1x2xf32>
    %c0_159 = arith.constant 0 : index
    %c0_160 = arith.constant 0 : index
    %605 = vector.load %arg27[%c0_159, %c0_160] : memref<1x2xf32, #tpu.memory_space<vmem>>, vector<1x2xf32>
    tpu.vector_store %arg27[%c0_159, %c0_160], %604 {strides = array<i32>} : memref<1x2xf32, #tpu.memory_space<vmem>>, vector<1x2xf32>,
    return
  }
}

</mosaic_0001>

<bundles_post_ra>
// kernel: tpu_custom_call.1
= control target key start
LH: loop header
LB: loop body
LE: loop exit
PB: predicated region body
PF: predicated region fallthrough
CT: control target
= control target key end

     0   :  { %s13878_s0 = inlined_call_operand.hbm [shape: f32[64,64], index: 0, kind: input, shape index: {}]   ;;  %s13879_s1 = inlined_call_operand.hbm [shape: bf16[64,512], index: 1, kind: input, shape index: {}]   ;;  %s13880_s2 = inlined_call_operand.vmem [shape: bf16[128,512], index: 2, kind: input, shape index: {}]   ;;  %s13881_s3 = inlined_call_operand.vmem [shape: f32[1,512], index: 3, kind: input, shape index: {}]   ;;  %s13882_s4 = inlined_call_operand.hbm [shape: bf16[64,512], index: 4, kind: input, shape index: {}]   ;;  %s13883_s5 = inlined_call_operand.vmem [shape: bf16[128,512], index: 5, kind: input, shape index: {}]   ;;  %s13884_s6 = inlined_call_operand.vmem [shape: f32[1,512], index: 6, kind: input, shape index: {}]   ;;  %s13885_s7 = inlined_call_operand.vmem [shape: bf16[256,256], index: 7, kind: input, shape index: {}]   ;;  %s13886_s8 = inlined_call_operand.hbm [shape: f32[1,256], index: 8, kind: input, shape index: {}]   ;;  %s13887_s9 = inlined_call_operand.vmem [shape: bf16[256,256], index: 9, kind: input, shape index: {}]   ;;  %s13888_s10 = inlined_call_operand.hbm [shape: f32[1,256], index: 10, kind: input, shape index: {}]   ;;  %s13889_s11 = inlined_call_operand.vmem [shape: bf16[256,256], index: 11, kind: input, shape index: {}]   ;;  %s13890_s12 = inlined_call_operand.hbm [shape: f32[1,256], index: 12, kind: input, shape index: {}]   ;;  %s13891_s13 = inlined_call_operand.vmem [shape: bf16[256,256], index: 13, kind: input, shape index: {}]   ;;  %s13892_s14 = inlined_call_operand.hbm [shape: f32[1,256], index: 14, kind: input, shape index: {}]   ;;  %s13893_s15 = inlined_call_operand.hbm [shape: bf16[2048,256], index: 15, kind: input, shape index: {}]   ;;  %s13894_s16 = inlined_call_operand.hbm [shape: f32[1,256], index: 16, kind: input, shape index: {}]   ;;  %s13895_s17 = inlined_call_operand.vmem [shape: bf16[7,256,70], index: 17, kind: input, shape index: {}]   ;;  %s13896_s18 = inlined_call_operand.vmem [shape: f32[14,70], index: 18, kind: input, shape index: {}]   ;;  %s13897_s19 = inlined_call_operand.hbm [shape: f32[256,128], index: 19, kind: input, shape index: {}]   ;;  %s13898_s20 = inlined_call_operand.hbm [shape: f32[256,128], index: 20, kind: input, shape index: {}]   ;;  %s13899_s21 = inlined_call_operand.hbm [shape: f32[256,128], index: 21, kind: input, shape index: {}]   ;;  %s13900_s22 = inlined_call_operand.hbm [shape: f32[256,128], index: 22, kind: input, shape index: {}]   ;;  %s13901_s23 = inlined_call_operand.hbm [shape: f32[70,128], index: 23, kind: input, shape index: {}]   ;;  %s13902_s24 = inlined_call_operand.hbm [shape: f32[1,128], index: 24, kind: input, shape index: {}]   ;;  %s13903_s25 = inlined_call_operand.vmem [shape: f32[128,2], index: 25, kind: input, shape index: {}]   ;;  %s13904_s26 = inlined_call_operand.hbm [shape: f32[1,2], index: 26, kind: input, shape index: {}]   ;;  %s13905_s27 = inlined_call_operand.hbm [shape: f32[1,2], index: 27, kind: output, shape index: {}]  }
   0x1   :  { %14011 = sst [smem:[#allocation124_spill]] %s13878_s0 }
   0x2   :  { %14012 = sst [smem:[#allocation125_spill]] %s13879_s1 }
   0x3   :  { %14013 = sst [smem:[#allocation126_spill]] %s13880_s2 }
   0x4   :  { %14014 = sst [smem:[#allocation127_spill]] %s13881_s3 }
   0x5   :  { %14015 = sst [smem:[#allocation128_spill]] %s13882_s4 }
   0x6   :  { %14016 = sst [smem:[#allocation129_spill]] %s13883_s5 }
   0x7   :  { %14017 = sst [smem:[#allocation130_spill]] %s13884_s6 }
   0x8   :  { %14018 = sst [smem:[#allocation131_spill]] %s13885_s7 }
   0x9   :  { %14019 = sst [smem:[#allocation132_spill]] %s13886_s8 }
   0xa   :  { %14020 = sst [smem:[#allocation133_spill]] %s13887_s9 }
   0xb   :  { %14021 = sst [smem:[#allocation134_spill]] %s13888_s10 }
   0xc   :  { %14022 = sst [smem:[#allocation135_spill]] %s13889_s11 }
   0xd   :  { %32 = vsyncpa [#allocation3], 0 }
   0xe   :  { %33 = vsyncpa [#allocation6], 0 }
   0xf   :  { %34 = vsyncpa [#allocation9], 0 }
  0x10   :  { %35 = vsyncpa [#allocation12], 0 }
  0x11   :  { %36 = vsyncpa [#allocation15], 0 }
  0x12   :  { %37 = vsyncpa [#allocation18], 0 }
  0x13   :  { %38 = vsyncpa [#allocation21], 0 }
  0x14   :  { %39 = vsyncpa [#allocation24], 0 }
  0x15   :  { %40 = vsyncpa [#allocation27], 0 }
  0x16   :  { %41 = vsyncpa [#allocation4], 0  ;;  %s10821_s7 = smov [#allocation5]  }
  0x17   :  { %s59_s4 = sshll.u32 %s10821_s7, 4  ;;  %s60_s4 = int_to_ptr.vmem [resolvable:$true] %s59_s4 }
  0x18   :  { %s10469_s8 = scalar_lea.vmem %s60_s4, 2048  ;;  %p10474_p1 = scmp.lt.s32.totalorder %s60_s4, %s60_s4 }
  0x19   :  { %p10470_p0 = scmp.ne.s32.totalorder %s60_s4, %s10469_s8  ;;  %p10475_p2 = scmp.lt.s32.totalorder %s10469_s8, %s10469_s8 }
  0x1b   :  { %p10476_p3 = por %p10475_p2, %p10474_p1 }
  0x1d   :  { %p10477_p4 = pnand %p10476_p3, %p10470_p0 }
  0x1f   :  { %10480 = shalt.err (!%p10477_p4)
}
  0x20   :  { %s10822_s30 = smov 256   ;;  %s10823_s9 = smov 16  }
  0x21   :  { %s14023_s0 = sld [smem:[#allocation125_spill]]  ;;  %s10824_s10 = smov [#allocation8]  }
  0x22   :  { %s94_s29 = sshll.u32 %s10824_s10, 4  ;;  %s10825_s1 = smov [#allocation11]   ;;  %s95_s29 = int_to_ptr.vmem [resolvable:$true] %s94_s29 }
  0x23   :  { %s118_s6 = sshll.u32 %s10825_s1, 4  ;;  %s10489_s11 = scalar_lea.vmem %s95_s29, 32  ;;  %s119_s6 = int_to_ptr.vmem [resolvable:$true] %s118_s6 }
  0x24   :  { %p10490_p5 = scmp.ne.s32.totalorder %s95_s29, %s10489_s11  ;;  %p10494_p6 = scmp.lt.s32.totalorder %s95_s29, %s95_s29 }
  0x25   :  { %p10495_p7 = scmp.lt.s32.totalorder %s10489_s11, %s10489_s11 }
  0x27   :  { %65 = dma.hbm_to_vmem [thread:$0]  %s14023_s0, 2048, %s60_s4, [#allocation6], %s10822_s30, %s10822_s30, %s10823_s9  }
  0x28   :  { %p10496_p8 = por %p10495_p7, %p10494_p6 }
  0x2a   :  { %p10497_p9 = pnand %p10496_p8, %p10490_p5 }
  0x2c   :  { %10500 = shalt.err (!%p10497_p9)
}
  0x2d   :  { %s14024_s7 = sld [smem:[#allocation132_spill]]  ;;  %s10509_s8 = scalar_lea.vmem %s119_s6, 32 }
  0x2e   :  { %p10510_p10 = scmp.ne.s32.totalorder %s119_s6, %s10509_s8  ;;  %p10514_p11 = scmp.lt.s32.totalorder %s119_s6, %s119_s6 }
  0x2f   :  { %p10515_p12 = scmp.lt.s32.totalorder %s10509_s8, %s10509_s8 }
  0x31   :  { %p10516_p13 = por %p10515_p12, %p10514_p11 }
  0x33   :  { %97 = dma.hbm_to_vmem [thread:$0]  %s14024_s7, 32, %s95_s29, [#allocation9]  }
  0x34   :  { %p10517_p0 = pnand %p10516_p13, %p10510_p10 }
  0x36   :  { %10520 = shalt.err (!%p10517_p0)
}
  0x37   :  { %121 = dma.hbm_to_vmem [thread:$0]  %s13890_s12, 32, %s119_s6, [#allocation12]  }
  0x38   :  { %s10826_s28 = smov [#allocation14]   ;;  %s10827_s10 = smov [#allocation17]  }
  0x39   :  { %s139_s0 = sshll.u32 %s10826_s28, 4  ;;  %s165_s1 = sshll.u32 %s10827_s10, 4  ;;  %s140_s0 = int_to_ptr.vmem [resolvable:$true] %s139_s0  ;;  %s166_s1 = int_to_ptr.vmem [resolvable:$true] %s165_s1 }
  0x3a   :  { %s10529_s11 = scalar_lea.vmem %s140_s0, 32768  ;;  %p10534_p2 = scmp.lt.s32.totalorder %s140_s0, %s140_s0 }
  0x3b   :  { %p10530_p1 = scmp.ne.s32.totalorder %s140_s0, %s10529_s11  ;;  %p10535_p3 = scmp.lt.s32.totalorder %s10529_s11, %s10529_s11 }
  0x3d   :  { %p10536_p4 = por %p10535_p3, %p10534_p2 }
  0x3f   :  { %p10537_p5 = pnand %p10536_p4, %p10530_p1 }
  0x41   :  { %10540 = shalt.err (!%p10537_p5)
}
  0x42   :  { %s10828_s29 = smov 128   ;;  %s10829_s2 = smov 8  }
  0x43   :  { %145 = dma.hbm_to_vmem [thread:$0]  %s13893_s15, 32768, %s140_s0, [#allocation15], %s10828_s29, %s10828_s29, %s10829_s2  }
  0x44   :  { %s10549_s12 = scalar_lea.vmem %s166_s1, 4096  ;;  %p10554_p7 = scmp.lt.s32.totalorder %s166_s1, %s166_s1 }
  0x45   :  { %p10550_p6 = scmp.ne.s32.totalorder %s166_s1, %s10549_s12  ;;  %p10555_p8 = scmp.lt.s32.totalorder %s10549_s12, %s10549_s12 }
  0x47   :  { %p10556_p9 = por %p10555_p8, %p10554_p7 }
  0x49   :  { %p10557_p10 = pnand %p10556_p9, %p10550_p6 }
  0x4b   :  { %10560 = shalt.err (!%p10557_p10)
}
  0x4c   :  { %171 = dma.hbm_to_vmem [thread:$0]  %s13897_s19, 4096, %s166_s1, [#allocation18], %s10828_s29, %s10828_s29, %s10829_s2  }
  0x4d   :  { %s10830_s4 = smov [#allocation20]   ;;  %s10831_s28 = smov [#allocation23]  }
  0x4e   :  { %s189_s5 = sshll.u32 %s10830_s4, 4  ;;  %s213_s15 = sshll.u32 %s10831_s28, 4  ;;  %s190_s5 = int_to_ptr.vmem [resolvable:$true] %s189_s5  ;;  %s214_s15 = int_to_ptr.vmem [resolvable:$true] %s213_s15 }
  0x4f   :  { %s10569_s0 = scalar_lea.vmem %s190_s5, 4096  ;;  %p10574_p12 = scmp.lt.s32.totalorder %s190_s5, %s190_s5 }
  0x50   :  { %p10570_p11 = scmp.ne.s32.totalorder %s190_s5, %s10569_s0  ;;  %p10575_p13 = scmp.lt.s32.totalorder %s10569_s0, %s10569_s0 }
  0x52   :  { %p10576_p0 = por %p10575_p13, %p10574_p12 }
  0x54   :  { %p10577_p1 = pnand %p10576_p0, %p10570_p11 }
  0x56   :  { %10580 = shalt.err (!%p10577_p1)
}
  0x57   :  { %195 = dma.hbm_to_vmem [thread:$0]  %s13899_s21, 4096, %s190_s5, [#allocation21], %s10828_s29, %s10828_s29, %s10829_s2  }
  0x58   :  { %s10589_s19 = scalar_lea.vmem %s214_s15, 1152  ;;  %p10594_p3 = scmp.lt.s32.totalorder %s214_s15, %s214_s15 }
  0x59   :  { %p10590_p2 = scmp.ne.s32.totalorder %s214_s15, %s10589_s19  ;;  %p10595_p4 = scmp.lt.s32.totalorder %s10589_s19, %s10589_s19 }
  0x5b   :  { %p10596_p5 = por %p10595_p4, %p10594_p3 }
  0x5d   :  { %p10597_p6 = pnand %p10596_p5, %p10590_p2 }
  0x5f   :  { %10600 = shalt.err (!%p10597_p6)
}
  0x60   :  { %219 = dma.hbm_to_vmem [thread:$0]  %s13901_s23, 1152, %s214_s15, [#allocation24], %s10828_s29, %s10828_s29, %s10829_s2  }
  0x61   :  { %s10832_s7 = smov [#allocation2]   ;;  %s10833_s6 = smov [#allocation7]  }
  0x62   :  { %s47_s12 = sshll.u32 %s10832_s7, 4  ;;  %s75_s21 = sshll.u32 %s10833_s6, 4  ;;  %s48_s12 = int_to_ptr.vmem [resolvable:$true] %s47_s12  ;;  %s76_s21 = int_to_ptr.vmem [resolvable:$true] %s75_s21 }
  0x63   :  { %s10609_s8 = scalar_lea.vmem %s48_s12, 1024  ;;  %p10614_p8 = scmp.lt.s32.totalorder %s48_s12, %s48_s12 }
  0x64   :  { %p10610_p7 = scmp.ne.s32.totalorder %s48_s12, %s10609_s8  ;;  %p10615_p9 = scmp.lt.s32.totalorder %s10609_s8, %s10609_s8 }
  0x66   :  { %p10616_p10 = por %p10615_p9, %p10614_p8 }
  0x68   :  { %p10617_p11 = pnand %p10616_p10, %p10610_p7 }
  0x6a   :  { %10620 = shalt.err (!%p10617_p11)
}
  0x6b   :  { %s14025_s28 = sld [smem:[#allocation124_spill]]  ;;  %s10629_s23 = scalar_lea.vmem %s76_s21, 2048 }
  0x6c   :  { %p10630_p12 = scmp.ne.s32.totalorder %s76_s21, %s10629_s23  ;;  %p10634_p13 = scmp.lt.s32.totalorder %s76_s21, %s76_s21 }
  0x6d   :  { %p10635_p0 = scmp.lt.s32.totalorder %s10629_s23, %s10629_s23 }
  0x6f   :  { %p10636_p1 = por %p10635_p0, %p10634_p13 }
  0x71   :  { %53 = dma.hbm_to_vmem [thread:$0]  %s14025_s28, 1024, %s48_s12, [#allocation3], %s10828_s29, %s10828_s29, %s10829_s2  }
  0x72   :  { %p10637_p2 = pnand %p10636_p1, %p10630_p12 }
  0x74   :  { %10640 = shalt.err (!%p10637_p2)
}
  0x75   :  { %s14026_s10 = sld [smem:[#allocation128_spill]]  ;;  %s10834_s11 = smov [#allocation10]  }
  0x76   :  { %s106_s19 = sshll.u32 %s10834_s11, 4  ;;  %s10835_s1 = smov [#allocation13]   ;;  %s107_s19 = int_to_ptr.vmem [resolvable:$true] %s106_s19 }
  0x77   :  { %s130_s3 = sshll.u32 %s10835_s1, 4  ;;  %s10649_s7 = scalar_lea.vmem %s107_s19, 32  ;;  %s131_s3 = int_to_ptr.vmem [resolvable:$true] %s130_s3 }
  0x78   :  { %p10650_p3 = scmp.ne.s32.totalorder %s107_s19, %s10649_s7  ;;  %p10654_p4 = scmp.lt.s32.totalorder %s107_s19, %s107_s19 }
  0x79   :  { %p10655_p5 = scmp.lt.s32.totalorder %s10649_s7, %s10649_s7 }
  0x7b   :  { %81 = dma.hbm_to_vmem [thread:$0]  %s14026_s10, 2048, %s76_s21, [#allocation6], %s10822_s30, %s10822_s30, %s10823_s9  }
  0x7c   :  { %p10656_p6 = por %p10655_p5, %p10654_p4 }
  0x7e   :  { %p10657_p7 = pnand %p10656_p6, %p10650_p3 }
  0x80   :  { %10660 = shalt.err (!%p10657_p7)
}
  0x81   :  { %s14027_s8 = sld [smem:[#allocation134_spill]]  ;;  %s10669_s4 = scalar_lea.vmem %s131_s3, 32 }
  0x82   :  { %p10670_p8 = scmp.ne.s32.totalorder %s131_s3, %s10669_s4  ;;  %p10674_p9 = scmp.lt.s32.totalorder %s131_s3, %s131_s3 }
  0x83   :  { %p10675_p10 = scmp.lt.s32.totalorder %s10669_s4, %s10669_s4 }
  0x85   :  { %p10676_p11 = por %p10675_p10, %p10674_p9 }
  0x87   :  { %109 = dma.hbm_to_vmem [thread:$0]  %s14027_s8, 32, %s107_s19, [#allocation9]  }
  0x88   :  { %p10677_p12 = pnand %p10676_p11, %p10670_p8 }
  0x8a   :  { %10680 = shalt.err (!%p10677_p12)
}
  0x8b   :  { %133 = dma.hbm_to_vmem [thread:$0]  %s13892_s14, 32, %s131_s3, [#allocation12]  }
  0x8c   :  { %s10836_s21 = smov [#allocation16]   ;;  %s10837_s28 = smov [#allocation19]  }
  0x8d   :  { %s152_s5 = sshll.u32 %s10836_s21, 4  ;;  %s177_s23 = sshll.u32 %s10837_s28, 4  ;;  %s153_s5 = int_to_ptr.vmem [resolvable:$true] %s152_s5  ;;  %s178_s23 = int_to_ptr.vmem [resolvable:$true] %s177_s23 }
  0x8e   :  { %s10689_s15 = scalar_lea.vmem %s153_s5, 32  ;;  %p10694_p0 = scmp.lt.s32.totalorder %s153_s5, %s153_s5 }
  0x8f   :  { %p10690_p13 = scmp.ne.s32.totalorder %s153_s5, %s10689_s15  ;;  %p10695_p1 = scmp.lt.s32.totalorder %s10689_s15, %s10689_s15 }
  0x91   :  { %p10696_p2 = por %p10695_p1, %p10694_p0 }
  0x93   :  { %p10697_p3 = pnand %p10696_p2, %p10690_p13 }
  0x95   :  { %10700 = shalt.err (!%p10697_p3)
}
  0x96   :  { %155 = dma.hbm_to_vmem [thread:$0]  %s13894_s16, 32, %s153_s5, [#allocation15]  }
  0x97   :  { %s10709_s11 = scalar_lea.vmem %s178_s23, 4096  ;;  %p10714_p5 = scmp.lt.s32.totalorder %s178_s23, %s178_s23 }
  0x98   :  { %p10710_p4 = scmp.ne.s32.totalorder %s178_s23, %s10709_s11  ;;  %p10715_p6 = scmp.lt.s32.totalorder %s10709_s11, %s10709_s11 }
  0x9a   :  { %p10716_p7 = por %p10715_p6, %p10714_p5 }
  0x9c   :  { %p10717_p8 = pnand %p10716_p7, %p10710_p4 }
  0x9e   :  { %10720 = shalt.err (!%p10717_p8)
}
  0x9f   :  { %183 = dma.hbm_to_vmem [thread:$0]  %s13898_s20, 4096, %s178_s23, [#allocation18], %s10828_s29, %s10828_s29, %s10829_s2  }
  0xa0   :  { %s10838_s1 = smov [#allocation22]   ;;  %s10839_s7 = smov [#allocation25]  }
  0xa1   :  { %s201_s3 = sshll.u32 %s10838_s1, 4  ;;  %s226_s16 = sshll.u32 %s10839_s7, 4  ;;  %s202_s3 = int_to_ptr.vmem [resolvable:$true] %s201_s3  ;;  %s227_s16 = int_to_ptr.vmem [resolvable:$true] %s226_s16 }
  0xa2   :  { %s10729_s12 = scalar_lea.vmem %s202_s3, 4096  ;;  %p10734_p10 = scmp.lt.s32.totalorder %s202_s3, %s202_s3 }
  0xa3   :  { %p10730_p9 = scmp.ne.s32.totalorder %s202_s3, %s10729_s12  ;;  %p10735_p11 = scmp.lt.s32.totalorder %s10729_s12, %s10729_s12 }
  0xa5   :  { %p10736_p12 = por %p10735_p11, %p10734_p10 }
  0xa7   :  { %p10737_p13 = pnand %p10736_p12, %p10730_p9 }
  0xa9   :  { %10740 = shalt.err (!%p10737_p13)
}
  0xaa   :  { %207 = dma.hbm_to_vmem [thread:$0]  %s13900_s22, 4096, %s202_s3, [#allocation21], %s10828_s29, %s10828_s29, %s10829_s2  }
  0xab   :  { %s10749_s20 = scalar_lea.vmem %s227_s16, 16  ;;  %s10753_s4 = scalar_lea.vmem %s227_s16, 32 }
  0xac   :  { %p10750_p0 = scmp.ne.s32.totalorder %s227_s16, %s10749_s20  ;;  %p10754_p1 = scmp.lt.s32.totalorder %s227_s16, %s227_s16 }
  0xad   :  { %p10755_p2 = scmp.lt.s32.totalorder %s10753_s4, %s10749_s20 }
  0xaf   :  { %p10756_p3 = por %p10755_p2, %p10754_p1 }
  0xb1   :  { %p10757_p4 = pnand %p10756_p3, %p10750_p0 }
  0xb3   :  { %10760 = shalt.err (!%p10757_p4)
}
  0xb4   :  { %229 = dma.hbm_to_vmem [thread:$0]  %s13902_s24, 16, %s227_s16, [#allocation24]  }
  0xb5   :  { %s10840_s21 = smov [#allocation26]  }
  0xb6   :  { %s238_s5 = sshll.u32 %s10840_s21, 4  ;;  %s239_s5 = int_to_ptr.vmem [resolvable:$true] %s238_s5 }
  0xb7   :  { %s10769_s28 = scalar_lea.vmem %s239_s5, 16  ;;  %s10773_s23 = scalar_lea.vmem %s239_s5, 32 }
  0xb8   :  { %p10770_p5 = scmp.ne.s32.totalorder %s239_s5, %s10769_s28  ;;  %p10774_p6 = scmp.lt.s32.totalorder %s239_s5, %s239_s5 }
  0xb9   :  { %p10775_p7 = scmp.lt.s32.totalorder %s10773_s23, %s10769_s28 }
  0xbb   :  { %p10776_p8 = por %p10775_p7, %p10774_p6 }
  0xbd   :  { %p10777_p9 = pnand %p10776_p8, %p10770_p5 }
  0xbf   :  { %10780 = shalt.err (!%p10777_p9)
}
  0xc0   :  { %241 = dma.hbm_to_vmem [thread:$0]  %s13904_s26, 16, %s239_s5, [#allocation27]  }
  0xc1   :  { %10801 = dma.done.wait [#allocation3], 1024  }
  0xc2   :  { %10802 = vsyncadd [#allocation3], 4294966272 }
  0xc3   :  { %10803 = dma.done.wait [#allocation6], 4096  }
  0xc4   :  { %10804 = vsyncadd [#allocation6], 4294963200 }
  0xc5   :  { %10805 = dma.done.wait [#allocation9], 64  }
  0xc6   :  { %10806 = vsyncadd [#allocation9], 4294967232 }
  0xc7   :  { %10807 = dma.done.wait [#allocation12], 64  }
  0xc8   :  { %10808 = vsyncadd [#allocation12], 4294967232 }
  0xc9   :  { %10809 = dma.done.wait [#allocation15], 32800  }
  0xca   :  { %10810 = vsyncadd [#allocation15], 4294934496 }
  0xcb   :  { %10811 = dma.done.wait [#allocation18], 8192  }
  0xcc   :  { %10812 = vsyncadd [#allocation18], 4294959104 }
  0xcd   :  { %10813 = dma.done.wait [#allocation21], 8192  }
  0xce   :  { %10814 = vsyncadd [#allocation21], 4294959104 }
  0xcf   :  { %10815 = dma.done.wait [#allocation24], 1168  }
  0xd0   :  { %10816 = vsyncadd [#allocation24], 4294966128 }
  0xd1   :  { %10817 = dma.done.wait [#allocation27], 16  }
  0xd2   :  { %10818 = vsyncadd [#allocation27], 4294967280  ;;  %v13911_v0 = vmov 0   ;;  %v9237_v1 = vld [vmem:[#allocation5 + $0x64] ss:$16 sps:$4 sm:$0xff]   ;;  %v292_v10 = vld [vmem:[#allocation2 + $0x8] sm:$0xff] }
  0xd3   :  { %466 = vmatprep.mubr.bf16.mxu0 %v13911_v0  ;;  %486 = vmatprep.mubr.bf16.mxu1 %v13911_v0  ;;  %v9239_v2 = vld [vmem:[#allocation5 + $0x60] ss:$16 sps:$4 sm:$0xff]   ;;  %v9240_v3 = vld [vmem:[#allocation5 + $0x44] ss:$16 sps:$4 sm:$0xff]   ;;  %v296_v12 = vld [vmem:[#allocation2 + $0x28] sm:$0xff]  ;;  %vm421_vm0 = vcmask 523264  }
  0xd4   :  { %442 = vmatprep.subr.bf16.mxu0 %v9237_v1  ;;  %9205 = vmatprep.subr.bf16.mxu1 %v9237_v1  ;;  %v9242_v4 = vld [vmem:[#allocation5 + $0x40] ss:$16 sps:$4 sm:$0xff]   ;;  %v9243_v5 = vld [vmem:[#allocation5 + $0x24] ss:$16 sps:$4 sm:$0xff]   ;;  %v9251_v13 = vld [vmem:[#allocation5 + $0x6c] ss:$16 sps:$4 sm:$0xff]  }
  0xd5   :  { %443 = vmatpush1.bf16.msra.mxu0 %v9239_v2  ;;  %9209 = vmatpush1.bf16.msra.mxu1 %v9239_v2  ;;  %v9245_v6 = vld [vmem:[#allocation5 + $0x20] ss:$16 sps:$4 sm:$0xff]   ;;  %v9246_v7 = vld [vmem:[#allocation5 + $0x4] ss:$16 sps:$4 sm:$0xff]   ;;  %v9249_v17 = vld [vmem:[#allocation5 + $0x68] ss:$16 sps:$4 sm:$0xff]  }
  0xd6   :  { %444 = vmatprep.subr.bf16.mxu0 %v9240_v3  ;;  %9206 = vmatprep.subr.bf16.mxu1 %v9240_v3  ;;  %v9248_v8 = vld [vmem:[#allocation5] ss:$16 sps:$4 sm:$0xff]   ;;  %v9254_v14 = vld [vmem:[#allocation7 + $0x64] ss:$16 sps:$4 sm:$0xff]   ;;  %v9257_v19 = vld [vmem:[#allocation5 + $0x4c] ss:$16 sps:$4 sm:$0xff]  }
  0xd7   :  { %v291_v9 = vld [vmem:[#allocation2] sm:$0xff]  ;;  %v9255_v21 = vld [vmem:[#allocation5 + $0x48] ss:$16 sps:$4 sm:$0xff]   ;;  %v293_v23 = vld [vmem:[#allocation2 + $0x10] sm:$0xff]  ;;  %s14028_s2 = sld [smem:[#allocation126_spill]]  ;;  %vm3008_vm1 = vcmask 1043456  }
  0xd8   :  { %v295_v11 = vld [vmem:[#allocation2 + $0x20] sm:$0xff]  ;;  %v11062_v15 = vpack.c.bf16 %v292_v10, %v291_v9  ;;  %v294_v24 = vld [vmem:[#allocation2 + $0x18] sm:$0xff]  ;;  %v297_v25 = vld [vmem:[#allocation2 + $0x30] sm:$0xff]  ;;  %s14029_s16 = sld [smem:[#allocation129_spill]]  ;;  %vm6038_vm2 = vcmask 1042432   ;;  %vm6044_vm3 = vcmask 1046528  }
  0xd9   :  { %445 = vmatpush1.bf16.msra.mxu0 %v9242_v4  ;;  %9210 = vmatpush1.bf16.msra.mxu1 %v9242_v4  ;;  %v11064_v16 = vpack.c.bf16 %v296_v12, %v295_v11  ;;  %v9252_v18 = vld [vmem:[#allocation7 + $0x60] ss:$16 sps:$4 sm:$0xff]   ;;  %v9260_v20 = vld [vmem:[#allocation7 + $0x44] ss:$16 sps:$4 sm:$0xff]   ;;  %v298_v26 = vld [vmem:[#allocation2 + $0x38] sm:$0xff]  ;;  %v11072_v29 = vpack.c.bf16 %v294_v24, %v293_v23  ;;  %s14032_s3 = sld [smem:[#allocation127_spill]] }
  0xda   :  { %446 = vmatprep.subr.bf16.mxu0 %v9243_v5  ;;  %9207 = vmatprep.subr.bf16.mxu1 %v9243_v5  ;;  %v9258_v22 = vld [vmem:[#allocation7 + $0x40] ss:$16 sps:$4 sm:$0xff]   ;;  %v9263_v27 = vld [vmem:[#allocation5 + $0x2c] ss:$16 sps:$4 sm:$0xff]   ;;  %v9266_v28 = vld [vmem:[#allocation7 + $0x24] ss:$16 sps:$4 sm:$0xff]   ;;  %v11074_v30 = vpack.c.bf16 %v298_v26, %v297_v25 }
  0xdb   :  { %v9261_v31 = vld [vmem:[#allocation5 + $0x28] ss:$16 sps:$4 sm:$0xff]   ;;  %v9264_v32 = vld [vmem:[#allocation7 + $0x20] ss:$16 sps:$4 sm:$0xff]   ;;  %v9269_v33 = vld [vmem:[#allocation5 + $0xc] ss:$16 sps:$4 sm:$0xff]  }
  0xdc   :  { %v9272_v34 = vld [vmem:[#allocation7 + $0x4] ss:$16 sps:$4 sm:$0xff]   ;;  %v9267_v35 = vld [vmem:[#allocation5 + $0x8] ss:$16 sps:$4 sm:$0xff]   ;;  %v9270_v36 = vld [vmem:[#allocation7] ss:$16 sps:$4 sm:$0xff]  }
  0xdd   :  { %447 = vmatpush1.bf16.msra.mxu0 %v9245_v6  ;;  %9211 = vmatpush1.bf16.msra.mxu1 %v9245_v6  ;;  %v9275_v37 = vld [vmem:[#allocation7 + $0x6c] ss:$16 sps:$4 sm:$0xff]   ;;  %v11083_v38 = vld [vmem:[%s14028_s2 + $0xe4] ss:$16 sps:$4 sm:$0xff]   ;;  %v9273_v39 = vld [vmem:[#allocation7 + $0x68] ss:$16 sps:$4 sm:$0xff]  }
  0xde   :  { %448 = vmatprep.subr.bf16.mxu0 %v9246_v7  ;;  %9208 = vmatprep.subr.bf16.mxu1 %v9246_v7  ;;  %v11090_v40 = vld [vmem:[%s14028_s2 + $0xe0] ss:$16 sps:$4 sm:$0xff]   ;;  %v11096_v41 = vld [vmem:[%s14028_s2 + $0xc4] ss:$16 sps:$4 sm:$0xff]   ;;  %v9284_v42 = vld [vmem:[#allocation7 + $0x4c] ss:$16 sps:$4 sm:$0xff]  }
  0xdf   :  { %v11105_v43 = vld [vmem:[%s14028_s2 + $0xc0] ss:$16 sps:$4 sm:$0xff]   ;;  %v9282_v44 = vld [vmem:[#allocation7 + $0x48] ss:$16 sps:$4 sm:$0xff]   ;;  %v11111_v45 = vld [vmem:[%s14028_s2 + $0xa4] ss:$16 sps:$4 sm:$0xff]  }
  0xe0   :  { %v9293_v46 = vld [vmem:[#allocation7 + $0x2c] ss:$16 sps:$4 sm:$0xff]   ;;  %v11120_v47 = vld [vmem:[%s14028_s2 + $0xa0] ss:$16 sps:$4 sm:$0xff]   ;;  %v11126_v48 = vld [vmem:[%s14028_s2 + $0x84] ss:$16 sps:$4 sm:$0xff]  }
  0xe1   :  { %449 = vmatpush1.bf16.msra.mxu0 %v9248_v8  ;;  %9212 = vmatpush1.bf16.msra.mxu1 %v9248_v8  ;;  %v9291_v49 = vld [vmem:[#allocation7 + $0x28] ss:$16 sps:$4 sm:$0xff]   ;;  %v9302_v50 = vld [vmem:[#allocation7 + $0xc] ss:$16 sps:$4 sm:$0xff]   ;;  %v11136_v51 = vld [vmem:[%s14028_s2 + $0x80] ss:$16 sps:$4 sm:$0xff]  }
  0xe2   :  { %515 = vmatprep.subr.bf16.mxu1 %v9251_v13  ;;  %706 = vmatprep.subr.bf16.mxu0 %v9254_v14  ;;  %v11144_v52 = vld [vmem:[%s14028_s2 + $0x64] ss:$16 sps:$4 sm:$0xff]   ;;  %v9300_v53 = vld [vmem:[#allocation7 + $0x8] ss:$16 sps:$4 sm:$0xff]   ;;  %v11150_v54 = vld [vmem:[%s14028_s2 + $0x60] ss:$16 sps:$4 sm:$0xff]  }
  0xe3   :  { %v11156_v55 = vld [vmem:[%s14028_s2 + $0x44] ss:$16 sps:$4 sm:$0xff]   ;;  %v11161_v56 = vld [vmem:[%s14028_s2 + $0xec] ss:$16 sps:$4 sm:$0xff]   ;;  %v11171_v57 = vld [vmem:[%s14028_s2 + $0x40] ss:$16 sps:$4 sm:$0xff]  }
  0xe4   :  { %7971 = vmatmul.mubr.msk.bf16.vlgmr.msra.gmra.mxu0 %vm421_vm0, %v11062_v15  ;;  %7973 = vmatmul.mubr.msk.bf16.vlgmr.msra.gmra.mxu1 %vm421_vm0, %v11064_v16  ;;  %v11179_v58 = vld [vmem:[%s14028_s2 + $0x24] ss:$16 sps:$4 sm:$0xff]   ;;  %v11186_v59 = vld [vmem:[%s14028_s2 + $0x20] ss:$16 sps:$4 sm:$0xff]   ;;  %v11215_v63 = vld [vmem:[%s14028_s2 + $0xe8] ss:$16 sps:$4 sm:$0xff]  }
  0xe5   :  { %516 = vmatpush1.bf16.msra.mxu1 %v9249_v17  ;;  %707 = vmatpush1.bf16.msra.mxu0 %v9252_v18  ;;  %v11192_v60 = vld [vmem:[%s14028_s2 + $0x4] ss:$16 sps:$4 sm:$0xff]   ;;  %v11202_v61 = vld [vmem:[%s14028_s2] ss:$16 sps:$4 sm:$0xff]   ;;  %v11224_v2 = vld [vmem:[%s14028_s2 + $0xcc] ss:$16 sps:$4 sm:$0xff]  }
  0xe6   :  { %517 = vmatprep.subr.bf16.mxu1 %v9257_v19  ;;  %708 = vmatprep.subr.bf16.mxu0 %v9260_v20  ;;  %v11210_v62 = vld [vmem:[%s14029_s16 + $0xe4] ss:$16 sps:$4 sm:$0xff]   ;;  %v9314_v1 = vld [vmem:[%s14029_s16 + $0xe0] ss:$16 sps:$4 sm:$0xff]   ;;  %v11233_v4 = vld [vmem:[%s14028_s2 + $0xc8] ss:$16 sps:$4 sm:$0xff]  }
  0xe7   :  { %476 = vmatprep.mubr.bf16.mxu0 %v13911_v0  ;;  %496 = vmatprep.mubr.bf16.mxu1 %v13911_v0  ;;  %v9318_v3 = vld [vmem:[%s14029_s16 + $0xc4] ss:$16 sps:$4 sm:$0xff]   ;;  %v9320_v5 = vld [vmem:[%s14029_s16 + $0xc0] ss:$16 sps:$4 sm:$0xff]   ;;  %v11244_v6 = vld [vmem:[%s14028_s2 + $0xac] ss:$16 sps:$4 sm:$0xff]  }
  0xe8   :  { %v9324_v7 = vld [vmem:[%s14029_s16 + $0xa4] ss:$16 sps:$4 sm:$0xff]   ;;  %v11255_v8 = vld [vmem:[%s14028_s2 + $0xa8] ss:$16 sps:$4 sm:$0xff]   ;;  %v9326_v9 = vld [vmem:[%s14029_s16 + $0xa0] ss:$16 sps:$4 sm:$0xff]  }
  0xe9   :  { %518 = vmatpush1.bf16.msra.mxu1 %v9255_v21  ;;  %709 = vmatpush1.bf16.msra.mxu0 %v9258_v22  ;;  %v11264_v10 = vld [vmem:[%s14028_s2 + $0x8c] ss:$16 sps:$4 sm:$0xff]   ;;  %v9330_v11 = vld [vmem:[%s14029_s16 + $0x84] ss:$16 sps:$4 sm:$0xff]   ;;  %v11274_v12 = vld [vmem:[%s14028_s2 + $0x88] ss:$16 sps:$4 sm:$0xff]  }
  0xea   :  { %519 = vmatprep.subr.bf16.mxu1 %v9263_v27  ;;  %710 = vmatprep.subr.bf16.mxu0 %v9266_v28  ;;  %v9332_v13 = vld [vmem:[%s14029_s16 + $0x80] ss:$16 sps:$4 sm:$0xff]   ;;  %v11284_v14 = vld [vmem:[%s14028_s2 + $0x6c] ss:$16 sps:$4 sm:$0xff]   ;;  %v11295_v17 = vld [vmem:[%s14028_s2 + $0x68] ss:$16 sps:$4 sm:$0xff]  }
  0xeb   :  { %v9338_v18 = vld [vmem:[%s14029_s16 + $0x60] ss:$16 sps:$4 sm:$0xff]   ;;  %v11303_v19 = vld [vmem:[%s14028_s2 + $0x4c] ss:$16 sps:$4 sm:$0xff]   ;;  %v9342_v20 = vld [vmem:[%s14029_s16 + $0x44] ss:$16 sps:$4 sm:$0xff]  }
  0xec   :  { %7972 = vmatmul.mubr.msk.bf16.gmra.mxu0 %vm421_vm0, %v11072_v29  ;;  %7974 = vmatmul.mubr.msk.bf16.gmra.mxu1 %vm421_vm0, %v11074_v30  ;;  %v11313_v21 = vld [vmem:[%s14028_s2 + $0x48] ss:$16 sps:$4 sm:$0xff]   ;;  %v9344_v22 = vld [vmem:[%s14029_s16 + $0x40] ss:$16 sps:$4 sm:$0xff]   ;;  %v11323_v23 = vld [vmem:[%s14028_s2 + $0x2c] ss:$16 sps:$4 sm:$0xff]  }
  0xed   :  { %520 = vmatpush1.bf16.msra.mxu1 %v9261_v31  ;;  %711 = vmatpush1.bf16.msra.mxu0 %v9264_v32  ;;  %v9348_v24 = vld [vmem:[%s14029_s16 + $0x24] ss:$16 sps:$4 sm:$0xff]   ;;  %v9350_v25 = vld [vmem:[%s14029_s16 + $0x20] ss:$16 sps:$4 sm:$0xff]   ;;  %v11342_v26 = vld [vmem:[%s14028_s2 + $0xc] ss:$16 sps:$4 sm:$0xff]  }
  0xee   :  { %521 = vmatprep.subr.bf16.mxu1 %v9269_v33  ;;  %712 = vmatprep.subr.bf16.mxu0 %v9272_v34  ;;  %v9354_v27 = vld [vmem:[%s14029_s16 + $0x4] ss:$16 sps:$4 sm:$0xff]   ;;  %v11352_v28 = vld [vmem:[%s14028_s2 + $0x8] ss:$16 sps:$4 sm:$0xff]   ;;  %v11362_v31 = vld [vmem:[%s14029_s16 + $0xec] ss:$16 sps:$4 sm:$0xff]  }
  0xef   :  { %539 = vmatprep.mubr.bf16.mxu1 %v13911_v0  ;;  %730 = vmatprep.mubr.bf16.mxu0 %v13911_v0  ;;  %v9359_v32 = vld [vmem:[%s14029_s16 + $0xe8] ss:$16 sps:$4 sm:$0xff]   ;;  %v9363_v34 = vld [vmem:[%s14029_s16 + $0xac] ss:$16 sps:$4 sm:$0xff]   ;;  %s14038_s6 = sld [smem:[#allocation130_spill]]  ;;  %vm7174_vm4 = vcmask 1044480   ;;  %vm13113_vm5 = vmpackc.low %vm3008_vm1, %vm3008_vm1 }
  0xf0   :  { %v9362_v33 = vld [vmem:[%s14029_s16 + $0xc8] ss:$16 sps:$4 sm:$0xff]   ;;  %s14301_s11 = sld [smem:[#allocation131_spill]]  ;;  %vm3792_vm6 = vcmask 64512   ;;  %vm6619_vm7 = vsmask.f32 6400 }
  0xf1   :  { %522 = vmatpush1.bf16.msra.mxu1 %v9267_v35  ;;  %713 = vmatpush1.bf16.msra.mxu0 %v9270_v36  ;;  %v9365_v35 = vld [vmem:[%s14029_s16 + $0xa8] ss:$16 sps:$4 sm:$0xff]   ;;  %v9366_v36 = vld [vmem:[%s14029_s16 + $0x8c] ss:$16 sps:$4 sm:$0xff]   ;;  %s14302_s7 = sld [smem:[#allocation133_spill]]  ;;  %vm6806_vm8 = vcmask 1045504  }
  0xf2   :  { %779 = vmatprep.subr.bf16.mxu1 %v9275_v37  ;;  %1068 = vmatprep.subr.bf16.mxu0 %v11083_v38  ;;  %v9368_v37 = vld [vmem:[%s14029_s16 + $0x88] ss:$16 sps:$4 sm:$0xff]   ;;  %s14303_s4 = sld [smem:[#allocation135_spill]]  ;;  %vm6986_vm9 = vsmask.f32 5376  ;;  %vm10843_vm10 = vmmov 0  }
  0xf3   :  { %vm7321_vm11 = vcmask 572416   ;;  %vm7323_vm12 = vcmask 570368   ;;  %vm7930_vm13 = vcmask 8192  }
  0xf4   :  { %7975 = vmatmul.mubr.msk.bf16.vlgmr.msra.gmra.mxu1 %vm421_vm0, %v11062_v15  ;;  %7995 = vmatmul.mubr.msk.bf16.vlgmr.msra.gmra.mxu0 %vm421_vm0, %v11062_v15 }
  0xf5   :  { %780 = vmatpush1.bf16.msra.mxu1 %v9273_v39  ;;  %1069 = vmatpush1.bf16.msra.mxu0 %v11090_v40  ;;  %v9371_v39 = vld [vmem:[%s14029_s16 + $0x68] ss:$16 sps:$4 sm:$0xff]  }
  0xf6   :  { %1070 = vmatprep.subr.bf16.mxu0 %v11096_v41  ;;  %549 = vmatprep.mubr.bf16.mxu1 %v13911_v0 }
  0xf7   :  { %740 = vmatprep.mubr.bf16.mxu0 %v13911_v0  ;;  %781 = vmatprep.subr.bf16.mxu1 %v9284_v42  ;;  %v9375_v42 = vld [vmem:[%s14029_s16 + $0x2c] ss:$16 sps:$4 sm:$0xff]  }
  0xf9   :  { %1071 = vmatpush1.bf16.msra.mxu0 %v11105_v43  ;;  %782 = vmatpush1.bf16.msra.mxu1 %v9282_v44  ;;  %v9378_v44 = vld [vmem:[%s14029_s16 + $0xc] ss:$16 sps:$4 sm:$0xff]  }
  0xfa   :  { %1072 = vmatprep.subr.bf16.mxu0 %v11111_v45  ;;  %783 = vmatprep.subr.bf16.mxu1 %v9293_v46  ;;  %v321_v46 = vlaneseq }
  0xfc   :  { %7976 = vmatmul.mubr.msk.bf16.gmra.mxu1 %vm421_vm0, %v11072_v29  ;;  %7996 = vmatmul.mubr.msk.bf16.gmra.mxu0 %vm421_vm0, %v11072_v29 }
  0xfd   :  { %1073 = vmatpush1.bf16.msra.mxu0 %v11120_v47  ;;  %559 = vmatprep.mubr.bf16.mxu1 %v13911_v0 }
  0xfe   :  { %1074 = vmatprep.subr.bf16.mxu0 %v11126_v48  ;;  %750 = vmatprep.mubr.bf16.mxu0 %v13911_v0 }
  0xff   :  { %784 = vmatpush1.bf16.msra.mxu1 %v9291_v49 }
 0x100   :  { %785 = vmatprep.subr.bf16.mxu1 %v9302_v50 }
 0x101   :  { %1075 = vmatpush1.bf16.msra.mxu0 %v11136_v51 }
 0x102   :  { %1076 = vmatprep.subr.bf16.mxu0 %v11144_v52 }
 0x103   :  { %786 = vmatpush1.bf16.msra.mxu1 %v9300_v53 }
 0x104   :  { %7977 = vmatmul.mubr.msk.bf16.gmra.mxu1 %vm421_vm0, %v11064_v16  ;;  %7997 = vmatmul.mubr.msk.bf16.gmra.mxu0 %vm421_vm0, %v11064_v16 }
 0x105   :  { %1077 = vmatpush1.bf16.msra.mxu0 %v11150_v54  ;;  %569 = vmatprep.mubr.bf16.mxu1 %v13911_v0 }
 0x106   :  { %1078 = vmatprep.subr.bf16.mxu0 %v11156_v55  ;;  %760 = vmatprep.mubr.bf16.mxu0 %v13911_v0 }
 0x107   :  { %1109 = vmatprep.subr.bf16.mxu1 %v11161_v56 }
 0x109   :  { %1079 = vmatpush1.bf16.msra.mxu0 %v11171_v57 }
 0x10a   :  { %1080 = vmatprep.subr.bf16.mxu0 %v11179_v58 }
 0x10c   :  { %7978 = vmatmul.mubr.msk.bf16.gmra.mxu1 %vm421_vm0, %v11074_v30  ;;  %7998 = vmatmul.mubr.msk.bf16.gmra.mxu0 %vm421_vm0, %v11074_v30 }
 0x10d   :  { %1081 = vmatpush1.bf16.msra.mxu0 %v11186_v59  ;;  %803 = vmatprep.mubr.bf16.mxu1 %v13911_v0 }
 0x10e   :  { %1082 = vmatprep.subr.bf16.mxu0 %v11192_v60  ;;  %1100 = vmatprep.mubr.bf16.mxu0 %v13911_v0 }
 0x111   :  { %1083 = vmatpush1.bf16.msra.mxu0 %v11202_v61 }
 0x112   :  { %1314 = vmatprep.subr.bf16.mxu0 %v11210_v62 }
 0x114   :  { %7999 = vmatmul.mubr.msk.bf16.vlgmr.msra.gmra.mxu1 %vm421_vm0, %v11062_v15  ;;  %1101 = vmatmul.mubr.bf16.vlgmr.msra.gmra.mxu0 %v13911_v0  ;;  %v9336_v15 = vld [vmem:[%s14029_s16 + $0x64] ss:$16 sps:$4 sm:$0xff]  }
 0x115   :  { %1110 = vmatpush1.bf16.msra.mxu1 %v11215_v63  ;;  %1315 = vmatpush1.bf16.msra.mxu0 %v9314_v1 }
 0x116   :  { %1111 = vmatprep.subr.bf16.mxu1 %v11224_v2  ;;  %1316 = vmatprep.subr.bf16.mxu0 %v9318_v3 }
 0x117   :  { %813 = vmatprep.mubr.bf16.mxu1 %v13911_v0  ;;  %1346 = vmatprep.mubr.bf16.mxu0 %v13911_v0 }
 0x119   :  { %1112 = vmatpush1.bf16.msra.mxu1 %v11233_v4  ;;  %1317 = vmatpush1.bf16.msra.mxu0 %v9320_v5 }
 0x11a   :  { %1113 = vmatprep.subr.bf16.mxu1 %v11244_v6  ;;  %1318 = vmatprep.subr.bf16.mxu0 %v9324_v7 }
 0x11c   :  { %8000 = vmatmul.mubr.msk.bf16.gmra.mxu1 %vm421_vm0, %v11072_v29  ;;  %v9356_v29 = vld [vmem:[%s14029_s16] ss:$16 sps:$4 sm:$0xff]  }
 0x11d   :  { %1114 = vmatpush1.bf16.msra.mxu1 %v11255_v8  ;;  %1319 = vmatpush1.bf16.msra.mxu0 %v9326_v9 }
 0x11e   :  { %1115 = vmatprep.subr.bf16.mxu1 %v11264_v10  ;;  %1320 = vmatprep.subr.bf16.mxu0 %v9330_v11 }
 0x11f   :  { %823 = vmatprep.mubr.bf16.mxu1 %v13911_v0 }
 0x121   :  { %1116 = vmatpush1.bf16.msra.mxu1 %v11274_v12  ;;  %1321 = vmatpush1.bf16.msra.mxu0 %v9332_v13 }
 0x122   :  { %1117 = vmatprep.subr.bf16.mxu1 %v11284_v14  ;;  %1322 = vmatprep.subr.bf16.mxu0 %v9336_v15 }
 0x124   :  { %8001 = vmatmul.mubr.msk.bf16.gmra.mxu1 %vm421_vm0, %v11064_v16  ;;  %v11334_v16 = vld [vmem:[%s14028_s2 + $0x28] ss:$16 sps:$4 sm:$0xff]  }
 0x125   :  { %1118 = vmatpush1.bf16.msra.mxu1 %v11295_v17  ;;  %1323 = vmatpush1.bf16.msra.mxu0 %v9338_v18 }
 0x126   :  { %1119 = vmatprep.subr.bf16.mxu1 %v11303_v19  ;;  %1324 = vmatprep.subr.bf16.mxu0 %v9342_v20 }
 0x127   :  { %833 = vmatprep.mubr.bf16.mxu1 %v13911_v0 }
 0x129   :  { %1120 = vmatpush1.bf16.msra.mxu1 %v11313_v21  ;;  %1325 = vmatpush1.bf16.msra.mxu0 %v9344_v22 }
 0x12a   :  { %1121 = vmatprep.subr.bf16.mxu1 %v11323_v23  ;;  %1326 = vmatprep.subr.bf16.mxu0 %v9348_v24 }
 0x12c   :  { %8002 = vmatmul.mubr.msk.bf16.gmra.mxu1 %vm421_vm0, %v11074_v30  ;;  %v9360_v30 = vld [vmem:[%s14029_s16 + $0xcc] ss:$16 sps:$4 sm:$0xff]  }
 0x12d   :  { %1122 = vmatpush1.bf16.msra.mxu1 %v11334_v16  ;;  %1327 = vmatpush1.bf16.msra.mxu0 %v9350_v25 }
 0x12e   :  { %1123 = vmatprep.subr.bf16.mxu1 %v11342_v26  ;;  %1328 = vmatprep.subr.bf16.mxu0 %v9354_v27 }
 0x12f   :  { %1141 = vmatprep.mubr.bf16.mxu1 %v13911_v0 }
 0x131   :  { %1124 = vmatpush1.bf16.msra.mxu1 %v11352_v28  ;;  %1329 = vmatpush1.bf16.msra.mxu0 %v9356_v29 }
 0x132   :  { %1355 = vmatprep.subr.bf16.mxu1 %v11362_v31  ;;  %1449 = vmatprep.subr.bf16.mxu0 %v11083_v38  ;;  %v9369_v38 = vld [vmem:[%s14029_s16 + $0x6c] ss:$16 sps:$4 sm:$0xff]  }
 0x134   :  { %1142 = vmatmul.mubr.bf16.vlgmr.msra.gmra.mxu1 %v13911_v0  ;;  %1347 = vmatmul.mubr.bf16.vlgmr.msra.gmra.mxu0 %v13911_v0 }
 0x135   :  { %1356 = vmatpush1.bf16.msra.mxu1 %v9359_v32  ;;  %1387 = vmatprep.mubr.bf16.mxu1 %v13911_v0 }
 0x136   :  { %1357 = vmatprep.subr.bf16.mxu1 %v9360_v30  ;;  %1450 = vmatpush1.bf16.msra.mxu0 %v11090_v40  ;;  %v9372_v40 = vld [vmem:[%s14029_s16 + $0x4c] ss:$16 sps:$4 sm:$0xff]  }
 0x137   :  { %1451 = vmatprep.subr.bf16.mxu0 %v11096_v41  ;;  %1481 = vmatprep.mubr.bf16.mxu0 %v13911_v0  ;;  %v9374_v41 = vld [vmem:[%s14029_s16 + $0x48] ss:$16 sps:$4 sm:$0xff]  }
 0x139   :  { %1358 = vmatpush1.bf16.msra.mxu1 %v9362_v33 }
 0x13a   :  { %1359 = vmatprep.subr.bf16.mxu1 %v9363_v34  ;;  %1452 = vmatpush1.bf16.msra.mxu0 %v11105_v43  ;;  %v9377_v43 = vld [vmem:[%s14029_s16 + $0x28] ss:$16 sps:$4 sm:$0xff]  }
 0x13b   :  { %1453 = vmatprep.subr.bf16.mxu0 %v11111_v45  ;;  %v9380_v45 = vld [vmem:[%s14029_s16 + $0x8] ss:$16 sps:$4 sm:$0xff]  }
 0x13d   :  { %1360 = vmatpush1.bf16.msra.mxu1 %v9365_v35 }
 0x13e   :  { %1361 = vmatprep.subr.bf16.mxu1 %v9366_v36  ;;  %1454 = vmatpush1.bf16.msra.mxu0 %v11120_v47  ;;  %v11454_v47 = vshrl.u32 %v321_v46, 7 }
 0x13f   :  { %1455 = vmatprep.subr.bf16.mxu0 %v11126_v48 }
 0x140   :  { %v11457_v48 = vsub.s32 0, %v11454_v47  ;;  %v11460_v49 = vsub.s32 1, %v11454_v47  ;;  %v331_v50 = vsub.s32 2, %v11454_v47 }
 0x141   :  { %1362 = vmatpush1.bf16.msra.mxu1 %v9368_v37 }
 0x142   :  { %1363 = vmatprep.subr.bf16.mxu1 %v9369_v38  ;;  %1456 = vmatpush1.bf16.msra.mxu0 %v11136_v51  ;;  %14030 = vst [vmem:[#allocation39_spill] sm:$0xff] %v11457_v48  ;;  %14031 = vst [vmem:[#allocation40_spill] sm:$0xff] %v11460_v49  ;;  %v335_v51 = vsub.s32 3, %v11454_v47 }
 0x143   :  { %1457 = vmatprep.subr.bf16.mxu0 %v11144_v52  ;;  %v319_v52 = vld [vmem:[%s14032_s3] sm:$0xf] }
 0x144   :  { %v11468_v53 = vrot.slane %v319_v52, %v11457_v48  ;;  %v11554_v36 = vrot.slane %v319_v52, %v335_v51 }
 0x145   :  { %1364 = vmatpush1.bf16.msra.mxu1 %v9371_v39 }
 0x146   :  { %1365 = vmatprep.subr.bf16.mxu1 %v9372_v40  ;;  %1458 = vmatpush1.bf16.msra.mxu0 %v11150_v54  ;;  %v11471_v54 = vrot.slane %v319_v52, %v11460_v49  ;;  %14052 = vst [vmem:[#allocation59_spill] sm:$0xff] %v11554_v36 }
 0x147   :  { %1459 = vmatprep.subr.bf16.mxu0 %v11156_v55 }
 0x148   :  { %14033 = vst [vmem:[#allocation41_spill] sm:$0xff] %v11471_v54 }
 0x149   :  { %1366 = vmatpush1.bf16.msra.mxu1 %v9374_v41 }
 0x14a   :  { %1367 = vmatprep.subr.bf16.mxu1 %v9375_v42  ;;  %1460 = vmatpush1.bf16.msra.mxu0 %v11171_v57 }
 0x14b   :  { %1461 = vmatprep.subr.bf16.mxu0 %v11179_v58 }
 0x14d   :  { %1368 = vmatpush1.bf16.msra.mxu1 %v9377_v43 }
 0x14e   :  { %1369 = vmatprep.subr.bf16.mxu1 %v9378_v44  ;;  %1462 = vmatpush1.bf16.msra.mxu0 %v11186_v59 }
 0x14f   :  { %1463 = vmatprep.subr.bf16.mxu0 %v11192_v60 }
 0x151   :  { %1370 = vmatpush1.bf16.msra.mxu1 %v9380_v45 }
 0x152   :  { %1490 = vmatprep.subr.bf16.mxu1 %v11161_v56  ;;  %1464 = vmatpush1.bf16.msra.mxu0 %v11202_v61 }
 0x153   :  { %1536 = vmatprep.subr.bf16.mxu0 %v11210_v62 }
 0x154   :  { %1388 = vmatmul.mubr.bf16.vlgmr.msra.gmra.mxu1 %v13911_v0 }
 0x155   :  { %1491 = vmatpush1.bf16.msra.mxu1 %v11215_v63  ;;  %1522 = vmatprep.mubr.bf16.mxu1 %v13911_v0 }
 0x156   :  { %1492 = vmatprep.subr.bf16.mxu1 %v11224_v2 }
 0x159   :  { %1493 = vmatpush1.bf16.msra.mxu1 %v11233_v4 }
 0x15a   :  { %1494 = vmatprep.subr.bf16.mxu1 %v11244_v6  ;;  %v11496_v6 = vld [vmem:[%s14038_s6] sm:$0xf] }
 0x15b   :  { %v11518_v18 = vrot.slane %v11496_v6, %v11457_v48 }
 0x15d   :  { %1495 = vmatpush1.bf16.msra.mxu1 %v11255_v8 }
 0x15e   :  { %1496 = vmatprep.subr.bf16.mxu1 %v11264_v10 }
 0x161   :  { %1497 = vmatpush1.bf16.msra.mxu1 %v11274_v12 }
 0x162   :  { %1498 = vmatprep.subr.bf16.mxu1 %v11284_v14 }
 0x165   :  { %1499 = vmatpush1.bf16.msra.mxu1 %v11295_v17 }
 0x166   :  { %1500 = vmatprep.subr.bf16.mxu1 %v11303_v19 }
 0x169   :  { %1501 = vmatpush1.bf16.msra.mxu1 %v11313_v21  ;;  %v11526_v21 = vrot.slane %v11496_v6, %v11460_v49 }
 0x16a   :  { %1502 = vmatprep.subr.bf16.mxu1 %v11323_v23 }
 0x16b   :  { %14047 = vst [vmem:[#allocation54_spill] sm:$0xff] %v11526_v21 }
 0x16d   :  { %1503 = vmatpush1.bf16.msra.mxu1 %v11334_v16 }
 0x16e   :  { %1504 = vmatprep.subr.bf16.mxu1 %v11342_v26  ;;  %v11537_v26 = vrot.slane %v319_v52, %v331_v50 }
 0x171   :  { %1505 = vmatpush1.bf16.msra.mxu1 %v11352_v28 }
 0x172   :  { %1577 = vmatprep.subr.bf16.mxu1 %v11362_v31 }
 0x1a4   :  { %v11473_v55 = vpop.f32.mrf.mxu0  ;;  %v488_v56 = vpop.f32.mrf.mxu1 }
 0x1a5   :  { %v11476_v57 = vadd.f32 %v488_v56, %v11468_v53  ;;  %v469_v0 = vadd.f32 %v11473_v55, %v11468_v53 }
 0x1a6   :  { %v11478_v58 = vpop.f32.mrf.mxu0  ;;  %v490_v59 = vpop.f32.mrf.mxu1 }
 0x1a7   :  { %14034 = vst [vmem:[#allocation42_spill] sm:$0xff] %v11476_v57  ;;  %v11481_v60 = vadd.f32 %v490_v59, %v11471_v54  ;;  %v11860_v57 = vld [vmem:[%s14029_s16 + $0x8] ss:$16 sps:$4 sm:$0xff]  }
 0x1a8   :  { %v472_v61 = vpop.f32.mrf.mxu0  ;;  %v492_v62 = vpop.f32.mrf.mxu1 }
 0x1a9   :  { %14035 = vst [vmem:[#allocation43_spill] sm:$0xff] %v11481_v60  ;;  %v11484_v63 = vadd.f32 %v472_v61, %v11468_v53  ;;  %v11487_v1 = vadd.f32 %v492_v62, %v11468_v53  ;;  %v11854_v60 = vld [vmem:[%s14029_s16] ss:$16 sps:$4 sm:$0xff]  }
 0x1aa   :  { %v11489_v2 = vpop.f32.mrf.mxu0  ;;  %v11491_v3 = vpop.f32.mrf.mxu1 }
 0x1ab   :  { %14036 = vst [vmem:[#allocation44_spill] sm:$0xff] %v11487_v1  ;;  %14037 = vst [vmem:[#allocation45_spill] sm:$0xff] %v11491_v3  ;;  %v11824_v1 = vld [vmem:[%s14029_s16 + $0x2c] ss:$16 sps:$4 sm:$0xff]   ;;  %v11830_v3 = vld [vmem:[%s14029_s16 + $0x20] ss:$16 sps:$4 sm:$0xff]  }
 0x1ac   :  { %v478_v4 = vpop.f32.mrf.mxu0  ;;  %v498_v5 = vpop.f32.mrf.mxu1 }
 0x1ad   :  { %v11499_v7 = vadd.f32 %v478_v4, %v11468_v53  ;;  %v11502_v8 = vadd.f32 %v498_v5, %v11468_v53 }
 0x1ae   :  { %v480_v9 = vpop.f32.mrf.mxu0  ;;  %v500_v10 = vpop.f32.mrf.mxu1 }
 0x1af   :  { %14039 = vst [vmem:[#allocation46_spill] sm:$0xff] %v11499_v7  ;;  %14040 = vst [vmem:[#allocation47_spill] sm:$0xff] %v11502_v8  ;;  %v11505_v11 = vadd.f32 %v480_v9, %v11471_v54  ;;  %v11508_v12 = vadd.f32 %v500_v10, %v11471_v54  ;;  %v11976_v7 = vld [vmem:[%s14028_s2 + $0x60] ss:$16 sps:$4 sm:$0xff]  }
 0x1b0   :  { %v482_v13 = vpop.f32.mrf.mxu0  ;;  %v502_v14 = vpop.f32.mrf.mxu1  ;;  %14102 = vst [vmem:[#allocation108_spill] sm:$0xff] %v11976_v7 }
 0x1b1   :  { %14041 = vst [vmem:[#allocation48_spill] sm:$0xff] %v11505_v11  ;;  %14042 = vst [vmem:[#allocation49_spill] sm:$0xff] %v11508_v12  ;;  %v11511_v15 = vadd.f32 %v482_v13, %v11468_v53  ;;  %v11514_v17 = vadd.f32 %v502_v14, %v11468_v53  ;;  %v11970_v11 = vld [vmem:[%s14028_s2 + $0x6c] ss:$16 sps:$4 sm:$0xff]  }
 0x1b2   :  { %v11520_v19 = vpop.f32.mrf.mxu0  ;;  %v11522_v20 = vpop.f32.mrf.mxu1  ;;  %14101 = vst [vmem:[#allocation107_spill] sm:$0xff] %v11970_v11 }
 0x1b3   :  { %14043 = vst [vmem:[#allocation50_spill] sm:$0xff] %v11511_v15  ;;  %14044 = vst [vmem:[#allocation51_spill] sm:$0xff] %v11514_v17  ;;  %v11922_v15 = vld [vmem:[%s14028_s2 + $0xac] ss:$16 sps:$4 sm:$0xff]  }
 0x1b4   :  { %14045 = vst [vmem:[#allocation52_spill] sm:$0xff] %v11520_v19  ;;  %14046 = vst [vmem:[#allocation53_spill] sm:$0xff] %v11522_v20  ;;  %v11528_v22 = vpop.f32.mrf.mxu1  ;;  %v732_v23 = vpop.f32.mrf.mxu0  ;;  %v11928_v19 = vld [vmem:[%s14028_s2 + $0xa0] ss:$16 sps:$4 sm:$0xff]  }
 0x1b5   :  { %v11531_v24 = vadd.f32 %v732_v23, %v11518_v18  ;;  %14093 = vst [vmem:[#allocation99_spill] sm:$0xff] %v11922_v15  ;;  %14094 = vst [vmem:[#allocation100_spill] sm:$0xff] %v11928_v19 }
 0x1b6   :  { %v11533_v16 = vpop.f32.mrf.mxu1  ;;  %v734_v25 = vpop.f32.mrf.mxu0 }
 0x1b7   :  { %14048 = vst [vmem:[#allocation55_spill] sm:$0xff] %v11531_v24  ;;  %v11540_v27 = vadd.f32 %v734_v25, %v11526_v21 }
 0x1b8   :  { %v545_v28 = vpop.f32.mrf.mxu1  ;;  %v736_v29 = vpop.f32.mrf.mxu0 }
 0x1b9   :  { %14049 = vst [vmem:[#allocation56_spill] sm:$0xff] %v11540_v27  ;;  %v11543_v31 = vadd.f32 %v545_v28, %v11537_v26  ;;  %v11546_v32 = vadd.f32 %v736_v29, %v11518_v18 }
 0x1ba   :  { %v11548_v30 = vpop.f32.mrf.mxu1  ;;  %v11550_v33 = vpop.f32.mrf.mxu0 }
 0x1bb   :  { %14050 = vst [vmem:[#allocation57_spill] sm:$0xff] %v11546_v32  ;;  %14051 = vst [vmem:[#allocation58_spill] sm:$0xff] %v11550_v33 }
 0x1bc   :  { %v551_v34 = vpop.f32.mrf.mxu1  ;;  %v742_v35 = vpop.f32.mrf.mxu0 }
 0x1bd   :  { %v11557_v37 = vadd.f32 %v551_v34, %v11537_v26  ;;  %v11560_v38 = vadd.f32 %v742_v35, %v11518_v18 }
 0x1be   :  { %v553_v39 = vpop.f32.mrf.mxu1  ;;  %v744_v40 = vpop.f32.mrf.mxu0 }
 0x1bf   :  { %14053 = vst [vmem:[#allocation60_spill] sm:$0xff] %v11557_v37  ;;  %14054 = vst [vmem:[#allocation61_spill] sm:$0xff] %v11560_v38  ;;  %v11563_v41 = vadd.f32 %v553_v39, %v11554_v36  ;;  %v11566_v42 = vadd.f32 %v744_v40, %v11526_v21  ;;  %v11958_v37 = vld [vmem:[%s14028_s2 + $0x88] ss:$16 sps:$4 sm:$0xff]  }
 0x1c0   :  { %v555_v43 = vpop.f32.mrf.mxu1  ;;  %v746_v44 = vpop.f32.mrf.mxu0  ;;  %14099 = vst [vmem:[#allocation105_spill] sm:$0xff] %v11958_v37 }
 0x1c1   :  { %14055 = vst [vmem:[#allocation62_spill] sm:$0xff] %v11563_v41  ;;  %14056 = vst [vmem:[#allocation63_spill] sm:$0xff] %v11566_v42  ;;  %v11569_v45 = vadd.f32 %v555_v43, %v11537_v26  ;;  %v11572_v46 = vadd.f32 %v746_v44, %v11518_v18  ;;  %v11964_v41 = vld [vmem:[%s14028_s2 + $0x64] ss:$16 sps:$4 sm:$0xff]  }
 0x1c2   :  { %v11574_v52 = vpop.f32.mrf.mxu1  ;;  %v11576_v56 = vpop.f32.mrf.mxu0  ;;  %14100 = vst [vmem:[#allocation106_spill] sm:$0xff] %v11964_v41 }
 0x1c3   :  { %14057 = vst [vmem:[#allocation64_spill] sm:$0xff] %v11569_v45  ;;  %14058 = vst [vmem:[#allocation65_spill] sm:$0xff] %v11572_v46  ;;  %v11842_v46 = vld [vmem:[%s14029_s16 + $0x4] ss:$16 sps:$4 sm:$0xff]   ;;  %v11910_v45 = vld [vmem:[%s14028_s2 + $0xc8] ss:$16 sps:$4 sm:$0xff]  }
 0x1c4   :  { %14059 = vst [vmem:[#allocation66_spill] sm:$0xff] %v11574_v52  ;;  %14060 = vst [vmem:[#allocation67_spill] sm:$0xff] %v11576_v56  ;;  %v561_v59 = vpop.f32.mrf.mxu1  ;;  %v752_v61 = vpop.f32.mrf.mxu0  ;;  %v11848_v56 = vld [vmem:[%s14029_s16 + $0xc] ss:$16 sps:$4 sm:$0xff]   ;;  %v11916_v52 = vld [vmem:[%s14028_s2 + $0xa4] ss:$16 sps:$4 sm:$0xff]  }
 0x1c5   :  { %v11579_v62 = vadd.f32 %v561_v59, %v11537_v26  ;;  %v11582_v4 = vadd.f32 %v752_v61, %v11518_v18  ;;  %14091 = vst [vmem:[#allocation97_spill] sm:$0xff] %v11910_v45  ;;  %14092 = vst [vmem:[#allocation98_spill] sm:$0xff] %v11916_v52 }
 0x1c6   :  { %v563_v5 = vpop.f32.mrf.mxu1  ;;  %v11584_v9 = vpop.f32.mrf.mxu0 }
 0x1c7   :  { %14061 = vst [vmem:[#allocation68_spill] sm:$0xff] %v11579_v62  ;;  %14062 = vst [vmem:[#allocation69_spill] sm:$0xff] %v11582_v4  ;;  %v11587_v10 = vadd.f32 %v563_v5, %v11554_v36  ;;  %v11890_v4 = vld [vmem:[%s14028_s2 + $0xc4] ss:$16 sps:$4 sm:$0xff]  }
 0x1c8   :  { %14063 = vst [vmem:[#allocation70_spill] sm:$0xff] %v11584_v9  ;;  %v565_v13 = vpop.f32.mrf.mxu1  ;;  %v756_v14 = vpop.f32.mrf.mxu0  ;;  %14088 = vst [vmem:[#allocation94_spill] sm:$0xff] %v11890_v4  ;;  %v11904_v9 = vld [vmem:[%s14028_s2 + $0xc0] ss:$16 sps:$4 sm:$0xff]  }
 0x1c9   :  { %14064 = vst [vmem:[#allocation71_spill] sm:$0xff] %v11587_v10  ;;  %v11590_v23 = vadd.f32 %v565_v13, %v11537_v26  ;;  %v11593_v25 = vadd.f32 %v756_v14, %v11518_v18  ;;  %v11616_v14 = vrot.slane %v11496_v6, %v331_v50  ;;  %14090 = vst [vmem:[#allocation96_spill] sm:$0xff] %v11904_v9 }
 0x1ca   :  { %v11595_v28 = vpop.f32.mrf.mxu1  ;;  %v11597_v29 = vpop.f32.mrf.mxu0 }
 0x1cb   :  { %14065 = vst [vmem:[#allocation72_spill] sm:$0xff] %v11590_v23  ;;  %14066 = vst [vmem:[#allocation73_spill] sm:$0xff] %v11593_v25  ;;  %v11946_v25 = vld [vmem:[%s14028_s2 + $0x8c] ss:$16 sps:$4 sm:$0xff]  }
 0x1cc   :  { %14067 = vst [vmem:[#allocation74_spill] sm:$0xff] %v11595_v28  ;;  %14068 = vst [vmem:[#allocation75_spill] sm:$0xff] %v11597_v29  ;;  %v571_v34 = vpop.f32.mrf.mxu1  ;;  %v762_v35 = vpop.f32.mrf.mxu0  ;;  %v11952_v29 = vld [vmem:[%s14028_s2 + $0x80] ss:$16 sps:$4 sm:$0xff]  }
 0x1cd   :  { %v11600_v39 = vadd.f32 %v571_v34, %v11537_v26  ;;  %v11603_v40 = vadd.f32 %v762_v35, %v11518_v18  ;;  %14097 = vst [vmem:[#allocation103_spill] sm:$0xff] %v11946_v25  ;;  %14098 = vst [vmem:[#allocation104_spill] sm:$0xff] %v11952_v29 }
 0x1ce   :  { %v573_v43 = vpop.f32.mrf.mxu1  ;;  %v11605_v44 = vpop.f32.mrf.mxu0 }
 0x1cf   :  { %14069 = vst [vmem:[#allocation76_spill] sm:$0xff] %v11600_v39  ;;  %v11608_v59 = vadd.f32 %v573_v43, %v11554_v36  ;;  %v11625_v43 = vrot.slane %v11496_v6, %v335_v51 }
 0x1d0   :  { %v575_v61 = vpop.f32.mrf.mxu1  ;;  %v766_v5 = vpop.f32.mrf.mxu0 }
 0x1d1   :  { %14070 = vst [vmem:[#allocation77_spill] sm:$0xff] %v11608_v59  ;;  %v11611_v13 = vadd.f32 %v575_v61, %v11537_v26  ;;  %14073 = vst [vmem:[#allocation80_spill] sm:$0xff] %v11625_v43  ;;  %v471_v61 = vadd.f32 %v11478_v58, %v11471_v54  ;;  %v544_v59 = vadd.f32 %v11533_v16, %v11554_v36 }
 0x1d2   :  { %v11618_v34 = vpop.f32.mrf.mxu1  ;;  %v768_v35 = vpop.f32.mrf.mxu0 }
 0x1d3   :  { %14071 = vst [vmem:[#allocation78_spill] sm:$0xff] %v11611_v13  ;;  %14072 = vst [vmem:[#allocation79_spill] sm:$0xff] %v11618_v34 }
 0x1d4   :  { %v805_v49 = vpop.f32.mrf.mxu1  ;;  %v1102_v48 = vpop.f32.mrf.mxu0 }
 0x1d5   :  { %v11630_v27 = vadd.f32 %v805_v49, %v11616_v14  ;;  %v1150_v50 = vadd.f32 %v1102_v48, %v469_v0 }
 0x1d6   :  { %v807_v24 = vpop.f32.mrf.mxu1  ;;  %v1104_v13 = vpop.f32.mrf.mxu0 }
 0x1d7   :  { %14074 = vst [vmem:[#allocation81_spill] sm:$0xff] %v11630_v27  ;;  %v8067_v34 = vmul.f32 -1.442695, %v1150_v50  ;;  %v11633_v17 = vadd.f32 %v807_v24, %v11625_v43  ;;  %v1151_v53 = vadd.f32 %v1104_v13, %v471_v61 }
 0x1d8   :  { %v809_v47 = vpop.f32.mrf.mxu1  ;;  %v1106_v55 = vpop.f32.mrf.mxu0 }
 0x1d9   :  { %14075 = vst [vmem:[#allocation82_spill] sm:$0xff] %v11633_v17  ;;  %v8068_v51 = vmul.f32 -1.442695, %v1151_v53  ;;  %v11636_v6 = vadd.f32 %v809_v47, %v11616_v14 }
 0x1da   :  { %v11638_v20 = vpop.f32.mrf.mxu1  ;;  %v1107_v58 = vpop.f32.mrf.mxu0 }
 0x1db   :  { %14076 = vst [vmem:[#allocation83_spill] sm:$0xff] %v11636_v6  ;;  %14077 = vst [vmem:[#allocation84_spill] sm:$0xff] %v11638_v20  ;;  %10069 = vpow2.f32 %v8068_v51 }
 0x1dc   :  { %v815_v32 = vpop.f32.mrf.mxu1  ;;  %10071 = vpow2.f32 %v8067_v34 }
 0x1dd   :  { %v11641_v49 = vadd.f32 %v815_v32, %v11616_v14 }
 0x1de   :  { %v817_v0 = vpop.f32.mrf.mxu1 }
 0x1df   :  { %14078 = vst [vmem:[#allocation85_spill] sm:$0xff] %v11641_v49  ;;  %v11644_v48 = vadd.f32 %v817_v0, %v11625_v43  ;;  %v769_v49 = vadd.f32 %v768_v35, %v11526_v21 }
 0x1e0   :  { %v819_v24 = vpop.f32.mrf.mxu1 }
 0x1e1   :  { %14079 = vst [vmem:[#allocation86_spill] sm:$0xff] %v11644_v48  ;;  %v11647_v13 = vadd.f32 %v819_v24, %v11616_v14 }
 0x1e2   :  { %v11649_v61 = vpop.f32.mrf.mxu1 }
 0x1e3   :  { %14080 = vst [vmem:[#allocation87_spill] sm:$0xff] %v11647_v13  ;;  %14081 = vst [vmem:[#allocation88_spill] sm:$0xff] %v11649_v61  ;;  %v11836_v13 = vld [vmem:[%s14029_s16 + $0x28] ss:$16 sps:$4 sm:$0xff]  }
 0x1e4   :  { %v825_v50 = vpop.f32.mrf.mxu1 }
 0x1e5   :  { %v11652_v53 = vadd.f32 %v825_v50, %v11616_v14 }
 0x1e6   :  { %v827_v47 = vpop.f32.mrf.mxu1 }
 0x1e7   :  { %14082 = vst [vmem:[#allocation89_spill] sm:$0xff] %v11652_v53  ;;  %v11655_v32 = vadd.f32 %v827_v47, %v11625_v43  ;;  %v542_v47 = vadd.f32 %v11528_v22, %v11537_v26 }
 0x1e8   :  { %v829_v55 = vpop.f32.mrf.mxu1  ;;  %v10070_v34 = vpop.eup %10069 }
 0x1e9   :  { %14083 = vst [vmem:[#allocation90_spill] sm:$0xff] %v11655_v32  ;;  %v11658_v58 = vadd.f32 %v829_v55, %v11616_v14  ;;  %v10072_v17 = vpop.eup %10071  ;;  %v1409_v6 = vadd.f32 1.0, %v10070_v34  ;;  %v11866_v32 = vld [vmem:[%s14028_s2 + $0xe4] ss:$16 sps:$4 sm:$0xff]  }
 0x1ea   :  { %v11660_v0 = vpop.f32.mrf.mxu1  ;;  %v1403_v20 = vadd.f32 1.0, %v10072_v17  ;;  %v767_v17 = vadd.f32 %v766_v5, %v11518_v18 }
 0x1eb   :  { %14084 = vst [vmem:[#allocation91_spill] sm:$0xff] %v11658_v58  ;;  %14085 = vst [vmem:[#allocation92_spill] sm:$0xff] %v11660_v0  ;;  %10073 = vrcp.f32 %v1409_v6  ;;  %v11934_v58 = vld [vmem:[%s14028_s2 + $0xa8] ss:$16 sps:$4 sm:$0xff]   ;;  %v11940_v0 = vld [vmem:[%s14028_s2 + $0x84] ss:$16 sps:$4 sm:$0xff]  }
 0x1ec   :  { %v835_v51 = vpop.f32.mrf.mxu1  ;;  %10075 = vrcp.f32 %v1403_v20  ;;  %14095 = vst [vmem:[#allocation101_spill] sm:$0xff] %v11934_v58  ;;  %14096 = vst [vmem:[#allocation102_spill] sm:$0xff] %v11940_v0 }
 0x1ed   :  { %v11663_v24 = vadd.f32 %v835_v51, %v11616_v14 }
 0x1ee   :  { %v11665_v27 = vpop.f32.mrf.mxu1 }
 0x1f0   :  { %v839_v50 = vpop.f32.mrf.mxu1 }
 0x1f2   :  { %v841_v33 = vpop.f32.mrf.mxu1 }
 0x1f4   :  { %v1143_v39 = vpop.f32.mrf.mxu1  ;;  %v1348_v55 = vpop.f32.mrf.mxu0 }
 0x1f5   :  { %v1152_v12 = vadd.f32 %v1143_v39, %v542_v47  ;;  %v1396_v26 = vadd.f32 %v1348_v55, %v767_v17 }
 0x1f6   :  { %v1145_v51 = vpop.f32.mrf.mxu1  ;;  %v1350_v8 = vpop.f32.mrf.mxu0 }
 0x1f7   :  { %10077 = vtanh.f32 %v1152_v12  ;;  %v1153_v48 = vadd.f32 %v1145_v51, %v544_v59  ;;  %v1397_v22 = vadd.f32 %v1350_v8, %v769_v49  ;;  %v8070_v6 = vmul.f32 -1.442695, %v1396_v26 }
 0x1f8   :  { %v1147_v34 = vpop.f32.mrf.mxu1  ;;  %v1352_v42 = vpop.f32.mrf.mxu0 }
 0x1f9   :  { %v8069_v38 = vmul.f32 -1.442695, %v1153_v48  ;;  %v8071_v16 = vmul.f32 -1.442695, %v1397_v22  ;;  %v10074_v20 = vpop.eup %10073  ;;  %v842_v48 = vadd.f32 %v841_v33, %v11625_v43  ;;  %v11681_v33 = vld [vmem:[%s14029_s16 + $0xe0] ss:$16 sps:$4 sm:$0xff]  }
 0x1fa   :  { %v1148_v23 = vpop.f32.mrf.mxu1  ;;  %v1353_v28 = vpop.f32.mrf.mxu0  ;;  %v1419_v35 = vmul.f32 0.0, %v10074_v20 }
 0x1fb   :  { %10079 = vpow2.f32 %v8069_v38  ;;  %v10076_v39 = vpop.eup %10075  ;;  %v840_v28 = vadd.f32 %v839_v50, %v11616_v14  ;;  %v11687_v14 = vld [vmem:[%s14029_s16 + $0xe8] ss:$16 sps:$4 sm:$0xff]   ;;  %v11693_v50 = vld [vmem:[%s14029_s16 + $0xc4] ss:$16 sps:$4 sm:$0xff]  }
 0x1fc   :  { %10081 = vpow2.f32 %v8071_v16 }
 0x1fd   :  { %10083 = vpow2.f32 %v8070_v6 }
 0x204   :  { %v10078_v47 = vpop.eup %10077 }
 0x205   :  { %v1420_v12 = vmul.f32 %v10078_v47, %v10076_v39  ;;  %v11699_v47 = vld [vmem:[%s14029_s16 + $0xcc] ss:$16 sps:$4 sm:$0xff]  }
 0x207   :  { %v11673_v59 = vadd.f32 %v1420_v12, %v1419_v35  ;;  %v14086_v35 = vmov 0  }
 0x208   :  { %v10080_v18 = vpop.eup %10079 }
 0x209   :  { %v1416_v5 = vadd.f32 1.0, %v10080_v18  ;;  %10085 = vtanh.f32 %v11673_v59  ;;  %v10082_v8 = vpop.eup %10081  ;;  %v11707_v18 = vld [vmem:[%s14029_s16 + $0xc0] ss:$16 sps:$4 sm:$0xff]  }
 0x20a   :  { %v10084_v42 = vpop.eup %10083  ;;  %v1433_v23 = vadd.f32 1.0, %v10082_v8 }
 0x20b   :  { %10087 = vrcp.f32 %v1416_v5  ;;  %v1427_v38 = vadd.f32 1.0, %v10084_v42  ;;  %v11713_v5 = vld [vmem:[%s14029_s16 + $0xc8] ss:$16 sps:$4 sm:$0xff]   ;;  %v11719_v42 = vld [vmem:[%s14029_s16 + $0xa4] ss:$16 sps:$4 sm:$0xff]  }
 0x20c   :  { %10089 = vrcp.f32 %v1433_v23  ;;  %v11725_v23 = vld [vmem:[%s14029_s16 + $0xac] ss:$16 sps:$4 sm:$0xff]  }
 0x20d   :  { %10091 = vrcp.f32 %v1427_v38 }
 0x214   :  { %v1389_v49 = vpop.f32.mrf.mxu1 }
 0x215   :  { %v1398_v55 = vadd.f32 %v1389_v49, %v840_v28 }
 0x216   :  { %v1391_v51 = vpop.f32.mrf.mxu1  ;;  %v10086_v17 = vpop.eup %10085 }
 0x217   :  { %10093 = vtanh.f32 %v1398_v55  ;;  %v1399_v34 = vadd.f32 %v1391_v51, %v842_v48  ;;  %v11731_v48 = vld [vmem:[%s14029_s16 + $0xa0] ss:$16 sps:$4 sm:$0xff]   ;;  %v11737_v55 = vld [vmem:[%s14029_s16 + $0xa8] ss:$16 sps:$4 sm:$0xff]  }
 0x218   :  { %v10088_v22 = vpop.eup %10087  ;;  %v1393_v26 = vpop.f32.mrf.mxu1 }
 0x219   :  { %v8072_v16 = vmul.f32 -1.442695, %v1399_v34  ;;  %v1423_v6 = vmul.f32 %v10088_v22, %v10086_v17  ;;  %v10090_v12 = vpop.eup %10089  ;;  %v11745_v17 = vld [vmem:[%s14029_s16 + $0x84] ss:$16 sps:$4 sm:$0xff]   ;;  %v11751_v34 = vld [vmem:[%s14029_s16 + $0x8c] ss:$16 sps:$4 sm:$0xff]  }
 0x21a   :  { %v1394_v20 = vpop.f32.mrf.mxu1  ;;  %v10092_v8 = vpop.eup %10091  ;;  %v1443_v28 = vmul.f32 0.0, %v10090_v12  ;;  %v11782_v12 = vld [vmem:[%s14029_s16 + $0x60] ss:$16 sps:$4 sm:$0xff]  }
 0x21b   :  { %10095 = vpow2.f32 %v8072_v16  ;;  %v1448_v39 = vpack.c.bf16 %v1423_v6, %v1423_v6  ;;  %v11758_v16 = vld [vmem:[%s14029_s16 + $0x80] ss:$16 sps:$4 sm:$0xff]   ;;  %v11764_v6 = vld [vmem:[%s14029_s16 + $0x88] ss:$16 sps:$4 sm:$0xff]   ;;  %v11770_v20 = vld [vmem:[%s14029_s16 + $0x64] ss:$16 sps:$4 sm:$0xff]  }
 0x21d   :  { %1482 = vmatmul.mubr.bf16.vlgmr.msra.gmra.mxu0 %v1448_v39  ;;  %1523 = vmatmul.mubr.bf16.vlgmr.msra.gmra.mxu1 %v1448_v39  ;;  %v11776_v39 = vld [vmem:[%s14029_s16 + $0x6c] ss:$16 sps:$4 sm:$0xff]  }
 0x21e   :  { %1537 = vmatpush1.bf16.msra.mxu0 %v11681_v33  ;;  %1578 = vmatpush1.bf16.msra.mxu1 %v11687_v14 }
 0x21f   :  { %1538 = vmatprep.subr.bf16.mxu0 %v11693_v50  ;;  %1579 = vmatprep.subr.bf16.mxu1 %v11699_v47 }
 0x220   :  { %1568 = vmatprep.mubr.bf16.mxu0 %v14086_v35  ;;  %1609 = vmatprep.mubr.bf16.mxu1 %v14086_v35 }
 0x222   :  { %1539 = vmatpush1.bf16.msra.mxu0 %v11707_v18  ;;  %1580 = vmatpush1.bf16.msra.mxu1 %v11713_v5 }
 0x223   :  { %1540 = vmatprep.subr.bf16.mxu0 %v11719_v42  ;;  %1581 = vmatprep.subr.bf16.mxu1 %v11725_v23 }
 0x224   :  { %v10094_v38 = vpop.eup %10093 }
 0x225   :  { %v1444_v49 = vmul.f32 %v10094_v38, %v10092_v8  ;;  %v11788_v8 = vld [vmem:[%s14029_s16 + $0x68] ss:$16 sps:$4 sm:$0xff]   ;;  %v11794_v38 = vld [vmem:[%s14029_s16 + $0x44] ss:$16 sps:$4 sm:$0xff]  }
 0x226   :  { %1541 = vmatpush1.bf16.msra.mxu0 %v11731_v48  ;;  %1582 = vmatpush1.bf16.msra.mxu1 %v11737_v55 }
 0x227   :  { %v11740_v51 = vadd.f32 %v1444_v49, %v1443_v28  ;;  %1542 = vmatprep.subr.bf16.mxu0 %v11745_v17  ;;  %1583 = vmatprep.subr.bf16.mxu1 %v11751_v34  ;;  %v11800_v28 = vld [vmem:[%s14029_s16 + $0x4c] ss:$16 sps:$4 sm:$0xff]   ;;  %v11806_v49 = vld [vmem:[%s14029_s16 + $0x40] ss:$16 sps:$4 sm:$0xff]  }
 0x228   :  { %v10096_v22 = vpop.eup %10095 }
 0x229   :  { %v1440_v26 = vadd.f32 1.0, %v10096_v22  ;;  %10097 = vtanh.f32 %v11740_v51  ;;  %v11812_v22 = vld [vmem:[%s14029_s16 + $0x48] ss:$16 sps:$4 sm:$0xff]  }
 0x22a   :  { %1543 = vmatpush1.bf16.msra.mxu0 %v11758_v16  ;;  %1584 = vmatpush1.bf16.msra.mxu1 %v11764_v6 }
 0x22b   :  { %10099 = vrcp.f32 %v1440_v26  ;;  %1544 = vmatprep.subr.bf16.mxu0 %v11770_v20  ;;  %1585 = vmatprep.subr.bf16.mxu1 %v11776_v39  ;;  %v11818_v26 = vld [vmem:[%s14029_s16 + $0x24] ss:$16 sps:$4 sm:$0xff]  }
 0x22e   :  { %1545 = vmatpush1.bf16.msra.mxu0 %v11782_v12  ;;  %1586 = vmatpush1.bf16.msra.mxu1 %v11788_v8 }
 0x22f   :  { %1546 = vmatprep.subr.bf16.mxu0 %v11794_v38  ;;  %1587 = vmatprep.subr.bf16.mxu1 %v11800_v28 }
 0x232   :  { %1547 = vmatpush1.bf16.msra.mxu0 %v11806_v49  ;;  %1588 = vmatpush1.bf16.msra.mxu1 %v11812_v22 }
 0x233   :  { %1548 = vmatprep.subr.bf16.mxu0 %v11818_v26  ;;  %1589 = vmatprep.subr.bf16.mxu1 %v11824_v1 }
 0x236   :  { %1549 = vmatpush1.bf16.msra.mxu0 %v11830_v3  ;;  %1590 = vmatpush1.bf16.msra.mxu1 %v11836_v13  ;;  %v10098_v61 = vpop.eup %10097 }
 0x237   :  { %1550 = vmatprep.subr.bf16.mxu0 %v11842_v46  ;;  %1591 = vmatprep.subr.bf16.mxu1 %v11848_v56 }
 0x238   :  { %v10100_v62 = vpop.eup %10099 }
 0x239   :  { %v1447_v10 = vmul.f32 %v10100_v62, %v10098_v61  ;;  %v11872_v62 = vld [vmem:[%s14028_s2 + $0xec] ss:$16 sps:$4 sm:$0xff]   ;;  %v11884_v61 = vld [vmem:[%s14028_s2 + $0xe8] ss:$16 sps:$4 sm:$0xff]  }
 0x23a   :  { %1551 = vmatpush1.bf16.msra.mxu0 %v11854_v60  ;;  %1592 = vmatpush1.bf16.msra.mxu1 %v11860_v57  ;;  %14087 = vst [vmem:[#allocation93_spill] sm:$0xff] %v11884_v61 }
 0x23b   :  { %v1535_v53 = vpack.c.bf16 %v1447_v10, %v1447_v10  ;;  %1671 = vmatprep.subr.bf16.mxu0 %v11866_v32  ;;  %1712 = vmatprep.subr.bf16.mxu1 %v11872_v62  ;;  %v11878_v10 = vld [vmem:[%s14028_s2 + $0xe0] ss:$16 sps:$4 sm:$0xff]  }
 0x23d   :  { %1569 = vmatmul.mubr.bf16.vlgmr.msra.gmra.mxu0 %v1535_v53  ;;  %1610 = vmatmul.mubr.bf16.vlgmr.msra.gmra.mxu1 %v1535_v53  ;;  %v11896_v53 = vld [vmem:[%s14028_s2 + $0xcc] ss:$16 sps:$4 sm:$0xff]  }
 0x23e   :  { %1672 = vmatpush1.bf16.msra.mxu0 %v11878_v10  ;;  %1713 = vmatpush1.bf16.msra.mxu1 %v11884_v61  ;;  %14089 = vst [vmem:[#allocation95_spill] sm:$0xff] %v11896_v53 }
 0x23f   :  { %1673 = vmatprep.subr.bf16.mxu0 %v11890_v4  ;;  %1714 = vmatprep.subr.bf16.mxu1 %v11896_v53 }
 0x240   :  { %1703 = vmatprep.mubr.bf16.mxu0 %v14086_v35  ;;  %1744 = vmatprep.mubr.bf16.mxu1 %v14086_v35 }
 0x242   :  { %1674 = vmatpush1.bf16.msra.mxu0 %v11904_v9  ;;  %1715 = vmatpush1.bf16.msra.mxu1 %v11910_v45 }
 0x243   :  { %1675 = vmatprep.subr.bf16.mxu0 %v11916_v52  ;;  %1716 = vmatprep.subr.bf16.mxu1 %v11922_v15 }
 0x246   :  { %1676 = vmatpush1.bf16.msra.mxu0 %v11928_v19  ;;  %1717 = vmatpush1.bf16.msra.mxu1 %v11934_v58 }
 0x247   :  { %1677 = vmatprep.subr.bf16.mxu0 %v11940_v0  ;;  %1718 = vmatprep.subr.bf16.mxu1 %v11946_v25  ;;  %v475_v25 = vadd.f32 %v11489_v2, %v11471_v54 }
 0x24a   :  { %1678 = vmatpush1.bf16.msra.mxu0 %v11952_v29  ;;  %1719 = vmatpush1.bf16.msra.mxu1 %v11958_v37  ;;  %v11982_v37 = vld [vmem:[%s14028_s2 + $0x68] ss:$16 sps:$4 sm:$0xff]  }
 0x24b   :  { %1679 = vmatprep.subr.bf16.mxu0 %v11964_v41  ;;  %1720 = vmatprep.subr.bf16.mxu1 %v11970_v11  ;;  %14103 = vst [vmem:[#allocation109_spill] sm:$0xff] %v11982_v37  ;;  %v11988_v41 = vld [vmem:[%s14028_s2 + $0x44] ss:$16 sps:$4 sm:$0xff]   ;;  %v11994_v11 = vld [vmem:[%s14028_s2 + $0x4c] ss:$16 sps:$4 sm:$0xff]  }
 0x24c   :  { %14104 = vst [vmem:[#allocation110_spill] sm:$0xff] %v11988_v41  ;;  %14105 = vst [vmem:[#allocation111_spill] sm:$0xff] %v11994_v11 }
 0x24e   :  { %1680 = vmatpush1.bf16.msra.mxu0 %v11976_v7  ;;  %1721 = vmatpush1.bf16.msra.mxu1 %v11982_v37  ;;  %v12000_v7 = vld [vmem:[%s14028_s2 + $0x40] ss:$16 sps:$4 sm:$0xff]   ;;  %v12006_v37 = vld [vmem:[%s14028_s2 + $0x48] ss:$16 sps:$4 sm:$0xff]  }
 0x24f   :  { %1681 = vmatprep.subr.bf16.mxu0 %v11988_v41  ;;  %1722 = vmatprep.subr.bf16.mxu1 %v11994_v11  ;;  %14106 = vst [vmem:[#allocation112_spill] sm:$0xff] %v12000_v7  ;;  %14107 = vst [vmem:[#allocation113_spill] sm:$0xff] %v12006_v37  ;;  %v12012_v41 = vld [vmem:[%s14028_s2 + $0x24] ss:$16 sps:$4 sm:$0xff]   ;;  %v12018_v11 = vld [vmem:[%s14028_s2 + $0x2c] ss:$16 sps:$4 sm:$0xff]  }
 0x250   :  { %14108 = vst [vmem:[#allocation114_spill] sm:$0xff] %v12012_v41  ;;  %14109 = vst [vmem:[#allocation115_spill] sm:$0xff] %v12018_v11 }
 0x252   :  { %1682 = vmatpush1.bf16.msra.mxu0 %v12000_v7  ;;  %1723 = vmatpush1.bf16.msra.mxu1 %v12006_v37  ;;  %v12024_v7 = vld [vmem:[%s14028_s2 + $0x20] ss:$16 sps:$4 sm:$0xff]   ;;  %v12030_v37 = vld [vmem:[%s14028_s2 + $0x28] ss:$16 sps:$4 sm:$0xff]  }
 0x253   :  { %1683 = vmatprep.subr.bf16.mxu0 %v12012_v41  ;;  %1724 = vmatprep.subr.bf16.mxu1 %v12018_v11  ;;  %14110 = vst [vmem:[#allocation116_spill] sm:$0xff] %v12024_v7  ;;  %14111 = vst [vmem:[#allocation117_spill] sm:$0xff] %v12030_v37  ;;  %v12036_v41 = vld [vmem:[%s14028_s2 + $0x4] ss:$16 sps:$4 sm:$0xff]   ;;  %v12042_v11 = vld [vmem:[%s14028_s2 + $0xc] ss:$16 sps:$4 sm:$0xff]  }
 0x254   :  { %14112 = vst [vmem:[#allocation118_spill] sm:$0xff] %v12036_v41  ;;  %14113 = vst [vmem:[#allocation119_spill] sm:$0xff] %v12042_v11 }
 0x256   :  { %1684 = vmatpush1.bf16.msra.mxu0 %v12024_v7  ;;  %1725 = vmatpush1.bf16.msra.mxu1 %v12030_v37  ;;  %v12048_v7 = vld [vmem:[%s14028_s2] ss:$16 sps:$4 sm:$0xff]   ;;  %v12054_v37 = vld [vmem:[%s14028_s2 + $0x8] ss:$16 sps:$4 sm:$0xff]  }
 0x257   :  { %1685 = vmatprep.subr.bf16.mxu0 %v12036_v41  ;;  %1726 = vmatprep.subr.bf16.mxu1 %v12042_v11  ;;  %14114 = vst [vmem:[#allocation120_spill] sm:$0xff] %v12048_v7  ;;  %14115 = vst [vmem:[#allocation121_spill] sm:$0xff] %v12054_v37  ;;  %v12060_v41 = vld [vmem:[%s14029_s16 + $0xe4] ss:$16 sps:$4 sm:$0xff]   ;;  %v12066_v11 = vld [vmem:[%s14029_s16 + $0xec] ss:$16 sps:$4 sm:$0xff]  }
 0x258   :  { %14116 = vst [vmem:[#allocation122_spill] sm:$0xff] %v12060_v41  ;;  %14117 = vst [vmem:[#allocation123_spill] sm:$0xff] %v12066_v11 }
 0x25a   :  { %1686 = vmatpush1.bf16.msra.mxu0 %v12048_v7  ;;  %1727 = vmatpush1.bf16.msra.mxu1 %v12054_v37 }
 0x25b   :  { %1758 = vmatprep.subr.bf16.mxu0 %v12060_v41  ;;  %1799 = vmatprep.subr.bf16.mxu1 %v12066_v11  ;;  %v548_v11 = vadd.f32 %v11548_v30, %v11554_v36  ;;  %v14143_v36 = vld [vmem:[#allocation118_spill] sm:$0xff] }
 0x2dd   :  { %v1483_v7 = vpop.f32.mrf.mxu0  ;;  %v1524_v29 = vpop.f32.mrf.mxu1 }
 0x2de   :  { %v1531_v37 = vadd.f32 %v1483_v7, %v11484_v63  ;;  %v1533_v61 = vadd.f32 %v1524_v29, %v11543_v31 }
 0x2df   :  { %v1485_v0 = vpop.f32.mrf.mxu0  ;;  %v1526_v58 = vpop.f32.mrf.mxu1 }
 0x2e0   :  { %v8073_v19 = vmul.f32 -1.442695, %v1531_v37  ;;  %v1532_v15 = vadd.f32 %v1485_v0, %v475_v25  ;;  %v1534_v4 = vadd.f32 %v1526_v58, %v548_v11 }
 0x2e1   :  { %v1487_v52 = vpop.f32.mrf.mxu0  ;;  %v1528_v41 = vpop.f32.mrf.mxu1 }
 0x2e2   :  { %10101 = vpow2.f32 %v8073_v19  ;;  %v8074_v45 = vmul.f32 -1.442695, %v1532_v15  ;;  %v8075_v2 = vmul.f32 -1.442695, %v1534_v4 }
 0x2e3   :  { %v1488_v9 = vpop.f32.mrf.mxu0  ;;  %v1529_v53 = vpop.f32.mrf.mxu1 }
 0x2e4   :  { %10103 = vpow2.f32 %v8074_v45  ;;  %v765_v45 = vadd.f32 %v11605_v44, %v11526_v21 }
 0x2e5   :  { %10105 = vtanh.f32 %v1533_v61 }
 0x2e6   :  { %10107 = vpow2.f32 %v8075_v2 }
 0x2ef   :  { %v10102_v54 = vpop.eup %10101 }
 0x2f0   :  { %v1625_v63 = vadd.f32 1.0, %v10102_v54 }
 0x2f1   :  { %v10104_v7 = vpop.eup %10103 }
 0x2f2   :  { %10109 = vrcp.f32 %v1625_v63  ;;  %v1631_v37 = vadd.f32 1.0, %v10104_v7  ;;  %v10106_v19 = vpop.eup %10105 }
 0x2f3   :  { %v10108_v52 = vpop.eup %10107 }
 0x2f4   :  { %10111 = vrcp.f32 %v1631_v37  ;;  %v1638_v58 = vadd.f32 1.0, %v10108_v52 }
 0x2fd   :  { %v1570_v15 = vpop.f32.mrf.mxu0  ;;  %v1611_v41 = vpop.f32.mrf.mxu1 }
 0x2fe   :  { %v1618_v11 = vadd.f32 %v1570_v15, %v11603_v40  ;;  %v838_v40 = vadd.f32 %v11665_v27, %v11625_v43 }
 0x2ff   :  { %v10110_v30 = vpop.eup %10109  ;;  %v1572_v31 = vpop.f32.mrf.mxu0 }
 0x300   :  { %v1613_v4 = vpop.f32.mrf.mxu1  ;;  %v1642_v9 = vmul.f32 %v10110_v30, %v10106_v19  ;;  %v8076_v54 = vmul.f32 -1.442695, %v1618_v11  ;;  %v1619_v25 = vadd.f32 %v1572_v31, %v765_v45  ;;  %v1620_v19 = vadd.f32 %v1611_v41, %v11663_v24 }
 0x301   :  { %v10112_v29 = vpop.eup %10111  ;;  %v1574_v0 = vpop.f32.mrf.mxu0  ;;  %v1621_v44 = vadd.f32 %v1613_v4, %v838_v40  ;;  %v14120_v40 = vld [vmem:[#allocation95_spill] sm:$0xff] }
 0x302   :  { %v1615_v61 = vpop.f32.mrf.mxu1  ;;  %v1641_v53 = vmul.f32 %v10112_v29, %v11673_v59  ;;  %10113 = vpow2.f32 %v8076_v54  ;;  %v8077_v2 = vmul.f32 -1.442695, %v1619_v25 }
 0x303   :  { %v1575_v63 = vpop.f32.mrf.mxu0  ;;  %v8078_v15 = vmul.f32 -1.442695, %v1621_v44  ;;  %v14121_v44 = vld [vmem:[#allocation96_spill] sm:$0xff] }
 0x304   :  { %v1616_v7 = vpop.f32.mrf.mxu1  ;;  %v12079_v37 = vadd.f32 %v1642_v9, %v1641_v53  ;;  %10115 = vpow2.f32 %v8077_v2  ;;  %v14118_v63 = vld [vmem:[#allocation93_spill] sm:$0xff] }
 0x305   :  { %10117 = vrcp.f32 %v1638_v58  ;;  %v14119_v7 = vld [vmem:[#allocation94_spill] sm:$0xff] }
 0x306   :  { %10119 = vtanh.f32 %v12079_v37 }
 0x307   :  { %10121 = vtanh.f32 %v1620_v19  ;;  %v14122_v19 = vld [vmem:[#allocation97_spill] sm:$0xff] }
 0x308   :  { %10123 = vpow2.f32 %v8078_v15  ;;  %v14123_v15 = vld [vmem:[#allocation98_spill] sm:$0xff] }
 0x30f   :  { %v10114_v52 = vpop.eup %10113 }
 0x310   :  { %v1649_v45 = vadd.f32 1.0, %v10114_v52  ;;  %v14124_v52 = vld [vmem:[#allocation99_spill] sm:$0xff] }
 0x311   :  { %v10116_v59 = vpop.eup %10115 }
 0x312   :  { %v10118_v11 = vpop.eup %10117  ;;  %10125 = vrcp.f32 %v1649_v45  ;;  %v1655_v30 = vadd.f32 1.0, %v10116_v59  ;;  %v14125_v45 = vld [vmem:[#allocation100_spill] sm:$0xff]  ;;  %v14126_v59 = vld [vmem:[#allocation101_spill] sm:$0xff] }
 0x313   :  { %v10120_v31 = vpop.eup %10119 }
 0x314   :  { %10127 = vrcp.f32 %v1655_v30  ;;  %v1645_v9 = vmul.f32 %v10120_v31, %v10118_v11  ;;  %v10122_v27 = vpop.eup %10121  ;;  %v14127_v11 = vld [vmem:[#allocation102_spill] sm:$0xff]  ;;  %v14128_v30 = vld [vmem:[#allocation103_spill] sm:$0xff]  ;;  %v14129_v31 = vld [vmem:[#allocation104_spill] sm:$0xff] }
 0x315   :  { %v10124_v24 = vpop.eup %10123 }
 0x316   :  { %v1670_v54 = vpack.c.bf16 %v1645_v9, %v1645_v9  ;;  %v1662_v29 = vadd.f32 1.0, %v10124_v24  ;;  %v14130_v9 = vld [vmem:[#allocation105_spill] sm:$0xff]  ;;  %v14133_v24 = vld [vmem:[#allocation108_spill] sm:$0xff] }
 0x318   :  { %1704 = vmatmul.mubr.bf16.vlgmr.msra.gmra.mxu0 %v1670_v54  ;;  %1745 = vmatmul.mubr.bf16.vlgmr.msra.gmra.mxu1 %v1670_v54  ;;  %10129 = vrcp.f32 %v1662_v29  ;;  %v14131_v54 = vld [vmem:[#allocation106_spill] sm:$0xff]  ;;  %v14137_v29 = vld [vmem:[#allocation112_spill] sm:$0xff] }
 0x319   :  { %1759 = vmatpush1.bf16.msra.mxu0 %v11681_v33  ;;  %1800 = vmatpush1.bf16.msra.mxu1 %v11687_v14 }
 0x31a   :  { %1760 = vmatprep.subr.bf16.mxu0 %v11693_v50  ;;  %1801 = vmatprep.subr.bf16.mxu1 %v11699_v47 }
 0x31b   :  { %1790 = vmatprep.mubr.bf16.mxu0 %v14086_v35  ;;  %1831 = vmatprep.mubr.bf16.mxu1 %v14086_v35 }
 0x31d   :  { %1761 = vmatpush1.bf16.msra.mxu0 %v11707_v18  ;;  %1802 = vmatpush1.bf16.msra.mxu1 %v11713_v5 }
 0x31e   :  { %1762 = vmatprep.subr.bf16.mxu0 %v11719_v42  ;;  %1803 = vmatprep.subr.bf16.mxu1 %v11725_v23 }
 0x31f   :  { %v10126_v41 = vpop.eup %10125 }
 0x320   :  { %v1666_v4 = vmul.f32 %v10126_v41, %v10122_v27  ;;  %v14132_v27 = vld [vmem:[#allocation107_spill] sm:$0xff]  ;;  %v14134_v41 = vld [vmem:[#allocation109_spill] sm:$0xff] }
 0x321   :  { %v10128_v25 = vpop.eup %10127  ;;  %1763 = vmatpush1.bf16.msra.mxu0 %v11731_v48  ;;  %1804 = vmatpush1.bf16.msra.mxu1 %v11737_v55 }
 0x322   :  { %v1665_v58 = vmul.f32 %v10128_v25, %v11740_v51  ;;  %1764 = vmatprep.subr.bf16.mxu0 %v11745_v17  ;;  %1805 = vmatprep.subr.bf16.mxu1 %v11751_v34  ;;  %v14136_v25 = vld [vmem:[#allocation111_spill] sm:$0xff] }
 0x324   :  { %v12100_v0 = vadd.f32 %v1666_v4, %v1665_v58  ;;  %v14135_v4 = vld [vmem:[#allocation110_spill] sm:$0xff]  ;;  %v14138_v58 = vld [vmem:[#allocation113_spill] sm:$0xff] }
 0x325   :  { %1765 = vmatpush1.bf16.msra.mxu0 %v11758_v16  ;;  %1806 = vmatpush1.bf16.msra.mxu1 %v11764_v6  ;;  %v10130_v51 = vpop.eup %10129 }
 0x326   :  { %1766 = vmatprep.subr.bf16.mxu0 %v11770_v20  ;;  %1807 = vmatprep.subr.bf16.mxu1 %v11776_v39  ;;  %10131 = vtanh.f32 %v12100_v0 }
 0x329   :  { %1767 = vmatpush1.bf16.msra.mxu0 %v11782_v12  ;;  %1808 = vmatpush1.bf16.msra.mxu1 %v11788_v8 }
 0x32a   :  { %1768 = vmatprep.subr.bf16.mxu0 %v11794_v38  ;;  %1809 = vmatprep.subr.bf16.mxu1 %v11800_v28 }
 0x32d   :  { %1769 = vmatpush1.bf16.msra.mxu0 %v11806_v49  ;;  %1810 = vmatpush1.bf16.msra.mxu1 %v11812_v22 }
 0x32e   :  { %1770 = vmatprep.subr.bf16.mxu0 %v11818_v26  ;;  %1811 = vmatprep.subr.bf16.mxu1 %v11824_v1 }
 0x331   :  { %1771 = vmatpush1.bf16.msra.mxu0 %v11830_v3  ;;  %1812 = vmatpush1.bf16.msra.mxu1 %v11836_v13 }
 0x332   :  { %1772 = vmatprep.subr.bf16.mxu0 %v11842_v46  ;;  %1813 = vmatprep.subr.bf16.mxu1 %v11848_v56 }
 0x333   :  { %v10132_v61 = vpop.eup %10131 }
 0x334   :  { %v1669_v53 = vmul.f32 %v10132_v61, %v10130_v51  ;;  %v14139_v51 = vld [vmem:[#allocation114_spill] sm:$0xff]  ;;  %v14140_v61 = vld [vmem:[#allocation115_spill] sm:$0xff] }
 0x335   :  { %1773 = vmatpush1.bf16.msra.mxu0 %v11854_v60  ;;  %1814 = vmatpush1.bf16.msra.mxu1 %v11860_v57 }
 0x336   :  { %v1757_v2 = vpack.c.bf16 %v1669_v53, %v1669_v53  ;;  %1893 = vmatprep.subr.bf16.mxu0 %v11866_v32  ;;  %1934 = vmatprep.subr.bf16.mxu1 %v11872_v62  ;;  %v14141_v53 = vld [vmem:[#allocation116_spill] sm:$0xff] }
 0x338   :  { %1791 = vmatmul.mubr.bf16.vlgmr.msra.gmra.mxu0 %v1757_v2  ;;  %1832 = vmatmul.mubr.bf16.vlgmr.msra.gmra.mxu1 %v1757_v2  ;;  %v14142_v2 = vld [vmem:[#allocation117_spill] sm:$0xff] }
 0x339   :  { %1894 = vmatpush1.bf16.msra.mxu0 %v11878_v10  ;;  %1935 = vmatpush1.bf16.msra.mxu1 %v14118_v63 }
 0x33a   :  { %1895 = vmatprep.subr.bf16.mxu0 %v14119_v7  ;;  %1936 = vmatprep.subr.bf16.mxu1 %v14120_v40 }
 0x33b   :  { %1925 = vmatprep.mubr.bf16.mxu0 %v14086_v35  ;;  %1966 = vmatprep.mubr.bf16.mxu1 %v14086_v35 }
 0x33d   :  { %1896 = vmatpush1.bf16.msra.mxu0 %v14121_v44  ;;  %1937 = vmatpush1.bf16.msra.mxu1 %v14122_v19 }
 0x33e   :  { %1897 = vmatprep.subr.bf16.mxu0 %v14123_v15  ;;  %1938 = vmatprep.subr.bf16.mxu1 %v14124_v52 }
 0x341   :  { %1898 = vmatpush1.bf16.msra.mxu0 %v14125_v45  ;;  %1939 = vmatpush1.bf16.msra.mxu1 %v14126_v59  ;;  %v14152_v59 = vld [vmem:[#allocation60_spill] sm:$0xff] }
 0x342   :  { %1899 = vmatprep.subr.bf16.mxu0 %v14127_v11  ;;  %1940 = vmatprep.subr.bf16.mxu1 %v14128_v30 }
 0x345   :  { %1900 = vmatpush1.bf16.msra.mxu0 %v14129_v31  ;;  %1941 = vmatpush1.bf16.msra.mxu1 %v14130_v9 }
 0x346   :  { %1901 = vmatprep.subr.bf16.mxu0 %v14131_v54  ;;  %1942 = vmatprep.subr.bf16.mxu1 %v14132_v27  ;;  %v14149_v27 = vld [vmem:[#allocation46_spill] sm:$0xff] }
 0x349   :  { %1902 = vmatpush1.bf16.msra.mxu0 %v14133_v24  ;;  %1943 = vmatpush1.bf16.msra.mxu1 %v14134_v41  ;;  %v14144_v24 = vld [vmem:[#allocation119_spill] sm:$0xff]  ;;  %v14145_v41 = vld [vmem:[#allocation120_spill] sm:$0xff] }
 0x34a   :  { %1903 = vmatprep.subr.bf16.mxu0 %v14135_v4  ;;  %1944 = vmatprep.subr.bf16.mxu1 %v14136_v25  ;;  %v14146_v4 = vld [vmem:[#allocation121_spill] sm:$0xff]  ;;  %v14147_v25 = vld [vmem:[#allocation122_spill] sm:$0xff] }
 0x34d   :  { %1904 = vmatpush1.bf16.msra.mxu0 %v14137_v29  ;;  %1945 = vmatpush1.bf16.msra.mxu1 %v14138_v58  ;;  %v14148_v29 = vld [vmem:[#allocation123_spill] sm:$0xff] }
 0x34e   :  { %1905 = vmatprep.subr.bf16.mxu0 %v14139_v51  ;;  %1946 = vmatprep.subr.bf16.mxu1 %v14140_v61 }
 0x351   :  { %1906 = vmatpush1.bf16.msra.mxu0 %v14141_v53  ;;  %1947 = vmatpush1.bf16.msra.mxu1 %v14142_v2  ;;  %v14150_v2 = vld [vmem:[#allocation48_spill] sm:$0xff] }
 0x352   :  { %1907 = vmatprep.subr.bf16.mxu0 %v14143_v36  ;;  %1948 = vmatprep.subr.bf16.mxu1 %v14144_v24 }
 0x355   :  { %1908 = vmatpush1.bf16.msra.mxu0 %v14145_v41  ;;  %1949 = vmatpush1.bf16.msra.mxu1 %v14146_v4  ;;  %v14151_v4 = vld [vmem:[#allocation62_spill] sm:$0xff] }
 0x356   :  { %1980 = vmatprep.subr.bf16.mxu0 %v14147_v25  ;;  %2021 = vmatprep.subr.bf16.mxu1 %v14148_v29 }
 0x3d8   :  { %v1705_v58 = vpop.f32.mrf.mxu0  ;;  %v1746_v51 = vpop.f32.mrf.mxu1 }
 0x3d9   :  { %v1753_v61 = vadd.f32 %v1705_v58, %v14149_v27  ;;  %v1755_v29 = vadd.f32 %v1746_v51, %v14152_v59 }
 0x3da   :  { %v1707_v54 = vpop.f32.mrf.mxu0  ;;  %v1748_v53 = vpop.f32.mrf.mxu1 }
 0x3db   :  { %v8079_v9 = vmul.f32 -1.442695, %v1753_v61  ;;  %v1754_v31 = vadd.f32 %v1707_v54, %v14150_v2  ;;  %v1756_v25 = vadd.f32 %v1748_v53, %v14151_v4 }
 0x3dc   :  { %v1709_v36 = vpop.f32.mrf.mxu0  ;;  %v1750_v30 = vpop.f32.mrf.mxu1 }
 0x3dd   :  { %10133 = vpow2.f32 %v8079_v9  ;;  %v8080_v24 = vmul.f32 -1.442695, %v1754_v31  ;;  %v8081_v45 = vmul.f32 -1.442695, %v1756_v25 }
 0x3de   :  { %v1710_v41 = vpop.f32.mrf.mxu0  ;;  %v1751_v11 = vpop.f32.mrf.mxu1 }
 0x3df   :  { %10135 = vpow2.f32 %v8080_v24  ;;  %v14153_v11 = vld [vmem:[#allocation75_spill] sm:$0xff]  ;;  %v14154_v24 = vld [vmem:[#allocation73_spill] sm:$0xff] }
 0x3e0   :  { %10137 = vtanh.f32 %v1755_v29  ;;  %v759_v54 = vadd.f32 %v14153_v11, %v11526_v21 }
 0x3e1   :  { %10139 = vpow2.f32 %v8081_v45 }
 0x3ea   :  { %v10134_v52 = vpop.eup %10133 }
 0x3eb   :  { %v1847_v15 = vadd.f32 1.0, %v10134_v52 }
 0x3ec   :  { %v10136_v27 = vpop.eup %10135 }
 0x3ed   :  { %10141 = vrcp.f32 %v1847_v15  ;;  %v1853_v58 = vadd.f32 1.0, %v10136_v27  ;;  %v10138_v36 = vpop.eup %10137 }
 0x3ee   :  { %v10140_v31 = vpop.eup %10139 }
 0x3ef   :  { %10143 = vrcp.f32 %v1853_v58  ;;  %v1860_v45 = vadd.f32 1.0, %v10140_v31 }
 0x3f8   :  { %v1792_v30 = vpop.f32.mrf.mxu0  ;;  %v1833_v9 = vpop.f32.mrf.mxu1 }
 0x3f9   :  { %v1840_v41 = vadd.f32 %v1792_v30, %v14154_v24 }
 0x3fa   :  { %v10142_v4 = vpop.eup %10141  ;;  %v1794_v59 = vpop.f32.mrf.mxu0 }
 0x3fb   :  { %v1835_v25 = vpop.f32.mrf.mxu1  ;;  %v1864_v51 = vmul.f32 %v10142_v4, %v10138_v36  ;;  %v8082_v52 = vmul.f32 -1.442695, %v1840_v41  ;;  %v1841_v29 = vadd.f32 %v1794_v59, %v759_v54  ;;  %v14155_v36 = vld [vmem:[#allocation92_spill] sm:$0xff]  ;;  %v14156_v54 = vld [vmem:[#allocation91_spill] sm:$0xff] }
 0x3fc   :  { %v10144_v61 = vpop.eup %10143  ;;  %v1796_v15 = vpop.f32.mrf.mxu0  ;;  %v832_v30 = vadd.f32 %v14155_v36, %v11625_v43  ;;  %v1842_v31 = vadd.f32 %v1833_v9, %v14156_v54  ;;  %v14158_v54 = vld [vmem:[#allocation97_spill] sm:$0xff]  ;;  %v14180_v43 = vld [vmem:[#allocation119_spill] sm:$0xff] }
 0x3fd   :  { %v1837_v53 = vpop.f32.mrf.mxu1  ;;  %v1863_v2 = vmul.f32 %v10144_v61, %v12079_v37  ;;  %10145 = vpow2.f32 %v8082_v52  ;;  %v8083_v27 = vmul.f32 -1.442695, %v1841_v29 }
 0x3fe   :  { %v1797_v58 = vpop.f32.mrf.mxu0  ;;  %v1843_v11 = vadd.f32 %v1835_v25, %v832_v30 }
 0x3ff   :  { %v1838_v19 = vpop.f32.mrf.mxu1  ;;  %v12165_v44 = vadd.f32 %v1864_v51, %v1863_v2  ;;  %10147 = vpow2.f32 %v8083_v27 }
 0x400   :  { %10149 = vrcp.f32 %v1860_v45  ;;  %v8084_v24 = vmul.f32 -1.442695, %v1843_v11  ;;  %v14157_v11 = vld [vmem:[#allocation96_spill] sm:$0xff] }
 0x401   :  { %10151 = vtanh.f32 %v12165_v44 }
 0x402   :  { %10153 = vtanh.f32 %v1842_v31  ;;  %v14159_v31 = vld [vmem:[#allocation98_spill] sm:$0xff] }
 0x403   :  { %10155 = vpow2.f32 %v8084_v24  ;;  %v14160_v24 = vld [vmem:[#allocation99_spill] sm:$0xff] }
 0x40a   :  { %v10146_v41 = vpop.eup %10145 }
 0x40b   :  { %v1871_v4 = vadd.f32 1.0, %v10146_v41  ;;  %v14161_v41 = vld [vmem:[#allocation100_spill] sm:$0xff] }
 0x40c   :  { %v10148_v37 = vpop.eup %10147 }
 0x40d   :  { %v10150_v59 = vpop.eup %10149  ;;  %10157 = vrcp.f32 %v1871_v4  ;;  %v1877_v19 = vadd.f32 1.0, %v10148_v37  ;;  %v14162_v4 = vld [vmem:[#allocation101_spill] sm:$0xff]  ;;  %v14163_v37 = vld [vmem:[#allocation102_spill] sm:$0xff] }
 0x40e   :  { %v10152_v51 = vpop.eup %10151 }
 0x40f   :  { %10159 = vrcp.f32 %v1877_v19  ;;  %v1867_v52 = vmul.f32 %v10152_v51, %v10150_v59  ;;  %v10154_v9 = vpop.eup %10153  ;;  %v14164_v59 = vld [vmem:[#allocation103_spill] sm:$0xff]  ;;  %v14165_v19 = vld [vmem:[#allocation104_spill] sm:$0xff]  ;;  %v14166_v51 = vld [vmem:[#allocation105_spill] sm:$0xff] }
 0x410   :  { %v10156_v25 = vpop.eup %10155 }
 0x411   :  { %v1892_v29 = vpack.c.bf16 %v1867_v52, %v1867_v52  ;;  %v1884_v53 = vadd.f32 1.0, %v10156_v25  ;;  %v14167_v52 = vld [vmem:[#allocation106_spill] sm:$0xff]  ;;  %v14170_v25 = vld [vmem:[#allocation109_spill] sm:$0xff] }
 0x413   :  { %1926 = vmatmul.mubr.bf16.vlgmr.msra.gmra.mxu0 %v1892_v29  ;;  %1967 = vmatmul.mubr.bf16.vlgmr.msra.gmra.mxu1 %v1892_v29  ;;  %10161 = vrcp.f32 %v1884_v53  ;;  %v14168_v29 = vld [vmem:[#allocation107_spill] sm:$0xff]  ;;  %v14174_v53 = vld [vmem:[#allocation113_spill] sm:$0xff] }
 0x414   :  { %1981 = vmatpush1.bf16.msra.mxu0 %v11681_v33  ;;  %2022 = vmatpush1.bf16.msra.mxu1 %v11687_v14 }
 0x415   :  { %1982 = vmatprep.subr.bf16.mxu0 %v11693_v50  ;;  %2023 = vmatprep.subr.bf16.mxu1 %v11699_v47 }
 0x416   :  { %2012 = vmatprep.mubr.bf16.mxu0 %v14086_v35  ;;  %2053 = vmatprep.mubr.bf16.mxu1 %v14086_v35 }
 0x418   :  { %1983 = vmatpush1.bf16.msra.mxu0 %v11707_v18  ;;  %2024 = vmatpush1.bf16.msra.mxu1 %v11713_v5 }
 0x419   :  { %1984 = vmatprep.subr.bf16.mxu0 %v11719_v42  ;;  %2025 = vmatprep.subr.bf16.mxu1 %v11725_v23 }
 0x41a   :  { %v10158_v61 = vpop.eup %10157 }
 0x41b   :  { %v1888_v45 = vmul.f32 %v10158_v61, %v10154_v9  ;;  %v14169_v9 = vld [vmem:[#allocation108_spill] sm:$0xff]  ;;  %v14171_v61 = vld [vmem:[#allocation110_spill] sm:$0xff] }
 0x41c   :  { %v10160_v15 = vpop.eup %10159  ;;  %1985 = vmatpush1.bf16.msra.mxu0 %v11731_v48  ;;  %2026 = vmatpush1.bf16.msra.mxu1 %v11737_v55 }
 0x41d   :  { %v1887_v2 = vmul.f32 %v10160_v15, %v12100_v0  ;;  %1986 = vmatprep.subr.bf16.mxu0 %v11745_v17  ;;  %2027 = vmatprep.subr.bf16.mxu1 %v11751_v34  ;;  %v14173_v15 = vld [vmem:[#allocation112_spill] sm:$0xff] }
 0x41f   :  { %v12186_v27 = vadd.f32 %v1888_v45, %v1887_v2  ;;  %v14172_v45 = vld [vmem:[#allocation111_spill] sm:$0xff]  ;;  %v14175_v2 = vld [vmem:[#allocation114_spill] sm:$0xff] }
 0x420   :  { %1987 = vmatpush1.bf16.msra.mxu0 %v11758_v16  ;;  %2028 = vmatpush1.bf16.msra.mxu1 %v11764_v6  ;;  %v10162_v0 = vpop.eup %10161 }
 0x421   :  { %1988 = vmatprep.subr.bf16.mxu0 %v11770_v20  ;;  %2029 = vmatprep.subr.bf16.mxu1 %v11776_v39  ;;  %10163 = vtanh.f32 %v12186_v27 }
 0x424   :  { %1989 = vmatpush1.bf16.msra.mxu0 %v11782_v12  ;;  %2030 = vmatpush1.bf16.msra.mxu1 %v11788_v8 }
 0x425   :  { %1990 = vmatprep.subr.bf16.mxu0 %v11794_v38  ;;  %2031 = vmatprep.subr.bf16.mxu1 %v11800_v28 }
 0x428   :  { %1991 = vmatpush1.bf16.msra.mxu0 %v11806_v49  ;;  %2032 = vmatpush1.bf16.msra.mxu1 %v11812_v22 }
 0x429   :  { %1992 = vmatprep.subr.bf16.mxu0 %v11818_v26  ;;  %2033 = vmatprep.subr.bf16.mxu1 %v11824_v1 }
 0x42c   :  { %1993 = vmatpush1.bf16.msra.mxu0 %v11830_v3  ;;  %2034 = vmatpush1.bf16.msra.mxu1 %v11836_v13 }
 0x42d   :  { %1994 = vmatprep.subr.bf16.mxu0 %v11842_v46  ;;  %2035 = vmatprep.subr.bf16.mxu1 %v11848_v56 }
 0x42e   :  { %v10164_v58 = vpop.eup %10163 }
 0x42f   :  { %v1891_v36 = vmul.f32 %v10164_v58, %v10162_v0  ;;  %v14176_v0 = vld [vmem:[#allocation115_spill] sm:$0xff]  ;;  %v14177_v58 = vld [vmem:[#allocation116_spill] sm:$0xff] }
 0x430   :  { %1995 = vmatpush1.bf16.msra.mxu0 %v11854_v60  ;;  %2036 = vmatpush1.bf16.msra.mxu1 %v11860_v57 }
 0x431   :  { %v1979_v30 = vpack.c.bf16 %v1891_v36, %v1891_v36  ;;  %2115 = vmatprep.subr.bf16.mxu0 %v11866_v32  ;;  %2156 = vmatprep.subr.bf16.mxu1 %v11872_v62  ;;  %v14178_v36 = vld [vmem:[#allocation117_spill] sm:$0xff] }
 0x433   :  { %2013 = vmatmul.mubr.bf16.vlgmr.msra.gmra.mxu0 %v1979_v30  ;;  %2054 = vmatmul.mubr.bf16.vlgmr.msra.gmra.mxu1 %v1979_v30  ;;  %v14179_v30 = vld [vmem:[#allocation118_spill] sm:$0xff] }
 0x434   :  { %2116 = vmatpush1.bf16.msra.mxu0 %v11878_v10  ;;  %2157 = vmatpush1.bf16.msra.mxu1 %v14118_v63 }
 0x435   :  { %2117 = vmatprep.subr.bf16.mxu0 %v14119_v7  ;;  %2158 = vmatprep.subr.bf16.mxu1 %v14120_v40 }
 0x436   :  { %2147 = vmatprep.mubr.bf16.mxu0 %v14086_v35  ;;  %2188 = vmatprep.mubr.bf16.mxu1 %v14086_v35 }
 0x438   :  { %2118 = vmatpush1.bf16.msra.mxu0 %v14157_v11  ;;  %2159 = vmatpush1.bf16.msra.mxu1 %v14158_v54 }
 0x439   :  { %2119 = vmatprep.subr.bf16.mxu0 %v14159_v31  ;;  %2160 = vmatprep.subr.bf16.mxu1 %v14160_v24  ;;  %v14190_v24 = vld [vmem:[#allocation64_spill] sm:$0xff] }
 0x43c   :  { %2120 = vmatpush1.bf16.msra.mxu0 %v14161_v41  ;;  %2161 = vmatpush1.bf16.msra.mxu1 %v14162_v4 }
 0x43d   :  { %2121 = vmatprep.subr.bf16.mxu0 %v14163_v37  ;;  %2162 = vmatprep.subr.bf16.mxu1 %v14164_v59 }
 0x440   :  { %2122 = vmatpush1.bf16.msra.mxu0 %v14165_v19  ;;  %2163 = vmatpush1.bf16.msra.mxu1 %v14166_v51 }
 0x441   :  { %2123 = vmatprep.subr.bf16.mxu0 %v14167_v52  ;;  %2164 = vmatprep.subr.bf16.mxu1 %v14168_v29 }
 0x444   :  { %2124 = vmatpush1.bf16.msra.mxu0 %v14169_v9  ;;  %2165 = vmatpush1.bf16.msra.mxu1 %v14170_v25  ;;  %v14181_v25 = vld [vmem:[#allocation120_spill] sm:$0xff]  ;;  %v14185_v9 = vld [vmem:[#allocation41_spill] sm:$0xff] }
 0x445   :  { %2125 = vmatprep.subr.bf16.mxu0 %v14171_v61  ;;  %2166 = vmatprep.subr.bf16.mxu1 %v14172_v45  ;;  %v14182_v61 = vld [vmem:[#allocation121_spill] sm:$0xff]  ;;  %v14183_v45 = vld [vmem:[#allocation122_spill] sm:$0xff] }
 0x448   :  { %2126 = vmatpush1.bf16.msra.mxu0 %v14173_v15  ;;  %2167 = vmatpush1.bf16.msra.mxu1 %v14174_v53  ;;  %v14184_v15 = vld [vmem:[#allocation123_spill] sm:$0xff] }
 0x449   :  { %2127 = vmatprep.subr.bf16.mxu0 %v14175_v2  ;;  %2168 = vmatprep.subr.bf16.mxu1 %v14176_v0  ;;  %v14186_v0 = vld [vmem:[#allocation52_spill] sm:$0xff] }
 0x44a   :  { %v485_v29 = vadd.f32 %v14186_v0, %v14185_v9 }
 0x44c   :  { %2128 = vmatpush1.bf16.msra.mxu0 %v14177_v58  ;;  %2169 = vmatpush1.bf16.msra.mxu1 %v14178_v36  ;;  %v14187_v58 = vld [vmem:[#allocation50_spill] sm:$0xff] }
 0x44d   :  { %2129 = vmatprep.subr.bf16.mxu0 %v14179_v30  ;;  %2170 = vmatprep.subr.bf16.mxu1 %v14180_v43 }
 0x450   :  { %2130 = vmatpush1.bf16.msra.mxu0 %v14181_v25  ;;  %2171 = vmatpush1.bf16.msra.mxu1 %v14182_v61 }
 0x451   :  { %2202 = vmatprep.subr.bf16.mxu0 %v14183_v45  ;;  %2243 = vmatprep.subr.bf16.mxu1 %v14184_v15  ;;  %v14188_v45 = vld [vmem:[#allocation59_spill] sm:$0xff]  ;;  %v14189_v15 = vld [vmem:[#allocation66_spill] sm:$0xff] }
 0x452   :  { %v558_v4 = vadd.f32 %v14189_v15, %v14188_v45 }
 0x4d3   :  { %v1927_v53 = vpop.f32.mrf.mxu0  ;;  %v1968_v2 = vpop.f32.mrf.mxu1 }
 0x4d4   :  { %v1975_v52 = vadd.f32 %v1927_v53, %v14187_v58  ;;  %v1977_v31 = vadd.f32 %v1968_v2, %v14190_v24 }
 0x4d5   :  { %v1929_v36 = vpop.f32.mrf.mxu0  ;;  %v1970_v51 = vpop.f32.mrf.mxu1 }
 0x4d6   :  { %v8085_v30 = vmul.f32 -1.442695, %v1975_v52  ;;  %v1976_v19 = vadd.f32 %v1929_v36, %v485_v29  ;;  %v1978_v41 = vadd.f32 %v1970_v51, %v558_v4  ;;  %v14191_v29 = vld [vmem:[#allocation70_spill] sm:$0xff] }
 0x4d7   :  { %v1931_v43 = vpop.f32.mrf.mxu0  ;;  %v1972_v59 = vpop.f32.mrf.mxu1 }
 0x4d8   :  { %10165 = vpow2.f32 %v8085_v30  ;;  %v8086_v25 = vmul.f32 -1.442695, %v1976_v19  ;;  %v8087_v0 = vmul.f32 -1.442695, %v1978_v41 }
 0x4d9   :  { %v1932_v61 = vpop.f32.mrf.mxu0  ;;  %v1973_v37 = vpop.f32.mrf.mxu1 }
 0x4da   :  { %10167 = vpow2.f32 %v8086_v25  ;;  %v755_v25 = vadd.f32 %v14191_v29, %v11526_v21  ;;  %v14192_v61 = vld [vmem:[#allocation69_spill] sm:$0xff] }
 0x4db   :  { %10169 = vtanh.f32 %v1977_v31  ;;  %v14194_v29 = vld [vmem:[#allocation89_spill] sm:$0xff] }
 0x4dc   :  { %10171 = vpow2.f32 %v8087_v0 }
 0x4e5   :  { %v10166_v9 = vpop.eup %10165 }
 0x4e6   :  { %v2069_v53 = vadd.f32 1.0, %v10166_v9 }
 0x4e7   :  { %v10168_v58 = vpop.eup %10167 }
 0x4e8   :  { %10173 = vrcp.f32 %v2069_v53  ;;  %v2075_v43 = vadd.f32 1.0, %v10168_v58  ;;  %v10170_v59 = vpop.eup %10169 }
 0x4e9   :  { %v10172_v37 = vpop.eup %10171 }
 0x4ea   :  { %10175 = vrcp.f32 %v2075_v43  ;;  %v2082_v36 = vadd.f32 1.0, %v10172_v37 }
 0x4f3   :  { %v2014_v19 = vpop.f32.mrf.mxu0  ;;  %v2055_v52 = vpop.f32.mrf.mxu1 }
 0x4f4   :  { %v2062_v4 = vadd.f32 %v2014_v19, %v14192_v61  ;;  %v14193_v19 = vld [vmem:[#allocation90_spill] sm:$0xff] }
 0x4f5   :  { %v10174_v51 = vpop.eup %10173  ;;  %v2016_v24 = vpop.f32.mrf.mxu0 }
 0x4f6   :  { %v2057_v41 = vpop.f32.mrf.mxu1  ;;  %v2086_v15 = vmul.f32 %v10174_v51, %v10170_v59  ;;  %v8088_v9 = vmul.f32 -1.442695, %v2062_v4  ;;  %v2063_v31 = vadd.f32 %v2016_v24, %v755_v25  ;;  %v2064_v25 = vadd.f32 %v2055_v52, %v14194_v29 }
 0x4f7   :  { %v10176_v2 = vpop.eup %10175  ;;  %v2018_v30 = vpop.f32.mrf.mxu0  ;;  %v2065_v59 = vadd.f32 %v2057_v41, %v14193_v19 }
 0x4f8   :  { %v2059_v0 = vpop.f32.mrf.mxu1  ;;  %v2085_v53 = vmul.f32 %v10176_v2, %v12165_v44  ;;  %10177 = vpow2.f32 %v8088_v9  ;;  %v8089_v58 = vmul.f32 -1.442695, %v2063_v31  ;;  %v14222_v2 = vld [vmem:[#allocation42_spill] sm:$0xff] }
 0x4f9   :  { %v2019_v43 = vpop.f32.mrf.mxu0  ;;  %v8090_v61 = vmul.f32 -1.442695, %v2065_v59 }
 0x4fa   :  { %v2060_v45 = vpop.f32.mrf.mxu1  ;;  %v12253_v54 = vadd.f32 %v2086_v15, %v2085_v53  ;;  %10179 = vpow2.f32 %v8089_v58  ;;  %v14223_v58 = vld [vmem:[#allocation43_spill] sm:$0xff] }
 0x4fb   :  { %10181 = vrcp.f32 %v2082_v36 }
 0x4fc   :  { %10183 = vtanh.f32 %v12253_v54 }
 0x4fd   :  { %10185 = vtanh.f32 %v2064_v25 }
 0x4fe   :  { %10187 = vpow2.f32 %v8090_v61 }
 0x505   :  { %v10178_v37 = vpop.eup %10177 }
 0x506   :  { %v2093_v4 = vadd.f32 1.0, %v10178_v37  ;;  %v14224_v37 = vld [vmem:[#allocation71_spill] sm:$0xff] }
 0x507   :  { %v10180_v51 = vpop.eup %10179 }
 0x508   :  { %v10182_v44 = vpop.eup %10181  ;;  %10189 = vrcp.f32 %v2093_v4  ;;  %v2099_v24 = vadd.f32 1.0, %v10180_v51  ;;  %v14225_v51 = vld [vmem:[#allocation68_spill] sm:$0xff] }
 0x509   :  { %v10184_v45 = vpop.eup %10183 }
 0x50a   :  { %10191 = vrcp.f32 %v2099_v24  ;;  %v2089_v15 = vmul.f32 %v10184_v45, %v10182_v44  ;;  %v10186_v52 = vpop.eup %10185 }
 0x50b   :  { %v10188_v41 = vpop.eup %10187 }
 0x50c   :  { %v2114_v9 = vpack.c.bf16 %v2089_v15, %v2089_v15 }
 0x50e   :  { %2148 = vmatmul.mubr.bf16.vlgmr.msra.gmra.mxu0 %v2114_v9  ;;  %2189 = vmatmul.mubr.bf16.vlgmr.msra.gmra.mxu1 %v2114_v9 }
 0x50f   :  { %2203 = vmatpush1.bf16.msra.mxu0 %v11681_v33  ;;  %2244 = vmatpush1.bf16.msra.mxu1 %v11687_v14 }
 0x510   :  { %2204 = vmatprep.subr.bf16.mxu0 %v11693_v50  ;;  %2245 = vmatprep.subr.bf16.mxu1 %v11699_v47  ;;  %v2106_v50 = vadd.f32 1.0, %v10188_v41 }
 0x511   :  { %2234 = vmatprep.mubr.bf16.mxu0 %v14086_v35  ;;  %2275 = vmatprep.mubr.bf16.mxu1 %v14086_v35 }
 0x512   :  { %10193 = vrcp.f32 %v2106_v50  ;;  %v14226_v50 = vld [vmem:[#allocation67_spill] sm:$0xff] }
 0x513   :  { %2205 = vmatpush1.bf16.msra.mxu0 %v11707_v18  ;;  %2246 = vmatpush1.bf16.msra.mxu1 %v11713_v5 }
 0x514   :  { %2206 = vmatprep.subr.bf16.mxu0 %v11719_v42  ;;  %2247 = vmatprep.subr.bf16.mxu1 %v11725_v23 }
 0x515   :  { %v10190_v33 = vpop.eup %10189 }
 0x516   :  { %v2110_v14 = vmul.f32 %v10190_v33, %v10186_v52 }
 0x517   :  { %v10192_v31 = vpop.eup %10191  ;;  %2207 = vmatpush1.bf16.msra.mxu0 %v11731_v48  ;;  %2248 = vmatpush1.bf16.msra.mxu1 %v11737_v55  ;;  %v14203_v55 = vld [vmem:[#allocation105_spill] sm:$0xff] }
 0x518   :  { %v2109_v47 = vmul.f32 %v10192_v31, %v12186_v27  ;;  %2208 = vmatprep.subr.bf16.mxu0 %v11745_v17  ;;  %2249 = vmatprep.subr.bf16.mxu1 %v11751_v34  ;;  %v14204_v17 = vld [vmem:[#allocation106_spill] sm:$0xff]  ;;  %v14205_v34 = vld [vmem:[#allocation107_spill] sm:$0xff] }
 0x51a   :  { %v12273_v18 = vadd.f32 %v2110_v14, %v2109_v47  ;;  %v749_v47 = vadd.f32 %v14226_v50, %v11526_v21  ;;  %v12473_v50 = vld [vmem:[%s14029_s16 + $0x40] ss:$16 sps:$4 sm:$0xff]  }
 0x51b   :  { %2209 = vmatpush1.bf16.msra.mxu0 %v11758_v16  ;;  %2250 = vmatpush1.bf16.msra.mxu1 %v11764_v6  ;;  %v14206_v16 = vld [vmem:[#allocation108_spill] sm:$0xff]  ;;  %v14207_v6 = vld [vmem:[#allocation109_spill] sm:$0xff] }
 0x51c   :  { %2210 = vmatprep.subr.bf16.mxu0 %v11770_v20  ;;  %2251 = vmatprep.subr.bf16.mxu1 %v11776_v39  ;;  %10195 = vtanh.f32 %v12273_v18  ;;  %v14208_v20 = vld [vmem:[#allocation110_spill] sm:$0xff]  ;;  %v14209_v39 = vld [vmem:[#allocation111_spill] sm:$0xff] }
 0x51d   :  { %v12715_v21 = vld [vmem:[%s14028_s2] ss:$16 sps:$4 sm:$0xff]  }
 0x51f   :  { %2211 = vmatpush1.bf16.msra.mxu0 %v11782_v12  ;;  %2252 = vmatpush1.bf16.msra.mxu1 %v11788_v8  ;;  %v10194_v5 = vpop.eup %10193  ;;  %v14210_v12 = vld [vmem:[#allocation112_spill] sm:$0xff]  ;;  %v14211_v8 = vld [vmem:[#allocation113_spill] sm:$0xff] }
 0x520   :  { %2212 = vmatprep.subr.bf16.mxu0 %v11794_v38  ;;  %2253 = vmatprep.subr.bf16.mxu1 %v11800_v28  ;;  %v14212_v38 = vld [vmem:[#allocation114_spill] sm:$0xff]  ;;  %v14213_v28 = vld [vmem:[#allocation115_spill] sm:$0xff] }
 0x523   :  { %2213 = vmatpush1.bf16.msra.mxu0 %v11806_v49  ;;  %2254 = vmatpush1.bf16.msra.mxu1 %v11812_v22  ;;  %v14214_v49 = vld [vmem:[#allocation116_spill] sm:$0xff]  ;;  %v14215_v22 = vld [vmem:[#allocation117_spill] sm:$0xff] }
 0x524   :  { %2214 = vmatprep.subr.bf16.mxu0 %v11818_v26  ;;  %2255 = vmatprep.subr.bf16.mxu1 %v11824_v1  ;;  %v14197_v1 = vld [vmem:[#allocation99_spill] sm:$0xff]  ;;  %v14216_v26 = vld [vmem:[#allocation118_spill] sm:$0xff] }
 0x527   :  { %2215 = vmatpush1.bf16.msra.mxu0 %v11830_v3  ;;  %2256 = vmatpush1.bf16.msra.mxu1 %v11836_v13  ;;  %v14198_v3 = vld [vmem:[#allocation100_spill] sm:$0xff]  ;;  %v14201_v13 = vld [vmem:[#allocation103_spill] sm:$0xff] }
 0x528   :  { %2216 = vmatprep.subr.bf16.mxu0 %v11842_v46  ;;  %2257 = vmatprep.subr.bf16.mxu1 %v11848_v56  ;;  %v14199_v46 = vld [vmem:[#allocation101_spill] sm:$0xff]  ;;  %v14200_v56 = vld [vmem:[#allocation102_spill] sm:$0xff] }
 0x529   :  { %v10196_v42 = vpop.eup %10195 }
 0x52a   :  { %v2113_v23 = vmul.f32 %v10196_v42, %v10194_v5  ;;  %v14227_v5 = vld [vmem:[#allocation65_spill] sm:$0xff] }
 0x52b   :  { %2217 = vmatpush1.bf16.msra.mxu0 %v11854_v60  ;;  %2258 = vmatpush1.bf16.msra.mxu1 %v11860_v57  ;;  %v14195_v57 = vld [vmem:[#allocation97_spill] sm:$0xff]  ;;  %v14196_v60 = vld [vmem:[#allocation98_spill] sm:$0xff] }
 0x52c   :  { %v2201_v48 = vpack.c.bf16 %v2113_v23, %v2113_v23  ;;  %2337 = vmatprep.subr.bf16.mxu0 %v11866_v32  ;;  %2378 = vmatprep.subr.bf16.mxu1 %v11872_v62  ;;  %v14202_v32 = vld [vmem:[#allocation104_spill] sm:$0xff]  ;;  %v14217_v62 = vld [vmem:[#allocation119_spill] sm:$0xff]  ;;  %14252 = vst [vmem:[#allocation98_spill] sm:$0xff] %v12715_v21 }
 0x52e   :  { %2235 = vmatmul.mubr.bf16.vlgmr.msra.gmra.mxu0 %v2201_v48  ;;  %2276 = vmatmul.mubr.bf16.vlgmr.msra.gmra.mxu1 %v2201_v48 }
 0x52f   :  { %2338 = vmatpush1.bf16.msra.mxu0 %v11878_v10  ;;  %2379 = vmatpush1.bf16.msra.mxu1 %v14118_v63  ;;  %v14218_v10 = vld [vmem:[#allocation120_spill] sm:$0xff]  ;;  %v14219_v63 = vld [vmem:[#allocation121_spill] sm:$0xff] }
 0x530   :  { %2339 = vmatprep.subr.bf16.mxu0 %v14119_v7  ;;  %2380 = vmatprep.subr.bf16.mxu1 %v14120_v40  ;;  %v14220_v7 = vld [vmem:[#allocation122_spill] sm:$0xff]  ;;  %v14221_v40 = vld [vmem:[#allocation123_spill] sm:$0xff] }
 0x531   :  { %2369 = vmatprep.mubr.bf16.mxu0 %v14086_v35  ;;  %2410 = vmatprep.mubr.bf16.mxu1 %v14086_v35 }
 0x533   :  { %2340 = vmatpush1.bf16.msra.mxu0 %v14157_v11  ;;  %2381 = vmatpush1.bf16.msra.mxu1 %v14195_v57 }
 0x534   :  { %2341 = vmatprep.subr.bf16.mxu0 %v14196_v60  ;;  %2382 = vmatprep.subr.bf16.mxu1 %v14197_v1 }
 0x537   :  { %2342 = vmatpush1.bf16.msra.mxu0 %v14198_v3  ;;  %2383 = vmatpush1.bf16.msra.mxu1 %v14199_v46 }
 0x538   :  { %2343 = vmatprep.subr.bf16.mxu0 %v14200_v56  ;;  %2384 = vmatprep.subr.bf16.mxu1 %v14201_v13 }
 0x53b   :  { %2344 = vmatpush1.bf16.msra.mxu0 %v14202_v32  ;;  %2385 = vmatpush1.bf16.msra.mxu1 %v14203_v55 }
 0x53c   :  { %2345 = vmatprep.subr.bf16.mxu0 %v14204_v17  ;;  %2386 = vmatprep.subr.bf16.mxu1 %v14205_v34 }
 0x53f   :  { %2346 = vmatpush1.bf16.msra.mxu0 %v14206_v16  ;;  %2387 = vmatpush1.bf16.msra.mxu1 %v14207_v6 }
 0x540   :  { %2347 = vmatprep.subr.bf16.mxu0 %v14208_v20  ;;  %2388 = vmatprep.subr.bf16.mxu1 %v14209_v39  ;;  %v14228_v20 = vld [vmem:[#allocation80_spill] sm:$0xff] }
 0x541   :  { %v14229_v39 = vld [vmem:[#allocation88_spill] sm:$0xff] }
 0x543   :  { %2348 = vmatpush1.bf16.msra.mxu0 %v14210_v12  ;;  %2389 = vmatpush1.bf16.msra.mxu1 %v14211_v8  ;;  %v822_v12 = vadd.f32 %v14229_v39, %v14228_v20  ;;  %v12557_v39 = vld [vmem:[%s14028_s2 + $0xc4] ss:$16 sps:$4 sm:$0xff]   ;;  %v12709_v20 = vld [vmem:[%s14028_s2 + $0xc] ss:$16 sps:$4 sm:$0xff]  }
 0x544   :  { %2349 = vmatprep.subr.bf16.mxu0 %v14212_v38  ;;  %2390 = vmatprep.subr.bf16.mxu1 %v14213_v28  ;;  %v14230_v38 = vld [vmem:[#allocation87_spill] sm:$0xff]  ;;  %14251 = vst [vmem:[#allocation97_spill] sm:$0xff] %v12709_v20 }
 0x547   :  { %2350 = vmatpush1.bf16.msra.mxu0 %v14214_v49  ;;  %2391 = vmatpush1.bf16.msra.mxu1 %v14215_v22 }
 0x548   :  { %2351 = vmatprep.subr.bf16.mxu0 %v14216_v26  ;;  %2392 = vmatprep.subr.bf16.mxu1 %v14217_v62 }
 0x54b   :  { %2352 = vmatpush1.bf16.msra.mxu0 %v14218_v10  ;;  %2393 = vmatpush1.bf16.msra.mxu1 %v14219_v63 }
 0x54c   :  { %2424 = vmatprep.subr.bf16.mxu0 %v14220_v7  ;;  %2465 = vmatprep.subr.bf16.mxu1 %v14221_v40 }
 0x5ce   :  { %v2149_v27 = vpop.f32.mrf.mxu0  ;;  %v2190_v11 = vpop.f32.mrf.mxu1 }
 0x5cf   :  { %v2197_v36 = vadd.f32 %v2149_v27, %v14222_v2  ;;  %v2199_v44 = vadd.f32 %v2190_v11, %v14225_v51  ;;  %v12347_v27 = vld [vmem:[%s14029_s16 + $0xe0] ss:$16 sps:$4 sm:$0xff]   ;;  %v12353_v11 = vld [vmem:[%s14029_s16 + $0xe8] ss:$16 sps:$4 sm:$0xff]   ;;  %v12359_v2 = vld [vmem:[%s14029_s16 + $0xc4] ss:$16 sps:$4 sm:$0xff]  }
 0x5d0   :  { %v2151_v30 = vpop.f32.mrf.mxu0  ;;  %v2192_v0 = vpop.f32.mrf.mxu1 }
 0x5d1   :  { %v8091_v53 = vmul.f32 -1.442695, %v2197_v36  ;;  %v2198_v43 = vadd.f32 %v2151_v30, %v14223_v58  ;;  %v2200_v4 = vadd.f32 %v2192_v0, %v14224_v37  ;;  %v12365_v36 = vld [vmem:[%s14029_s16 + $0xcc] ss:$16 sps:$4 sm:$0xff]   ;;  %v12373_v0 = vld [vmem:[%s14029_s16 + $0xc0] ss:$16 sps:$4 sm:$0xff]  }
 0x5d2   :  { %v2153_v19 = vpop.f32.mrf.mxu0  ;;  %v2194_v59 = vpop.f32.mrf.mxu1  ;;  %v12397_v37 = vld [vmem:[%s14029_s16 + $0xa0] ss:$16 sps:$4 sm:$0xff]  }
 0x5d3   :  { %10197 = vpow2.f32 %v8091_v53  ;;  %v8092_v29 = vmul.f32 -1.442695, %v2198_v43  ;;  %v8093_v24 = vmul.f32 -1.442695, %v2200_v4  ;;  %v12379_v53 = vld [vmem:[%s14029_s16 + $0xc8] ss:$16 sps:$4 sm:$0xff]  }
 0x5d4   :  { %v2154_v25 = vpop.f32.mrf.mxu0  ;;  %v2195_v61 = vpop.f32.mrf.mxu1  ;;  %v12385_v43 = vld [vmem:[%s14029_s16 + $0xa4] ss:$16 sps:$4 sm:$0xff]   ;;  %v12391_v19 = vld [vmem:[%s14029_s16 + $0xac] ss:$16 sps:$4 sm:$0xff]   ;;  %v12403_v4 = vld [vmem:[%s14029_s16 + $0xa8] ss:$16 sps:$4 sm:$0xff]  }
 0x5d5   :  { %10199 = vpow2.f32 %v8092_v29 }
 0x5d6   :  { %10201 = vtanh.f32 %v2199_v44  ;;  %v12410_v44 = vld [vmem:[%s14029_s16 + $0x84] ss:$16 sps:$4 sm:$0xff]  }
 0x5d7   :  { %10203 = vpow2.f32 %v8093_v24  ;;  %v12416_v24 = vld [vmem:[%s14029_s16 + $0x8c] ss:$16 sps:$4 sm:$0xff]  }
 0x5e0   :  { %v10198_v45 = vpop.eup %10197 }
 0x5e1   :  { %v2291_v15 = vadd.f32 1.0, %v10198_v45 }
 0x5e2   :  { %v10200_v9 = vpop.eup %10199 }
 0x5e3   :  { %10205 = vrcp.f32 %v2291_v15  ;;  %v2297_v52 = vadd.f32 1.0, %v10200_v9  ;;  %v10202_v41 = vpop.eup %10201  ;;  %v12430_v15 = vld [vmem:[%s14029_s16 + $0x88] ss:$16 sps:$4 sm:$0xff]   ;;  %v12436_v9 = vld [vmem:[%s14029_s16 + $0x64] ss:$16 sps:$4 sm:$0xff]  }
 0x5e4   :  { %v10204_v31 = vpop.eup %10203 }
 0x5e5   :  { %10207 = vrcp.f32 %v2297_v52  ;;  %v2304_v56 = vadd.f32 1.0, %v10204_v31  ;;  %v12442_v52 = vld [vmem:[%s14029_s16 + $0x6c] ss:$16 sps:$4 sm:$0xff]  }
 0x5e6   :  { %v12467_v31 = vld [vmem:[%s14029_s16 + $0x4c] ss:$16 sps:$4 sm:$0xff]  }
 0x5ee   :  { %v2236_v33 = vpop.f32.mrf.mxu0  ;;  %v2277_v14 = vpop.f32.mrf.mxu1 }
 0x5ef   :  { %v2284_v42 = vadd.f32 %v2236_v33, %v14227_v5  ;;  %v2286_v28 = vadd.f32 %v2277_v14, %v14230_v38  ;;  %v12455_v33 = vld [vmem:[%s14029_s16 + $0x68] ss:$16 sps:$4 sm:$0xff]   ;;  %v12461_v14 = vld [vmem:[%s14029_s16 + $0x44] ss:$16 sps:$4 sm:$0xff]  }
 0x5f0   :  { %v10206_v23 = vpop.eup %10205  ;;  %v2238_v48 = vpop.f32.mrf.mxu0  ;;  %v12485_v5 = vld [vmem:[%s14029_s16 + $0x24] ss:$16 sps:$4 sm:$0xff]   ;;  %v12577_v38 = vld [vmem:[%s14028_s2 + $0xc8] ss:$16 sps:$4 sm:$0xff]  }
 0x5f1   :  { %v2279_v57 = vpop.f32.mrf.mxu1  ;;  %v2308_v60 = vmul.f32 %v10206_v23, %v10202_v41  ;;  %v8094_v1 = vmul.f32 -1.442695, %v2284_v42  ;;  %v2285_v3 = vadd.f32 %v2238_v48, %v749_v47  ;;  %v12449_v41 = vld [vmem:[%s14029_s16 + $0x60] ss:$16 sps:$4 sm:$0xff]   ;;  %v12479_v47 = vld [vmem:[%s14029_s16 + $0x48] ss:$16 sps:$4 sm:$0xff]  }
 0x5f2   :  { %v10208_v46 = vpop.eup %10207  ;;  %v2240_v13 = vpop.f32.mrf.mxu0  ;;  %v2287_v8 = vadd.f32 %v2279_v57, %v822_v12  ;;  %v12491_v42 = vld [vmem:[%s14029_s16 + $0x2c] ss:$16 sps:$4 sm:$0xff]   ;;  %v12497_v23 = vld [vmem:[%s14029_s16 + $0x20] ss:$16 sps:$4 sm:$0xff]   ;;  %v12503_v48 = vld [vmem:[%s14029_s16 + $0x28] ss:$16 sps:$4 sm:$0xff]  }
 0x5f3   :  { %v2281_v32 = vpop.f32.mrf.mxu1  ;;  %v2307_v55 = vmul.f32 %v10208_v46, %v12253_v54  ;;  %10209 = vpow2.f32 %v8094_v1  ;;  %v8095_v17 = vmul.f32 -1.442695, %v2285_v3  ;;  %v12515_v1 = vld [vmem:[%s14029_s16 + $0xc] ss:$16 sps:$4 sm:$0xff]   ;;  %v12527_v13 = vld [vmem:[%s14029_s16 + $0x8] ss:$16 sps:$4 sm:$0xff]  }
 0x5f4   :  { %v2241_v34 = vpop.f32.mrf.mxu0  ;;  %v8096_v49 = vmul.f32 -1.442695, %v2287_v8  ;;  %v12563_v12 = vld [vmem:[%s14028_s2 + $0xcc] ss:$16 sps:$4 sm:$0xff]   ;;  %v12571_v8 = vld [vmem:[%s14028_s2 + $0xc0] ss:$16 sps:$4 sm:$0xff]  }
 0x5f5   :  { %v2282_v16 = vpop.f32.mrf.mxu1  ;;  %v12338_v6 = vadd.f32 %v2308_v60, %v2307_v55  ;;  %10211 = vpow2.f32 %v8095_v17  ;;  %v12509_v60 = vld [vmem:[%s14029_s16 + $0x4] ss:$16 sps:$4 sm:$0xff]   ;;  %v12539_v17 = vld [vmem:[%s14028_s2 + $0xec] ss:$16 sps:$4 sm:$0xff]   ;;  %v12545_v34 = vld [vmem:[%s14028_s2 + $0xe0] ss:$16 sps:$4 sm:$0xff]  }
 0x5f6   :  { %10213 = vrcp.f32 %v2304_v56  ;;  %v12521_v56 = vld [vmem:[%s14029_s16] ss:$16 sps:$4 sm:$0xff]   ;;  %v12533_v55 = vld [vmem:[%s14028_s2 + $0xe4] ss:$16 sps:$4 sm:$0xff]   ;;  %v12551_v16 = vld [vmem:[%s14028_s2 + $0xe8] ss:$16 sps:$4 sm:$0xff]  }
 0x5f7   :  { %10215 = vtanh.f32 %v12338_v6 }
 0x5f8   :  { %10217 = vtanh.f32 %v2286_v28  ;;  %v12583_v28 = vld [vmem:[%s14028_s2 + $0xa4] ss:$16 sps:$4 sm:$0xff]  }
 0x5f9   :  { %10219 = vpow2.f32 %v8096_v49  ;;  %v12589_v49 = vld [vmem:[%s14028_s2 + $0xac] ss:$16 sps:$4 sm:$0xff]  }
 0x5fa   :  { %14231 = vst [vmem:[#allocation93_spill] sm:$0xff] %v12589_v49 }
 0x600   :  { %v10210_v22 = vpop.eup %10209 }
 0x601   :  { %v2315_v26 = vadd.f32 1.0, %v10210_v22  ;;  %v12595_v22 = vld [vmem:[%s14028_s2 + $0xa0] ss:$16 sps:$4 sm:$0xff]  }
 0x602   :  { %v10212_v54 = vpop.eup %10211  ;;  %14232 = vst [vmem:[#allocation94_spill] sm:$0xff] %v12595_v22 }
 0x603   :  { %v10214_v62 = vpop.eup %10213  ;;  %10221 = vrcp.f32 %v2315_v26  ;;  %v2321_v10 = vadd.f32 1.0, %v10212_v54  ;;  %v12601_v26 = vld [vmem:[%s14028_s2 + $0xa8] ss:$16 sps:$4 sm:$0xff]   ;;  %v12607_v54 = vld [vmem:[%s14028_s2 + $0x84] ss:$16 sps:$4 sm:$0xff]  }
 0x604   :  { %v10216_v63 = vpop.eup %10215  ;;  %14233 = vst [vmem:[#allocation95_spill] sm:$0xff] %v12601_v26  ;;  %14234 = vst [vmem:[#allocation46_spill] sm:$0xff] %v12607_v54 }
 0x605   :  { %10223 = vrcp.f32 %v2321_v10  ;;  %v2311_v7 = vmul.f32 %v10216_v63, %v10214_v62  ;;  %v10218_v30 = vpop.eup %10217  ;;  %v12613_v62 = vld [vmem:[%s14028_s2 + $0x8c] ss:$16 sps:$4 sm:$0xff]   ;;  %v12619_v10 = vld [vmem:[%s14028_s2 + $0x80] ss:$16 sps:$4 sm:$0xff]   ;;  %v12625_v63 = vld [vmem:[%s14028_s2 + $0x88] ss:$16 sps:$4 sm:$0xff]  }
 0x606   :  { %v10220_v58 = vpop.eup %10219  ;;  %14235 = vst [vmem:[#allocation48_spill] sm:$0xff] %v12613_v62  ;;  %14236 = vst [vmem:[#allocation62_spill] sm:$0xff] %v12619_v10 }
 0x607   :  { %v2336_v40 = vpack.c.bf16 %v2311_v7, %v2311_v7  ;;  %v2328_v61 = vadd.f32 1.0, %v10220_v58  ;;  %14237 = vst [vmem:[#allocation60_spill] sm:$0xff] %v12625_v63  ;;  %v12631_v7 = vld [vmem:[%s14028_s2 + $0x64] ss:$16 sps:$4 sm:$0xff]   ;;  %v12649_v58 = vld [vmem:[%s14028_s2 + $0x68] ss:$16 sps:$4 sm:$0xff]  }
 0x608   :  { %14238 = vst [vmem:[#allocation75_spill] sm:$0xff] %v12631_v7  ;;  %14241 = vst [vmem:[#allocation91_spill] sm:$0xff] %v12649_v58 }
 0x609   :  { %2370 = vmatmul.mubr.bf16.vlgmr.msra.gmra.mxu0 %v2336_v40  ;;  %2411 = vmatmul.mubr.bf16.vlgmr.msra.gmra.mxu1 %v2336_v40  ;;  %10225 = vrcp.f32 %v2328_v61  ;;  %v12637_v40 = vld [vmem:[%s14028_s2 + $0x6c] ss:$16 sps:$4 sm:$0xff]   ;;  %v12673_v61 = vld [vmem:[%s14028_s2 + $0x48] ss:$16 sps:$4 sm:$0xff]  }
 0x60a   :  { %2425 = vmatpush1.bf16.msra.mxu0 %v12347_v27  ;;  %2466 = vmatpush1.bf16.msra.mxu1 %v12353_v11  ;;  %14239 = vst [vmem:[#allocation73_spill] sm:$0xff] %v12637_v40  ;;  %14245 = vst [vmem:[#allocation66_spill] sm:$0xff] %v12673_v61 }
 0x60b   :  { %2426 = vmatprep.subr.bf16.mxu0 %v12359_v2  ;;  %2467 = vmatprep.subr.bf16.mxu1 %v12365_v36 }
 0x60c   :  { %2456 = vmatprep.mubr.bf16.mxu0 %v14086_v35  ;;  %2497 = vmatprep.mubr.bf16.mxu1 %v14086_v35 }
 0x60e   :  { %2427 = vmatpush1.bf16.msra.mxu0 %v12373_v0  ;;  %2468 = vmatpush1.bf16.msra.mxu1 %v12379_v53 }
 0x60f   :  { %2428 = vmatprep.subr.bf16.mxu0 %v12385_v43  ;;  %2469 = vmatprep.subr.bf16.mxu1 %v12391_v19 }
 0x610   :  { %v10222_v59 = vpop.eup %10221 }
 0x611   :  { %v2332_v29 = vmul.f32 %v10222_v59, %v10218_v30  ;;  %v12643_v30 = vld [vmem:[%s14028_s2 + $0x60] ss:$16 sps:$4 sm:$0xff]   ;;  %v12655_v59 = vld [vmem:[%s14028_s2 + $0x44] ss:$16 sps:$4 sm:$0xff]  }
 0x612   :  { %v10224_v25 = vpop.eup %10223  ;;  %2429 = vmatpush1.bf16.msra.mxu0 %v12397_v37  ;;  %2470 = vmatpush1.bf16.msra.mxu1 %v12403_v4  ;;  %14240 = vst [vmem:[#allocation92_spill] sm:$0xff] %v12643_v30  ;;  %14242 = vst [vmem:[#allocation96_spill] sm:$0xff] %v12655_v59 }
 0x613   :  { %v2331_v51 = vmul.f32 %v10224_v25, %v12273_v18  ;;  %2430 = vmatprep.subr.bf16.mxu0 %v12410_v44  ;;  %2471 = vmatprep.subr.bf16.mxu1 %v12416_v24  ;;  %v12424_v18 = vld [vmem:[%s14029_s16 + $0x80] ss:$16 sps:$4 sm:$0xff]  }
 0x614   :  { %v12667_v25 = vld [vmem:[%s14028_s2 + $0x40] ss:$16 sps:$4 sm:$0xff]  }
 0x615   :  { %v12419_v45 = vadd.f32 %v2332_v29, %v2331_v51  ;;  %v12661_v29 = vld [vmem:[%s14028_s2 + $0x4c] ss:$16 sps:$4 sm:$0xff]   ;;  %14244 = vst [vmem:[#allocation50_spill] sm:$0xff] %v12667_v25  ;;  %v12679_v51 = vld [vmem:[%s14028_s2 + $0x24] ss:$16 sps:$4 sm:$0xff]  }
 0x616   :  { %2431 = vmatpush1.bf16.msra.mxu0 %v12424_v18  ;;  %2472 = vmatpush1.bf16.msra.mxu1 %v12430_v15  ;;  %v10226_v57 = vpop.eup %10225  ;;  %14243 = vst [vmem:[#allocation52_spill] sm:$0xff] %v12661_v29  ;;  %14246 = vst [vmem:[#allocation64_spill] sm:$0xff] %v12679_v51 }
 0x617   :  { %2432 = vmatprep.subr.bf16.mxu0 %v12436_v9  ;;  %2473 = vmatprep.subr.bf16.mxu1 %v12442_v52  ;;  %10227 = vtanh.f32 %v12419_v45 }
 0x61a   :  { %2433 = vmatpush1.bf16.msra.mxu0 %v12449_v41  ;;  %2474 = vmatpush1.bf16.msra.mxu1 %v12455_v33 }
 0x61b   :  { %2434 = vmatprep.subr.bf16.mxu0 %v12461_v14  ;;  %2475 = vmatprep.subr.bf16.mxu1 %v12467_v31 }
 0x61e   :  { %2435 = vmatpush1.bf16.msra.mxu0 %v12473_v50  ;;  %2476 = vmatpush1.bf16.msra.mxu1 %v12479_v47 }
 0x61f   :  { %2436 = vmatprep.subr.bf16.mxu0 %v12485_v5  ;;  %2477 = vmatprep.subr.bf16.mxu1 %v12491_v42 }
 0x622   :  { %2437 = vmatpush1.bf16.msra.mxu0 %v12497_v23  ;;  %2478 = vmatpush1.bf16.msra.mxu1 %v12503_v48 }
 0x623   :  { %2438 = vmatprep.subr.bf16.mxu0 %v12509_v60  ;;  %2479 = vmatprep.subr.bf16.mxu1 %v12515_v1 }
 0x624   :  { %v10228_v3 = vpop.eup %10227 }
 0x625   :  { %v2335_v46 = vmul.f32 %v10228_v3, %v10226_v57  ;;  %v12685_v57 = vld [vmem:[%s14028_s2 + $0x2c] ss:$16 sps:$4 sm:$0xff]   ;;  %v12691_v3 = vld [vmem:[%s14028_s2 + $0x20] ss:$16 sps:$4 sm:$0xff]  }
 0x626   :  { %2439 = vmatpush1.bf16.msra.mxu0 %v12521_v56  ;;  %2480 = vmatpush1.bf16.msra.mxu1 %v12527_v13  ;;  %14247 = vst [vmem:[#allocation70_spill] sm:$0xff] %v12685_v57  ;;  %14248 = vst [vmem:[#allocation69_spill] sm:$0xff] %v12691_v3 }
 0x627   :  { %v2423_v32 = vpack.c.bf16 %v2335_v46, %v2335_v46  ;;  %2559 = vmatprep.subr.bf16.mxu0 %v12533_v55  ;;  %2600 = vmatprep.subr.bf16.mxu1 %v12539_v17  ;;  %v12697_v46 = vld [vmem:[%s14028_s2 + $0x28] ss:$16 sps:$4 sm:$0xff]  }
 0x628   :  { %14249 = vst [vmem:[#allocation90_spill] sm:$0xff] %v12697_v46 }
 0x629   :  { %2457 = vmatmul.mubr.bf16.vlgmr.msra.gmra.mxu0 %v2423_v32  ;;  %2498 = vmatmul.mubr.bf16.vlgmr.msra.gmra.mxu1 %v2423_v32  ;;  %v12703_v32 = vld [vmem:[%s14028_s2 + $0x4] ss:$16 sps:$4 sm:$0xff]  }
 0x62a   :  { %2560 = vmatpush1.bf16.msra.mxu0 %v12545_v34  ;;  %2601 = vmatpush1.bf16.msra.mxu1 %v12551_v16  ;;  %14250 = vst [vmem:[#allocation89_spill] sm:$0xff] %v12703_v32 }
 0x62b   :  { %2561 = vmatprep.subr.bf16.mxu0 %v12557_v39  ;;  %2602 = vmatprep.subr.bf16.mxu1 %v12563_v12 }
 0x62c   :  { %2591 = vmatprep.mubr.bf16.mxu0 %v14086_v35  ;;  %2632 = vmatprep.mubr.bf16.mxu1 %v14086_v35 }
 0x62e   :  { %2562 = vmatpush1.bf16.msra.mxu0 %v12571_v8  ;;  %2603 = vmatpush1.bf16.msra.mxu1 %v12577_v38 }
 0x62f   :  { %2563 = vmatprep.subr.bf16.mxu0 %v12583_v28  ;;  %2604 = vmatprep.subr.bf16.mxu1 %v12589_v49 }
 0x632   :  { %2564 = vmatpush1.bf16.msra.mxu0 %v12595_v22  ;;  %2605 = vmatpush1.bf16.msra.mxu1 %v12601_v26  ;;  %v14261_v22 = vld [vmem:[#allocation72_spill] sm:$0xff] }
 0x633   :  { %2565 = vmatprep.subr.bf16.mxu0 %v12607_v54  ;;  %2606 = vmatprep.subr.bf16.mxu1 %v12613_v62  ;;  %v14259_v62 = vld [vmem:[#allocation59_spill] sm:$0xff] }
 0x636   :  { %2566 = vmatpush1.bf16.msra.mxu0 %v12619_v10  ;;  %2607 = vmatpush1.bf16.msra.mxu1 %v12625_v63 }
 0x637   :  { %2567 = vmatprep.subr.bf16.mxu0 %v12631_v7  ;;  %2608 = vmatprep.subr.bf16.mxu1 %v12637_v40 }
 0x63a   :  { %2568 = vmatpush1.bf16.msra.mxu0 %v12643_v30  ;;  %2609 = vmatpush1.bf16.msra.mxu1 %v12649_v58 }
 0x63b   :  { %2569 = vmatprep.subr.bf16.mxu0 %v12655_v59  ;;  %2610 = vmatprep.subr.bf16.mxu1 %v12661_v29 }
 0x63e   :  { %2570 = vmatpush1.bf16.msra.mxu0 %v12667_v25  ;;  %2611 = vmatpush1.bf16.msra.mxu1 %v12673_v61 }
 0x63f   :  { %2571 = vmatprep.subr.bf16.mxu0 %v12679_v51  ;;  %2612 = vmatprep.subr.bf16.mxu1 %v12685_v57  ;;  %v14256_v57 = vld [vmem:[#allocation41_spill] sm:$0xff] }
 0x640   :  { %v14257_v51 = vld [vmem:[#allocation45_spill] sm:$0xff] }
 0x641   :  { %v495_v61 = vadd.f32 %v14257_v51, %v14256_v57 }
 0x642   :  { %2572 = vmatpush1.bf16.msra.mxu0 %v12691_v3  ;;  %2613 = vmatpush1.bf16.msra.mxu1 %v12697_v46  ;;  %v12721_v46 = vld [vmem:[%s14028_s2 + $0x8] ss:$16 sps:$4 sm:$0xff]  }
 0x643   :  { %2573 = vmatprep.subr.bf16.mxu0 %v12703_v32  ;;  %2614 = vmatprep.subr.bf16.mxu1 %v12709_v20  ;;  %14253 = vst [vmem:[#allocation99_spill] sm:$0xff] %v12721_v46  ;;  %v12727_v32 = vld [vmem:[%s14029_s16 + $0xe4] ss:$16 sps:$4 sm:$0xff]   ;;  %v12733_v20 = vld [vmem:[%s14029_s16 + $0xec] ss:$16 sps:$4 sm:$0xff]  }
 0x644   :  { %14254 = vst [vmem:[#allocation100_spill] sm:$0xff] %v12727_v32  ;;  %14255 = vst [vmem:[#allocation101_spill] sm:$0xff] %v12733_v20 }
 0x646   :  { %2574 = vmatpush1.bf16.msra.mxu0 %v12715_v21  ;;  %2615 = vmatpush1.bf16.msra.mxu1 %v12721_v46  ;;  %v14258_v46 = vld [vmem:[#allocation44_spill] sm:$0xff] }
 0x647   :  { %2646 = vmatprep.subr.bf16.mxu0 %v12727_v32  ;;  %2687 = vmatprep.subr.bf16.mxu1 %v12733_v20  ;;  %v14260_v20 = vld [vmem:[#allocation74_spill] sm:$0xff] }
 0x648   :  { %v568_v54 = vadd.f32 %v14260_v20, %v14259_v62 }
 0x6c9   :  { %v2371_v21 = vpop.f32.mrf.mxu0  ;;  %v2412_v3 = vpop.f32.mrf.mxu1 }
 0x6ca   :  { %v2419_v25 = vadd.f32 %v2371_v21, %v14258_v46  ;;  %v2421_v49 = vadd.f32 %v2412_v3, %v14261_v22 }
 0x6cb   :  { %v2373_v29 = vpop.f32.mrf.mxu0  ;;  %v2414_v59 = vpop.f32.mrf.mxu1 }
 0x6cc   :  { %v8097_v58 = vmul.f32 -1.442695, %v2419_v25  ;;  %v2420_v30 = vadd.f32 %v2373_v29, %v495_v61  ;;  %v2422_v26 = vadd.f32 %v2414_v59, %v568_v54 }
 0x6cd   :  { %v2375_v40 = vpop.f32.mrf.mxu0  ;;  %v2416_v32 = vpop.f32.mrf.mxu1 }
 0x6ce   :  { %10229 = vpow2.f32 %v8097_v58  ;;  %v8098_v7 = vmul.f32 -1.442695, %v2420_v30  ;;  %v8099_v51 = vmul.f32 -1.442695, %v2422_v26  ;;  %v14263_v26 = vld [vmem:[#allocation63_spill] sm:$0xff] }
 0x6cf   :  { %v2376_v63 = vpop.f32.mrf.mxu0  ;;  %v2417_v10 = vpop.f32.mrf.mxu1 }
 0x6d0   :  { %10231 = vpow2.f32 %v8098_v7  ;;  %v14262_v7 = vld [vmem:[#allocation61_spill] sm:$0xff] }
 0x6d1   :  { %10233 = vtanh.f32 %v2421_v49 }
 0x6d2   :  { %10235 = vpow2.f32 %v8099_v51 }
 0x6db   :  { %v10230_v57 = vpop.eup %10229 }
 0x6dc   :  { %v2513_v21 = vadd.f32 1.0, %v10230_v57 }
 0x6dd   :  { %v10232_v46 = vpop.eup %10231 }
 0x6de   :  { %10237 = vrcp.f32 %v2513_v21  ;;  %v2519_v40 = vadd.f32 1.0, %v10232_v46  ;;  %v10234_v58 = vpop.eup %10233 }
 0x6df   :  { %v10236_v10 = vpop.eup %10235 }
 0x6e0   :  { %10239 = vrcp.f32 %v2519_v40  ;;  %v2526_v49 = vadd.f32 1.0, %v10236_v10 }
 0x6e9   :  { %v2458_v30 = vpop.f32.mrf.mxu0  ;;  %v2499_v63 = vpop.f32.mrf.mxu1 }
 0x6ea   :  { %v2506_v29 = vadd.f32 %v2458_v30, %v14262_v7  ;;  %v14265_v7 = vld [vmem:[#allocation85_spill] sm:$0xff] }
 0x6eb   :  { %v10238_v25 = vpop.eup %10237  ;;  %v2460_v20 = vpop.f32.mrf.mxu0 }
 0x6ec   :  { %v2501_v54 = vpop.f32.mrf.mxu1  ;;  %v2530_v59 = vmul.f32 %v10238_v25, %v10234_v58  ;;  %v8100_v22 = vmul.f32 -1.442695, %v2506_v29  ;;  %v2507_v61 = vadd.f32 %v2460_v20, %v14263_v26  ;;  %v14264_v58 = vld [vmem:[#allocation86_spill] sm:$0xff]  ;;  %v2508_v29 = vadd.f32 %v2499_v63, %v14265_v7  ;;  %v14272_v7 = vld [vmem:[#allocation60_spill] sm:$0xff] }
 0x6ed   :  { %v10240_v57 = vpop.eup %10239  ;;  %v2462_v3 = vpop.f32.mrf.mxu0  ;;  %v2509_v30 = vadd.f32 %v2501_v54, %v14264_v58 }
 0x6ee   :  { %v2503_v32 = vpop.f32.mrf.mxu1  ;;  %v2529_v51 = vmul.f32 %v10240_v57, %v12338_v6  ;;  %10241 = vpow2.f32 %v8100_v22  ;;  %v8101_v21 = vmul.f32 -1.442695, %v2507_v61 }
 0x6ef   :  { %v2463_v46 = vpop.f32.mrf.mxu0  ;;  %v8102_v25 = vmul.f32 -1.442695, %v2509_v30 }
 0x6f0   :  { %v2504_v40 = vpop.f32.mrf.mxu1  ;;  %v12745_v62 = vadd.f32 %v2530_v59, %v2529_v51  ;;  %10243 = vpow2.f32 %v8101_v21 }
 0x6f1   :  { %10245 = vrcp.f32 %v2526_v49 }
 0x6f2   :  { %10247 = vtanh.f32 %v12745_v62 }
 0x6f3   :  { %10249 = vtanh.f32 %v2508_v29  ;;  %v14273_v29 = vld [vmem:[#allocation75_spill] sm:$0xff] }
 0x6f4   :  { %10251 = vpow2.f32 %v8102_v25  ;;  %v14277_v25 = vld [vmem:[#allocation96_spill] sm:$0xff] }
 0x6fb   :  { %v10242_v10 = vpop.eup %10241 }
 0x6fc   :  { %v2537_v20 = vadd.f32 1.0, %v10242_v10  ;;  %v14278_v10 = vld [vmem:[#allocation52_spill] sm:$0xff] }
 0x6fd   :  { %v10244_v26 = vpop.eup %10243 }
 0x6fe   :  { %v10246_v6 = vpop.eup %10245  ;;  %10253 = vrcp.f32 %v2537_v20  ;;  %v2543_v22 = vadd.f32 1.0, %v10244_v26  ;;  %v14279_v20 = vld [vmem:[#allocation50_spill] sm:$0xff] }
 0x6ff   :  { %v10248_v61 = vpop.eup %10247  ;;  %v14280_v26 = vld [vmem:[#allocation66_spill] sm:$0xff] }
 0x700   :  { %10255 = vrcp.f32 %v2543_v22  ;;  %v2533_v59 = vmul.f32 %v10248_v61, %v10246_v6  ;;  %v10250_v63 = vpop.eup %10249  ;;  %v14281_v6 = vld [vmem:[#allocation64_spill] sm:$0xff]  ;;  %v14282_v22 = vld [vmem:[#allocation70_spill] sm:$0xff]  ;;  %v14283_v61 = vld [vmem:[#allocation69_spill] sm:$0xff] }
 0x701   :  { %v10252_v54 = vpop.eup %10251 }
 0x702   :  { %v2558_v57 = vpack.c.bf16 %v2533_v59, %v2533_v59  ;;  %v2550_v51 = vadd.f32 1.0, %v10252_v54  ;;  %v14284_v59 = vld [vmem:[#allocation90_spill] sm:$0xff] }
 0x703   :  { %v14287_v54 = vld [vmem:[#allocation98_spill] sm:$0xff] }
 0x704   :  { %2592 = vmatmul.mubr.bf16.vlgmr.msra.gmra.mxu0 %v2558_v57  ;;  %2633 = vmatmul.mubr.bf16.vlgmr.msra.gmra.mxu1 %v2558_v57  ;;  %10257 = vrcp.f32 %v2550_v51  ;;  %v14285_v57 = vld [vmem:[#allocation89_spill] sm:$0xff] }
 0x705   :  { %2647 = vmatpush1.bf16.msra.mxu0 %v12347_v27  ;;  %2688 = vmatpush1.bf16.msra.mxu1 %v12353_v11 }
 0x706   :  { %2648 = vmatprep.subr.bf16.mxu0 %v12359_v2  ;;  %2689 = vmatprep.subr.bf16.mxu1 %v12365_v36 }
 0x707   :  { %2678 = vmatprep.mubr.bf16.mxu0 %v14086_v35  ;;  %2719 = vmatprep.mubr.bf16.mxu1 %v14086_v35 }
 0x709   :  { %2649 = vmatpush1.bf16.msra.mxu0 %v12373_v0  ;;  %2690 = vmatpush1.bf16.msra.mxu1 %v12379_v53 }
 0x70a   :  { %2650 = vmatprep.subr.bf16.mxu0 %v12385_v43  ;;  %2691 = vmatprep.subr.bf16.mxu1 %v12391_v19 }
 0x70b   :  { %v10254_v49 = vpop.eup %10253 }
 0x70c   :  { %v2554_v3 = vmul.f32 %v10254_v49, %v10250_v63  ;;  %v14286_v63 = vld [vmem:[#allocation97_spill] sm:$0xff]  ;;  %v14288_v49 = vld [vmem:[#allocation99_spill] sm:$0xff] }
 0x70d   :  { %v10256_v32 = vpop.eup %10255  ;;  %2651 = vmatpush1.bf16.msra.mxu0 %v12397_v37  ;;  %2692 = vmatpush1.bf16.msra.mxu1 %v12403_v4 }
 0x70e   :  { %v2553_v21 = vmul.f32 %v10256_v32, %v12419_v45  ;;  %2652 = vmatprep.subr.bf16.mxu0 %v12410_v44  ;;  %2693 = vmatprep.subr.bf16.mxu1 %v12416_v24  ;;  %v14290_v32 = vld [vmem:[#allocation101_spill] sm:$0xff] }
 0x710   :  { %v12765_v46 = vadd.f32 %v2554_v3, %v2553_v21  ;;  %v14289_v3 = vld [vmem:[#allocation100_spill] sm:$0xff] }
 0x711   :  { %2653 = vmatpush1.bf16.msra.mxu0 %v12424_v18  ;;  %2694 = vmatpush1.bf16.msra.mxu1 %v12430_v15  ;;  %v10258_v45 = vpop.eup %10257 }
 0x712   :  { %2654 = vmatprep.subr.bf16.mxu0 %v12436_v9  ;;  %2695 = vmatprep.subr.bf16.mxu1 %v12442_v52  ;;  %10259 = vtanh.f32 %v12765_v46 }
 0x715   :  { %2655 = vmatpush1.bf16.msra.mxu0 %v12449_v41  ;;  %2696 = vmatpush1.bf16.msra.mxu1 %v12455_v33 }
 0x716   :  { %2656 = vmatprep.subr.bf16.mxu0 %v12461_v14  ;;  %2697 = vmatprep.subr.bf16.mxu1 %v12467_v31 }
 0x719   :  { %2657 = vmatpush1.bf16.msra.mxu0 %v12473_v50  ;;  %2698 = vmatpush1.bf16.msra.mxu1 %v12479_v47 }
 0x71a   :  { %2658 = vmatprep.subr.bf16.mxu0 %v12485_v5  ;;  %2699 = vmatprep.subr.bf16.mxu1 %v12491_v42 }
 0x71d   :  { %2659 = vmatpush1.bf16.msra.mxu0 %v12497_v23  ;;  %2700 = vmatpush1.bf16.msra.mxu1 %v12503_v48 }
 0x71e   :  { %2660 = vmatprep.subr.bf16.mxu0 %v12509_v60  ;;  %2701 = vmatprep.subr.bf16.mxu1 %v12515_v1 }
 0x71f   :  { %v10260_v40 = vpop.eup %10259 }
 0x720   :  { %v2557_v58 = vmul.f32 %v10260_v40, %v10258_v45  ;;  %v14291_v45 = vld [vmem:[#allocation47_spill] sm:$0xff] }
 0x721   :  { %2661 = vmatpush1.bf16.msra.mxu0 %v12521_v56  ;;  %2702 = vmatpush1.bf16.msra.mxu1 %v12527_v13 }
 0x722   :  { %v2645_v30 = vpack.c.bf16 %v2557_v58, %v2557_v58  ;;  %2781 = vmatprep.subr.bf16.mxu0 %v12533_v55  ;;  %2822 = vmatprep.subr.bf16.mxu1 %v12539_v17  ;;  %v14266_v55 = vld [vmem:[#allocation93_spill] sm:$0xff]  ;;  %v14267_v17 = vld [vmem:[#allocation94_spill] sm:$0xff] }
 0x724   :  { %2679 = vmatmul.mubr.bf16.vlgmr.msra.gmra.mxu0 %v2645_v30  ;;  %2720 = vmatmul.mubr.bf16.vlgmr.msra.gmra.mxu1 %v2645_v30 }
 0x725   :  { %2782 = vmatpush1.bf16.msra.mxu0 %v12545_v34  ;;  %2823 = vmatpush1.bf16.msra.mxu1 %v12551_v16  ;;  %v14268_v34 = vld [vmem:[#allocation95_spill] sm:$0xff]  ;;  %v14269_v16 = vld [vmem:[#allocation46_spill] sm:$0xff] }
 0x726   :  { %2783 = vmatprep.subr.bf16.mxu0 %v12557_v39  ;;  %2824 = vmatprep.subr.bf16.mxu1 %v12563_v12  ;;  %v14270_v39 = vld [vmem:[#allocation48_spill] sm:$0xff]  ;;  %v14271_v12 = vld [vmem:[#allocation62_spill] sm:$0xff] }
 0x727   :  { %2813 = vmatprep.mubr.bf16.mxu0 %v14086_v35  ;;  %2854 = vmatprep.mubr.bf16.mxu1 %v14086_v35 }
 0x729   :  { %2784 = vmatpush1.bf16.msra.mxu0 %v12571_v8  ;;  %2825 = vmatpush1.bf16.msra.mxu1 %v12577_v38  ;;  %v14274_v8 = vld [vmem:[#allocation73_spill] sm:$0xff]  ;;  %v14275_v38 = vld [vmem:[#allocation92_spill] sm:$0xff] }
 0x72a   :  { %2785 = vmatprep.subr.bf16.mxu0 %v12583_v28  ;;  %2826 = vmatprep.subr.bf16.mxu1 %v14266_v55  ;;  %v14276_v28 = vld [vmem:[#allocation91_spill] sm:$0xff] }
 0x72d   :  { %2786 = vmatpush1.bf16.msra.mxu0 %v14267_v17  ;;  %2827 = vmatpush1.bf16.msra.mxu1 %v14268_v34  ;;  %v14292_v17 = vld [vmem:[#allocation49_spill] sm:$0xff] }
 0x72e   :  { %2787 = vmatprep.subr.bf16.mxu0 %v14269_v16  ;;  %2828 = vmatprep.subr.bf16.mxu1 %v14270_v39 }
 0x731   :  { %2788 = vmatpush1.bf16.msra.mxu0 %v14271_v12  ;;  %2829 = vmatpush1.bf16.msra.mxu1 %v14272_v7 }
 0x732   :  { %2789 = vmatprep.subr.bf16.mxu0 %v14273_v29  ;;  %2830 = vmatprep.subr.bf16.mxu1 %v14274_v8  ;;  %v14293_v8 = vld [vmem:[#allocation77_spill] sm:$0xff] }
 0x735   :  { %2790 = vmatpush1.bf16.msra.mxu0 %v14275_v38  ;;  %2831 = vmatpush1.bf16.msra.mxu1 %v14276_v28  ;;  %v14294_v28 = vld [vmem:[#allocation76_spill] sm:$0xff] }
 0x736   :  { %2791 = vmatprep.subr.bf16.mxu0 %v14277_v25  ;;  %2832 = vmatprep.subr.bf16.mxu1 %v14278_v10 }
 0x739   :  { %2792 = vmatpush1.bf16.msra.mxu0 %v14279_v20  ;;  %2833 = vmatpush1.bf16.msra.mxu1 %v14280_v26 }
 0x73a   :  { %2793 = vmatprep.subr.bf16.mxu0 %v14281_v6  ;;  %2834 = vmatprep.subr.bf16.mxu1 %v14282_v22 }
 0x73d   :  { %2794 = vmatpush1.bf16.msra.mxu0 %v14283_v61  ;;  %2835 = vmatpush1.bf16.msra.mxu1 %v14284_v59 }
 0x73e   :  { %2795 = vmatprep.subr.bf16.mxu0 %v14285_v57  ;;  %2836 = vmatprep.subr.bf16.mxu1 %v14286_v63 }
 0x741   :  { %2796 = vmatpush1.bf16.msra.mxu0 %v14287_v54  ;;  %2837 = vmatpush1.bf16.msra.mxu1 %v14288_v49  ;;  %v14295_v54 = vld [vmem:[#allocation54_spill] sm:$0xff] }
 0x742   :  { %2868 = vmatprep.subr.bf16.mxu0 %v14289_v3  ;;  %2909 = vmatprep.subr.bf16.mxu1 %v14290_v32  ;;  %v14296_v49 = vld [vmem:[#allocation58_spill] sm:$0xff]  ;;  %v14297_v32 = vld [vmem:[#allocation57_spill] sm:$0xff] }
 0x743   :  { %v739_v3 = vadd.f32 %v14296_v49, %v14295_v54 }
 0x7c4   :  { %v2593_v51 = vpop.f32.mrf.mxu0  ;;  %v2634_v21 = vpop.f32.mrf.mxu1 }
 0x7c5   :  { %v2641_v40 = vadd.f32 %v2593_v51, %v14291_v45  ;;  %v2643_v25 = vadd.f32 %v2634_v21, %v14294_v28  ;;  %v14298_v28 = vld [vmem:[#allocation80_spill] sm:$0xff] }
 0x7c6   :  { %v2595_v58 = vpop.f32.mrf.mxu0  ;;  %v2636_v30 = vpop.f32.mrf.mxu1 }
 0x7c7   :  { %v8103_v55 = vmul.f32 -1.442695, %v2641_v40  ;;  %v2642_v34 = vadd.f32 %v2595_v58, %v14292_v17  ;;  %v2644_v38 = vadd.f32 %v2636_v30, %v14293_v8 }
 0x7c8   :  { %v2597_v16 = vpop.f32.mrf.mxu0  ;;  %v2638_v39 = vpop.f32.mrf.mxu1 }
 0x7c9   :  { %10261 = vpow2.f32 %v8103_v55  ;;  %v8104_v12 = vmul.f32 -1.442695, %v2642_v34  ;;  %v8105_v10 = vmul.f32 -1.442695, %v2644_v38 }
 0x7ca   :  { %v2598_v7 = vpop.f32.mrf.mxu0  ;;  %v2639_v29 = vpop.f32.mrf.mxu1 }
 0x7cb   :  { %10263 = vpow2.f32 %v8104_v12 }
 0x7cc   :  { %10265 = vtanh.f32 %v2643_v25  ;;  %v14299_v25 = vld [vmem:[#allocation84_spill] sm:$0xff] }
 0x7cd   :  { %10267 = vpow2.f32 %v8105_v10  ;;  %v812_v10 = vadd.f32 %v14299_v25, %v14298_v28  ;;  %v9432_v28 = vld [vmem:[%s14302_s7 + $0xf0] ss:$8 sps:$4 sm:$0xff]   ;;  %v9437_v25 = vld [vmem:[%s14301_s11 + $0xe4] ss:$8 sps:$4 sm:$0xff]  }
 0x7d6   :  { %v10262_v20 = vpop.eup %10261 }
 0x7d7   :  { %v2735_v26 = vadd.f32 1.0, %v10262_v20 }
 0x7d8   :  { %v10264_v6 = vpop.eup %10263 }
 0x7d9   :  { %10269 = vrcp.f32 %v2735_v26  ;;  %v2741_v22 = vadd.f32 1.0, %v10264_v6  ;;  %v10266_v61 = vpop.eup %10265  ;;  %v14300_v26 = vld [vmem:[#allocation83_spill] sm:$0xff] }
 0x7da   :  { %v10268_v63 = vpop.eup %10267 }
 0x7db   :  { %10271 = vrcp.f32 %v2741_v22  ;;  %v2748_v34 = vadd.f32 1.0, %v10268_v63 }
 0x7e4   :  { %v2680_v59 = vpop.f32.mrf.mxu0  ;;  %v2721_v57 = vpop.f32.mrf.mxu1 }
 0x7e5   :  { %v2728_v51 = vadd.f32 %v2680_v59, %v14297_v32  ;;  %v2730_v6 = vadd.f32 %v2721_v57, %v14300_v26  ;;  %v9438_v26 = vld [vmem:[%s14302_s7 + $0xe0] ss:$8 sps:$4 sm:$0xff]  }
 0x7e6   :  { %v10270_v45 = vpop.eup %10269  ;;  %v2682_v21 = vpop.f32.mrf.mxu0 }
 0x7e7   :  { %v2723_v40 = vpop.f32.mrf.mxu1  ;;  %v2752_v58 = vmul.f32 %v10270_v45, %v10266_v61  ;;  %v8106_v30 = vmul.f32 -1.442695, %v2728_v51  ;;  %v2729_v55 = vadd.f32 %v2682_v21, %v739_v3  ;;  %v9416_v21 = vld [vmem:[%s14302_s7 + $0x24] ss:$8 sps:$4 sm:$0xff]  }
 0x7e8   :  { %v10272_v17 = vpop.eup %10271  ;;  %v2684_v16 = vpop.f32.mrf.mxu0  ;;  %v2731_v20 = vadd.f32 %v2723_v40, %v812_v10  ;;  %v9414_v40 = vld [vmem:[%s14302_s7 + $0x20] ss:$8 sps:$4 sm:$0xff]  }
 0x7e9   :  { %v2725_v39 = vpop.f32.mrf.mxu1  ;;  %v2751_v12 = vmul.f32 %v10272_v17, %v12745_v62  ;;  %10273 = vpow2.f32 %v8106_v30  ;;  %v8107_v7 = vmul.f32 -1.442695, %v2729_v55  ;;  %v9417_v30 = vld [vmem:[%s14301_s11 + $0x10] ss:$8 sps:$4 sm:$0xff]   ;;  %v9422_v55 = vld [vmem:[%s14302_s7 + $0x14] ss:$8 sps:$4 sm:$0xff]  }
 0x7ea   :  { %v2685_v29 = vpop.f32.mrf.mxu0  ;;  %v8108_v22 = vmul.f32 -1.442695, %v2731_v20  ;;  %v9420_v17 = vld [vmem:[%s14302_s7 + $0x10] ss:$8 sps:$4 sm:$0xff]   ;;  %v9423_v16 = vld [vmem:[%s14301_s11] ss:$8 sps:$4 sm:$0xff]  }
 0x7eb   :  { %v2726_v8 = vpop.f32.mrf.mxu1  ;;  %v12830_v38 = vadd.f32 %v2752_v58, %v2751_v12  ;;  %10275 = vpow2.f32 %v8107_v7  ;;  %v9419_v58 = vld [vmem:[%s14301_s11 + $0x14] ss:$8 sps:$4 sm:$0xff]   ;;  %v9428_v39 = vld [vmem:[%s14302_s7 + $0x4] ss:$8 sps:$4 sm:$0xff]   ;;  %v9426_v12 = vld [vmem:[%s14302_s7] ss:$8 sps:$4 sm:$0xff]  }
 0x7ec   :  { %10277 = vrcp.f32 %v2748_v34  ;;  %v9425_v34 = vld [vmem:[%s14301_s11 + $0x4] ss:$8 sps:$4 sm:$0xff]   ;;  %v9431_v7 = vld [vmem:[%s14301_s11 + $0xf4] ss:$8 sps:$4 sm:$0xff]   ;;  %v9429_v29 = vld [vmem:[%s14301_s11 + $0xf0] ss:$8 sps:$4 sm:$0xff]  }
 0x7ed   :  { %10279 = vtanh.f32 %v12830_v38  ;;  %v9434_v8 = vld [vmem:[%s14302_s7 + $0xf4] ss:$8 sps:$4 sm:$0xff]   ;;  %v9435_v10 = vld [vmem:[%s14301_s11 + $0xe0] ss:$8 sps:$4 sm:$0xff]   ;;  %v9440_v20 = vld [vmem:[%s14302_s7 + $0xe4] ss:$8 sps:$4 sm:$0xff]  }
 0x7ee   :  { %10281 = vtanh.f32 %v2730_v6  ;;  %v9443_v6 = vld [vmem:[%s14301_s11 + $0xd4] ss:$8 sps:$4 sm:$0xff]  }
 0x7ef   :  { %10283 = vpow2.f32 %v8108_v22  ;;  %v9441_v22 = vld [vmem:[%s14301_s11 + $0xd0] ss:$8 sps:$4 sm:$0xff]  }
 0x7f6   :  { %v10274_v61 = vpop.eup %10273 }
 0x7f7   :  { %v2759_v59 = vadd.f32 1.0, %v10274_v61  ;;  %v9446_v61 = vld [vmem:[%s14302_s7 + $0xd4] ss:$8 sps:$4 sm:$0xff]  }
 0x7f8   :  { %v10276_v62 = vpop.eup %10275 }
 0x7f9   :  { %v10278_v63 = vpop.eup %10277  ;;  %10285 = vrcp.f32 %v2759_v59  ;;  %v2765_v54 = vadd.f32 1.0, %v10276_v62  ;;  %v9444_v59 = vld [vmem:[%s14302_s7 + $0xd0] ss:$8 sps:$4 sm:$0xff]   ;;  %v9449_v62 = vld [vmem:[%s14301_s11 + $0xc4] ss:$8 sps:$4 sm:$0xff]  }
 0x7fa   :  { %v10280_v49 = vpop.eup %10279 }
 0x7fb   :  { %10287 = vrcp.f32 %v2765_v54  ;;  %v2755_v3 = vmul.f32 %v10280_v49, %v10278_v63  ;;  %v10282_v57 = vpop.eup %10281  ;;  %v9447_v63 = vld [vmem:[%s14301_s11 + $0xc0] ss:$8 sps:$4 sm:$0xff]   ;;  %v9452_v49 = vld [vmem:[%s14302_s7 + $0xc4] ss:$8 sps:$4 sm:$0xff]  }
 0x7fc   :  { %v10284_v51 = vpop.eup %10283  ;;  %v9450_v54 = vld [vmem:[%s14302_s7 + $0xc0] ss:$8 sps:$4 sm:$0xff]  }
 0x7fd   :  { %v2780_v32 = vpack.c.bf16 %v2755_v3, %v2755_v3  ;;  %v9455_v3 = vld [vmem:[%s14301_s11 + $0xb4] ss:$8 sps:$4 sm:$0xff]  }
 0x7ff   :  { %2814 = vmatmul.mubr.bf16.vlgmr.msra.gmra.mxu0 %v2780_v32  ;;  %2855 = vmatmul.mubr.bf16.vlgmr.msra.gmra.mxu1 %v2780_v32  ;;  %v9453_v32 = vld [vmem:[%s14301_s11 + $0xb0] ss:$8 sps:$4 sm:$0xff]  }
 0x800   :  { %2869 = vmatpush1.bf16.msra.mxu0 %v12347_v27  ;;  %2910 = vmatpush1.bf16.msra.mxu1 %v12353_v11 }
 0x801   :  { %2870 = vmatprep.subr.bf16.mxu0 %v12359_v2  ;;  %2911 = vmatprep.subr.bf16.mxu1 %v12365_v36  ;;  %v2772_v2 = vadd.f32 1.0, %v10284_v51  ;;  %v9456_v51 = vld [vmem:[%s14302_s7 + $0xb0] ss:$8 sps:$4 sm:$0xff]  }
 0x802   :  { %2900 = vmatprep.mubr.bf16.mxu0 %v14086_v35  ;;  %2941 = vmatprep.mubr.bf16.mxu1 %v14086_v35 }
 0x803   :  { %10289 = vrcp.f32 %v2772_v2  ;;  %v9462_v2 = vld [vmem:[%s14302_s7 + $0xa0] ss:$8 sps:$4 sm:$0xff]  }
 0x804   :  { %2871 = vmatpush1.bf16.msra.mxu0 %v12373_v0  ;;  %2912 = vmatpush1.bf16.msra.mxu1 %v12379_v53 }
 0x805   :  { %2872 = vmatprep.subr.bf16.mxu0 %v12385_v43  ;;  %2913 = vmatprep.subr.bf16.mxu1 %v12391_v19 }
 0x806   :  { %v10286_v27 = vpop.eup %10285 }
 0x807   :  { %v2776_v11 = vmul.f32 %v10286_v27, %v10282_v57  ;;  %v9458_v57 = vld [vmem:[%s14302_s7 + $0xb4] ss:$8 sps:$4 sm:$0xff]   ;;  %v9461_v27 = vld [vmem:[%s14301_s11 + $0xa4] ss:$8 sps:$4 sm:$0xff]  }
 0x808   :  { %v10288_v45 = vpop.eup %10287  ;;  %2873 = vmatpush1.bf16.msra.mxu0 %v12397_v37  ;;  %2914 = vmatpush1.bf16.msra.mxu1 %v12403_v4  ;;  %v9383_v4 = vld [vmem:[%s14301_s11 + $0x74] ss:$8 sps:$4 sm:$0xff]  }
 0x809   :  { %v2775_v36 = vmul.f32 %v10288_v45, %v12765_v46  ;;  %2874 = vmatprep.subr.bf16.mxu0 %v12410_v44  ;;  %2915 = vmatprep.subr.bf16.mxu1 %v12416_v24  ;;  %v9381_v44 = vld [vmem:[%s14301_s11 + $0x70] ss:$8 sps:$4 sm:$0xff]   ;;  %v9386_v24 = vld [vmem:[%s14302_s7 + $0x74] ss:$8 sps:$4 sm:$0xff]   ;;  %v9411_v46 = vld [vmem:[%s14301_s11 + $0x20] ss:$8 sps:$4 sm:$0xff]  }
 0x80a   :  { %v9459_v45 = vld [vmem:[%s14301_s11 + $0xa0] ss:$8 sps:$4 sm:$0xff]  }
 0x80b   :  { %v12851_v0 = vadd.f32 %v2776_v11, %v2775_v36  ;;  %v9464_v11 = vld [vmem:[%s14302_s7 + $0xa4] ss:$8 sps:$4 sm:$0xff]   ;;  %v9467_v36 = vld [vmem:[%s14301_s11 + $0x94] ss:$8 sps:$4 sm:$0xff]  }
 0x80c   :  { %2875 = vmatpush1.bf16.msra.mxu0 %v12424_v18  ;;  %2916 = vmatpush1.bf16.msra.mxu1 %v12430_v15  ;;  %v9384_v18 = vld [vmem:[%s14302_s7 + $0x70] ss:$8 sps:$4 sm:$0xff]   ;;  %v9389_v15 = vld [vmem:[%s14301_s11 + $0x64] ss:$8 sps:$4 sm:$0xff]  }
 0x80d   :  { %2876 = vmatprep.subr.bf16.mxu0 %v12436_v9  ;;  %2917 = vmatprep.subr.bf16.mxu1 %v12442_v52  ;;  %10291 = vtanh.f32 %v12851_v0  ;;  %v9387_v9 = vld [vmem:[%s14301_s11 + $0x60] ss:$8 sps:$4 sm:$0xff]   ;;  %v9392_v52 = vld [vmem:[%s14302_s7 + $0x64] ss:$8 sps:$4 sm:$0xff]  }
 0x810   :  { %2877 = vmatpush1.bf16.msra.mxu0 %v12449_v41  ;;  %2918 = vmatpush1.bf16.msra.mxu1 %v12455_v33  ;;  %v10290_v53 = vpop.eup %10289  ;;  %v9390_v41 = vld [vmem:[%s14302_s7 + $0x60] ss:$8 sps:$4 sm:$0xff]   ;;  %v9395_v33 = vld [vmem:[%s14301_s11 + $0x54] ss:$8 sps:$4 sm:$0xff]  }
 0x811   :  { %2878 = vmatprep.subr.bf16.mxu0 %v12461_v14  ;;  %2919 = vmatprep.subr.bf16.mxu1 %v12467_v31  ;;  %v9393_v14 = vld [vmem:[%s14301_s11 + $0x50] ss:$8 sps:$4 sm:$0xff]   ;;  %v9398_v31 = vld [vmem:[%s14302_s7 + $0x54] ss:$8 sps:$4 sm:$0xff]  }
 0x814   :  { %2879 = vmatpush1.bf16.msra.mxu0 %v12473_v50  ;;  %2920 = vmatpush1.bf16.msra.mxu1 %v12479_v47  ;;  %v9396_v50 = vld [vmem:[%s14302_s7 + $0x50] ss:$8 sps:$4 sm:$0xff]   ;;  %v9401_v47 = vld [vmem:[%s14301_s11 + $0x44] ss:$8 sps:$4 sm:$0xff]  }
 0x815   :  { %2880 = vmatprep.subr.bf16.mxu0 %v12485_v5  ;;  %2921 = vmatprep.subr.bf16.mxu1 %v12491_v42  ;;  %v9399_v5 = vld [vmem:[%s14301_s11 + $0x40] ss:$8 sps:$4 sm:$0xff]   ;;  %v9404_v42 = vld [vmem:[%s14302_s7 + $0x44] ss:$8 sps:$4 sm:$0xff]  }
 0x818   :  { %2881 = vmatpush1.bf16.msra.mxu0 %v12497_v23  ;;  %2922 = vmatpush1.bf16.msra.mxu1 %v12503_v48  ;;  %v9402_v23 = vld [vmem:[%s14302_s7 + $0x40] ss:$8 sps:$4 sm:$0xff]   ;;  %v9407_v48 = vld [vmem:[%s14301_s11 + $0x34] ss:$8 sps:$4 sm:$0xff]  }
 0x819   :  { %2882 = vmatprep.subr.bf16.mxu0 %v12509_v60  ;;  %2923 = vmatprep.subr.bf16.mxu1 %v12515_v1  ;;  %v9405_v60 = vld [vmem:[%s14301_s11 + $0x30] ss:$8 sps:$4 sm:$0xff]   ;;  %v9410_v1 = vld [vmem:[%s14302_s7 + $0x34] ss:$8 sps:$4 sm:$0xff]  }
 0x81a   :  { %v10292_v43 = vpop.eup %10291 }
 0x81b   :  { %v2779_v19 = vmul.f32 %v10292_v43, %v10290_v53  ;;  %v9470_v53 = vld [vmem:[%s14302_s7 + $0x94] ss:$8 sps:$4 sm:$0xff]   ;;  %v9465_v43 = vld [vmem:[%s14301_s11 + $0x90] ss:$8 sps:$4 sm:$0xff]  }
 0x81c   :  { %2883 = vmatpush1.bf16.msra.mxu0 %v12521_v56  ;;  %2924 = vmatpush1.bf16.msra.mxu1 %v12527_v13  ;;  %v9408_v56 = vld [vmem:[%s14302_s7 + $0x30] ss:$8 sps:$4 sm:$0xff]   ;;  %v9413_v13 = vld [vmem:[%s14301_s11 + $0x24] ss:$8 sps:$4 sm:$0xff]  }
 0x81d   :  { %v2867_v37 = vpack.c.bf16 %v2779_v19, %v2779_v19  ;;  %3217 = vmatprep.subr.bf16.mxu0 %v9383_v4  ;;  %3462 = vmatprep.subr.bf16.mxu1 %v9386_v24  ;;  %v9468_v19 = vld [vmem:[%s14302_s7 + $0x90] ss:$8 sps:$4 sm:$0xff]   ;;  %v9476_v4 = vld [vmem:[%s14302_s7 + $0x84] ss:$8 sps:$4 sm:$0xff]   ;;  %v9474_v24 = vld [vmem:[%s14302_s7 + $0x80] ss:$8 sps:$4 sm:$0xff]  }
 0x81f   :  { %2901 = vmatmul.mubr.bf16.vlgmr.msra.gmra.mxu0 %v2867_v37  ;;  %2942 = vmatmul.mubr.bf16.vlgmr.msra.gmra.mxu1 %v2867_v37  ;;  %v9473_v37 = vld [vmem:[%s14301_s11 + $0x84] ss:$8 sps:$4 sm:$0xff]  }
 0x820   :  { %3218 = vmatpush1.bf16.msra.mxu0 %v9381_v44  ;;  %3463 = vmatpush1.bf16.msra.mxu1 %v9384_v18  ;;  %v9471_v44 = vld [vmem:[%s14301_s11 + $0x80] ss:$8 sps:$4 sm:$0xff]   ;;  %v9479_v18 = vld [vmem:[%s14303_s4 + $0x74] ss:$8 sps:$4 sm:$0xff]  }
 0x821   :  { %3219 = vmatprep.subr.bf16.mxu0 %v9389_v15  ;;  %3464 = vmatprep.subr.bf16.mxu1 %v9392_v52  ;;  %v14304_v52 = vld [vmem:[#allocation41_spill] sm:$0xff] }
 0x824   :  { %3220 = vmatpush1.bf16.msra.mxu0 %v9387_v9  ;;  %3465 = vmatpush1.bf16.msra.mxu1 %v9390_v41  ;;  %v14305_v41 = vld [vmem:[#allocation53_spill] sm:$0xff] }
 0x825   :  { %3221 = vmatprep.subr.bf16.mxu0 %v9395_v33  ;;  %3466 = vmatprep.subr.bf16.mxu1 %v9398_v31  ;;  %v505_v33 = vadd.f32 %v14305_v41, %v14304_v52 }
 0x828   :  { %3222 = vmatpush1.bf16.msra.mxu0 %v9393_v14  ;;  %3467 = vmatpush1.bf16.msra.mxu1 %v9396_v50  ;;  %v14306_v14 = vld [vmem:[#allocation51_spill] sm:$0xff] }
 0x829   :  { %3223 = vmatprep.subr.bf16.mxu0 %v9401_v47  ;;  %3468 = vmatprep.subr.bf16.mxu1 %v9404_v42 }
 0x82c   :  { %3224 = vmatpush1.bf16.msra.mxu0 %v9399_v5  ;;  %3469 = vmatpush1.bf16.msra.mxu1 %v9402_v23 }
 0x82d   :  { %3225 = vmatprep.subr.bf16.mxu0 %v9407_v48  ;;  %3470 = vmatprep.subr.bf16.mxu1 %v9410_v1 }
 0x830   :  { %3226 = vmatpush1.bf16.msra.mxu0 %v9405_v60  ;;  %3471 = vmatpush1.bf16.msra.mxu1 %v9408_v56 }
 0x831   :  { %3227 = vmatprep.subr.bf16.mxu0 %v9413_v13  ;;  %3472 = vmatprep.subr.bf16.mxu1 %v9416_v21  ;;  %v14307_v13 = vld [vmem:[#allocation59_spill] sm:$0xff] }
 0x834   :  { %3228 = vmatpush1.bf16.msra.mxu0 %v9411_v46  ;;  %3473 = vmatpush1.bf16.msra.mxu1 %v9414_v40  ;;  %v14308_v46 = vld [vmem:[#allocation79_spill] sm:$0xff] }
 0x835   :  { %3229 = vmatprep.subr.bf16.mxu0 %v9419_v58  ;;  %3474 = vmatprep.subr.bf16.mxu1 %v9422_v55  ;;  %v578_v21 = vadd.f32 %v14308_v46, %v14307_v13  ;;  %v14309_v58 = vld [vmem:[#allocation78_spill] sm:$0xff] }
 0x838   :  { %3230 = vmatpush1.bf16.msra.mxu0 %v9417_v30  ;;  %3475 = vmatpush1.bf16.msra.mxu1 %v9420_v17 }
 0x839   :  { %3231 = vmatprep.subr.bf16.mxu0 %v9425_v34  ;;  %3476 = vmatprep.subr.bf16.mxu1 %v9428_v39 }
 0x83c   :  { %3232 = vmatpush1.bf16.msra.mxu0 %v9423_v16  ;;  %3477 = vmatpush1.bf16.msra.mxu1 %v9426_v12 }
 0x83d   :  { %3233 = vmatprep.subr.bf16.mxu0 %v9431_v7  ;;  %3478 = vmatprep.subr.bf16.mxu1 %v9434_v8 }
 0x840   :  { %3234 = vmatpush2.bf16.msra.mxu0 %v9429_v29  ;;  %3479 = vmatpush2.bf16.msra.mxu1 %v9432_v28  ;;  %v14310_v28 = vld [vmem:[#allocation55_spill] sm:$0xff] }
 0x841   :  { %3235 = vmatprep.subr.bf16.mxu0 %v9437_v25  ;;  %3480 = vmatprep.subr.bf16.mxu1 %v9440_v20 }
 0x844   :  { %3236 = vmatpush2.bf16.msra.mxu0 %v9435_v10  ;;  %3481 = vmatpush2.bf16.msra.mxu1 %v9438_v26 }
 0x845   :  { %3237 = vmatprep.subr.bf16.mxu0 %v9443_v6  ;;  %3482 = vmatprep.subr.bf16.mxu1 %v9446_v61  ;;  %v14311_v61 = vld [vmem:[#allocation56_spill] sm:$0xff] }
 0x848   :  { %3238 = vmatpush2.bf16.msra.mxu0 %v9441_v22  ;;  %3483 = vmatpush2.bf16.msra.mxu1 %v9444_v59 }
 0x849   :  { %3239 = vmatprep.subr.bf16.mxu0 %v9449_v62  ;;  %3484 = vmatprep.subr.bf16.mxu1 %v9452_v49 }
 0x84c   :  { %3240 = vmatpush2.bf16.msra.mxu0 %v9447_v63  ;;  %3485 = vmatpush2.bf16.msra.mxu1 %v9450_v54 }
 0x84d   :  { %3241 = vmatprep.subr.bf16.mxu0 %v9455_v3  ;;  %3486 = vmatprep.subr.bf16.mxu1 %v9458_v57 }
 0x850   :  { %3242 = vmatpush2.bf16.msra.mxu0 %v9453_v32  ;;  %3487 = vmatpush2.bf16.msra.mxu1 %v9456_v51 }
 0x851   :  { %3243 = vmatprep.subr.bf16.mxu0 %v9461_v27  ;;  %3488 = vmatprep.subr.bf16.mxu1 %v9464_v11  ;;  %v14312_v11 = vld [vmem:[#allocation82_spill] sm:$0xff] }
 0x854   :  { %3244 = vmatpush2.bf16.msra.mxu0 %v9459_v45  ;;  %3489 = vmatpush2.bf16.msra.mxu1 %v9462_v2  ;;  %v14313_v2 = vld [vmem:[#allocation81_spill] sm:$0xff] }
 0x855   :  { %3245 = vmatprep.subr.bf16.mxu0 %v9467_v36  ;;  %3490 = vmatprep.subr.bf16.mxu1 %v9470_v53 }
 0x858   :  { %3246 = vmatpush2.bf16.msra.mxu0 %v9465_v43  ;;  %3491 = vmatpush2.bf16.msra.mxu1 %v9468_v19 }
 0x859   :  { %3247 = vmatprep.subr.bf16.mxu0 %v9473_v37  ;;  %3492 = vmatprep.subr.bf16.mxu1 %v9476_v4 }
 0x85c   :  { %3248 = vmatpush2.bf16.msra.mxu0 %v9471_v44  ;;  %3493 = vmatpush2.bf16.msra.mxu1 %v9474_v24 }
 0x85d   :  { %3707 = vmatprep.subr.bf16.mxu0 %v9479_v18 }
 0x8bf   :  { %v2815_v15 = vpop.f32.mrf.mxu0  ;;  %v2856_v9 = vpop.f32.mrf.mxu1 }
 0x8c0   :  { %v2863_v31 = vadd.f32 %v2815_v15, %v14306_v14  ;;  %v2865_v30 = vadd.f32 %v2856_v9, %v14309_v58 }
 0x8c1   :  { %v2817_v50 = vpop.f32.mrf.mxu0  ;;  %v2858_v47 = vpop.f32.mrf.mxu1 }
 0x8c2   :  { %v8109_v5 = vmul.f32 -1.442695, %v2863_v31  ;;  %v2864_v42 = vadd.f32 %v2817_v50, %v505_v33  ;;  %v2866_v40 = vadd.f32 %v2858_v47, %v578_v21  ;;  %v13090_v50 = vrot.slane %v14086_v35, 3 }
 0x8c3   :  { %v2819_v23 = vpop.f32.mrf.mxu0  ;;  %v2860_v48 = vpop.f32.mrf.mxu1 }
 0x8c4   :  { %10293 = vpow2.f32 %v8109_v5  ;;  %v8110_v60 = vmul.f32 -1.442695, %v2864_v42  ;;  %v8111_v55 = vmul.f32 -1.442695, %v2866_v40 }
 0x8c5   :  { %v2820_v1 = vpop.f32.mrf.mxu0  ;;  %v2861_v56 = vpop.f32.mrf.mxu1 }
 0x8c6   :  { %10295 = vpow2.f32 %v8110_v60 }
 0x8c7   :  { %10297 = vtanh.f32 %v2865_v30 }
 0x8c8   :  { %10299 = vpow2.f32 %v8111_v55 }
 0x8d1   :  { %v10294_v17 = vpop.eup %10293 }
 0x8d2   :  { %v2957_v34 = vadd.f32 1.0, %v10294_v17 }
 0x8d3   :  { %v10296_v16 = vpop.eup %10295 }
 0x8d4   :  { %10301 = vrcp.f32 %v2957_v34  ;;  %v2963_v39 = vadd.f32 1.0, %v10296_v16  ;;  %v10298_v12 = vpop.eup %10297 }
 0x8d5   :  { %v10300_v8 = vpop.eup %10299 }
 0x8d6   :  { %10303 = vrcp.f32 %v2963_v39  ;;  %v2970_v63 = vadd.f32 1.0, %v10300_v8  ;;  %v9477_v39 = vld [vmem:[%s14303_s4 + $0x70] ss:$8 sps:$4 sm:$0xff]  }
 0x8df   :  { %v2902_v7 = vpop.f32.mrf.mxu0  ;;  %v2943_v29 = vpop.f32.mrf.mxu1 }
 0x8e0   :  { %v2950_v25 = vadd.f32 %v2902_v7, %v14310_v28  ;;  %v2952_v36 = vadd.f32 %v2943_v29, %v14313_v2  ;;  %v9482_v29 = vld [vmem:[%s14303_s4 + $0x64] ss:$8 sps:$4 sm:$0xff]   ;;  %v9498_v2 = vld [vmem:[%s14303_s4] ss:$8 sps:$4 sm:$0xff]  }
 0x8e1   :  { %v10302_v10 = vpop.eup %10301  ;;  %v2904_v20 = vpop.f32.mrf.mxu0 }
 0x8e2   :  { %v2945_v26 = vpop.f32.mrf.mxu1  ;;  %v2974_v6 = vmul.f32 %v10302_v10, %v10298_v12  ;;  %v8112_v22 = vmul.f32 -1.442695, %v2950_v25  ;;  %v2951_v59 = vadd.f32 %v2904_v20, %v14311_v61  ;;  %v9480_v25 = vld [vmem:[%s14303_s4 + $0x60] ss:$8 sps:$4 sm:$0xff]   ;;  %v9485_v10 = vld [vmem:[%s14303_s4 + $0x54] ss:$8 sps:$4 sm:$0xff]  }
 0x8e3   :  { %v10304_v62 = vpop.eup %10303  ;;  %v2906_v54 = vpop.f32.mrf.mxu0  ;;  %v2953_v45 = vadd.f32 %v2945_v26, %v14312_v11  ;;  %v9483_v61 = vld [vmem:[%s14303_s4 + $0x50] ss:$8 sps:$4 sm:$0xff]  }
 0x8e4   :  { %v2947_v49 = vpop.f32.mrf.mxu1  ;;  %v2973_v3 = vmul.f32 %v10304_v62, %v12830_v38  ;;  %10305 = vpow2.f32 %v8112_v22  ;;  %v8113_v32 = vmul.f32 -1.442695, %v2951_v59  ;;  %v9488_v59 = vld [vmem:[%s14303_s4 + $0x44] ss:$8 sps:$4 sm:$0xff]   ;;  %v9486_v54 = vld [vmem:[%s14303_s4 + $0x40] ss:$8 sps:$4 sm:$0xff]  }
 0x8e5   :  { %v2907_v57 = vpop.f32.mrf.mxu0  ;;  %v8114_v53 = vmul.f32 -1.442695, %v2953_v45  ;;  %v9495_v11 = vld [vmem:[%s14303_s4 + $0x10] ss:$8 sps:$4 sm:$0xff]   ;;  %v9500_v45 = vld [vmem:[%s14303_s4 + $0x4] ss:$8 sps:$4 sm:$0xff]  }
 0x8e6   :  { %v2948_v51 = vpop.f32.mrf.mxu1  ;;  %v2975_v27 = vadd.f32 %v2974_v6, %v2973_v3  ;;  %10307 = vpow2.f32 %v8113_v32  ;;  %v9491_v3 = vld [vmem:[%s14303_s4 + $0x34] ss:$8 sps:$4 sm:$0xff]   ;;  %v9489_v32 = vld [vmem:[%s14303_s4 + $0x30] ss:$8 sps:$4 sm:$0xff]   ;;  %v9494_v57 = vld [vmem:[%s14303_s4 + $0x24] ss:$8 sps:$4 sm:$0xff]  }
 0x8e7   :  { %10309 = vrcp.f32 %v2970_v63  ;;  %v9492_v51 = vld [vmem:[%s14303_s4 + $0x20] ss:$8 sps:$4 sm:$0xff]  }
 0x8e8   :  { %10311 = vtanh.f32 %v2975_v27  ;;  %v9497_v27 = vld [vmem:[%s14303_s4 + $0x14] ss:$8 sps:$4 sm:$0xff]  }
 0x8e9   :  { %10313 = vtanh.f32 %v2952_v36  ;;  %v9503_v36 = vld [vmem:[%s14303_s4 + $0xf4] ss:$8 sps:$4 sm:$0xff]  }
 0x8ea   :  { %10315 = vpow2.f32 %v8114_v53  ;;  %v9501_v53 = vld [vmem:[%s14303_s4 + $0xf0] ss:$8 sps:$4 sm:$0xff]  }
 0x8f1   :  { %v10306_v43 = vpop.eup %10305 }
 0x8f2   :  { %v2981_v19 = vadd.f32 1.0, %v10306_v43  ;;  %v9506_v43 = vld [vmem:[%s14303_s4 + $0xe4] ss:$8 sps:$4 sm:$0xff]  }
 0x8f3   :  { %v10308_v37 = vpop.eup %10307 }
 0x8f4   :  { %v10310_v4 = vpop.eup %10309  ;;  %10317 = vrcp.f32 %v2981_v19  ;;  %v2987_v38 = vadd.f32 1.0, %v10308_v37  ;;  %v9504_v19 = vld [vmem:[%s14303_s4 + $0xe0] ss:$8 sps:$4 sm:$0xff]   ;;  %v9509_v37 = vld [vmem:[%s14303_s4 + $0xd4] ss:$8 sps:$4 sm:$0xff]  }
 0x8f5   :  { %v10312_v44 = vpop.eup %10311 }
 0x8f6   :  { %v13078_v24 = vmul.f32 %v10312_v44, %v10310_v4  ;;  %10319 = vrcp.f32 %v2987_v38  ;;  %v10314_v41 = vpop.eup %10313  ;;  %v9507_v4 = vld [vmem:[%s14303_s4 + $0xd0] ss:$8 sps:$4 sm:$0xff]   ;;  %v9512_v38 = vld [vmem:[%s14303_s4 + $0xc4] ss:$8 sps:$4 sm:$0xff]   ;;  %v9510_v44 = vld [vmem:[%s14303_s4 + $0xc0] ss:$8 sps:$4 sm:$0xff]  }
 0x8f7   :  { %v10316_v14 = vpop.eup %10315 }
 0x8f8   :  { %v3004_v18 = vrot.slane %v13078_v24, 1  ;;  %v2994_v1 = vadd.f32 1.0, %v10316_v14  ;;  %v9519_v14 = vld [vmem:[%s14303_s4 + $0x90] ss:$8 sps:$4 sm:$0xff]  }
 0x8fa   :  { %v3009_v15 = vsel %vm3008_vm1, %v3004_v18, 0.0  ;;  %10321 = vrcp.f32 %v2994_v1  ;;  %v13121_v7 = vpack.c.bf16 %v3004_v18, %v3004_v18  ;;  %v9515_v18 = vld [vmem:[%s14303_s4 + $0xb4] ss:$8 sps:$4 sm:$0xff]  }
 0x8fb   :  { %v3011_v9 = vpack.c.bf16 %v3009_v15, %v3009_v15  ;;  %v9513_v15 = vld [vmem:[%s14303_s4 + $0xb0] ss:$8 sps:$4 sm:$0xff]  }
 0x8fc   :  { %v14316_v1 = vld [vmem:[#allocation39_spill] sm:$0xff] }
 0x8fd   :  { %v6036_v52 = vrot.slane %v3011_v9, 5  ;;  %v9518_v9 = vld [vmem:[%s14303_s4 + $0xa4] ss:$8 sps:$4 sm:$0xff]  }
 0x8ff   :  { %v13083_v33 = vsel %vm6038_vm2, 0, %v6036_v52  ;;  %v9516_v52 = vld [vmem:[%s14303_s4 + $0xa0] ss:$8 sps:$4 sm:$0xff]  }
 0x900   :  { %v13087_v31 = vsel %vm6044_vm3, %v13083_v33, 0 }
 0x901   :  { %v10318_v47 = vpop.eup %10317  ;;  %v13093_v5 = vshrl.u32 %v13087_v31, 16  ;;  %v13096_v42 = vshll.u32 %v13087_v31, 16  ;;  %v7175_v48 = vrot.slane %v13087_v31, 3 }
 0x902   :  { %v2998_v23 = vmul.f32 %v10318_v47, %v10314_v41  ;;  %v9521_v41 = vld [vmem:[%s14303_s4 + $0x94] ss:$8 sps:$4 sm:$0xff]   ;;  %v9524_v47 = vld [vmem:[%s14303_s4 + $0x84] ss:$8 sps:$4 sm:$0xff]  }
 0x903   :  { %v10320_v60 = vpop.eup %10319  ;;  %v6987_v13 = vrot.slane %v13093_v5, 2  ;;  %v6988_v46 = vrot.slane %v13096_v42, 3  ;;  %v13104_v21 = vsel %vm7174_vm4, %v7175_v48, %v13090_v50  ;;  %v3290_v48 = vld [vmem:[#allocation10] sm:$0x3] }
 0x904   :  { %v2997_v56 = vmul.f32 %v10320_v60, %v12851_v0  ;;  %v3045_v60 = vld [vmem:[#allocation8] sm:$0x3] }
 0x905   :  { %v13106_v58 = vor.u32 %v6988_v46, %v6987_v13  ;;  %v14317_v13 = vld [vmem:[#allocation40_spill] sm:$0xff]  ;;  %v3050_v0 = vrot.slane %v3045_v60, %v14316_v1 }
 0x906   :  { %v2999_v40 = vadd.f32 %v2998_v23, %v2997_v56  ;;  %v9522_v23 = vld [vmem:[%s14303_s4 + $0x80] ss:$8 sps:$4 sm:$0xff]   ;;  %v3295_v56 = vrot.slane %v3290_v48, %v14316_v1  ;;  %v3054_v46 = vrot.slane %v3045_v60, %v14317_v13 }
 0x907   :  { %v10322_v30 = vpop.eup %10321 }
 0x908   :  { %10323 = vtanh.f32 %v2999_v40  ;;  %v3299_v40 = vrot.slane %v3290_v48, %v14317_v13 }
 0x915   :  { %v10324_v55 = vpop.eup %10323 }
 0x916   :  { %v13108_v17 = vmul.f32 %v10324_v55, %v10322_v30 }
 0x918   :  { %v3005_v34 = vrot.slane %v13108_v17, 1 }
 0x91a   :  { %v8148_v16 = vpack.c.bf16 %v3005_v34, %v3005_v34  ;;  %v3010_v12 = vsel %vm3008_vm1, %v3005_v34, 0.0 }
 0x91b   :  { %v3012_v8 = vpack.c.bf16 %v3010_v12, %v3010_v12 }
 0x91c   :  { %8149 = vmatprep.mubr.msk.bf16.mxu0 %vm13113_vm5, %v8148_v16  ;;  %8187 = vmatprep.mubr.msk.bf16.mxu1 %vm13113_vm5, %v8148_v16 }
 0x91d   :  { %8152 = vmatmul.mubr.msk.bf16.vlgmr.msra.gmra.mxu0 %vm13113_vm5, %v13121_v7  ;;  %8190 = vmatmul.mubr.msk.bf16.vlgmr.msra.gmra.mxu1 %vm13113_vm5, %v13121_v7  ;;  %v6037_v28 = vrot.slane %v3012_v8, 5 }
 0x91e   :  { %3708 = vmatpush1.bf16.msra.mxu0 %v9477_v39  ;;  %8225 = vmatprep.mubr.msk.bf16.mxu0 %vm13113_vm5, %v8148_v16 }
 0x91f   :  { %3709 = vmatprep.subr.bf16.mxu0 %v9482_v29  ;;  %v13145_v20 = vsel %vm6038_vm2, 0, %v6037_v28 }
 0x920   :  { %v13149_v26 = vsel %vm6044_vm3, %v13145_v20, 0 }
 0x921   :  { %v13152_v6 = vshrl.u32 %v13149_v26, 16  ;;  %v13155_v22 = vshll.u32 %v13149_v26, 16 }
 0x922   :  { %3710 = vmatpush1.bf16.msra.mxu0 %v9480_v25 }
 0x923   :  { %3711 = vmatprep.subr.bf16.mxu0 %v9485_v10  ;;  %v6996_v62 = vrot.slane %v13152_v6, 2  ;;  %v6997_v63 = vrot.slane %v13155_v22, 3 }
 0x925   :  { %v13168_v49 = vor.u32 %v6997_v63, %v6996_v62 }
 0x926   :  { %3712 = vmatpush1.bf16.msra.mxu0 %v9483_v61 }
 0x927   :  { %3713 = vmatprep.subr.bf16.mxu0 %v9488_v59 }
 0x92a   :  { %3714 = vmatpush1.bf16.msra.mxu0 %v9486_v54  ;;  %v3535_v54 = vld [vmem:[#allocation11] sm:$0x3] }
 0x92b   :  { %3715 = vmatprep.subr.bf16.mxu0 %v9491_v3  ;;  %v3540_v3 = vrot.slane %v3535_v54, %v14316_v1 }
 0x92e   :  { %3716 = vmatpush1.bf16.msra.mxu0 %v9489_v32  ;;  %v3544_v32 = vrot.slane %v3535_v54, %v14317_v13  ;;  %v9540_v54 = vld [vmem:[%s13891_s13 + $0x20] ss:$8 sps:$4 sm:$0xff]  }
 0x92f   :  { %3717 = vmatprep.subr.bf16.mxu0 %v9494_v57 }
 0x932   :  { %3718 = vmatpush1.bf16.msra.mxu0 %v9492_v51 }
 0x933   :  { %3719 = vmatprep.subr.bf16.mxu0 %v9497_v27 }
 0x936   :  { %3720 = vmatpush1.bf16.msra.mxu0 %v9495_v11 }
 0x937   :  { %3721 = vmatprep.subr.bf16.mxu0 %v9500_v45 }
 0x93a   :  { %3722 = vmatpush1.bf16.msra.mxu0 %v9498_v2 }
 0x93b   :  { %3723 = vmatprep.subr.bf16.mxu0 %v9503_v36 }
 0x93e   :  { %3724 = vmatpush2.bf16.msra.mxu0 %v9501_v53 }
 0x93f   :  { %3725 = vmatprep.subr.bf16.mxu0 %v9506_v43 }
 0x942   :  { %3726 = vmatpush2.bf16.msra.mxu0 %v9504_v19  ;;  %v9527_v19 = vld [vmem:[%s13891_s13 + $0x74] ss:$8 sps:$4 sm:$0xff]  }
 0x943   :  { %3727 = vmatprep.subr.bf16.mxu0 %v9509_v37 }
 0x946   :  { %3728 = vmatpush2.bf16.msra.mxu0 %v9507_v4 }
 0x947   :  { %3729 = vmatprep.subr.bf16.mxu0 %v9512_v38 }
 0x94a   :  { %3730 = vmatpush2.bf16.msra.mxu0 %v9510_v44 }
 0x94b   :  { %3731 = vmatprep.subr.bf16.mxu0 %v9515_v18 }
 0x94e   :  { %3732 = vmatpush2.bf16.msra.mxu0 %v9513_v15 }
 0x94f   :  { %3733 = vmatprep.subr.bf16.mxu0 %v9518_v9 }
 0x952   :  { %3734 = vmatpush2.bf16.msra.mxu0 %v9516_v52 }
 0x953   :  { %3735 = vmatprep.subr.bf16.mxu0 %v9521_v41 }
 0x956   :  { %3736 = vmatpush2.bf16.msra.mxu0 %v9519_v14 }
 0x957   :  { %3737 = vmatprep.subr.bf16.mxu0 %v9524_v47 }
 0x95a   :  { %3738 = vmatpush2.bf16.msra.mxu0 %v9522_v23 }
 0x95d   :  { %8228 = vmatmul.mubr.msk.bf16.vlgmr.msra.gmra.mxu0 %vm13113_vm5, %v13121_v7 }
 0x9dd   :  { %v3251_v30 = vpop.f32.mrf.mxu0  ;;  %v3496_v55 = vpop.f32.mrf.mxu1 }
 0x9de   :  { %v3497_v34 = vadd.f32 %v3496_v55, %v3295_v56  ;;  %v3252_v62 = vadd.f32 %v3251_v30, %v3050_v0  ;;  %v9528_v0 = vld [vmem:[%s13891_s13 + $0x60] ss:$8 sps:$4 sm:$0xff]  }
 0x9df   :  { %v3253_v16 = vpop.f32.mrf.mxu0  ;;  %v3498_v39 = vpop.f32.mrf.mxu1 }
 0x9e0   :  { %v3254_v12 = vadd.f32 %v3253_v16, %v3054_v46  ;;  %v3499_v29 = vadd.f32 %v3498_v39, %v3299_v40  ;;  %v3750_v10 = vpack.c.bf16 %v3497_v34, %v3497_v34  ;;  %v3748_v63 = vpack.c.bf16 %v3252_v62, %v3252_v62  ;;  %v9537_v62 = vld [vmem:[%s13891_s13 + $0x30] ss:$8 sps:$4 sm:$0xff]  }
 0x9e1   :  { %v3255_v8 = vpop.f32.mrf.mxu0  ;;  %v3500_v28 = vpop.f32.mrf.mxu1 }
 0x9e2   :  { %v3749_v7 = vpack.c.bf16 %v3254_v12, %v3254_v12  ;;  %v3751_v25 = vpack.c.bf16 %v3499_v29, %v3499_v29  ;;  %v9525_v29 = vld [vmem:[%s13891_s13 + $0x70] ss:$8 sps:$4 sm:$0xff]   ;;  %v9530_v28 = vld [vmem:[%s13891_s13 + $0x64] ss:$8 sps:$4 sm:$0xff]  }
 0x9e3   :  { %v3256_v61 = vpop.f32.mrf.mxu0  ;;  %v3501_v59 = vpop.f32.mrf.mxu1 }
 0x9e4   :  { %3766 = vmatprep.subr.bf16.mxu1 %v3751_v25  ;;  %3784 = vmatprep.mubr.bf16.mxu1 %v3749_v7  ;;  %v9533_v7 = vld [vmem:[%s13891_s13 + $0x54] ss:$8 sps:$4 sm:$0xff]   ;;  %v9531_v25 = vld [vmem:[%s13891_s13 + $0x50] ss:$8 sps:$4 sm:$0xff]   ;;  %v9534_v61 = vld [vmem:[%s13891_s13 + $0x40] ss:$8 sps:$4 sm:$0xff]  }
 0x9e5   :  { %3767 = vmatpush1.bf16.xpose.msra.mxu1 %v3750_v10  ;;  %v9536_v10 = vld [vmem:[%s13891_s13 + $0x44] ss:$8 sps:$4 sm:$0xff]   ;;  %v9539_v59 = vld [vmem:[%s13891_s13 + $0x34] ss:$8 sps:$4 sm:$0xff]  }
 0x9ec   :  { %3785 = vmatmul.mubr.bf16.vlgmr.msra.gmra.mxu1 %v3748_v63  ;;  %v9542_v63 = vld [vmem:[%s13891_s13 + $0x24] ss:$8 sps:$4 sm:$0xff]  }
 0x9ed   :  { %3856 = vmatprep.mubr.bf16.mxu1 %v14086_v35 }
 0xa1d   :  { %v3741_v57 = vpop.f32.mrf.mxu0 }
 0xa1e   :  { %v3742_v51 = vadd.f32 %v3741_v57, %v3540_v3  ;;  %v9545_v3 = vld [vmem:[%s13891_s13 + $0x14] ss:$8 sps:$4 sm:$0xff]   ;;  %v9548_v57 = vld [vmem:[%s13891_s13 + $0x4] ss:$8 sps:$4 sm:$0xff]  }
 0xa1f   :  { %v3743_v27 = vpop.f32.mrf.mxu0 }
 0xa20   :  { %v3813_v11 = vpack.c.bf16 %v3742_v51, %v3742_v51  ;;  %v3744_v45 = vadd.f32 %v3743_v27, %v3544_v32  ;;  %v9543_v32 = vld [vmem:[%s13891_s13 + $0x10] ss:$8 sps:$4 sm:$0xff]   ;;  %v9546_v51 = vld [vmem:[%s13891_s13] ss:$8 sps:$4 sm:$0xff]   ;;  %v9551_v27 = vld [vmem:[%s13891_s13 + $0xf4] ss:$8 sps:$4 sm:$0xff]  }
 0xa21   :  { %v3745_v2 = vpop.f32.mrf.mxu0 }
 0xa22   :  { %v3814_v36 = vpack.c.bf16 %v3744_v45, %v3744_v45  ;;  %v3819_v43 = vsel %vm3008_vm1, %v3813_v11, 0  ;;  %v9549_v11 = vld [vmem:[%s13891_s13 + $0xf0] ss:$8 sps:$4 sm:$0xff]   ;;  %v9554_v45 = vld [vmem:[%s13891_s13 + $0xe4] ss:$8 sps:$4 sm:$0xff]  }
 0xa23   :  { %v3746_v53 = vpop.f32.mrf.mxu0  ;;  %v9552_v2 = vld [vmem:[%s13891_s13 + $0xe0] ss:$8 sps:$4 sm:$0xff]  }
 0xa24   :  { %8229 = vmatprep.subr.msk.bf16.mxu1 %vm3008_vm1, %v3814_v36  ;;  %v9557_v36 = vld [vmem:[%s13891_s13 + $0xd4] ss:$8 sps:$4 sm:$0xff]   ;;  %v9555_v53 = vld [vmem:[%s13891_s13 + $0xd0] ss:$8 sps:$4 sm:$0xff]  }
 0xa25   :  { %3839 = vmatpush1.bf16.msra.mxu1 %v3819_v43  ;;  %v9560_v43 = vld [vmem:[%s13891_s13 + $0xc4] ss:$8 sps:$4 sm:$0xff]  }
 0xa26   :  { %4071 = vmatprep.subr.bf16.mxu1 %v9527_v19  ;;  %v9558_v19 = vld [vmem:[%s13891_s13 + $0xc0] ss:$8 sps:$4 sm:$0xff]  }
 0xaac   :  { %v3786_v37 = vpop.f32.mrf.mxu1 }
 0xaad   :  { %v3793_v4 = vsel %vm3792_vm6, %v3786_v37, -inf }
 0xaae   :  { %v3794_v38 = vrot.slane %v3793_v4, 4  ;;  %v3788_v44 = vpop.f32.mrf.mxu1 }
 0xaaf   :  { %v9564_v44 = vld [vmem:[%s13891_s13 + $0xa0] ss:$8 sps:$4 sm:$0xff]  }
 0xab0   :  { %v3795_v18 = vmax.f32 %v3793_v4, %v3794_v38  ;;  %v3789_v15 = vpop.f32.mrf.mxu1  ;;  %v9561_v4 = vld [vmem:[%s13891_s13 + $0xb0] ss:$8 sps:$4 sm:$0xff]   ;;  %v9566_v38 = vld [vmem:[%s13891_s13 + $0xa4] ss:$8 sps:$4 sm:$0xff]  }
 0xab1   :  { %v9567_v15 = vld [vmem:[%s13891_s13 + $0x90] ss:$8 sps:$4 sm:$0xff]  }
 0xab2   :  { %v3796_v9 = vrot.slane %v3795_v18, 2  ;;  %v3790_v52 = vpop.f32.mrf.mxu1 }
 0xab3   :  { %v9570_v52 = vld [vmem:[%s13891_s13 + $0x80] ss:$8 sps:$4 sm:$0xff]  }
 0xab4   :  { %v3797_v41 = vmax.f32 %v3795_v18, %v3796_v9  ;;  %v9569_v18 = vld [vmem:[%s13891_s13 + $0x94] ss:$8 sps:$4 sm:$0xff]   ;;  %v9572_v9 = vld [vmem:[%s13891_s13 + $0x84] ss:$8 sps:$4 sm:$0xff]  }
 0xab6   :  { %v3798_v14 = vrot.slane %v3797_v41, 1 }
 0xab8   :  { %v3799_v47 = vmax.f32 %v3797_v41, %v3798_v14  ;;  %v9573_v41 = vld [vmem:[#allocation14 + $0x70] ss:$8 sps:$4 sm:$0xff]   ;;  %v9575_v14 = vld [vmem:[#allocation14 + $0x74] ss:$8 sps:$4 sm:$0xff]  }
 0xab9   :  { %5706 = vmatprep.subr.bf16.mxu0 %v9575_v14  ;;  %v9614_v14 = vld [vmem:[#allocation14 + $0x114] ss:$8 sps:$4 sm:$0xff]  }
 0xaba   :  { %v3800_v23 = vsub.f32 %v3786_v37, %v3799_v47  ;;  %v9563_v37 = vld [vmem:[%s13891_s13 + $0xb4] ss:$8 sps:$4 sm:$0xff]   ;;  %5707 = vmatpush1.bf16.msra.mxu0 %v9573_v41  ;;  %v9606_v41 = vld [vmem:[#allocation14 + $0x120] ss:$8 sps:$4 sm:$0xff]  }
 0xabb   :  { %v9578_v47 = vld [vmem:[#allocation14 + $0x174] ss:$8 sps:$4 sm:$0xff]  }
 0xabc   :  { %v3801_v48 = vmul.f32 1.442695, %v3800_v23  ;;  %v9581_v23 = vld [vmem:[#allocation14 + $0x64] ss:$8 sps:$4 sm:$0xff]  }
 0xabd   :  { %5708 = vmatprep.subr.bf16.mxu0 %v9581_v23  ;;  %v9620_v23 = vld [vmem:[#allocation14 + $0x104] ss:$8 sps:$4 sm:$0xff]  }
 0xabe   :  { %10325 = vpow2.f32 %v3801_v48  ;;  %v9579_v48 = vld [vmem:[#allocation14 + $0x60] ss:$8 sps:$4 sm:$0xff]  }
 0xabf   :  { %5709 = vmatpush1.bf16.msra.mxu0 %v9579_v48  ;;  %v9618_v48 = vld [vmem:[#allocation14 + $0x100] ss:$8 sps:$4 sm:$0xff]  }
 0xacb   :  { %v10326_v60 = vpop.eup %10325 }
 0xacc   :  { %v3803_v56 = vsel %vm3792_vm6, %v10326_v60, 0.0 }
 0xacd   :  { %v3804_v46 = vrot.slane %v3803_v56, 4 }
 0xacf   :  { %v3805_v40 = vadd.f32 %v3804_v46, %v3803_v56  ;;  %v9585_v56 = vld [vmem:[#allocation14 + $0x50] ss:$8 sps:$4 sm:$0xff]   ;;  %v9593_v46 = vld [vmem:[#allocation14 + $0x44] ss:$8 sps:$4 sm:$0xff]  }
 0xad1   :  { %v3806_v30 = vrot.slane %v3805_v40, 2 }
 0xad3   :  { %v3807_v55 = vadd.f32 %v3806_v30, %v3805_v40  ;;  %v9591_v40 = vld [vmem:[#allocation14 + $0x40] ss:$8 sps:$4 sm:$0xff]   ;;  %v9599_v30 = vld [vmem:[#allocation14 + $0x34] ss:$8 sps:$4 sm:$0xff]  }
 0xad5   :  { %v3808_v34 = vrot.slane %v3807_v55, 1 }
 0xad7   :  { %v3809_v16 = vadd.f32 %v3808_v34, %v3807_v55  ;;  %v9597_v55 = vld [vmem:[#allocation14 + $0x30] ss:$8 sps:$4 sm:$0xff]   ;;  %v9605_v34 = vld [vmem:[#allocation14 + $0x24] ss:$8 sps:$4 sm:$0xff]  }
 0xad9   :  { %10327 = vrcp.f32 %v3809_v16  ;;  %v9603_v16 = vld [vmem:[#allocation14 + $0x20] ss:$8 sps:$4 sm:$0xff]  }
 0xae6   :  { %v10328_v39 = vpop.eup %10327 }
 0xae7   :  { %v3811_v12 = vmul.f32 %v10328_v39, %v10326_v60  ;;  %v9587_v60 = vld [vmem:[#allocation14 + $0x54] ss:$8 sps:$4 sm:$0xff]  }
 0xae8   :  { %5710 = vmatprep.subr.bf16.mxu0 %v9587_v60  ;;  %v9611_v39 = vld [vmem:[#allocation14 + $0x14] ss:$8 sps:$4 sm:$0xff]  }
 0xae9   :  { %v3812_v8 = vpack.c.bf16 %v3811_v12, %v3811_v12  ;;  %5711 = vmatpush1.bf16.msra.mxu0 %v9585_v56  ;;  %v9609_v12 = vld [vmem:[#allocation14 + $0x10] ss:$8 sps:$4 sm:$0xff]   ;;  %v9626_v60 = vld [vmem:[#allocation14 + $0x1f4] ss:$8 sps:$4 sm:$0xff]  }
 0xaea   :  { %5712 = vmatprep.subr.bf16.mxu0 %v9593_v46  ;;  %v9624_v56 = vld [vmem:[#allocation14 + $0x1f0] ss:$8 sps:$4 sm:$0xff]   ;;  %v9632_v46 = vld [vmem:[#allocation14 + $0x1e4] ss:$8 sps:$4 sm:$0xff]  }
 0xaeb   :  { %8230 = vmatmul.mubr.msk.bf16.vlgmr.msra.gmra.mxu1 %vm3792_vm6, %v3812_v8  ;;  %v9615_v8 = vld [vmem:[#allocation14] ss:$8 sps:$4 sm:$0xff]  }
 0xaec   :  { %4072 = vmatpush1.bf16.msra.mxu1 %v9525_v29  ;;  %v9617_v29 = vld [vmem:[#allocation14 + $0x4] ss:$8 sps:$4 sm:$0xff]  }
 0xaed   :  { %4073 = vmatprep.subr.bf16.mxu1 %v9530_v28  ;;  %5713 = vmatpush1.bf16.msra.mxu0 %v9591_v40  ;;  %v9623_v28 = vld [vmem:[#allocation14 + $0xf4] ss:$8 sps:$4 sm:$0xff]   ;;  %v9630_v40 = vld [vmem:[#allocation14 + $0x1e0] ss:$8 sps:$4 sm:$0xff]  }
 0xaee   :  { %5714 = vmatprep.subr.bf16.mxu0 %v9599_v30  ;;  %v9638_v30 = vld [vmem:[#allocation14 + $0x1d4] ss:$8 sps:$4 sm:$0xff]  }
 0xaf0   :  { %4074 = vmatpush1.bf16.msra.mxu1 %v9528_v0  ;;  %v9621_v0 = vld [vmem:[#allocation14 + $0xf0] ss:$8 sps:$4 sm:$0xff]  }
 0xaf1   :  { %4075 = vmatprep.subr.bf16.mxu1 %v9533_v7  ;;  %5715 = vmatpush1.bf16.msra.mxu0 %v9597_v55  ;;  %v9629_v7 = vld [vmem:[#allocation14 + $0xe4] ss:$8 sps:$4 sm:$0xff]   ;;  %v9636_v55 = vld [vmem:[#allocation14 + $0x1d0] ss:$8 sps:$4 sm:$0xff]  }
 0xaf2   :  { %5716 = vmatprep.subr.bf16.mxu0 %v9605_v34  ;;  %v9644_v34 = vld [vmem:[#allocation14 + $0x1c4] ss:$8 sps:$4 sm:$0xff]  }
 0xaf4   :  { %4076 = vmatpush1.bf16.msra.mxu1 %v9531_v25  ;;  %v9627_v25 = vld [vmem:[#allocation14 + $0xe0] ss:$8 sps:$4 sm:$0xff]  }
 0xaf5   :  { %4077 = vmatprep.subr.bf16.mxu1 %v9536_v10  ;;  %5717 = vmatpush1.bf16.msra.mxu0 %v9603_v16  ;;  %v9635_v10 = vld [vmem:[#allocation14 + $0xd4] ss:$8 sps:$4 sm:$0xff]   ;;  %v9642_v16 = vld [vmem:[#allocation14 + $0x1c0] ss:$8 sps:$4 sm:$0xff]  }
 0xaf6   :  { %5718 = vmatprep.subr.bf16.mxu0 %v9611_v39  ;;  %v9650_v39 = vld [vmem:[#allocation14 + $0x1b4] ss:$8 sps:$4 sm:$0xff]  }
 0xaf8   :  { %4078 = vmatpush1.bf16.msra.mxu1 %v9534_v61  ;;  %v9633_v61 = vld [vmem:[#allocation14 + $0xd0] ss:$8 sps:$4 sm:$0xff]  }
 0xaf9   :  { %4079 = vmatprep.subr.bf16.mxu1 %v9539_v59  ;;  %5719 = vmatpush1.bf16.msra.mxu0 %v9609_v12  ;;  %v9641_v59 = vld [vmem:[#allocation14 + $0xc4] ss:$8 sps:$4 sm:$0xff]   ;;  %v9648_v12 = vld [vmem:[#allocation14 + $0x1b0] ss:$8 sps:$4 sm:$0xff]  }
 0xafa   :  { %5720 = vmatprep.subr.bf16.mxu0 %v9617_v29  ;;  %v9656_v29 = vld [vmem:[#allocation14 + $0x1a4] ss:$8 sps:$4 sm:$0xff]  }
 0xafc   :  { %4080 = vmatpush1.bf16.msra.mxu1 %v9537_v62  ;;  %v9639_v62 = vld [vmem:[#allocation14 + $0xc0] ss:$8 sps:$4 sm:$0xff]  }
 0xafd   :  { %4081 = vmatprep.subr.bf16.mxu1 %v9542_v63  ;;  %5721 = vmatpush1.bf16.msra.mxu0 %v9615_v8  ;;  %v9647_v63 = vld [vmem:[#allocation14 + $0xb4] ss:$8 sps:$4 sm:$0xff]   ;;  %v9654_v8 = vld [vmem:[#allocation14 + $0x1a0] ss:$8 sps:$4 sm:$0xff]  }
 0xafe   :  { %5722 = vmatprep.subr.bf16.mxu0 %v9623_v28  ;;  %v9662_v28 = vld [vmem:[#allocation14 + $0x194] ss:$8 sps:$4 sm:$0xff]  }
 0xb00   :  { %4082 = vmatpush1.bf16.msra.mxu1 %v9540_v54  ;;  %v9645_v54 = vld [vmem:[#allocation14 + $0xb0] ss:$8 sps:$4 sm:$0xff]  }
 0xb01   :  { %4083 = vmatprep.subr.bf16.mxu1 %v9545_v3  ;;  %5723 = vmatpush2.bf16.msra.mxu0 %v9621_v0  ;;  %v9653_v3 = vld [vmem:[#allocation14 + $0xa4] ss:$8 sps:$4 sm:$0xff]   ;;  %v9660_v0 = vld [vmem:[#allocation14 + $0x190] ss:$8 sps:$4 sm:$0xff]  }
 0xb02   :  { %5724 = vmatprep.subr.bf16.mxu0 %v9629_v7  ;;  %v9665_v7 = vld [vmem:[#allocation14 + $0x84] ss:$8 sps:$4 sm:$0xff]  }
 0xb04   :  { %4084 = vmatpush1.bf16.msra.mxu1 %v9543_v32  ;;  %v9651_v32 = vld [vmem:[#allocation14 + $0xa0] ss:$8 sps:$4 sm:$0xff]  }
 0xb05   :  { %4085 = vmatprep.subr.bf16.mxu1 %v9548_v57  ;;  %5725 = vmatpush2.bf16.msra.mxu0 %v9627_v25  ;;  %v9659_v57 = vld [vmem:[#allocation14 + $0x94] ss:$8 sps:$4 sm:$0xff]   ;;  %v9663_v25 = vld [vmem:[#allocation14 + $0x80] ss:$8 sps:$4 sm:$0xff]  }
 0xb06   :  { %5726 = vmatprep.subr.bf16.mxu0 %v9635_v10  ;;  %v9666_v10 = vld [vmem:[#allocation14 + $0x180] ss:$8 sps:$4 sm:$0xff]  }
 0xb08   :  { %4086 = vmatpush1.bf16.msra.mxu1 %v9546_v51  ;;  %v9657_v51 = vld [vmem:[#allocation14 + $0x90] ss:$8 sps:$4 sm:$0xff]  }
 0xb09   :  { %4087 = vmatprep.subr.bf16.mxu1 %v9551_v27  ;;  %5727 = vmatpush2.bf16.msra.mxu0 %v9633_v61  ;;  %v9668_v61 = vld [vmem:[#allocation14 + $0x184] ss:$8 sps:$4 sm:$0xff]  }
 0xb0a   :  { %5728 = vmatprep.subr.bf16.mxu0 %v9641_v59  ;;  %v9671_v59 = vld [vmem:[#allocation14 + $0x274] ss:$8 sps:$4 sm:$0xff]  }
 0xb0c   :  { %4088 = vmatpush2.bf16.msra.mxu1 %v9549_v11 }
 0xb0d   :  { %4089 = vmatprep.subr.bf16.mxu1 %v9554_v45  ;;  %5729 = vmatpush2.bf16.msra.mxu0 %v9639_v62  ;;  %v9674_v62 = vld [vmem:[#allocation14 + $0x374] ss:$8 sps:$4 sm:$0xff]  }
 0xb0e   :  { %5730 = vmatprep.subr.bf16.mxu0 %v9647_v63  ;;  %v3899_v63 = vld [vmem:[#allocation13] sm:$0x3] }
 0xb10   :  { %4090 = vmatpush2.bf16.msra.mxu1 %v9552_v2  ;;  %v9576_v2 = vld [vmem:[#allocation14 + $0x170] ss:$8 sps:$4 sm:$0xff]  }
 0xb11   :  { %4091 = vmatprep.subr.bf16.mxu1 %v9557_v36  ;;  %5731 = vmatpush2.bf16.msra.mxu0 %v9645_v54  ;;  %v3904_v54 = vrot.slane %v3899_v63, %v14316_v1 }
 0xb12   :  { %5732 = vmatprep.subr.bf16.mxu0 %v9653_v3  ;;  %v3908_v3 = vrot.slane %v3899_v63, %v14317_v13  ;;  %v9711_v63 = vld [vmem:[#allocation14 + $0x200] ss:$8 sps:$4 sm:$0xff]  }
 0xb14   :  { %4092 = vmatpush2.bf16.msra.mxu1 %v9555_v53 }
 0xb15   :  { %4093 = vmatprep.subr.bf16.mxu1 %v9560_v43  ;;  %5733 = vmatpush2.bf16.msra.mxu0 %v9651_v32  ;;  %v9584_v43 = vld [vmem:[#allocation14 + $0x164] ss:$8 sps:$4 sm:$0xff]  }
 0xb16   :  { %5734 = vmatprep.subr.bf16.mxu0 %v9659_v57 }
 0xb18   :  { %4094 = vmatpush2.bf16.msra.mxu1 %v9558_v19 }
 0xb19   :  { %4095 = vmatprep.subr.bf16.mxu1 %v9563_v37  ;;  %5735 = vmatpush2.bf16.msra.mxu0 %v9657_v51  ;;  %v9582_v37 = vld [vmem:[#allocation14 + $0x160] ss:$8 sps:$4 sm:$0xff]  }
 0xb1a   :  { %5736 = vmatprep.subr.bf16.mxu0 %v9665_v7  ;;  %v9702_v7 = vld [vmem:[#allocation14 + $0x320] ss:$8 sps:$4 sm:$0xff]  }
 0xb1c   :  { %4096 = vmatpush2.bf16.msra.mxu1 %v9561_v4  ;;  %v9590_v4 = vld [vmem:[#allocation14 + $0x154] ss:$8 sps:$4 sm:$0xff]  }
 0xb1d   :  { %4097 = vmatprep.subr.bf16.mxu1 %v9566_v38  ;;  %v9588_v38 = vld [vmem:[#allocation14 + $0x150] ss:$8 sps:$4 sm:$0xff]   ;;  %5737 = vmatpush2.bf16.msra.mxu0 %v9663_v25  ;;  %v9710_v25 = vld [vmem:[#allocation14 + $0x314] ss:$8 sps:$4 sm:$0xff]  }
 0xb1e   :  { %5788 = vmatprep.subr.bf16.mxu0 %v9671_v59  ;;  %v9708_v59 = vld [vmem:[#allocation14 + $0x310] ss:$8 sps:$4 sm:$0xff]  }
 0xb20   :  { %4098 = vmatpush2.bf16.msra.mxu1 %v9564_v44  ;;  %v9596_v44 = vld [vmem:[#allocation14 + $0x144] ss:$8 sps:$4 sm:$0xff]  }
 0xb21   :  { %4099 = vmatprep.subr.bf16.mxu1 %v9569_v18  ;;  %v9594_v18 = vld [vmem:[#allocation14 + $0x140] ss:$8 sps:$4 sm:$0xff]  }
 0xb24   :  { %4100 = vmatpush2.bf16.msra.mxu1 %v9567_v15  ;;  %v9602_v15 = vld [vmem:[#allocation14 + $0x134] ss:$8 sps:$4 sm:$0xff]  }
 0xb25   :  { %4101 = vmatprep.subr.bf16.mxu1 %v9572_v9  ;;  %v9600_v9 = vld [vmem:[#allocation14 + $0x130] ss:$8 sps:$4 sm:$0xff]  }
 0xb28   :  { %4102 = vmatpush2.bf16.msra.mxu1 %v9570_v52  ;;  %v9608_v52 = vld [vmem:[#allocation14 + $0x124] ss:$8 sps:$4 sm:$0xff]  }
 0xb29   :  { %5747 = vmatprep.subr.bf16.mxu1 %v9578_v47  ;;  %v9612_v47 = vld [vmem:[#allocation14 + $0x110] ss:$8 sps:$4 sm:$0xff]  }
 0xbab   :  { %v3858_v27 = vpop.f32.mrf.mxu1 }
 0xbac   :  { %v3865_v36 = vpack.c.bf16 %v3858_v27, %v3858_v27 }
 0xbad   :  { %v3860_v11 = vpop.f32.mrf.mxu1 }
 0xbae   :  { %v3866_v45 = vpack.c.bf16 %v3860_v11, %v3860_v11 }
 0xbaf   :  { %v3862_v53 = vpop.f32.mrf.mxu1 }
 0xbb0   :  { %4103 = vmatprep.mubr.bf16.mxu1 %v3866_v45 }
 0xbb1   :  { %v3863_v19 = vpop.f32.mrf.mxu1  ;;  %4104 = vmatmul.mubr.bf16.vlgmr.msra.gmra.mxu1 %v3865_v36  ;;  %v9669_v36 = vld [vmem:[#allocation14 + $0x270] ss:$8 sps:$4 sm:$0xff]  }
 0xbb2   :  { %5748 = vmatpush1.bf16.msra.mxu1 %v9576_v2 }
 0xbb3   :  { %5749 = vmatprep.subr.bf16.mxu1 %v9584_v43 }
 0xbb6   :  { %5750 = vmatpush1.bf16.msra.mxu1 %v9582_v37 }
 0xbb7   :  { %5751 = vmatprep.subr.bf16.mxu1 %v9590_v4 }
 0xbba   :  { %5752 = vmatpush1.bf16.msra.mxu1 %v9588_v38 }
 0xbbb   :  { %5753 = vmatprep.subr.bf16.mxu1 %v9596_v44 }
 0xbbe   :  { %5754 = vmatpush1.bf16.msra.mxu1 %v9594_v18  ;;  %v9672_v18 = vld [vmem:[#allocation14 + $0x370] ss:$8 sps:$4 sm:$0xff]  }
 0xbbf   :  { %5755 = vmatprep.subr.bf16.mxu1 %v9602_v15  ;;  %v9677_v15 = vld [vmem:[#allocation14 + $0x264] ss:$8 sps:$4 sm:$0xff]  }
 0xbc2   :  { %5756 = vmatpush1.bf16.msra.mxu1 %v9600_v9 }
 0xbc3   :  { %5757 = vmatprep.subr.bf16.mxu1 %v9608_v52  ;;  %v9680_v52 = vld [vmem:[#allocation14 + $0x364] ss:$8 sps:$4 sm:$0xff]  }
 0xbc6   :  { %5758 = vmatpush1.bf16.msra.mxu1 %v9606_v41  ;;  %v9675_v41 = vld [vmem:[#allocation14 + $0x260] ss:$8 sps:$4 sm:$0xff]  }
 0xbc7   :  { %5759 = vmatprep.subr.bf16.mxu1 %v9614_v14 }
 0xbca   :  { %5760 = vmatpush1.bf16.msra.mxu1 %v9612_v47  ;;  %v9683_v47 = vld [vmem:[#allocation14 + $0x254] ss:$8 sps:$4 sm:$0xff]  }
 0xbcb   :  { %5761 = vmatprep.subr.bf16.mxu1 %v9620_v23  ;;  %v9678_v23 = vld [vmem:[#allocation14 + $0x360] ss:$8 sps:$4 sm:$0xff]  }
 0xbce   :  { %5762 = vmatpush1.bf16.msra.mxu1 %v9618_v48  ;;  %v9686_v48 = vld [vmem:[#allocation14 + $0x354] ss:$8 sps:$4 sm:$0xff]  }
 0xbcf   :  { %5763 = vmatprep.subr.bf16.mxu1 %v9626_v60  ;;  %v9681_v60 = vld [vmem:[#allocation14 + $0x250] ss:$8 sps:$4 sm:$0xff]  }
 0xbd2   :  { %5764 = vmatpush2.bf16.msra.mxu1 %v9624_v56  ;;  %v9689_v56 = vld [vmem:[#allocation14 + $0x244] ss:$8 sps:$4 sm:$0xff]  }
 0xbd3   :  { %5765 = vmatprep.subr.bf16.mxu1 %v9632_v46  ;;  %v9684_v46 = vld [vmem:[#allocation14 + $0x350] ss:$8 sps:$4 sm:$0xff]  }
 0xbd6   :  { %5766 = vmatpush2.bf16.msra.mxu1 %v9630_v40  ;;  %v9692_v40 = vld [vmem:[#allocation14 + $0x344] ss:$8 sps:$4 sm:$0xff]  }
 0xbd7   :  { %5767 = vmatprep.subr.bf16.mxu1 %v9638_v30  ;;  %v9687_v30 = vld [vmem:[#allocation14 + $0x240] ss:$8 sps:$4 sm:$0xff]  }
 0xbda   :  { %5768 = vmatpush2.bf16.msra.mxu1 %v9636_v55  ;;  %v9695_v55 = vld [vmem:[#allocation14 + $0x234] ss:$8 sps:$4 sm:$0xff]  }
 0xbdb   :  { %5769 = vmatprep.subr.bf16.mxu1 %v9644_v34  ;;  %v9690_v34 = vld [vmem:[#allocation14 + $0x340] ss:$8 sps:$4 sm:$0xff]  }
 0xbde   :  { %5770 = vmatpush2.bf16.msra.mxu1 %v9642_v16  ;;  %v9698_v16 = vld [vmem:[#allocation14 + $0x334] ss:$8 sps:$4 sm:$0xff]  }
 0xbdf   :  { %5771 = vmatprep.subr.bf16.mxu1 %v9650_v39  ;;  %v9693_v39 = vld [vmem:[#allocation14 + $0x230] ss:$8 sps:$4 sm:$0xff]  }
 0xbe2   :  { %5772 = vmatpush2.bf16.msra.mxu1 %v9648_v12  ;;  %v9701_v12 = vld [vmem:[#allocation14 + $0x224] ss:$8 sps:$4 sm:$0xff]  }
 0xbe3   :  { %5773 = vmatprep.subr.bf16.mxu1 %v9656_v29  ;;  %v9696_v29 = vld [vmem:[#allocation14 + $0x330] ss:$8 sps:$4 sm:$0xff]  }
 0xbe6   :  { %5774 = vmatpush2.bf16.msra.mxu1 %v9654_v8  ;;  %v9704_v8 = vld [vmem:[#allocation14 + $0x324] ss:$8 sps:$4 sm:$0xff]  }
 0xbe7   :  { %5775 = vmatprep.subr.bf16.mxu1 %v9662_v28  ;;  %v9699_v28 = vld [vmem:[#allocation14 + $0x220] ss:$8 sps:$4 sm:$0xff]  }
 0xbea   :  { %5776 = vmatpush2.bf16.msra.mxu1 %v9660_v0  ;;  %v9707_v0 = vld [vmem:[#allocation14 + $0x214] ss:$8 sps:$4 sm:$0xff]  }
 0xbeb   :  { %5777 = vmatprep.subr.bf16.mxu1 %v9668_v61  ;;  %v9713_v61 = vld [vmem:[#allocation14 + $0x204] ss:$8 sps:$4 sm:$0xff]  }
 0xbee   :  { %5778 = vmatpush2.bf16.msra.mxu1 %v9666_v10  ;;  %v9705_v10 = vld [vmem:[#allocation14 + $0x210] ss:$8 sps:$4 sm:$0xff]  }
 0xbef   :  { %5829 = vmatprep.subr.bf16.mxu1 %v9674_v62  ;;  %v9716_v62 = vld [vmem:[#allocation14 + $0x304] ss:$8 sps:$4 sm:$0xff]  }
 0xc71   :  { %v4105_v32 = vpop.f32.mrf.mxu1 }
 0xc72   :  { %v13355_v57 = vadd.f32 %v4105_v32, %v3904_v54  ;;  %v9719_v54 = vld [vmem:[#allocation14 + $0x2f4] ss:$8 sps:$4 sm:$0xff]  }
 0xc73   :  { %v4107_v51 = vpop.f32.mrf.mxu1  ;;  %v9722_v32 = vld [vmem:[#allocation14 + $0x3f4] ss:$8 sps:$4 sm:$0xff]  }
 0xc74   :  { %v13357_v27 = vadd.f32 %v4107_v51, %v3908_v3  ;;  %v4114_v45 = vrot.slane %v13355_v57, 1  ;;  %v4142_v37 = vpack.c.bf16 %v13355_v57, %v13355_v57  ;;  %v9714_v3 = vld [vmem:[#allocation14 + $0x300] ss:$8 sps:$4 sm:$0xff]   ;;  %v9717_v51 = vld [vmem:[#allocation14 + $0x2f0] ss:$8 sps:$4 sm:$0xff]  }
 0xc75   :  { %v4109_v11 = vpop.f32.mrf.mxu1 }
 0xc76   :  { %v4143_v2 = vpack.c.bf16 %v13357_v27, %v13357_v27  ;;  %v4115_v53 = vrot.slane %v13357_v27, 1  ;;  %v4119_v43 = vrot.slane %v13357_v27, 2  ;;  %v4123_v4 = vrot.slane %v13357_v27, 3  ;;  %v9725_v11 = vld [vmem:[#allocation14 + $0x2e4] ss:$8 sps:$4 sm:$0xff]  }
 0xc77   :  { %v4110_v19 = vpop.f32.mrf.mxu1  ;;  %v4144_v9 = vpack.c.bf16 %v4114_v45, %v4114_v45  ;;  %v9720_v45 = vld [vmem:[#allocation14 + $0x3f0] ss:$8 sps:$4 sm:$0xff]  }
 0xc78   :  { %5738 = vmatprep.mubr.bf16.mxu0 %v4143_v2  ;;  %v4145_v38 = vpack.c.bf16 %v4115_v53, %v4115_v53  ;;  %v4147_v44 = vpack.c.bf16 %v4119_v43, %v4119_v43  ;;  %v4149_v14 = vpack.c.bf16 %v4123_v4, %v4123_v4  ;;  %v9728_v2 = vld [vmem:[#allocation14 + $0x3e4] ss:$8 sps:$4 sm:$0xff]   ;;  %v9731_v53 = vld [vmem:[#allocation14 + $0x2d4] ss:$8 sps:$4 sm:$0xff]   ;;  %v9726_v43 = vld [vmem:[#allocation14 + $0x3e0] ss:$8 sps:$4 sm:$0xff]  }
 0xc79   :  { %5739 = vmatmul.mubr.bf16.vlgmr.msra.gmra.mxu0 %v4142_v37  ;;  %v9734_v19 = vld [vmem:[#allocation14 + $0x3d4] ss:$8 sps:$4 sm:$0xff]   ;;  %v9729_v37 = vld [vmem:[#allocation14 + $0x2d0] ss:$8 sps:$4 sm:$0xff]   ;;  %v9737_v4 = vld [vmem:[#allocation14 + $0x2c4] ss:$8 sps:$4 sm:$0xff]  }
 0xc7a   :  { %5789 = vmatpush1.bf16.msra.mxu0 %v9669_v36  ;;  %5779 = vmatprep.mubr.bf16.mxu1 %v4145_v38  ;;  %v9723_v36 = vld [vmem:[#allocation14 + $0x2e0] ss:$8 sps:$4 sm:$0xff]   ;;  %v9732_v38 = vld [vmem:[#allocation14 + $0x3d0] ss:$8 sps:$4 sm:$0xff]  }
 0xc7b   :  { %5820 = vmatprep.mubr.bf16.mxu0 %v4147_v44  ;;  %5780 = vmatmul.mubr.bf16.vlgmr.msra.gmra.mxu1 %v4144_v9  ;;  %v9740_v44 = vld [vmem:[#allocation14 + $0x3c4] ss:$8 sps:$4 sm:$0xff]   ;;  %v9738_v9 = vld [vmem:[#allocation14 + $0x3c0] ss:$8 sps:$4 sm:$0xff]  }
 0xc7c   :  { %5830 = vmatpush1.bf16.msra.mxu1 %v9672_v18  ;;  %5790 = vmatprep.subr.bf16.mxu0 %v9677_v15  ;;  %v9735_v18 = vld [vmem:[#allocation14 + $0x2c0] ss:$8 sps:$4 sm:$0xff]   ;;  %v9743_v15 = vld [vmem:[#allocation14 + $0x2b4] ss:$8 sps:$4 sm:$0xff]  }
 0xc7d   :  { %5861 = vmatprep.mubr.bf16.mxu1 %v4149_v14  ;;  %5831 = vmatprep.subr.bf16.mxu1 %v9680_v52  ;;  %v9746_v52 = vld [vmem:[#allocation14 + $0x3b4] ss:$8 sps:$4 sm:$0xff]   ;;  %v9749_v14 = vld [vmem:[#allocation14 + $0x2a4] ss:$8 sps:$4 sm:$0xff]  }
 0xc7e   :  { %5791 = vmatpush1.bf16.msra.mxu0 %v9675_v41  ;;  %v9741_v41 = vld [vmem:[#allocation14 + $0x2b0] ss:$8 sps:$4 sm:$0xff]  }
 0xc7f   :  { %5792 = vmatprep.subr.bf16.mxu0 %v9683_v47  ;;  %v9744_v47 = vld [vmem:[#allocation14 + $0x3b0] ss:$8 sps:$4 sm:$0xff]  }
 0xc80   :  { %5832 = vmatpush1.bf16.msra.mxu1 %v9678_v23  ;;  %v9752_v23 = vld [vmem:[#allocation14 + $0x3a4] ss:$8 sps:$4 sm:$0xff]  }
 0xc81   :  { %5833 = vmatprep.subr.bf16.mxu1 %v9686_v48  ;;  %v9747_v48 = vld [vmem:[#allocation14 + $0x2a0] ss:$8 sps:$4 sm:$0xff]  }
 0xc82   :  { %5793 = vmatpush1.bf16.msra.mxu0 %v9681_v60  ;;  %v9755_v60 = vld [vmem:[#allocation14 + $0x294] ss:$8 sps:$4 sm:$0xff]  }
 0xc83   :  { %5794 = vmatprep.subr.bf16.mxu0 %v9689_v56  ;;  %v9750_v56 = vld [vmem:[#allocation14 + $0x3a0] ss:$8 sps:$4 sm:$0xff]  }
 0xc84   :  { %5834 = vmatpush1.bf16.msra.mxu1 %v9684_v46  ;;  %v9758_v46 = vld [vmem:[#allocation14 + $0x394] ss:$8 sps:$4 sm:$0xff]  }
 0xc85   :  { %5835 = vmatprep.subr.bf16.mxu1 %v9692_v40  ;;  %v9753_v40 = vld [vmem:[#allocation14 + $0x290] ss:$8 sps:$4 sm:$0xff]  }
 0xc86   :  { %5795 = vmatpush1.bf16.msra.mxu0 %v9687_v30  ;;  %v9761_v30 = vld [vmem:[#allocation14 + $0x284] ss:$8 sps:$4 sm:$0xff]  }
 0xc87   :  { %5796 = vmatprep.subr.bf16.mxu0 %v9695_v55  ;;  %v9756_v55 = vld [vmem:[#allocation14 + $0x390] ss:$8 sps:$4 sm:$0xff]  }
 0xc88   :  { %5836 = vmatpush1.bf16.msra.mxu1 %v9690_v34  ;;  %v9764_v34 = vld [vmem:[#allocation14 + $0x384] ss:$8 sps:$4 sm:$0xff]  }
 0xc89   :  { %5837 = vmatprep.subr.bf16.mxu1 %v9698_v16  ;;  %v9759_v16 = vld [vmem:[#allocation14 + $0x280] ss:$8 sps:$4 sm:$0xff]  }
 0xc8a   :  { %5797 = vmatpush1.bf16.msra.mxu0 %v9693_v39  ;;  %v4118_v39 = vrot.slane %v13355_v57, 2 }
 0xc8b   :  { %5798 = vmatprep.subr.bf16.mxu0 %v9701_v12  ;;  %v9767_v12 = vld [vmem:[#allocation14 + $0x474] ss:$8 sps:$4 sm:$0xff]  }
 0xc8c   :  { %5838 = vmatpush1.bf16.msra.mxu1 %v9696_v29  ;;  %v9762_v29 = vld [vmem:[#allocation14 + $0x380] ss:$8 sps:$4 sm:$0xff]  }
 0xc8d   :  { %5839 = vmatprep.subr.bf16.mxu1 %v9704_v8  ;;  %v4127_v8 = vrot.slane %v13357_v27, 4 }
 0xc8e   :  { %5799 = vmatpush1.bf16.msra.mxu0 %v9699_v28  ;;  %v4122_v28 = vrot.slane %v13355_v57, 3 }
 0xc8f   :  { %5800 = vmatprep.subr.bf16.mxu0 %v9707_v0  ;;  %v9770_v0 = vld [vmem:[#allocation14 + $0x574] ss:$8 sps:$4 sm:$0xff]  }
 0xc90   :  { %5840 = vmatpush1.bf16.msra.mxu1 %v9702_v7  ;;  %v9765_v7 = vld [vmem:[#allocation14 + $0x470] ss:$8 sps:$4 sm:$0xff]  }
 0xc91   :  { %5841 = vmatprep.subr.bf16.mxu1 %v9710_v25  ;;  %v4131_v25 = vrot.slane %v13357_v27, 5 }
 0xc92   :  { %5801 = vmatpush1.bf16.msra.mxu0 %v9705_v10  ;;  %v4146_v10 = vpack.c.bf16 %v4118_v39, %v4118_v39  ;;  %v9816_v39 = vld [vmem:[#allocation14 + $0x5f0] ss:$8 sps:$4 sm:$0xff]  }
 0xc93   :  { %5802 = vmatprep.subr.bf16.mxu0 %v9713_v61  ;;  %v9773_v61 = vld [vmem:[#allocation14 + $0x464] ss:$8 sps:$4 sm:$0xff]  }
 0xc94   :  { %5842 = vmatpush1.bf16.msra.mxu1 %v9708_v59  ;;  %v4151_v59 = vpack.c.bf16 %v4127_v8, %v4127_v8  ;;  %v9827_v8 = vld [vmem:[#allocation14 + $0x4d4] ss:$8 sps:$4 sm:$0xff]  }
 0xc95   :  { %5843 = vmatprep.subr.bf16.mxu1 %v9716_v62  ;;  %v9768_v62 = vld [vmem:[#allocation14 + $0x570] ss:$8 sps:$4 sm:$0xff]  }
 0xc96   :  { %5803 = vmatpush1.bf16.msra.mxu0 %v9711_v63  ;;  %v4148_v63 = vpack.c.bf16 %v4122_v28, %v4122_v28  ;;  %v9822_v28 = vld [vmem:[#allocation14 + $0x5e0] ss:$8 sps:$4 sm:$0xff]  }
 0xc97   :  { %5804 = vmatprep.subr.bf16.mxu0 %v9719_v54  ;;  %v9776_v54 = vld [vmem:[#allocation14 + $0x564] ss:$8 sps:$4 sm:$0xff]  }
 0xc98   :  { %5844 = vmatpush1.bf16.msra.mxu1 %v9714_v3  ;;  %v4153_v3 = vpack.c.bf16 %v4131_v25, %v4131_v25  ;;  %v9833_v25 = vld [vmem:[#allocation14 + $0x4c4] ss:$8 sps:$4 sm:$0xff]  }
 0xc99   :  { %5845 = vmatprep.subr.bf16.mxu1 %v9722_v32  ;;  %v9771_v32 = vld [vmem:[#allocation14 + $0x460] ss:$8 sps:$4 sm:$0xff]  }
 0xc9a   :  { %5805 = vmatpush2.bf16.msra.mxu0 %v9717_v51  ;;  %v9779_v51 = vld [vmem:[#allocation14 + $0x454] ss:$8 sps:$4 sm:$0xff]  }
 0xc9b   :  { %5806 = vmatprep.subr.bf16.mxu0 %v9725_v11  ;;  %v9774_v11 = vld [vmem:[#allocation14 + $0x560] ss:$8 sps:$4 sm:$0xff]  }
 0xc9c   :  { %5846 = vmatpush2.bf16.msra.mxu1 %v9720_v45  ;;  %v9782_v45 = vld [vmem:[#allocation14 + $0x554] ss:$8 sps:$4 sm:$0xff]  }
 0xc9d   :  { %5847 = vmatprep.subr.bf16.mxu1 %v9728_v2  ;;  %v9777_v2 = vld [vmem:[#allocation14 + $0x450] ss:$8 sps:$4 sm:$0xff]  }
 0xc9e   :  { %5807 = vmatpush2.bf16.msra.mxu0 %v9723_v36  ;;  %v9785_v36 = vld [vmem:[#allocation14 + $0x444] ss:$8 sps:$4 sm:$0xff]  }
 0xc9f   :  { %5808 = vmatprep.subr.bf16.mxu0 %v9731_v53  ;;  %v9780_v53 = vld [vmem:[#allocation14 + $0x550] ss:$8 sps:$4 sm:$0xff]  }
 0xca0   :  { %5848 = vmatpush2.bf16.msra.mxu1 %v9726_v43  ;;  %v9788_v43 = vld [vmem:[#allocation14 + $0x544] ss:$8 sps:$4 sm:$0xff]  }
 0xca1   :  { %5849 = vmatprep.subr.bf16.mxu1 %v9734_v19  ;;  %v9783_v19 = vld [vmem:[#allocation14 + $0x440] ss:$8 sps:$4 sm:$0xff]  }
 0xca2   :  { %5809 = vmatpush2.bf16.msra.mxu0 %v9729_v37  ;;  %v9791_v37 = vld [vmem:[#allocation14 + $0x434] ss:$8 sps:$4 sm:$0xff]  }
 0xca3   :  { %5810 = vmatprep.subr.bf16.mxu0 %v9737_v4  ;;  %v9786_v4 = vld [vmem:[#allocation14 + $0x540] ss:$8 sps:$4 sm:$0xff]  }
 0xca4   :  { %5850 = vmatpush2.bf16.msra.mxu1 %v9732_v38  ;;  %v9794_v38 = vld [vmem:[#allocation14 + $0x534] ss:$8 sps:$4 sm:$0xff]  }
 0xca5   :  { %5851 = vmatprep.subr.bf16.mxu1 %v9740_v44  ;;  %v9789_v44 = vld [vmem:[#allocation14 + $0x430] ss:$8 sps:$4 sm:$0xff]  }
 0xca6   :  { %5811 = vmatpush2.bf16.msra.mxu0 %v9735_v18  ;;  %v9797_v18 = vld [vmem:[#allocation14 + $0x424] ss:$8 sps:$4 sm:$0xff]  }
 0xca7   :  { %5812 = vmatprep.subr.bf16.mxu0 %v9743_v15  ;;  %v9792_v15 = vld [vmem:[#allocation14 + $0x530] ss:$8 sps:$4 sm:$0xff]  }
 0xca8   :  { %5852 = vmatpush2.bf16.msra.mxu1 %v9738_v9  ;;  %v9800_v9 = vld [vmem:[#allocation14 + $0x524] ss:$8 sps:$4 sm:$0xff]  }
 0xca9   :  { %5853 = vmatprep.subr.bf16.mxu1 %v9746_v52  ;;  %v9795_v52 = vld [vmem:[#allocation14 + $0x420] ss:$8 sps:$4 sm:$0xff]  }
 0xcaa   :  { %5813 = vmatpush2.bf16.msra.mxu0 %v9741_v41  ;;  %v9803_v41 = vld [vmem:[#allocation14 + $0x414] ss:$8 sps:$4 sm:$0xff]  }
 0xcab   :  { %5814 = vmatprep.subr.bf16.mxu0 %v9749_v14  ;;  %v9798_v14 = vld [vmem:[#allocation14 + $0x520] ss:$8 sps:$4 sm:$0xff]  }
 0xcac   :  { %5854 = vmatpush2.bf16.msra.mxu1 %v9744_v47  ;;  %v9806_v47 = vld [vmem:[#allocation14 + $0x514] ss:$8 sps:$4 sm:$0xff]  }
 0xcad   :  { %5855 = vmatprep.subr.bf16.mxu1 %v9752_v23  ;;  %v9801_v23 = vld [vmem:[#allocation14 + $0x410] ss:$8 sps:$4 sm:$0xff]  }
 0xcae   :  { %5815 = vmatpush2.bf16.msra.mxu0 %v9747_v48  ;;  %v9809_v48 = vld [vmem:[#allocation14 + $0x404] ss:$8 sps:$4 sm:$0xff]  }
 0xcaf   :  { %5816 = vmatprep.subr.bf16.mxu0 %v9755_v60  ;;  %v9804_v60 = vld [vmem:[#allocation14 + $0x510] ss:$8 sps:$4 sm:$0xff]  }
 0xcb0   :  { %5856 = vmatpush2.bf16.msra.mxu1 %v9750_v56  ;;  %v9812_v56 = vld [vmem:[#allocation14 + $0x504] ss:$8 sps:$4 sm:$0xff]  }
 0xcb1   :  { %5857 = vmatprep.subr.bf16.mxu1 %v9758_v46  ;;  %v9807_v46 = vld [vmem:[#allocation14 + $0x400] ss:$8 sps:$4 sm:$0xff]  }
 0xcb2   :  { %5817 = vmatpush2.bf16.msra.mxu0 %v9753_v40  ;;  %v9815_v40 = vld [vmem:[#allocation14 + $0x4f4] ss:$8 sps:$4 sm:$0xff]  }
 0xcb3   :  { %5818 = vmatprep.subr.bf16.mxu0 %v9761_v30  ;;  %v9810_v30 = vld [vmem:[#allocation14 + $0x500] ss:$8 sps:$4 sm:$0xff]  }
 0xcb4   :  { %5858 = vmatpush2.bf16.msra.mxu1 %v9756_v55  ;;  %v9818_v55 = vld [vmem:[#allocation14 + $0x5f4] ss:$8 sps:$4 sm:$0xff]  }
 0xcb5   :  { %5859 = vmatprep.subr.bf16.mxu1 %v9764_v34  ;;  %v9813_v34 = vld [vmem:[#allocation14 + $0x4f0] ss:$8 sps:$4 sm:$0xff]  }
 0xcb6   :  { %5819 = vmatpush2.bf16.msra.mxu0 %v9759_v16  ;;  %v9821_v16 = vld [vmem:[#allocation14 + $0x4e4] ss:$8 sps:$4 sm:$0xff]  }
 0xcb7   :  { %5870 = vmatprep.subr.bf16.mxu0 %v9767_v12  ;;  %v9824_v12 = vld [vmem:[#allocation14 + $0x5e4] ss:$8 sps:$4 sm:$0xff]  }
 0xcb8   :  { %5860 = vmatpush2.bf16.msra.mxu1 %v9762_v29  ;;  %v9819_v29 = vld [vmem:[#allocation14 + $0x4e0] ss:$8 sps:$4 sm:$0xff]  }
 0xcb9   :  { %5821 = vmatmul.mubr.bf16.vlgmr.msra.gmra.mxu0 %v4146_v10  ;;  %5911 = vmatprep.subr.bf16.mxu1 %v9770_v0  ;;  %v9830_v0 = vld [vmem:[#allocation14 + $0x5d4] ss:$8 sps:$4 sm:$0xff]   ;;  %v9828_v10 = vld [vmem:[#allocation14 + $0x5d0] ss:$8 sps:$4 sm:$0xff]  }
 0xcba   :  { %5871 = vmatpush1.bf16.msra.mxu0 %v9765_v7  ;;  %5902 = vmatprep.mubr.bf16.mxu0 %v4151_v59  ;;  %v9825_v7 = vld [vmem:[#allocation14 + $0x4d0] ss:$8 sps:$4 sm:$0xff]   ;;  %v9831_v59 = vld [vmem:[#allocation14 + $0x4c0] ss:$8 sps:$4 sm:$0xff]  }
 0xcbb   :  { %5862 = vmatmul.mubr.bf16.vlgmr.msra.gmra.mxu1 %v4148_v63  ;;  %5872 = vmatprep.subr.bf16.mxu0 %v9773_v61  ;;  %v9836_v61 = vld [vmem:[#allocation14 + $0x5c4] ss:$8 sps:$4 sm:$0xff]   ;;  %v9834_v63 = vld [vmem:[#allocation14 + $0x5c0] ss:$8 sps:$4 sm:$0xff]  }
 0xcbc   :  { %5912 = vmatpush1.bf16.msra.mxu1 %v9768_v62  ;;  %5943 = vmatprep.mubr.bf16.mxu1 %v4153_v3  ;;  %v9839_v62 = vld [vmem:[#allocation14 + $0x4b4] ss:$8 sps:$4 sm:$0xff]   ;;  %v9837_v3 = vld [vmem:[#allocation14 + $0x4b0] ss:$8 sps:$4 sm:$0xff]  }
 0xcbd   :  { %5913 = vmatprep.subr.bf16.mxu1 %v9776_v54  ;;  %v9842_v54 = vld [vmem:[#allocation14 + $0x5b4] ss:$8 sps:$4 sm:$0xff]  }
 0xcbe   :  { %5873 = vmatpush1.bf16.msra.mxu0 %v9771_v32  ;;  %v9845_v32 = vld [vmem:[#allocation14 + $0x4a4] ss:$8 sps:$4 sm:$0xff]  }
 0xcbf   :  { %5874 = vmatprep.subr.bf16.mxu0 %v9779_v51  ;;  %v9840_v51 = vld [vmem:[#allocation14 + $0x5b0] ss:$8 sps:$4 sm:$0xff]  }
 0xcc0   :  { %5914 = vmatpush1.bf16.msra.mxu1 %v9774_v11  ;;  %v9848_v11 = vld [vmem:[#allocation14 + $0x5a4] ss:$8 sps:$4 sm:$0xff]  }
 0xcc1   :  { %5915 = vmatprep.subr.bf16.mxu1 %v9782_v45  ;;  %v9843_v45 = vld [vmem:[#allocation14 + $0x4a0] ss:$8 sps:$4 sm:$0xff]  }
 0xcc2   :  { %5875 = vmatpush1.bf16.msra.mxu0 %v9777_v2  ;;  %v9851_v2 = vld [vmem:[#allocation14 + $0x494] ss:$8 sps:$4 sm:$0xff]  }
 0xcc3   :  { %5876 = vmatprep.subr.bf16.mxu0 %v9785_v36  ;;  %v9846_v36 = vld [vmem:[#allocation14 + $0x5a0] ss:$8 sps:$4 sm:$0xff]  }
 0xcc4   :  { %5916 = vmatpush1.bf16.msra.mxu1 %v9780_v53  ;;  %v9854_v53 = vld [vmem:[#allocation14 + $0x594] ss:$8 sps:$4 sm:$0xff]  }
 0xcc5   :  { %5917 = vmatprep.subr.bf16.mxu1 %v9788_v43  ;;  %v9849_v43 = vld [vmem:[#allocation14 + $0x490] ss:$8 sps:$4 sm:$0xff]  }
 0xcc6   :  { %5877 = vmatpush1.bf16.msra.mxu0 %v9783_v19  ;;  %v9857_v19 = vld [vmem:[#allocation14 + $0x484] ss:$8 sps:$4 sm:$0xff]  }
 0xcc7   :  { %5878 = vmatprep.subr.bf16.mxu0 %v9791_v37  ;;  %v9852_v37 = vld [vmem:[#allocation14 + $0x590] ss:$8 sps:$4 sm:$0xff]  }
 0xcc8   :  { %5918 = vmatpush1.bf16.msra.mxu1 %v9786_v4  ;;  %v9860_v4 = vld [vmem:[#allocation14 + $0x584] ss:$8 sps:$4 sm:$0xff]  }
 0xcc9   :  { %5919 = vmatprep.subr.bf16.mxu1 %v9794_v38  ;;  %v9855_v38 = vld [vmem:[#allocation14 + $0x480] ss:$8 sps:$4 sm:$0xff]  }
 0xcca   :  { %5879 = vmatpush1.bf16.msra.mxu0 %v9789_v44  ;;  %v4126_v44 = vrot.slane %v13355_v57, 4 }
 0xccb   :  { %5880 = vmatprep.subr.bf16.mxu0 %v9797_v18  ;;  %v9863_v18 = vld [vmem:[#allocation14 + $0x674] ss:$8 sps:$4 sm:$0xff]  }
 0xccc   :  { %5920 = vmatpush1.bf16.msra.mxu1 %v9792_v15  ;;  %v9858_v15 = vld [vmem:[#allocation14 + $0x580] ss:$8 sps:$4 sm:$0xff]  }
 0xccd   :  { %5921 = vmatprep.subr.bf16.mxu1 %v9800_v9  ;;  %v4135_v9 = vrot.slane %v13357_v27, 6 }
 0xcce   :  { %5881 = vmatpush1.bf16.msra.mxu0 %v9795_v52  ;;  %v4130_v52 = vrot.slane %v13355_v57, 5 }
 0xccf   :  { %5882 = vmatprep.subr.bf16.mxu0 %v9803_v41  ;;  %v9866_v41 = vld [vmem:[#allocation14 + $0x774] ss:$8 sps:$4 sm:$0xff]  }
 0xcd0   :  { %5922 = vmatpush1.bf16.msra.mxu1 %v9798_v14  ;;  %v9861_v14 = vld [vmem:[#allocation14 + $0x670] ss:$8 sps:$4 sm:$0xff]  }
 0xcd1   :  { %5923 = vmatprep.subr.bf16.mxu1 %v9806_v47  ;;  %v4139_v47 = vrot.slane %v13357_v27, 7  ;;  %v9870_v27 = vld [vmem:[#allocation14 + $0x760] ss:$8 sps:$4 sm:$0xff]  }
 0xcd2   :  { %5883 = vmatpush1.bf16.msra.mxu0 %v9801_v23  ;;  %v4150_v23 = vpack.c.bf16 %v4126_v44, %v4126_v44  ;;  %v9920_v44 = vld [vmem:[#allocation14 + $0x7e4] ss:$8 sps:$4 sm:$0xff]  }
 0xcd3   :  { %5884 = vmatprep.subr.bf16.mxu0 %v9809_v48  ;;  %v9869_v48 = vld [vmem:[#allocation14 + $0x664] ss:$8 sps:$4 sm:$0xff]  }
 0xcd4   :  { %5924 = vmatpush1.bf16.msra.mxu1 %v9804_v60  ;;  %v4155_v60 = vpack.c.bf16 %v4135_v9, %v4135_v9  ;;  %v9918_v9 = vld [vmem:[#allocation14 + $0x7e0] ss:$8 sps:$4 sm:$0xff]  }
 0xcd5   :  { %5925 = vmatprep.subr.bf16.mxu1 %v9812_v56  ;;  %v9864_v56 = vld [vmem:[#allocation14 + $0x770] ss:$8 sps:$4 sm:$0xff]  }
 0xcd6   :  { %5885 = vmatpush1.bf16.msra.mxu0 %v9807_v46  ;;  %v4152_v46 = vpack.c.bf16 %v4130_v52, %v4130_v52  ;;  %v9926_v52 = vld [vmem:[#allocation14 + $0x7d4] ss:$8 sps:$4 sm:$0xff]  }
 0xcd7   :  { %5886 = vmatprep.subr.bf16.mxu0 %v9815_v40  ;;  %v9872_v40 = vld [vmem:[#allocation14 + $0x764] ss:$8 sps:$4 sm:$0xff]  }
 0xcd8   :  { %5926 = vmatpush1.bf16.msra.mxu1 %v9810_v30  ;;  %v4157_v30 = vpack.c.bf16 %v4139_v47, %v4139_v47  ;;  %v9924_v47 = vld [vmem:[#allocation14 + $0x7d0] ss:$8 sps:$4 sm:$0xff]  }
 0xcd9   :  { %5927 = vmatprep.subr.bf16.mxu1 %v9818_v55  ;;  %v9867_v55 = vld [vmem:[#allocation14 + $0x660] ss:$8 sps:$4 sm:$0xff]  }
 0xcda   :  { %5887 = vmatpush2.bf16.msra.mxu0 %v9813_v34  ;;  %v9875_v34 = vld [vmem:[#allocation14 + $0x654] ss:$8 sps:$4 sm:$0xff]  }
 0xcdb   :  { %5888 = vmatprep.subr.bf16.mxu0 %v9821_v16  ;;  %v9878_v16 = vld [vmem:[#allocation14 + $0x754] ss:$8 sps:$4 sm:$0xff]  }
 0xcdc   :  { %5928 = vmatpush2.bf16.msra.mxu1 %v9816_v39  ;;  %v9873_v39 = vld [vmem:[#allocation14 + $0x650] ss:$8 sps:$4 sm:$0xff]  }
 0xcdd   :  { %5929 = vmatprep.subr.bf16.mxu1 %v9824_v12  ;;  %v9881_v12 = vld [vmem:[#allocation14 + $0x644] ss:$8 sps:$4 sm:$0xff]  }
 0xcde   :  { %5889 = vmatpush2.bf16.msra.mxu0 %v9819_v29  ;;  %v9876_v29 = vld [vmem:[#allocation14 + $0x750] ss:$8 sps:$4 sm:$0xff]  }
 0xcdf   :  { %5890 = vmatprep.subr.bf16.mxu0 %v9827_v8  ;;  %v9884_v8 = vld [vmem:[#allocation14 + $0x744] ss:$8 sps:$4 sm:$0xff]  }
 0xce0   :  { %5930 = vmatpush2.bf16.msra.mxu1 %v9822_v28  ;;  %v9879_v28 = vld [vmem:[#allocation14 + $0x640] ss:$8 sps:$4 sm:$0xff]  }
 0xce1   :  { %5931 = vmatprep.subr.bf16.mxu1 %v9830_v0  ;;  %v9887_v0 = vld [vmem:[#allocation14 + $0x634] ss:$8 sps:$4 sm:$0xff]  }
 0xce2   :  { %5891 = vmatpush2.bf16.msra.mxu0 %v9825_v7  ;;  %v9882_v7 = vld [vmem:[#allocation14 + $0x740] ss:$8 sps:$4 sm:$0xff]  }
 0xce3   :  { %5892 = vmatprep.subr.bf16.mxu0 %v9833_v25  ;;  %v9890_v25 = vld [vmem:[#allocation14 + $0x734] ss:$8 sps:$4 sm:$0xff]  }
 0xce4   :  { %5932 = vmatpush2.bf16.msra.mxu1 %v9828_v10  ;;  %v9885_v10 = vld [vmem:[#allocation14 + $0x630] ss:$8 sps:$4 sm:$0xff]  }
 0xce5   :  { %5933 = vmatprep.subr.bf16.mxu1 %v9836_v61  ;;  %v9893_v61 = vld [vmem:[#allocation14 + $0x624] ss:$8 sps:$4 sm:$0xff]  }
 0xce6   :  { %5893 = vmatpush2.bf16.msra.mxu0 %v9831_v59  ;;  %v9888_v59 = vld [vmem:[#allocation14 + $0x730] ss:$8 sps:$4 sm:$0xff]  }
 0xce7   :  { %5894 = vmatprep.subr.bf16.mxu0 %v9839_v62  ;;  %v9896_v62 = vld [vmem:[#allocation14 + $0x724] ss:$8 sps:$4 sm:$0xff]  }
 0xce8   :  { %5934 = vmatpush2.bf16.msra.mxu1 %v9834_v63  ;;  %v9891_v63 = vld [vmem:[#allocation14 + $0x620] ss:$8 sps:$4 sm:$0xff]  }
 0xce9   :  { %5935 = vmatprep.subr.bf16.mxu1 %v9842_v54  ;;  %v9899_v54 = vld [vmem:[#allocation14 + $0x614] ss:$8 sps:$4 sm:$0xff]  }
 0xcea   :  { %5895 = vmatpush2.bf16.msra.mxu0 %v9837_v3  ;;  %v9894_v3 = vld [vmem:[#allocation14 + $0x720] ss:$8 sps:$4 sm:$0xff]  }
 0xceb   :  { %5896 = vmatprep.subr.bf16.mxu0 %v9845_v32  ;;  %v9902_v32 = vld [vmem:[#allocation14 + $0x714] ss:$8 sps:$4 sm:$0xff]  }
 0xcec   :  { %5936 = vmatpush2.bf16.msra.mxu1 %v9840_v51  ;;  %v9897_v51 = vld [vmem:[#allocation14 + $0x610] ss:$8 sps:$4 sm:$0xff]  }
 0xced   :  { %5937 = vmatprep.subr.bf16.mxu1 %v9848_v11  ;;  %v9905_v11 = vld [vmem:[#allocation14 + $0x604] ss:$8 sps:$4 sm:$0xff]  }
 0xcee   :  { %5897 = vmatpush2.bf16.msra.mxu0 %v9843_v45  ;;  %v9900_v45 = vld [vmem:[#allocation14 + $0x710] ss:$8 sps:$4 sm:$0xff]  }
 0xcef   :  { %5898 = vmatprep.subr.bf16.mxu0 %v9851_v2  ;;  %v9908_v2 = vld [vmem:[#allocation14 + $0x704] ss:$8 sps:$4 sm:$0xff]  }
 0xcf0   :  { %5938 = vmatpush2.bf16.msra.mxu1 %v9846_v36  ;;  %v9903_v36 = vld [vmem:[#allocation14 + $0x600] ss:$8 sps:$4 sm:$0xff]  }
 0xcf1   :  { %5939 = vmatprep.subr.bf16.mxu1 %v9854_v53  ;;  %v9911_v53 = vld [vmem:[#allocation14 + $0x6f4] ss:$8 sps:$4 sm:$0xff]  }
 0xcf2   :  { %5899 = vmatpush2.bf16.msra.mxu0 %v9849_v43  ;;  %v9906_v43 = vld [vmem:[#allocation14 + $0x700] ss:$8 sps:$4 sm:$0xff]  }
 0xcf3   :  { %5900 = vmatprep.subr.bf16.mxu0 %v9857_v19  ;;  %v9914_v19 = vld [vmem:[#allocation14 + $0x7f4] ss:$8 sps:$4 sm:$0xff]  }
 0xcf4   :  { %5940 = vmatpush2.bf16.msra.mxu1 %v9852_v37  ;;  %v9909_v37 = vld [vmem:[#allocation14 + $0x6f0] ss:$8 sps:$4 sm:$0xff]  }
 0xcf5   :  { %5941 = vmatprep.subr.bf16.mxu1 %v9860_v4  ;;  %v9917_v4 = vld [vmem:[#allocation14 + $0x6e4] ss:$8 sps:$4 sm:$0xff]  }
 0xcf6   :  { %5901 = vmatpush2.bf16.msra.mxu0 %v9855_v38  ;;  %v9912_v38 = vld [vmem:[#allocation14 + $0x7f0] ss:$8 sps:$4 sm:$0xff]  }
 0xcf7   :  { %5952 = vmatprep.subr.bf16.mxu0 %v9863_v18  ;;  %v9915_v18 = vld [vmem:[#allocation14 + $0x6e0] ss:$8 sps:$4 sm:$0xff]  }
 0xcf8   :  { %5942 = vmatpush2.bf16.msra.mxu1 %v9858_v15  ;;  %v9923_v15 = vld [vmem:[#allocation14 + $0x6d4] ss:$8 sps:$4 sm:$0xff]  }
 0xcf9   :  { %5903 = vmatmul.mubr.bf16.vlgmr.msra.gmra.mxu0 %v4150_v23  ;;  %5993 = vmatprep.subr.bf16.mxu1 %v9866_v41  ;;  %v9921_v41 = vld [vmem:[#allocation14 + $0x6d0] ss:$8 sps:$4 sm:$0xff]   ;;  %v9932_v23 = vld [vmem:[#allocation14 + $0x7c4] ss:$8 sps:$4 sm:$0xff]  }
 0xcfa   :  { %5953 = vmatpush1.bf16.msra.mxu0 %v9861_v14  ;;  %5984 = vmatprep.mubr.bf16.mxu0 %v4155_v60  ;;  %v9929_v14 = vld [vmem:[#allocation14 + $0x6c4] ss:$8 sps:$4 sm:$0xff]   ;;  %v9935_v60 = vld [vmem:[#allocation14 + $0x6b4] ss:$8 sps:$4 sm:$0xff]  }
 0xcfb   :  { %5944 = vmatmul.mubr.bf16.vlgmr.msra.gmra.mxu1 %v4152_v46  ;;  %5954 = vmatprep.subr.bf16.mxu0 %v9869_v48  ;;  %v9927_v48 = vld [vmem:[#allocation14 + $0x6c0] ss:$8 sps:$4 sm:$0xff]   ;;  %v9938_v46 = vld [vmem:[#allocation14 + $0x7b4] ss:$8 sps:$4 sm:$0xff]  }
 0xcfc   :  { %5994 = vmatpush1.bf16.msra.mxu1 %v9864_v56  ;;  %6025 = vmatprep.mubr.bf16.mxu1 %v4157_v30  ;;  %v9930_v56 = vld [vmem:[#allocation14 + $0x7c0] ss:$8 sps:$4 sm:$0xff]   ;;  %v9941_v30 = vld [vmem:[#allocation14 + $0x6a4] ss:$8 sps:$4 sm:$0xff]  }
 0xcfd   :  { %5995 = vmatprep.subr.bf16.mxu1 %v9872_v40  ;;  %v9933_v40 = vld [vmem:[#allocation14 + $0x6b0] ss:$8 sps:$4 sm:$0xff]  }
 0xcfe   :  { %5955 = vmatpush1.bf16.msra.mxu0 %v9867_v55  ;;  %v9936_v55 = vld [vmem:[#allocation14 + $0x7b0] ss:$8 sps:$4 sm:$0xff]  }
 0xcff   :  { %5956 = vmatprep.subr.bf16.mxu0 %v9875_v34  ;;  %v9944_v34 = vld [vmem:[#allocation14 + $0x7a4] ss:$8 sps:$4 sm:$0xff]  }
 0xd00   :  { %5996 = vmatpush1.bf16.msra.mxu1 %v9870_v27  ;;  %v9939_v27 = vld [vmem:[#allocation14 + $0x6a0] ss:$8 sps:$4 sm:$0xff]  }
 0xd01   :  { %5997 = vmatprep.subr.bf16.mxu1 %v9878_v16  ;;  %v9947_v16 = vld [vmem:[#allocation14 + $0x694] ss:$8 sps:$4 sm:$0xff]  }
 0xd02   :  { %5957 = vmatpush1.bf16.msra.mxu0 %v9873_v39  ;;  %v9942_v39 = vld [vmem:[#allocation14 + $0x7a0] ss:$8 sps:$4 sm:$0xff]  }
 0xd03   :  { %5958 = vmatprep.subr.bf16.mxu0 %v9881_v12  ;;  %v9950_v12 = vld [vmem:[#allocation14 + $0x794] ss:$8 sps:$4 sm:$0xff]  }
 0xd04   :  { %5998 = vmatpush1.bf16.msra.mxu1 %v9876_v29  ;;  %v9945_v29 = vld [vmem:[#allocation14 + $0x690] ss:$8 sps:$4 sm:$0xff]  }
 0xd05   :  { %5999 = vmatprep.subr.bf16.mxu1 %v9884_v8  ;;  %v9953_v8 = vld [vmem:[#allocation14 + $0x684] ss:$8 sps:$4 sm:$0xff]  }
 0xd06   :  { %5959 = vmatpush1.bf16.msra.mxu0 %v9879_v28  ;;  %v9948_v28 = vld [vmem:[#allocation14 + $0x790] ss:$8 sps:$4 sm:$0xff]  }
 0xd07   :  { %5960 = vmatprep.subr.bf16.mxu0 %v9887_v0  ;;  %v9956_v0 = vld [vmem:[#allocation14 + $0x784] ss:$8 sps:$4 sm:$0xff]  }
 0xd08   :  { %6000 = vmatpush1.bf16.msra.mxu1 %v9882_v7  ;;  %v9951_v7 = vld [vmem:[#allocation14 + $0x680] ss:$8 sps:$4 sm:$0xff]  }
 0xd09   :  { %6001 = vmatprep.subr.bf16.mxu1 %v9890_v25  ;;  %v4134_v25 = vrot.slane %v13355_v57, 6 }
 0xd0a   :  { %5961 = vmatpush1.bf16.msra.mxu0 %v9885_v10  ;;  %v9957_v10 = vld [vmem:[%s13895_s17 + $0x78] sm:$0xff]  }
 0xd0b   :  { %5962 = vmatprep.subr.bf16.mxu0 %v9893_v61  ;;  %v4414_v61 = vld [vmem:[#allocation16] sm:$0x3] }
 0xd0c   :  { %6002 = vmatpush1.bf16.msra.mxu1 %v9888_v59  ;;  %v9954_v59 = vld [vmem:[#allocation14 + $0x780] ss:$8 sps:$4 sm:$0xff]  }
 0xd0d   :  { %6003 = vmatprep.subr.bf16.mxu1 %v9896_v62  ;;  %v4138_v62 = vrot.slane %v13355_v57, 7  ;;  %v5703_v57 = vrot.slane %v4414_v61, %v14317_v13  ;;  %v9962_v13 = vld [vmem:[%s13895_s17 + $0x30] sm:$0xff]  }
 0xd0e   :  { %5963 = vmatpush1.bf16.msra.mxu0 %v9891_v63  ;;  %v9959_v63 = vld [vmem:[%s13895_s17 + $0xf8] sm:$0xff]  }
 0xd0f   :  { %5964 = vmatprep.subr.bf16.mxu0 %v9899_v54  ;;  %v5699_v54 = vrot.slane %v4414_v61, %v14316_v1  ;;  %v9986_v61 = vld [vmem:[%s13895_s17] sm:$0xff]  }
 0xd10   :  { %6004 = vmatpush1.bf16.msra.mxu1 %v9894_v3  ;;  %v9958_v3 = vld [vmem:[%s13895_s17 + $0x38] sm:$0xff]  }
 0xd11   :  { %6005 = vmatprep.subr.bf16.mxu1 %v9902_v32  ;;  %v6265_v32 = vrot.slane %v13155_v22, 1 }
 0xd12   :  { %5965 = vmatpush1.bf16.msra.mxu0 %v9897_v51  ;;  %v4154_v51 = vpack.c.bf16 %v4134_v25, %v4134_v25  ;;  %v9984_v25 = vld [vmem:[%s13895_s17 + $0x88] sm:$0xff]  }
 0xd13   :  { %5966 = vmatprep.subr.bf16.mxu0 %v9905_v11  ;;  %v9961_v11 = vld [vmem:[%s13895_s17 + $0x70] sm:$0xff]  }
 0xd14   :  { %6006 = vmatpush1.bf16.msra.mxu1 %v9900_v45  ;;  %v9960_v45 = vld [vmem:[%s13895_s17 + $0xb8] sm:$0xff]  }
 0xd15   :  { %6007 = vmatprep.subr.bf16.mxu1 %v9908_v2  ;;  %v4156_v2 = vpack.c.bf16 %v4138_v62, %v4138_v62  ;;  %v6627_v62 = vrot.slane %v13152_v6, 1 }
 0xd16   :  { %5967 = vmatpush1.bf16.msra.mxu0 %v9903_v36  ;;  %v9963_v36 = vld [vmem:[%s13895_s17 + $0xf0] sm:$0xff]  }
 0xd17   :  { %5968 = vmatprep.subr.bf16.mxu0 %v9911_v53 }
 0xd18   :  { %6008 = vmatpush1.bf16.msra.mxu1 %v9906_v43  ;;  %v6266_v43 = vor.u32 %v6265_v32, %v13152_v6  ;;  %v9991_v32 = vld [vmem:[%s13895_s17 + $0x1f8] sm:$0xff]  }
 0xd19   :  { %6009 = vmatprep.subr.bf16.mxu1 %v9914_v19 }
 0xd1a   :  { %5969 = vmatpush2.bf16.msra.mxu0 %v9909_v37 }
 0xd1b   :  { %5970 = vmatprep.subr.bf16.mxu0 %v9917_v4  ;;  %v9965_v4 = vld [vmem:[%s13895_s17 + $0x68] sm:$0xff]  }
 0xd1c   :  { %6010 = vmatpush2.bf16.msra.mxu1 %v9912_v38 }
 0xd1d   :  { %6011 = vmatprep.subr.bf16.mxu1 %v9920_v44 }
 0xd1e   :  { %5971 = vmatpush2.bf16.msra.mxu0 %v9915_v18 }
 0xd1f   :  { %5972 = vmatprep.subr.bf16.mxu0 %v9923_v15 }
 0xd20   :  { %6012 = vmatpush2.bf16.msra.mxu1 %v9918_v9  ;;  %v9967_v9 = vld [vmem:[%s13895_s17 + $0xe8] sm:$0xff]  }
 0xd21   :  { %6013 = vmatprep.subr.bf16.mxu1 %v9926_v52 }
 0xd22   :  { %5973 = vmatpush2.bf16.msra.mxu0 %v9921_v41  ;;  %v9966_v41 = vld [vmem:[%s13895_s17 + $0x28] sm:$0xff]  }
 0xd23   :  { %5974 = vmatprep.subr.bf16.mxu0 %v9929_v14 }
 0xd24   :  { %6014 = vmatpush2.bf16.msra.mxu1 %v9924_v47 }
 0xd25   :  { %6015 = vmatprep.subr.bf16.mxu1 %v9932_v23  ;;  %v9969_v23 = vld [vmem:[%s13895_s17 + $0x60] sm:$0xff]  }
 0xd26   :  { %5975 = vmatpush2.bf16.msra.mxu0 %v9927_v48  ;;  %v9968_v48 = vld [vmem:[%s13895_s17 + $0xa8] sm:$0xff]  }
 0xd27   :  { %5976 = vmatprep.subr.bf16.mxu0 %v9935_v60 }
 0xd28   :  { %6016 = vmatpush2.bf16.msra.mxu1 %v9930_v56  ;;  %v9971_v56 = vld [vmem:[%s13895_s17 + $0xe0] sm:$0xff]  }
 0xd29   :  { %6017 = vmatprep.subr.bf16.mxu1 %v9938_v46  ;;  %v9970_v46 = vld [vmem:[%s13895_s17 + $0x20] sm:$0xff]  }
 0xd2a   :  { %5977 = vmatpush2.bf16.msra.mxu0 %v9933_v40  ;;  %v9973_v40 = vld [vmem:[%s13895_s17 + $0x58] sm:$0xff]  }
 0xd2b   :  { %5978 = vmatprep.subr.bf16.mxu0 %v9941_v30  ;;  %v9972_v30 = vld [vmem:[%s13895_s17 + $0xa0] sm:$0xff]  }
 0xd2c   :  { %6018 = vmatpush2.bf16.msra.mxu1 %v9936_v55  ;;  %v9975_v55 = vld [vmem:[%s13895_s17 + $0xd8] sm:$0xff]  }
 0xd2d   :  { %6019 = vmatprep.subr.bf16.mxu1 %v9944_v34  ;;  %v9974_v34 = vld [vmem:[%s13895_s17 + $0x18] sm:$0xff]  }
 0xd2e   :  { %5979 = vmatpush2.bf16.msra.mxu0 %v9939_v27  ;;  %v9977_v27 = vld [vmem:[%s13895_s17 + $0x50] sm:$0xff]  }
 0xd2f   :  { %5980 = vmatprep.subr.bf16.mxu0 %v9947_v16  ;;  %v9976_v16 = vld [vmem:[%s13895_s17 + $0x98] sm:$0xff]  }
 0xd30   :  { %6020 = vmatpush2.bf16.msra.mxu1 %v9942_v39  ;;  %v9979_v39 = vld [vmem:[%s13895_s17 + $0xd0] sm:$0xff]  }
 0xd31   :  { %6021 = vmatprep.subr.bf16.mxu1 %v9950_v12  ;;  %v9978_v12 = vld [vmem:[%s13895_s17 + $0x10] sm:$0xff]  }
 0xd32   :  { %5981 = vmatpush2.bf16.msra.mxu0 %v9945_v29  ;;  %v9981_v29 = vld [vmem:[%s13895_s17 + $0x48] sm:$0xff]  }
 0xd33   :  { %5982 = vmatprep.subr.bf16.mxu0 %v9953_v8  ;;  %v9980_v8 = vld [vmem:[%s13895_s17 + $0x90] sm:$0xff]  }
 0xd34   :  { %6022 = vmatpush2.bf16.msra.mxu1 %v9948_v28  ;;  %v9983_v28 = vld [vmem:[%s13895_s17 + $0xc8] sm:$0xff]  }
 0xd35   :  { %6023 = vmatprep.subr.bf16.mxu1 %v9956_v0  ;;  %v9982_v0 = vld [vmem:[%s13895_s17 + $0x8] sm:$0xff]  }
 0xd36   :  { %5983 = vmatpush2.bf16.msra.mxu0 %v9951_v7  ;;  %v9985_v7 = vld [vmem:[%s13895_s17 + $0x40] sm:$0xff]  }
 0xd37   :  { %8828 = vmatprep.subr.bf16.mxu0 %v9957_v10  ;;  %v9987_v10 = vld [vmem:[%s13895_s17 + $0xc0] sm:$0xff]  }
 0xd38   :  { %6024 = vmatpush2.bf16.msra.mxu1 %v9954_v59  ;;  %v9989_v59 = vld [vmem:[%s13895_s17 + $0x178] sm:$0xff]  }
 0xd39   :  { %5985 = vmatmul.mubr.bf16.vlgmr.msra.gmra.mxu0 %v4154_v51  ;;  %v5740_v1 = vpop.f32.mrf.mxu0  ;;  %8850 = vmatprep.subr.bf16.mxu1 %v9959_v63  ;;  %v6628_v63 = vrot.slane %v13155_v22, 2  ;;  %v9990_v51 = vld [vmem:[%s13895_s17 + $0x138] sm:$0xff]   ;;  %v9993_v22 = vld [vmem:[%s13895_s17 + $0x170] sm:$0xff]  }
 0xd3a   :  { %v5741_v53 = vadd.f32 %v5740_v1, %v5699_v54  ;;  %8829 = vmatpush3.bf16.msra.mxu0 %v9958_v3  ;;  %8535 = vmatprep.mubr.msk.bf16.mxu0 %vm6044_vm3, %v13145_v20  ;;  %v9964_v20 = vld [vmem:[%s13895_s17 + $0xb0] sm:$0xff]   ;;  %v9988_v54 = vld [vmem:[%s13895_s17 + $0x80] sm:$0xff]   ;;  %v6259_v3 = vrot.slane %v13096_v42, 1  ;;  %v13506_v1 = vrot.slane %v14086_v35, 2  ;;  %v9997_v35 = vld [vmem:[%s13895_s17 + $0x168] sm:$0xff]  }
 0xd3b   :  { %6026 = vmatmul.mubr.bf16.vlgmr.msra.gmra.mxu1 %v4156_v2  ;;  %v5742_v19 = vpop.f32.mrf.mxu0  ;;  %v5781_v37 = vpop.f32.mrf.mxu1  ;;  %8830 = vmatprep.subr.bf16.mxu0 %v9961_v11  ;;  %v6629_v6 = vor.u32 %v6628_v63, %v6627_v62  ;;  %v6444_v11 = vrot.slane %v13149_v26, 1  ;;  %v9995_v2 = vld [vmem:[%s13895_s17 + $0x1f0] sm:$0xff]  }
 0xd3c   :  { %v5743_v38 = vadd.f32 %v5742_v19, %v5703_v57  ;;  %v13407_v44 = vadd.f32 %v5781_v37, %v5741_v53  ;;  %8851 = vmatpush3.bf16.msra.mxu1 %v9960_v45  ;;  %6397 = vmatprep.mubr.bf16.mxu1 %v6266_v43  ;;  %v9992_v57 = vld [vmem:[%s13895_s17 + $0x1b8] sm:$0xff]   ;;  %v6260_v45 = vor.u32 %v6259_v3, %v13093_v5  ;;  %v9996_v53 = vld [vmem:[%s13895_s17 + $0x1b0] sm:$0xff]   ;;  %v9999_v43 = vld [vmem:[%s13895_s17 + $0x1e8] sm:$0xff]  }
 0xd3d   :  { %v5744_v18 = vpop.f32.mrf.mxu0  ;;  %v5783_v15 = vpop.f32.mrf.mxu1  ;;  %8852 = vmatprep.subr.bf16.mxu1 %v9963_v36  ;;  %v9994_v36 = vld [vmem:[%s13895_s17 + $0x130] sm:$0xff]   ;;  %v10001_v19 = vld [vmem:[%s13895_s17 + $0x160] sm:$0xff]   ;;  %v10000_v37 = vld [vmem:[%s13895_s17 + $0x1a8] sm:$0xff]  }
 0xd3e   :  { %v13415_v52 = vadd.f32 %v5783_v15, %v5743_v38  ;;  %8831 = vmatpush3.bf16.msra.mxu0 %v9962_v13  ;;  %v9998_v13 = vld [vmem:[%s13895_s17 + $0x128] sm:$0xff]   ;;  %v10002_v38 = vld [vmem:[%s13895_s17 + $0x120] sm:$0xff]   ;;  %v10007_v15 = vld [vmem:[%s13895_s17 + $0x1d8] sm:$0xff]  }
 0xd3f   :  { %v5745_v14 = vpop.f32.mrf.mxu0  ;;  %v5785_v47 = vpop.f32.mrf.mxu1  ;;  %8832 = vmatprep.subr.bf16.mxu0 %v9965_v4  ;;  %v10003_v4 = vld [vmem:[%s13895_s17 + $0x1e0] sm:$0xff]  }
 0xd40   :  { %8853 = vmatpush3.bf16.msra.mxu1 %v9964_v20  ;;  %v10005_v20 = vld [vmem:[%s13895_s17 + $0x158] sm:$0xff]   ;;  %v10004_v18 = vld [vmem:[%s13895_s17 + $0x1a0] sm:$0xff]   ;;  %v10011_v47 = vld [vmem:[%s13895_s17 + $0x1d0] sm:$0xff]  }
 0xd41   :  { %v5786_v60 = vpop.f32.mrf.mxu1  ;;  %8854 = vmatprep.subr.bf16.mxu1 %v9967_v9  ;;  %v10006_v9 = vld [vmem:[%s13895_s17 + $0x118] sm:$0xff]  }
 0xd42   :  { %8833 = vmatpush3.bf16.msra.mxu0 %v9966_v41  ;;  %v10009_v41 = vld [vmem:[%s13895_s17 + $0x150] sm:$0xff]   ;;  %v10008_v14 = vld [vmem:[%s13895_s17 + $0x198] sm:$0xff]  }
 0xd43   :  { %8834 = vmatprep.subr.bf16.mxu0 %v9969_v23  ;;  %v10010_v23 = vld [vmem:[%s13895_s17 + $0x110] sm:$0xff]  }
 0xd44   :  { %8855 = vmatpush3.bf16.msra.mxu1 %v9968_v48  ;;  %v10013_v48 = vld [vmem:[%s13895_s17 + $0x148] sm:$0xff]   ;;  %v10012_v60 = vld [vmem:[%s13895_s17 + $0x190] sm:$0xff]  }
 0xd45   :  { %8856 = vmatprep.subr.bf16.mxu1 %v9971_v56  ;;  %v10015_v56 = vld [vmem:[%s13895_s17 + $0x1c8] sm:$0xff]  }
 0xd46   :  { %8835 = vmatpush3.bf16.msra.mxu0 %v9970_v46  ;;  %v10014_v46 = vld [vmem:[%s13895_s17 + $0x108] sm:$0xff]  }
 0xd47   :  { %8836 = vmatprep.subr.bf16.mxu0 %v9973_v40  ;;  %v10017_v40 = vld [vmem:[%s13895_s17 + $0x140] sm:$0xff]  }
 0xd48   :  { %8857 = vmatpush3.bf16.msra.mxu1 %v9972_v30  ;;  %v10016_v30 = vld [vmem:[%s13895_s17 + $0x188] sm:$0xff]  }
 0xd49   :  { %8858 = vmatprep.subr.bf16.mxu1 %v9975_v55  ;;  %v10019_v55 = vld [vmem:[%s13895_s17 + $0x1c0] sm:$0xff]  }
 0xd4a   :  { %8837 = vmatpush3.bf16.msra.mxu0 %v9974_v34  ;;  %v10018_v34 = vld [vmem:[%s13895_s17 + $0x100] sm:$0xff]  }
 0xd4b   :  { %8838 = vmatprep.subr.bf16.mxu0 %v9977_v27  ;;  %v6620_v27 = vrot.slane %v13093_v5, 1  ;;  %v10022_v5 = vld [vmem:[%s13895_s17 + $0x238] sm:$0xff]  }
 0xd4c   :  { %8859 = vmatpush3.bf16.msra.mxu1 %v9976_v16  ;;  %v6621_v16 = vrot.slane %v13096_v42, 2 }
 0xd4d   :  { %8860 = vmatprep.subr.bf16.mxu1 %v9979_v39  ;;  %v10021_v39 = vld [vmem:[%s13895_s17 + $0x278] sm:$0xff]  }
 0xd4e   :  { %8839 = vmatpush3.bf16.msra.mxu0 %v9978_v12  ;;  %v10020_v12 = vld [vmem:[%s13895_s17 + $0x180] sm:$0xff]   ;;  %v6622_v42 = vor.u32 %v6621_v16, %v6620_v27  ;;  %v7178_v27 = vrot.slane %v13149_v26, 3  ;;  %v10054_v16 = vld [vmem:[%s13895_s17 + $0x338] sm:$0xff]  }
 0xd4f   :  { %8840 = vmatprep.subr.bf16.mxu0 %v9981_v29  ;;  %v6810_v29 = vrot.slane %v13149_v26, 2  ;;  %v7385_v26 = vld [vmem:[#allocation19 + $0x78] sm:$0xff] }
 0xd50   :  { %8861 = vmatpush3.bf16.msra.mxu1 %v9980_v8  ;;  %v10023_v8 = vld [vmem:[%s13895_s17 + $0x2f8] sm:$0xff]   ;;  %v6626_v63 = vsel %vm6619_vm7, %v6622_v42, %v13506_v1 }
 0xd51   :  { %8862 = vmatprep.subr.bf16.mxu1 %v9983_v28  ;;  %v6443_v28 = vrot.slane %v13087_v31, 1  ;;  %v7400_v42 = vld [vmem:[#allocation19 + $0xf0] sm:$0xff] }
 0xd52   :  { %8841 = vmatpush3.bf16.msra.mxu0 %v9982_v0  ;;  %v10025_v0 = vld [vmem:[%s13895_s17 + $0x270] sm:$0xff]  }
 0xd53   :  { %8842 = vmatprep.subr.bf16.mxu0 %v9985_v7  ;;  %v10024_v7 = vld [vmem:[%s13895_s17 + $0x2b8] sm:$0xff]  }
 0xd54   :  { %8863 = vmatpush3.bf16.msra.mxu1 %v9984_v25 }
 0xd55   :  { %8864 = vmatprep.subr.bf16.mxu1 %v9987_v10  ;;  %v6811_v10 = vsel %vm6806_vm8, %v6810_v29, %v13506_v1 }
 0xd56   :  { %8843 = vmatpush3.bf16.msra.mxu0 %v9986_v61  ;;  %v13614_v61 = vor.u32 %v13090_v50, %v13506_v1 }
 0xd57   :  { %8872 = vmatprep.subr.bf16.mxu0 %v9989_v59  ;;  %v10027_v59 = vld [vmem:[%s13895_s17 + $0x2f0] sm:$0xff]  }
 0xd58   :  { %8865 = vmatpush3.bf16.msra.mxu1 %v9988_v54  ;;  %v10026_v54 = vld [vmem:[%s13895_s17 + $0x230] sm:$0xff]  }
 0xd59   :  { %8536 = vmatmul.mubr.msk.bf16.vlgmr.msra.gmra.mxu0 %vm6044_vm3, %v13083_v33  ;;  %8894 = vmatprep.subr.bf16.mxu1 %v9991_v32  ;;  %v6630_v33 = vsel %vm6619_vm7, %v6629_v6, %v13506_v1 }
 0xd5a   :  { %8873 = vmatpush3.bf16.msra.mxu0 %v9990_v51  ;;  %6575 = vmatprep.mubr.bf16.mxu0 %v6444_v11  ;;  %v6999_v51 = vsel %vm6986_vm9, %v13168_v49, %v13614_v61  ;;  %v10028_v11 = vld [vmem:[%s13895_s17 + $0x2b0] sm:$0xff]   ;;  %v10031_v49 = vld [vmem:[%s13895_s17 + $0x2e8] sm:$0xff]  }
 0xd5b   :  { %6398 = vmatmul.mubr.bf16.vlgmr.msra.gmra.mxu1 %v6260_v45  ;;  %8874 = vmatprep.subr.bf16.mxu0 %v9993_v22 }
 0xd5c   :  { %8895 = vmatpush3.bf16.msra.mxu1 %v9992_v57  ;;  %6761 = vmatprep.mubr.bf16.mxu1 %v6630_v33 }
 0xd5d   :  { %8896 = vmatprep.subr.bf16.mxu1 %v9995_v2 }
 0xd5e   :  { %8875 = vmatpush3.bf16.msra.mxu0 %v9994_v36 }
 0xd5f   :  { %8876 = vmatprep.subr.bf16.mxu0 %v9997_v35  ;;  %v10033_v35 = vld [vmem:[%s13895_s17 + $0x260] sm:$0xff]  }
 0xd60   :  { %8897 = vmatpush3.bf16.msra.mxu1 %v9996_v53  ;;  %v10032_v53 = vld [vmem:[%s13895_s17 + $0x2a8] sm:$0xff]  }
 0xd61   :  { %8898 = vmatprep.subr.bf16.mxu1 %v9999_v43 }
 0xd62   :  { %8877 = vmatpush3.bf16.msra.mxu0 %v9998_v13  ;;  %v10035_v13 = vld [vmem:[%s13895_s17 + $0x2e0] sm:$0xff]  }
 0xd63   :  { %8878 = vmatprep.subr.bf16.mxu0 %v10001_v19  ;;  %v10034_v19 = vld [vmem:[%s13895_s17 + $0x220] sm:$0xff]  }
 0xd64   :  { %8899 = vmatpush3.bf16.msra.mxu1 %v10000_v37  ;;  %v10037_v37 = vld [vmem:[%s13895_s17 + $0x258] sm:$0xff]  }
 0xd65   :  { %8900 = vmatprep.subr.bf16.mxu1 %v10003_v4  ;;  %v10036_v4 = vld [vmem:[%s13895_s17 + $0x2a0] sm:$0xff]  }
 0xd66   :  { %8879 = vmatpush3.bf16.msra.mxu0 %v10002_v38  ;;  %v10039_v38 = vld [vmem:[%s13895_s17 + $0x2d8] sm:$0xff]  }
 0xd67   :  { %8880 = vmatprep.subr.bf16.mxu0 %v10005_v20  ;;  %v10038_v20 = vld [vmem:[%s13895_s17 + $0x218] sm:$0xff]  }
 0xd68   :  { %8901 = vmatpush3.bf16.msra.mxu1 %v10004_v18  ;;  %v10041_v18 = vld [vmem:[%s13895_s17 + $0x250] sm:$0xff]  }
 0xd69   :  { %8902 = vmatprep.subr.bf16.mxu1 %v10007_v15  ;;  %v10040_v15 = vld [vmem:[%s13895_s17 + $0x298] sm:$0xff]  }
 0xd6a   :  { %8881 = vmatpush3.bf16.msra.mxu0 %v10006_v9  ;;  %v10043_v9 = vld [vmem:[%s13895_s17 + $0x2d0] sm:$0xff]  }
 0xd6b   :  { %8882 = vmatprep.subr.bf16.mxu0 %v10009_v41  ;;  %v10042_v41 = vld [vmem:[%s13895_s17 + $0x210] sm:$0xff]  }
 0xd6c   :  { %8903 = vmatpush3.bf16.msra.mxu1 %v10008_v14  ;;  %v10045_v14 = vld [vmem:[%s13895_s17 + $0x248] sm:$0xff]  }
 0xd6d   :  { %8904 = vmatprep.subr.bf16.mxu1 %v10011_v47  ;;  %v10044_v47 = vld [vmem:[%s13895_s17 + $0x290] sm:$0xff]  }
 0xd6e   :  { %8883 = vmatpush3.bf16.msra.mxu0 %v10010_v23  ;;  %v10047_v23 = vld [vmem:[%s13895_s17 + $0x2c8] sm:$0xff]  }
 0xd6f   :  { %8884 = vmatprep.subr.bf16.mxu0 %v10013_v48  ;;  %v10046_v48 = vld [vmem:[%s13895_s17 + $0x208] sm:$0xff]  }
 0xd70   :  { %8905 = vmatpush3.bf16.msra.mxu1 %v10012_v60  ;;  %v10049_v60 = vld [vmem:[%s13895_s17 + $0x240] sm:$0xff]  }
 0xd71   :  { %8906 = vmatprep.subr.bf16.mxu1 %v10015_v56  ;;  %v10048_v56 = vld [vmem:[%s13895_s17 + $0x288] sm:$0xff]  }
 0xd72   :  { %8885 = vmatpush3.bf16.msra.mxu0 %v10014_v46  ;;  %v10051_v46 = vld [vmem:[%s13895_s17 + $0x2c0] sm:$0xff]  }
 0xd73   :  { %8886 = vmatprep.subr.bf16.mxu0 %v10017_v40  ;;  %v10050_v40 = vld [vmem:[%s13895_s17 + $0x200] sm:$0xff]  }
 0xd74   :  { %8907 = vmatpush3.bf16.msra.mxu1 %v10016_v30  ;;  %v10053_v30 = vld [vmem:[%s13895_s17 + $0x378] sm:$0xff]  }
 0xd75   :  { %8908 = vmatprep.subr.bf16.mxu1 %v10019_v55  ;;  %v10052_v55 = vld [vmem:[%s13895_s17 + $0x280] sm:$0xff]  }
 0xd76   :  { %8887 = vmatpush3.bf16.msra.mxu0 %v10018_v34  ;;  %v6807_v34 = vrot.slane %v13087_v31, 2  ;;  %v7179_v31 = vsel %vm7174_vm4, %v7178_v27, %v13090_v50  ;;  %v7384_v50 = vld [vmem:[#allocation19 + $0x70] sm:$0xff] }
 0xd77   :  { %8916 = vmatprep.subr.bf16.mxu0 %v10021_v39  ;;  %v7401_v39 = vld [vmem:[#allocation19 + $0xf8] sm:$0xff] }
 0xd78   :  { %8909 = vmatpush3.bf16.msra.mxu1 %v10020_v12  ;;  %v10055_v12 = vld [vmem:[%s13895_s17 + $0x370] sm:$0xff]   ;;  %v6809_v29 = vsel %vm6806_vm8, %v6807_v34, %v13506_v1  ;;  %v10057_v1 = vld [vmem:[%s13895_s17 + $0x368] sm:$0xff]  }
 0xd79   :  { %v5822_v25 = vpop.f32.mrf.mxu0  ;;  %6576 = vmatmul.mubr.bf16.vlgmr.msra.gmra.mxu0 %v6443_v28  ;;  %8938 = vmatprep.subr.bf16.mxu1 %v10023_v8  ;;  %v6995_v8 = vsel %vm6986_vm9, %v13106_v58, %v13614_v61  ;;  %v7399_v28 = vld [vmem:[#allocation19 + $0xe8] sm:$0xff]  ;;  %v10058_v58 = vld [vmem:[%s13895_s17 + $0x328] sm:$0xff]  }
 0xd7a   :  { %v5823_v62 = vadd.f32 %v5822_v25, %v13407_v44  ;;  %8917 = vmatpush3.bf16.msra.mxu0 %v10022_v5  ;;  %6942 = vmatprep.mubr.bf16.mxu0 %v6811_v10  ;;  %v10029_v44 = vld [vmem:[%s13895_s17 + $0x268] sm:$0xff]   ;;  %v10056_v5 = vld [vmem:[%s13895_s17 + $0x330] sm:$0xff]   ;;  %v10059_v25 = vld [vmem:[%s13895_s17 + $0x360] sm:$0xff]  }
 0xd7b   :  { %v5824_v3 = vpop.f32.mrf.mxu0  ;;  %v5863_v32 = vpop.f32.mrf.mxu1  ;;  %6762 = vmatmul.mubr.bf16.vlgmr.msra.gmra.mxu1 %v6626_v63  ;;  %8918 = vmatprep.subr.bf16.mxu0 %v10025_v0  ;;  %v7383_v0 = vld [vmem:[#allocation19 + $0x68] sm:$0xff]  ;;  %v7382_v10 = vld [vmem:[#allocation19 + $0x60] sm:$0xff]  ;;  %v7397_v61 = vld [vmem:[#allocation19 + $0xd8] sm:$0xff] }
 0xd7c   :  { %v5825_v6 = vadd.f32 %v5824_v3, %v13415_v52  ;;  %v13632_v22 = vadd.f32 %v5863_v32, %v5823_v62  ;;  %8939 = vmatpush3.bf16.msra.mxu1 %v10024_v7  ;;  %7130 = vmatprep.mubr.bf16.mxu1 %v6999_v51  ;;  %v10030_v52 = vld [vmem:[%s13895_s17 + $0x228] sm:$0xff]   ;;  %v10060_v62 = vld [vmem:[%s13895_s17 + $0x320] sm:$0xff]   ;;  %v7395_v32 = vld [vmem:[#allocation19 + $0xc8] sm:$0xff] }
 0xd7d   :  { %v5826_v57 = vpop.f32.mrf.mxu0  ;;  %v5865_v45 = vpop.f32.mrf.mxu1  ;;  %8940 = vmatprep.subr.bf16.mxu1 %v10027_v59  ;;  %v7398_v7 = vld [vmem:[#allocation19 + $0xe0] sm:$0xff]  ;;  %v7381_v59 = vld [vmem:[#allocation19 + $0x58] sm:$0xff]  ;;  %v7396_v63 = vld [vmem:[#allocation19 + $0xd0] sm:$0xff] }
 0xd7e   :  { %v13640_v2 = vadd.f32 %v5865_v45, %v5825_v6  ;;  %8919 = vmatpush3.bf16.msra.mxu0 %v10026_v54  ;;  %v10061_v54 = vld [vmem:[%s13895_s17 + $0x358] sm:$0xff]   ;;  %v7394_v6 = vld [vmem:[#allocation19 + $0xc0] sm:$0xff]  ;;  %v7393_v45 = vld [vmem:[#allocation19 + $0xb8] sm:$0xff] }
 0xd7f   :  { %v5827_v36 = vpop.f32.mrf.mxu0  ;;  %v5867_v33 = vpop.f32.mrf.mxu1  ;;  %8920 = vmatprep.subr.bf16.mxu0 %v10029_v44  ;;  %v7380_v3 = vld [vmem:[#allocation19 + $0x50] sm:$0xff]  ;;  %v7379_v51 = vld [vmem:[#allocation19 + $0x48] sm:$0xff]  ;;  %v7378_v57 = vld [vmem:[#allocation19 + $0x40] sm:$0xff] }
 0xd80   :  { %8941 = vmatpush3.bf16.msra.mxu1 %v10028_v11  ;;  %v10062_v44 = vld [vmem:[%s13895_s17 + $0x318] sm:$0xff]   ;;  %v10063_v11 = vld [vmem:[%s13895_s17 + $0x350] sm:$0xff]   ;;  %v10065_v33 = vld [vmem:[%s13895_s17 + $0x348] sm:$0xff]  }
 0xd81   :  { %v5868_v43 = vpop.f32.mrf.mxu1  ;;  %8942 = vmatprep.subr.bf16.mxu1 %v10031_v49  ;;  %v7377_v49 = vld [vmem:[#allocation19 + $0x38] sm:$0xff]  ;;  %v7392_v36 = vld [vmem:[#allocation19 + $0xb0] sm:$0xff] }
 0xd82   :  { %8921 = vmatpush3.bf16.msra.mxu0 %v10030_v52  ;;  %v10064_v52 = vld [vmem:[%s13895_s17 + $0x310] sm:$0xff]  }
 0xd83   :  { %8922 = vmatprep.subr.bf16.mxu0 %v10033_v35  ;;  %v7376_v35 = vld [vmem:[#allocation19 + $0x30] sm:$0xff]  ;;  %v7375_v43 = vld [vmem:[#allocation19 + $0x28] sm:$0xff] }
 0xd84   :  { %8943 = vmatpush3.bf16.msra.mxu1 %v10032_v53  ;;  %v7391_v53 = vld [vmem:[#allocation19 + $0xa8] sm:$0xff] }
 0xd85   :  { %8944 = vmatprep.subr.bf16.mxu1 %v10035_v13  ;;  %v10066_v13 = vld [vmem:[%s13895_s17 + $0x308] sm:$0xff]  }
 0xd86   :  { %8923 = vmatpush3.bf16.msra.mxu0 %v10034_v19  ;;  %v7390_v19 = vld [vmem:[#allocation19 + $0xa0] sm:$0xff] }
 0xd87   :  { %8924 = vmatprep.subr.bf16.mxu0 %v10037_v37  ;;  %v10067_v37 = vld [vmem:[%s13895_s17 + $0x340] sm:$0xff]  }
 0xd88   :  { %8945 = vmatpush3.bf16.msra.mxu1 %v10036_v4  ;;  %v7374_v4 = vld [vmem:[#allocation19 + $0x20] sm:$0xff] }
 0xd89   :  { %8946 = vmatprep.subr.bf16.mxu1 %v10039_v38  ;;  %v7389_v38 = vld [vmem:[#allocation19 + $0x98] sm:$0xff] }
 0xd8a   :  { %8925 = vmatpush3.bf16.msra.mxu0 %v10038_v20  ;;  %v7373_v20 = vld [vmem:[#allocation19 + $0x18] sm:$0xff] }
 0xd8b   :  { %8926 = vmatprep.subr.bf16.mxu0 %v10041_v18  ;;  %v10068_v18 = vld [vmem:[%s13895_s17 + $0x300] sm:$0xff]  }
 0xd8c   :  { %8947 = vmatpush3.bf16.msra.mxu1 %v10040_v15  ;;  %v7388_v15 = vld [vmem:[#allocation19 + $0x90] sm:$0xff] }
 0xd8d   :  { %8948 = vmatprep.subr.bf16.mxu1 %v10043_v9  ;;  %v7372_v9 = vld [vmem:[#allocation19 + $0x10] sm:$0xff] }
 0xd8e   :  { %8927 = vmatpush3.bf16.msra.mxu0 %v10042_v41  ;;  %v7369_v41 = vld [vmem:[#allocation17 + $0xf8] sm:$0xff] }
 0xd8f   :  { %8928 = vmatprep.subr.bf16.mxu0 %v10045_v14  ;;  %v7387_v14 = vld [vmem:[#allocation19 + $0x88] sm:$0xff] }
 0xd90   :  { %8949 = vmatpush3.bf16.msra.mxu1 %v10044_v47  ;;  %v7371_v47 = vld [vmem:[#allocation19 + $0x8] sm:$0xff] }
 0xd91   :  { %8950 = vmatprep.subr.bf16.mxu1 %v10047_v23  ;;  %v7386_v23 = vld [vmem:[#allocation19 + $0x80] sm:$0xff] }
 0xd92   :  { %8929 = vmatpush3.bf16.msra.mxu0 %v10046_v48  ;;  %v7353_v48 = vld [vmem:[#allocation17 + $0x78] sm:$0xff] }
 0xd93   :  { %8930 = vmatprep.subr.bf16.mxu0 %v10049_v60  ;;  %v7368_v60 = vld [vmem:[#allocation17 + $0xf0] sm:$0xff] }
 0xd94   :  { %8951 = vmatpush3.bf16.msra.mxu1 %v10048_v56  ;;  %v7370_v56 = vld [vmem:[#allocation19] sm:$0xff] }
 0xd95   :  { %8952 = vmatprep.subr.bf16.mxu1 %v10051_v46 }
 0xd96   :  { %8931 = vmatpush3.bf16.msra.mxu0 %v10050_v40  ;;  %v7352_v40 = vld [vmem:[#allocation17 + $0x70] sm:$0xff] }
 0xd97   :  { %8960 = vmatprep.subr.bf16.mxu0 %v10053_v30  ;;  %v7573_v30 = vld [vmem:[#allocation20 + $0xf8] sm:$0xff] }
 0xd98   :  { %8953 = vmatpush3.bf16.msra.mxu1 %v10052_v55  ;;  %v7367_v55 = vld [vmem:[#allocation17 + $0xe8] sm:$0xff] }
 0xd99   :  { %6943 = vmatmul.mubr.bf16.vlgmr.msra.gmra.mxu0 %v6809_v29  ;;  %8982 = vmatprep.subr.mxu1 %v7401_v39  ;;  %v7366_v39 = vld [vmem:[#allocation17 + $0xe0] sm:$0xff] }
 0xd9a   :  { %8961 = vmatpush3.bf16.msra.mxu0 %v10054_v16  ;;  %7310 = vmatprep.mubr.bf16.mxu0 %v7179_v31  ;;  %v7351_v16 = vld [vmem:[#allocation17 + $0x68] sm:$0xff]  ;;  %v7365_v31 = vld [vmem:[#allocation17 + $0xd8] sm:$0xff] }
 0xd9b   :  { %7131 = vmatmul.mubr.bf16.vlgmr.msra.gmra.mxu1 %v6995_v8  ;;  %8962 = vmatprep.subr.bf16.mxu0 %v10055_v12 }
 0xd9c   :  { %8983 = vmatpush3.msra.mxu1 %v7385_v26 }
 0xd9d   :  { %8984 = vmatprep.subr.mxu1 %v7400_v42  ;;  %v7364_v42 = vld [vmem:[#allocation17 + $0xd0] sm:$0xff] }
 0xd9e   :  { %8963 = vmatpush3.bf16.msra.mxu0 %v10056_v5  ;;  %8985 = vmatpush3.msra.mxu1 %v7384_v50  ;;  %v7349_v5 = vld [vmem:[#allocation17 + $0x58] sm:$0xff]  ;;  %v7348_v50 = vld [vmem:[#allocation17 + $0x50] sm:$0xff] }
 0xd9f   :  { %8964 = vmatprep.subr.bf16.mxu0 %v10057_v1  ;;  %8986 = vmatprep.subr.mxu1 %v7399_v28  ;;  %v7363_v28 = vld [vmem:[#allocation17 + $0xc8] sm:$0xff] }
 0xda0   :  { %8987 = vmatpush3.msra.mxu1 %v7383_v0  ;;  %v7347_v0 = vld [vmem:[#allocation17 + $0x48] sm:$0xff] }
 0xda1   :  { %8988 = vmatprep.subr.mxu1 %v7398_v7  ;;  %v7346_v7 = vld [vmem:[#allocation17 + $0x40] sm:$0xff] }
 0xda2   :  { %8965 = vmatpush3.bf16.msra.mxu0 %v10058_v58  ;;  %8989 = vmatpush3.msra.mxu1 %v7382_v10  ;;  %v7362_v58 = vld [vmem:[#allocation17 + $0xc0] sm:$0xff]  ;;  %v7345_v10 = vld [vmem:[#allocation17 + $0x38] sm:$0xff] }
 0xda3   :  { %8966 = vmatprep.subr.bf16.mxu0 %v10059_v25  ;;  %8990 = vmatprep.subr.mxu1 %v7397_v61  ;;  %v7361_v25 = vld [vmem:[#allocation17 + $0xb8] sm:$0xff]  ;;  %v7360_v61 = vld [vmem:[#allocation17 + $0xb0] sm:$0xff] }
 0xda4   :  { %8991 = vmatpush3.msra.mxu1 %v7381_v59  ;;  %v7344_v59 = vld [vmem:[#allocation17 + $0x30] sm:$0xff] }
 0xda5   :  { %8992 = vmatprep.subr.mxu1 %v7396_v63  ;;  %v7343_v63 = vld [vmem:[#allocation17 + $0x28] sm:$0xff] }
 0xda6   :  { %8967 = vmatpush3.bf16.msra.mxu0 %v10060_v62  ;;  %8993 = vmatpush3.msra.mxu1 %v7380_v3  ;;  %v7359_v62 = vld [vmem:[#allocation17 + $0xa8] sm:$0xff]  ;;  %v7342_v3 = vld [vmem:[#allocation17 + $0x20] sm:$0xff] }
 0xda7   :  { %8968 = vmatprep.subr.bf16.mxu0 %v10061_v54  ;;  %8994 = vmatprep.subr.mxu1 %v7395_v32  ;;  %v7358_v54 = vld [vmem:[#allocation17 + $0xa0] sm:$0xff]  ;;  %v7357_v32 = vld [vmem:[#allocation17 + $0x98] sm:$0xff] }
 0xda8   :  { %8995 = vmatpush3.msra.mxu1 %v7379_v51  ;;  %v7341_v51 = vld [vmem:[#allocation17 + $0x18] sm:$0xff] }
 0xda9   :  { %8996 = vmatprep.subr.mxu1 %v7394_v6  ;;  %v7340_v6 = vld [vmem:[#allocation17 + $0x10] sm:$0xff] }
 0xdaa   :  { %8969 = vmatpush3.bf16.msra.mxu0 %v10062_v44  ;;  %8997 = vmatpush3.msra.mxu1 %v7378_v57  ;;  %v7356_v44 = vld [vmem:[#allocation17 + $0x90] sm:$0xff]  ;;  %v7339_v57 = vld [vmem:[#allocation17 + $0x8] sm:$0xff] }
 0xdab   :  { %8970 = vmatprep.subr.bf16.mxu0 %v10063_v11  ;;  %8998 = vmatprep.subr.mxu1 %v7393_v45  ;;  %v7355_v11 = vld [vmem:[#allocation17 + $0x88] sm:$0xff]  ;;  %v7354_v45 = vld [vmem:[#allocation17 + $0x80] sm:$0xff] }
 0xdac   :  { %8999 = vmatpush3.msra.mxu1 %v7377_v49  ;;  %v7338_v49 = vld [vmem:[#allocation17] sm:$0xff] }
 0xdad   :  { %9000 = vmatprep.subr.mxu1 %v7392_v36  ;;  %v7660_v36 = vld [vmem:[#allocation22 + $0x78] sm:$0xff] }
 0xdae   :  { %8971 = vmatpush3.bf16.msra.mxu0 %v10064_v52  ;;  %9001 = vmatpush3.msra.mxu1 %v7376_v35  ;;  %v7676_v52 = vld [vmem:[#allocation22 + $0xf8] sm:$0xff]  ;;  %v7659_v35 = vld [vmem:[#allocation22 + $0x70] sm:$0xff] }
 0xdaf   :  { %8972 = vmatprep.subr.bf16.mxu0 %v10065_v33  ;;  %9002 = vmatprep.subr.mxu1 %v7391_v53  ;;  %v7675_v33 = vld [vmem:[#allocation22 + $0xf0] sm:$0xff]  ;;  %v7674_v53 = vld [vmem:[#allocation22 + $0xe8] sm:$0xff] }
 0xdb0   :  { %9003 = vmatpush3.msra.mxu1 %v7375_v43  ;;  %v7658_v43 = vld [vmem:[#allocation22 + $0x68] sm:$0xff] }
 0xdb1   :  { %9004 = vmatprep.subr.mxu1 %v7390_v19  ;;  %v7657_v19 = vld [vmem:[#allocation22 + $0x60] sm:$0xff] }
 0xdb2   :  { %8973 = vmatpush3.bf16.msra.mxu0 %v10066_v13  ;;  %9005 = vmatpush3.msra.mxu1 %v7374_v4  ;;  %v7673_v13 = vld [vmem:[#allocation22 + $0xe0] sm:$0xff]  ;;  %v7656_v4 = vld [vmem:[#allocation22 + $0x58] sm:$0xff] }
 0xdb3   :  { %8974 = vmatprep.subr.bf16.mxu0 %v10067_v37  ;;  %9006 = vmatprep.subr.mxu1 %v7389_v38  ;;  %v7672_v37 = vld [vmem:[#allocation22 + $0xd8] sm:$0xff]  ;;  %v7671_v38 = vld [vmem:[#allocation22 + $0xd0] sm:$0xff] }
 0xdb4   :  { %9007 = vmatpush3.msra.mxu1 %v7373_v20  ;;  %v7655_v20 = vld [vmem:[#allocation22 + $0x50] sm:$0xff] }
 0xdb5   :  { %9008 = vmatprep.subr.mxu1 %v7388_v15  ;;  %v7654_v15 = vld [vmem:[#allocation22 + $0x48] sm:$0xff] }
 0xdb6   :  { %8975 = vmatpush3.bf16.msra.mxu0 %v10068_v18  ;;  %9009 = vmatpush3.msra.mxu1 %v7372_v9  ;;  %v7670_v18 = vld [vmem:[#allocation22 + $0xc8] sm:$0xff]  ;;  %v7669_v9 = vld [vmem:[#allocation22 + $0xc0] sm:$0xff] }
 0xdb7   :  { %9017 = vmatprep.subr.mxu0 %v7369_v41  ;;  %9010 = vmatprep.subr.mxu1 %v7387_v14  ;;  %v7653_v41 = vld [vmem:[#allocation22 + $0x40] sm:$0xff]  ;;  %v7668_v14 = vld [vmem:[#allocation22 + $0xb8] sm:$0xff] }
 0xdb8   :  { %9011 = vmatpush3.msra.mxu1 %v7371_v47  ;;  %v7652_v47 = vld [vmem:[#allocation22 + $0x38] sm:$0xff] }
 0xdb9   :  { %v13765_v46 = vpop.f32.mrf.mxu0  ;;  %7311 = vmatmul.mubr.bf16.vlgmr.msra.gmra.mxu0 %v13104_v21  ;;  %9012 = vmatprep.subr.mxu1 %v7386_v23  ;;  %v7350_v21 = vld [vmem:[#allocation17 + $0x60] sm:$0xff]  ;;  %v7667_v23 = vld [vmem:[#allocation22 + $0xb0] sm:$0xff] }
 0xdba   :  { %9018 = vmatpush3.msra.mxu0 %v7353_v48  ;;  %7536 = vmatprep.mubr.f32.mxu0 %v13108_v17  ;;  %v7651_v48 = vld [vmem:[#allocation22 + $0x30] sm:$0xff] }
 0xdbb   :  { %v13769_v34 = vpop.f32.mrf.mxu0  ;;  %v13771_v27 = vpop.f32.mrf.mxu1  ;;  %9019 = vmatprep.subr.mxu0 %v7368_v60  ;;  %9013 = vmatpush3.msra.mxu1 %v7370_v56  ;;  %v7666_v60 = vld [vmem:[#allocation22 + $0xa8] sm:$0xff] }
 0xdbc   :  { %9020 = vmatpush3.msra.mxu0 %v7352_v40  ;;  %9052 = vmatprep.subr.mxu1 %v7573_v30  ;;  %v7650_v56 = vld [vmem:[#allocation22 + $0x28] sm:$0xff]  ;;  %v7665_v40 = vld [vmem:[#allocation22 + $0xa0] sm:$0xff] }
 0xdbd   :  { %v5908_v12 = vpop.f32.mrf.mxu0  ;;  %v13773_v29 = vpop.f32.mrf.mxu1  ;;  %9021 = vmatprep.subr.mxu0 %v7367_v55  ;;  %v7649_v30 = vld [vmem:[#allocation22 + $0x20] sm:$0xff]  ;;  %v7664_v55 = vld [vmem:[#allocation22 + $0x98] sm:$0xff] }
 0xdbe   :  { %9022 = vmatpush3.msra.mxu0 %v7351_v16  ;;  %v7648_v16 = vld [vmem:[#allocation22 + $0x18] sm:$0xff]  ;;  %v7647_v12 = vld [vmem:[#allocation22 + $0x10] sm:$0xff] }
 0xdbf   :  { %v5909_v26 = vpop.f32.mrf.mxu0  ;;  %v5949_v8 = vpop.f32.mrf.mxu1  ;;  %9023 = vmatprep.subr.mxu0 %v7366_v39  ;;  %v7663_v39 = vld [vmem:[#allocation22 + $0x90] sm:$0xff] }
 0xdc0   :  { %9024 = vmatpush3.msra.mxu0 %v7350_v21  ;;  %v7662_v21 = vld [vmem:[#allocation22 + $0x88] sm:$0xff]  ;;  %v5905_v26 = vadd.f32 %v13765_v46, %v13632_v22  ;;  %v7661_v8 = vld [vmem:[#allocation22 + $0x80] sm:$0xff] }
 0xdc1   :  { %v5950_v1 = vpop.f32.mrf.mxu1  ;;  %9025 = vmatprep.subr.mxu0 %v7365_v31  ;;  %v7646_v31 = vld [vmem:[#allocation22 + $0x8] sm:$0xff] }
 0xdc2   :  { %9026 = vmatpush3.msra.mxu0 %v7349_v5  ;;  %v7645_v5 = vld [vmem:[#allocation22] sm:$0xff]  ;;  %v5946_v1 = vadd.f32 %v13771_v27, %v5905_v26 }
 0xdc3   :  { %9027 = vmatprep.subr.mxu0 %v7364_v42  ;;  %v5907_v42 = vadd.f32 %v13769_v34, %v13640_v2  ;;  %v7557_v2 = vld [vmem:[#allocation20 + $0x78] sm:$0xff]  ;;  %v7572_v34 = vld [vmem:[#allocation20 + $0xf0] sm:$0xff]  ;;  %v7748_v26 = vld [vmem:[#allocation23] sm:$0xff] }
 0xdc4   :  { %9028 = vmatpush3.msra.mxu0 %v7348_v50 }
 0xdc5   :  { %9029 = vmatprep.subr.mxu0 %v7363_v28  ;;  %v5948_v28 = vadd.f32 %v13773_v29, %v5907_v42 }
 0xdc6   :  { %9030 = vmatpush3.msra.mxu0 %v7347_v0 }
 0xdc7   :  { %9031 = vmatprep.subr.mxu0 %v7362_v58 }
 0xdc8   :  { %9032 = vmatpush3.msra.mxu0 %v7346_v7 }
 0xdc9   :  { %9033 = vmatprep.subr.mxu0 %v7361_v25 }
 0xdca   :  { %9034 = vmatpush3.msra.mxu0 %v7345_v10 }
 0xdcb   :  { %9035 = vmatprep.subr.mxu0 %v7360_v61 }
 0xdcc   :  { %9036 = vmatpush3.msra.mxu0 %v7344_v59 }
 0xdcd   :  { %9037 = vmatprep.subr.mxu0 %v7359_v62 }
 0xdce   :  { %9038 = vmatpush3.msra.mxu0 %v7343_v63 }
 0xdcf   :  { %9039 = vmatprep.subr.mxu0 %v7358_v54 }
 0xdd0   :  { %9040 = vmatpush3.msra.mxu0 %v7342_v3  ;;  %v7556_v3 = vld [vmem:[#allocation20 + $0x70] sm:$0xff] }
 0xdd1   :  { %9041 = vmatprep.subr.mxu0 %v7357_v32  ;;  %v7571_v32 = vld [vmem:[#allocation20 + $0xe8] sm:$0xff] }
 0xdd2   :  { %9042 = vmatpush3.msra.mxu0 %v7341_v51 }
 0xdd3   :  { %9043 = vmatprep.subr.mxu0 %v7356_v44  ;;  %v7555_v44 = vld [vmem:[#allocation20 + $0x68] sm:$0xff] }
 0xdd4   :  { %9044 = vmatpush3.msra.mxu0 %v7340_v6  ;;  %v7570_v6 = vld [vmem:[#allocation20 + $0xe0] sm:$0xff] }
 0xdd5   :  { %9045 = vmatprep.subr.mxu0 %v7355_v11  ;;  %v7554_v11 = vld [vmem:[#allocation20 + $0x60] sm:$0xff] }
 0xdd6   :  { %9046 = vmatpush3.msra.mxu0 %v7339_v57  ;;  %v10842_v57 = vmov 0.0  }
 0xdd7   :  { %9047 = vmatprep.subr.mxu0 %v7354_v45  ;;  %v7553_v45 = vld [vmem:[#allocation20 + $0x58] sm:$0xff] }
 0xdd8   :  { %9048 = vmatpush3.msra.mxu0 %v7338_v49  ;;  %v7568_v49 = vld [vmem:[#allocation20 + $0xd0] sm:$0xff] }
 0xdd9   :  { %7537 = vmatmul.mubr.f32.vlgmr.msra.gmra.mxu0 %v13078_v24  ;;  %9087 = vmatprep.subr.mxu0 %v7676_v52  ;;  %v7552_v52 = vld [vmem:[#allocation20 + $0x50] sm:$0xff] }
 0xdda   :  { %9088 = vmatpush3.msra.mxu0 %v7660_v36  ;;  %v7567_v36 = vld [vmem:[#allocation20 + $0xc8] sm:$0xff] }
 0xddb   :  { %9089 = vmatprep.subr.mxu0 %v7675_v33  ;;  %v7551_v33 = vld [vmem:[#allocation20 + $0x48] sm:$0xff] }
 0xddc   :  { %9090 = vmatpush3.msra.mxu0 %v7659_v35  ;;  %v7566_v35 = vld [vmem:[#allocation20 + $0xc0] sm:$0xff] }
 0xddd   :  { %9091 = vmatprep.subr.mxu0 %v7674_v53  ;;  %v7550_v53 = vld [vmem:[#allocation20 + $0x40] sm:$0xff] }
 0xdde   :  { %9092 = vmatpush3.msra.mxu0 %v7658_v43  ;;  %v7565_v43 = vld [vmem:[#allocation20 + $0xb8] sm:$0xff] }
 0xddf   :  { %9093 = vmatprep.subr.mxu0 %v7673_v13  ;;  %v7549_v13 = vld [vmem:[#allocation20 + $0x38] sm:$0xff] }
 0xde0   :  { %9094 = vmatpush3.msra.mxu0 %v7657_v19  ;;  %v7564_v19 = vld [vmem:[#allocation20 + $0xb0] sm:$0xff] }
 0xde1   :  { %9095 = vmatprep.subr.mxu0 %v7672_v37  ;;  %v7548_v37 = vld [vmem:[#allocation20 + $0x30] sm:$0xff] }
 0xde2   :  { %9096 = vmatpush3.msra.mxu0 %v7656_v4  ;;  %v7563_v4 = vld [vmem:[#allocation20 + $0xa8] sm:$0xff] }
 0xde3   :  { %9097 = vmatprep.subr.mxu0 %v7671_v38  ;;  %v7547_v38 = vld [vmem:[#allocation20 + $0x28] sm:$0xff] }
 0xde4   :  { %9098 = vmatpush3.msra.mxu0 %v7655_v20  ;;  %v7562_v20 = vld [vmem:[#allocation20 + $0xa0] sm:$0xff] }
 0xde5   :  { %9099 = vmatprep.subr.mxu0 %v7670_v18  ;;  %v7546_v18 = vld [vmem:[#allocation20 + $0x20] sm:$0xff] }
 0xde6   :  { %9100 = vmatpush3.msra.mxu0 %v7654_v15  ;;  %v7561_v15 = vld [vmem:[#allocation20 + $0x98] sm:$0xff] }
 0xde7   :  { %9101 = vmatprep.subr.mxu0 %v7669_v9  ;;  %v7545_v9 = vld [vmem:[#allocation20 + $0x18] sm:$0xff] }
 0xde8   :  { %9102 = vmatpush3.msra.mxu0 %v7653_v41  ;;  %v7560_v41 = vld [vmem:[#allocation20 + $0x90] sm:$0xff] }
 0xde9   :  { %9103 = vmatprep.subr.mxu0 %v7668_v14  ;;  %v7544_v14 = vld [vmem:[#allocation20 + $0x10] sm:$0xff] }
 0xdea   :  { %9104 = vmatpush3.msra.mxu0 %v7652_v47  ;;  %v7559_v47 = vld [vmem:[#allocation20 + $0x88] sm:$0xff] }
 0xdeb   :  { %9105 = vmatprep.subr.mxu0 %v7667_v23 }
 0xdec   :  { %9106 = vmatpush3.msra.mxu0 %v7651_v48  ;;  %v7543_v48 = vld [vmem:[#allocation20 + $0x8] sm:$0xff] }
 0xded   :  { %9107 = vmatprep.subr.mxu0 %v7666_v60  ;;  %v7558_v60 = vld [vmem:[#allocation20 + $0x80] sm:$0xff] }
 0xdee   :  { %9108 = vmatpush3.msra.mxu0 %v7650_v56  ;;  %v7542_v56 = vld [vmem:[#allocation20] sm:$0xff] }
 0xdef   :  { %9109 = vmatprep.subr.mxu0 %v7665_v40 }
 0xdf0   :  { %9110 = vmatpush3.msra.mxu0 %v7649_v30  ;;  %v7756_v30 = vld [vmem:[#allocation23 + $0x40] sm:$0x3f] }
 0xdf1   :  { %9111 = vmatprep.subr.mxu0 %v7664_v55  ;;  %v7755_v55 = vld [vmem:[#allocation23 + $0x38] sm:$0xff] }
 0xdf2   :  { %9112 = vmatpush3.msra.mxu0 %v7648_v16  ;;  %v7753_v16 = vld [vmem:[#allocation23 + $0x28] sm:$0xff] }
 0xdf3   :  { %9113 = vmatprep.subr.mxu0 %v7663_v39  ;;  %v7752_v39 = vld [vmem:[#allocation23 + $0x20] sm:$0xff] }
 0xdf4   :  { %9114 = vmatpush3.msra.mxu0 %v7647_v12  ;;  %v7751_v12 = vld [vmem:[#allocation23 + $0x18] sm:$0xff] }
 0xdf5   :  { %9115 = vmatprep.subr.mxu0 %v7662_v21  ;;  %v7750_v21 = vld [vmem:[#allocation23 + $0x10] sm:$0xff] }
 0xdf6   :  { %9116 = vmatpush3.msra.mxu0 %v7646_v31  ;;  %v7749_v31 = vld [vmem:[#allocation23 + $0x8] sm:$0xff] }
 0xdf7   :  { %9117 = vmatprep.subr.mxu0 %v7661_v8 }
 0xdf8   :  { %9118 = vmatpush3.msra.mxu0 %v7645_v5 }
 0xdf9   :  { %v5986_v50 = vpop.f32.mrf.mxu0  ;;  %9170 = vmatprep.subr.mxu0 %v10842_v57 }
 0xdfa   :  { %v5987_v0 = vadd.f32 %v5986_v50, %v5946_v1 }
 0xdfb   :  { %v5988_v58 = vpop.f32.mrf.mxu0  ;;  %v6027_v7 = vpop.f32.mrf.mxu1 }
 0xdfc   :  { %v5989_v25 = vadd.f32 %v5988_v58, %v5948_v28  ;;  %v13782_v22 = vadd.f32 %v6027_v7, %v5987_v0 }
 0xdfd   :  { %v5990_v46 = vpop.f32.mrf.mxu0  ;;  %v6029_v10 = vpop.f32.mrf.mxu1 }
 0xdfe   :  { %v6030_v61 = vadd.f32 %v6029_v10, %v5989_v25  ;;  %v7336_v29 = vmul.f32 %v13782_v22, %v13078_v24  ;;  %v7332_v23 = vsub.f32 %v13782_v22, %v13078_v24  ;;  %v7754_v24 = vld [vmem:[#allocation23 + $0x30] sm:$0xff] }
 0xdff   :  { %v5991_v59 = vpop.f32.mrf.mxu0  ;;  %v6031_v62 = vpop.f32.mrf.mxu1 }
 0xe00   :  { %7466 = vmatprep.mubr.f32.mxu1 %v6030_v61  ;;  %v7337_v27 = vmul.f32 %v6030_v61, %v13108_v17  ;;  %v7333_v63 = vsub.f32 %v6030_v61, %v13108_v17  ;;  %v7569_v17 = vld [vmem:[#allocation20 + $0xd8] sm:$0xff]  ;;  %v7334_v40 = vand.u32 2147483647, %v7332_v23 }
 0xe01   :  { %v6032_v54 = vpop.f32.mrf.mxu1  ;;  %7467 = vmatmul.mubr.f32.vlgmr.msra.gmra.mxu1 %v13782_v22 }
 0xe02   :  { %9053 = vmatpush3.msra.mxu1 %v7557_v2  ;;  %7741 = vmatprep.mubr.f32.mxu0 %v7337_v27  ;;  %v7335_v51 = vand.u32 2147483647, %v7333_v63 }
 0xe03   :  { %9054 = vmatprep.subr.mxu1 %v7572_v34  ;;  %7742 = vmatmul.mubr.f32.vlgmr.msra.gmra.mxu0 %v7336_v29  ;;  %v6049_v34 = vld [vmem:[%s13896_s18] sm:$0xff]  ;;  %v6050_v29 = vld [vmem:[%s13896_s18 + $0x8] sm:$0x3f] }
 0xe04   :  { %9055 = vmatpush3.msra.mxu1 %v7556_v3  ;;  %7638 = vmatprep.mubr.f32.mxu1 %v7335_v51 }
 0xe05   :  { %9056 = vmatprep.subr.mxu1 %v7571_v32  ;;  %9202 = vmatprep.mubr.msk.f32.mxu0 %vm10843_vm10, %v10842_v57 }
 0xe06   :  { %9057 = vmatpush3.msra.mxu1 %v7555_v44 }
 0xe07   :  { %9058 = vmatprep.subr.mxu1 %v7570_v6 }
 0xe08   :  { %9059 = vmatpush3.msra.mxu1 %v7554_v11 }
 0xe09   :  { %9060 = vmatprep.subr.mxu1 %v7569_v17 }
 0xe0a   :  { %9061 = vmatpush3.msra.mxu1 %v7553_v45 }
 0xe0b   :  { %9062 = vmatprep.subr.mxu1 %v7568_v49 }
 0xe0c   :  { %9063 = vmatpush3.msra.mxu1 %v7552_v52 }
 0xe0d   :  { %9064 = vmatprep.subr.mxu1 %v7567_v36 }
 0xe0e   :  { %9065 = vmatpush3.msra.mxu1 %v7551_v33 }
 0xe0f   :  { %9066 = vmatprep.subr.mxu1 %v7566_v35 }
 0xe10   :  { %9067 = vmatpush3.msra.mxu1 %v7550_v53 }
 0xe11   :  { %9068 = vmatprep.subr.mxu1 %v7565_v43 }
 0xe12   :  { %9069 = vmatpush3.msra.mxu1 %v7549_v13 }
 0xe13   :  { %9070 = vmatprep.subr.mxu1 %v7564_v19 }
 0xe14   :  { %9071 = vmatpush3.msra.mxu1 %v7548_v37 }
 0xe15   :  { %9072 = vmatprep.subr.mxu1 %v7563_v4 }
 0xe16   :  { %9073 = vmatpush3.msra.mxu1 %v7547_v38 }
 0xe17   :  { %9074 = vmatprep.subr.mxu1 %v7562_v20 }
 0xe18   :  { %9075 = vmatpush3.msra.mxu1 %v7546_v18 }
 0xe19   :  { %9076 = vmatprep.subr.mxu1 %v7561_v15  ;;  %v8844_v8 = vpop.f32.mrf.mxu0 }
 0xe1a   :  { %9077 = vmatpush3.msra.mxu1 %v7545_v9 }
 0xe1b   :  { %9078 = vmatprep.subr.mxu1 %v7560_v41  ;;  %v8845_v5 = vpop.f32.mrf.mxu0  ;;  %v8866_v42 = vpop.f32.mrf.mxu1 }
 0xe1c   :  { %9079 = vmatpush3.msra.mxu1 %v7544_v14  ;;  %v8846_v2 = vadd.f32 %v8845_v5, %v8844_v8 }
 0xe1d   :  { %9080 = vmatprep.subr.mxu1 %v7559_v47  ;;  %v8847_v1 = vpop.f32.mrf.mxu0  ;;  %v8867_v50 = vpop.f32.mrf.mxu1 }
 0xe1e   :  { %9081 = vmatpush3.msra.mxu1 %v7543_v48  ;;  %v6220_v32 = vadd.f32 %v8846_v2, %v6049_v34  ;;  %v8868_v51 = vadd.f32 %v8867_v50, %v8866_v42  ;;  %v7858_v50 = vld [vmem:[%s13903_s25 + $0x78] sm:$0xff]  ;;  %v7845_v34 = vld [vmem:[%s13903_s25 + $0x10] sm:$0xff] }
 0xe1f   :  { %9082 = vmatprep.subr.mxu1 %v7558_v60  ;;  %v8848_v28 = vpop.f32.mrf.mxu0  ;;  %v8869_v0 = vpop.f32.mrf.mxu1  ;;  %9171 = vmatpush3.msra.mxu0 %v7858_v50  ;;  %v7846_v2 = vld [vmem:[%s13903_s25 + $0x18] sm:$0xff] }
 0xe20   :  { %9083 = vmatpush3.msra.mxu1 %v7542_v56  ;;  %v8849_v63 = vadd.f32 %v8848_v28, %v8847_v1  ;;  %v6406_v49 = vadd.f32 %v8868_v51, %v6220_v32  ;;  %9172 = vmatprep.subr.mxu0 %v10842_v57  ;;  %v7857_v28 = vld [vmem:[%s13903_s25 + $0x70] sm:$0xff] }
 0xe21   :  { %7639 = vmatmul.mubr.f32.vlgmr.msra.gmra.mxu1 %v7334_v40  ;;  %9149 = vmatprep.subr.mxu1 %v10842_v57  ;;  %v8870_v7 = vpop.f32.mrf.mxu1 }
 0xe22   :  { %9150 = vmatpush3.msk.msra.mxu1 %vm6806_vm8, %v7756_v30  ;;  %9167 = vmatprep.mubr.msk.f32.mxu1 %vm10843_vm10, %v10842_v57  ;;  %v6221_v44 = vadd.f32 %v8849_v63, %v6050_v29  ;;  %v8871_v6 = vadd.f32 %v8870_v7, %v8869_v0  ;;  %v7856_v0 = vld [vmem:[%s13903_s25 + $0x68] sm:$0xff]  ;;  %v7854_v7 = vld [vmem:[%s13903_s25 + $0x58] sm:$0xff]  ;;  %v7843_v63 = vld [vmem:[%s13903_s25] sm:$0xff] }
 0xe23   :  { %9151 = vmatprep.subr.mxu1 %v10842_v57  ;;  %9173 = vmatpush3.msra.mxu0 %v7857_v28 }
 0xe24   :  { %9152 = vmatpush3.msra.mxu1 %v7755_v55  ;;  %v6407_v36 = vadd.f32 %v8871_v6, %v6221_v44  ;;  %9174 = vmatprep.subr.mxu0 %v10842_v57 }
 0xe25   :  { %9153 = vmatprep.subr.mxu1 %v10842_v57  ;;  %9175 = vmatpush3.msra.mxu0 %v7856_v0 }
 0xe26   :  { %9154 = vmatpush3.msra.mxu1 %v7754_v24  ;;  %9176 = vmatprep.subr.mxu0 %v10842_v57 }
 0xe27   :  { %9155 = vmatprep.subr.mxu1 %v10842_v57 }
 0xe28   :  { %9156 = vmatpush3.msra.mxu1 %v7753_v16 }
 0xe29   :  { %9157 = vmatprep.subr.mxu1 %v10842_v57 }
 0xe2a   :  { %9158 = vmatpush3.msra.mxu1 %v7752_v39 }
 0xe2b   :  { %9159 = vmatprep.subr.mxu1 %v10842_v57 }
 0xe2c   :  { %9160 = vmatpush3.msra.mxu1 %v7751_v12 }
 0xe2d   :  { %9161 = vmatprep.subr.mxu1 %v10842_v57 }
 0xe2e   :  { %9162 = vmatpush3.msra.mxu1 %v7750_v21 }
 0xe2f   :  { %9163 = vmatprep.subr.mxu1 %v10842_v57 }
 0xe30   :  { %9164 = vmatpush3.msra.mxu1 %v7749_v31 }
 0xe31   :  { %9165 = vmatprep.subr.mxu1 %v10842_v57 }
 0xe32   :  { %9166 = vmatpush3.msra.mxu1 %v7748_v26 }
 0xe39   :  { %v8888_v58 = vpop.f32.mrf.mxu0 }
 0xe3b   :  { %v8889_v25 = vpop.f32.mrf.mxu0  ;;  %v8910_v22 = vpop.f32.mrf.mxu1 }
 0xe3c   :  { %v8890_v11 = vadd.f32 %v8889_v25, %v8888_v58  ;;  %v7855_v58 = vld [vmem:[%s13903_s25 + $0x60] sm:$0xff]  ;;  %v7853_v25 = vld [vmem:[%s13903_s25 + $0x50] sm:$0xff] }
 0xe3d   :  { %v8891_v46 = vpop.f32.mrf.mxu0  ;;  %v8911_v10 = vpop.f32.mrf.mxu1  ;;  %9177 = vmatpush3.msra.mxu0 %v7855_v58 }
 0xe3e   :  { %v6584_v33 = vadd.f32 %v8890_v11, %v6406_v49  ;;  %v8912_v35 = vadd.f32 %v8911_v10, %v8910_v22  ;;  %9178 = vmatprep.subr.mxu0 %v10842_v57  ;;  %v7852_v22 = vld [vmem:[%s13903_s25 + $0x48] sm:$0xff]  ;;  %v7850_v10 = vld [vmem:[%s13903_s25 + $0x38] sm:$0xff] }
 0xe3f   :  { %v8892_v61 = vpop.f32.mrf.mxu0  ;;  %v8913_v59 = vpop.f32.mrf.mxu1  ;;  %9179 = vmatpush3.msra.mxu0 %v7854_v7 }
 0xe40   :  { %v8893_v52 = vadd.f32 %v8892_v61, %v8891_v46  ;;  %v6770_v4 = vadd.f32 %v8912_v35, %v6584_v33  ;;  %9180 = vmatprep.subr.mxu0 %v10842_v57  ;;  %v7851_v46 = vld [vmem:[%s13903_s25 + $0x40] sm:$0xff]  ;;  %v7849_v61 = vld [vmem:[%s13903_s25 + $0x30] sm:$0xff] }
 0xe41   :  { %v8914_v27 = vpop.f32.mrf.mxu1  ;;  %9181 = vmatpush3.msra.mxu0 %v7853_v25 }
 0xe42   :  { %v6585_v13 = vadd.f32 %v8893_v52, %v6407_v36  ;;  %v8915_v19 = vadd.f32 %v8914_v27, %v8913_v59  ;;  %9182 = vmatprep.subr.mxu0 %v10842_v57  ;;  %v7848_v59 = vld [vmem:[%s13903_s25 + $0x28] sm:$0xff] }
 0xe43   :  { %9183 = vmatpush3.msra.mxu0 %v7852_v22  ;;  %v7844_v27 = vld [vmem:[%s13903_s25 + $0x8] sm:$0xff] }
 0xe44   :  { %v6771_v15 = vadd.f32 %v8915_v19, %v6585_v13  ;;  %9184 = vmatprep.subr.mxu0 %v10842_v57 }
 0xe45   :  { %9185 = vmatpush3.msra.mxu0 %v7851_v46 }
 0xe46   :  { %9186 = vmatprep.subr.mxu0 %v10842_v57 }
 0xe47   :  { %9187 = vmatpush3.msra.mxu0 %v7850_v10 }
 0xe48   :  { %9188 = vmatprep.subr.mxu0 %v10842_v57 }
 0xe49   :  { %9189 = vmatpush3.msra.mxu0 %v7849_v61 }
 0xe4a   :  { %9190 = vmatprep.subr.mxu0 %v10842_v57 }
 0xe4b   :  { %9191 = vmatpush3.msra.mxu0 %v7848_v59 }
 0xe4c   :  { %9192 = vmatprep.subr.mxu0 %v10842_v57 }
 0xe59   :  { %v8932_v62 = vpop.f32.mrf.mxu0 }
 0xe5b   :  { %v8933_v54 = vpop.f32.mrf.mxu0  ;;  %v8954_v3 = vpop.f32.mrf.mxu1 }
 0xe5c   :  { %v8934_v37 = vadd.f32 %v8933_v54, %v8932_v62  ;;  %v7847_v62 = vld [vmem:[%s13903_s25 + $0x20] sm:$0xff]  ;;  %s10844_s25 = smov [#allocation28]  }
 0xe5d   :  { %v8935_v17 = vpop.f32.mrf.mxu0  ;;  %v8955_v45 = vpop.f32.mrf.mxu1  ;;  %9193 = vmatpush3.msra.mxu0 %v7847_v62  ;;  %s7938_s24 = sshll.u32 %s10844_s25, 4  ;;  %s7939_s24 = int_to_ptr.vmem [resolvable:$true] %s7938_s24 }
 0xe5e   :  { %v6951_v9 = vadd.f32 %v8934_v37, %v6770_v4  ;;  %v8956_v41 = vadd.f32 %v8955_v45, %v8954_v3  ;;  %9194 = vmatprep.subr.mxu0 %v10842_v57  ;;  %s10781_s26 = scalar_lea.vmem %s7939_s24, 16  ;;  %s10785_s4 = scalar_lea.vmem %s7939_s24, 32 }
 0xe5f   :  { %v8936_v53 = vpop.f32.mrf.mxu0  ;;  %v8957_v43 = vpop.f32.mrf.mxu1  ;;  %9195 = vmatpush3.msra.mxu0 %v7846_v2  ;;  %p10782_p10 = scmp.ne.s32.totalorder %s7939_s24, %s10781_s26  ;;  %p10786_p11 = scmp.lt.s32.totalorder %s7939_s24, %s7939_s24 }
 0xe60   :  { %v8937_v38 = vadd.f32 %v8936_v53, %v8935_v17  ;;  %v7139_v56 = vadd.f32 %v8956_v41, %v6951_v9  ;;  %9196 = vmatprep.subr.mxu0 %v10842_v57  ;;  %p10787_p12 = scmp.lt.s32.totalorder %s10785_s4, %s10781_s26 }
 0xe61   :  { %v8958_v20 = vpop.f32.mrf.mxu1  ;;  %9197 = vmatpush3.msra.mxu0 %v7845_v34 }
 0xe62   :  { %v6952_v47 = vadd.f32 %v8937_v38, %v6771_v15  ;;  %v8959_v23 = vadd.f32 %v8958_v20, %v8957_v43  ;;  %9198 = vmatprep.subr.mxu0 %v10842_v57  ;;  %v7835_v43 = vld [vmem:[#allocation25] sm:$0x1]  ;;  %p10788_p13 = por %p10787_p12, %p10786_p11 }
 0xe63   :  { %9199 = vmatpush3.msra.mxu0 %v7844_v27 }
 0xe64   :  { %v7140_v30 = vadd.f32 %v8959_v23, %v6952_v47  ;;  %9200 = vmatprep.subr.mxu0 %v10842_v57  ;;  %p10789_p0 = pnand %p10788_p13, %p10782_p10 }
 0xe65   :  { %9201 = vmatpush3.msra.mxu0 %v7843_v63 }
 0xe79   :  { %v8976_v18 = vpop.f32.mrf.mxu0 }
 0xe7b   :  { %v8977_v14 = vpop.f32.mrf.mxu0 }
 0xe7c   :  { %v8978_v48 = vadd.f32 %v8977_v14, %v8976_v18  ;;  %v7859_v18 = vld [vmem:[#allocation26] sm:$0x1] }
 0xe7d   :  { %v8979_v60 = vpop.f32.mrf.mxu0 }
 0xe7e   :  { %v7319_v55 = vadd.f32 %v8978_v48, %v7139_v56 }
 0xe7f   :  { %v8980_v40 = vpop.f32.mrf.mxu0 }
 0xe80   :  { %v8981_v24 = vadd.f32 %v8980_v40, %v8979_v60  ;;  %v7322_v39 = vsel %vm7321_vm11, %v7319_v55, -inf }
 0xe82   :  { %v7320_v16 = vadd.f32 %v8981_v24, %v7140_v30 }
 0xe84   :  { %v7324_v12 = vsel %vm7323_vm12, %v7320_v16, -inf }
 0xe85   :  { %v7325_v21 = vmax.f32 %v7322_v39, %v7324_v12 }
 0xe87   :  { %v7326_v31 = vrot.slane %v7325_v21, 4 }
 0xe89   :  { %v7327_v26 = vmax.f32 %v7325_v21, %v7326_v31 }
 0xe8b   :  { %v7328_v8 = vrot.slane %v7327_v26, 2 }
 0xe8d   :  { %v7329_v5 = vmax.f32 %v7327_v26, %v7328_v8 }
 0xe8f   :  { %v7330_v42 = vrot.slane %v7329_v5, 1 }
 0xe91   :  { %v7331_v1 = vmax.f32 %v7329_v5, %v7330_v42 }
 0xe93   :  { %9168 = vmatmul.mubr.msk.f32.vlgmr.msra.gmra.mxu1 %vm7321_vm11, %v7331_v1 }
 0xe99   :  { %v9049_v3 = vpop.f32.mrf.mxu0 }
 0xe9b   :  { %v9050_v51 = vpop.f32.mrf.mxu0 }
 0xe9c   :  { %v9051_v17 = vadd.f32 %v9050_v51, %v9049_v3 }
 0xec1   :  { %v9014_v29 = vpop.f32.mrf.mxu1 }
 0xec3   :  { %v9015_v54 = vpop.f32.mrf.mxu1  ;;  %v9119_v11 = vpop.f32.mrf.mxu0 }
 0xec4   :  { %v9016_v6 = vadd.f32 %v9015_v54, %v9014_v29 }
 0xec5   :  { %v9120_v52 = vpop.f32.mrf.mxu0 }
 0xec6   :  { %v7539_v49 = vadd.f32 %v9051_v17, %v9016_v6  ;;  %v9121_v33 = vadd.f32 %v9120_v52, %v9119_v11 }
 0xee1   :  { %v9084_v32 = vpop.f32.mrf.mxu1 }
 0xee3   :  { %v9085_v44 = vpop.f32.mrf.mxu1 }
 0xee4   :  { %v9086_v45 = vadd.f32 %v9085_v44, %v9084_v32 }
 0xee6   :  { %v7644_v36 = vadd.f32 %v9086_v45, %v7539_v49 }
 0xee8   :  { %v7747_v35 = vadd.f32 %v9121_v33, %v7644_v36 }
 0xf53   :  { %v7830_v53 = vpop.f32.mrf.mxu1 }
 0xf54   :  { %v7834_v13 = vadd.f32 %v7830_v53, %v7747_v35 }
 0xf55   :  { %v9169_v57 = vpop.f32.mrf.mxu1 }
 0xf56   :  { %v7836_v19 = vadd.f32 %v7835_v43, %v7834_v13 }
 0xf58   :  { %v8827_v37 = vmul.f32 -1.442695, %v7836_v19 }
 0xf5a   :  { %10329 = vpow2.f32 %v8827_v37 }
 0xf67   :  { %v10330_v4 = vpop.eup %10329 }
 0xf68   :  { %v7840_v38 = vadd.f32 1.0, %v10330_v4 }
 0xf6a   :  { %10331 = vrcp.f32 %v7840_v38 }
 0xf77   :  { %v10332_v20 = vpop.eup %10331 }
 0xf78   :  { %9203 = vmatmul.mubr.f32.vlgmr.msra.gmra.mxu0 %v10332_v20 }
0x1038   :  { %v7926_v15 = vpop.f32.mrf.mxu0 }
0x1039   :  { %v7927_v9 = vadd.f32 %v7926_v15, %v7859_v18 }
0x103a   :  { %v9204_v41 = vpop.f32.mrf.mxu0 }
0x103b   :  { %7931 = vst.msk [vmem:[#allocation28] sm:$0x1] %vm7930_vm13, %v7927_v9 }
0x103c   :  { %10792 = shalt.err (!%p10789_p0)
}
0x103d   :  { %7941 = dma.vmem_to_hbm [thread:$0]  %s7939_s24, 16, %s13905_s27, [#allocation4]  }
0x103e   :  { %10819 = dma.done.wait [#allocation4], 16  }
0x103f   :  { %10820 = vsyncadd [#allocation4], 4294967280 }
0x1040   :  { %7945 = vsyncpa [#allocation3], 1 }
0x1041   :  { %7946 = vsyncpa [#allocation6], 1 }
0x1042   :  { %7947 = vsyncpa [#allocation9], 1 }
0x1043   :  { %7948 = vsyncpa [#allocation12], 1 }
0x1044   :  { %7949 = vsyncpa [#allocation15], 1 }
0x1045   :  { %7950 = vsyncpa [#allocation18], 1 }
0x1046   :  { %7951 = vsyncpa [#allocation21], 1 }
0x1047   :  { %7952 = vsyncpa [#allocation24], 1 }
0x1048   :  { %7953 = vsyncpa [#allocation27], 1 }
0x1049   :  { %7954 = vsyncpa [#allocation4], 1 }

</bundles_post_ra>
